<compile_context>
chip_gen: v6e
topology: v6e:2x2x1
jax: 0.10.0
libtpu: 0.0.40
codegen_flags: <defaults>
</compile_context>

<pallas_src>
import functools

import jax
import jax.numpy as jnp
from jax.experimental import pallas as pl
from jax.experimental.pallas import tpu as pltpu

NOISE_DIM = 100


def _round_up(x, m):
    return (x + m - 1) // m * m


# --------------------------------------------------------------------------
# Batched (phase-axis) tiled matmul: out[p] = x[p] @ w[p] (+ bias) (+ tanh)
# Grid = (P, M/tm, N/tn, K/tk), K innermost, f32 accumulator in VMEM scratch.
# x, w are bf16; accumulate in f32; cast in the epilogue.
# --------------------------------------------------------------------------
def fused_matmul(x, w, bias=None, act=None, out_dtype=jnp.bfloat16,
                 tm=512, tn=256, tk=512):
    P, M, K = x.shape
    Pw, Kw, N = w.shape
    assert Pw == P and Kw >= K

    if Kw > K:                                   # fc: K=100 -> 128 (weights pre-padded)
        x = jnp.pad(x, ((0, 0), (0, 0), (0, Kw - K)))

    tm = min(tm, _round_up(M, 8))
    tk = min(tk, Kw)
    tn = min(tn, N)
    assert Kw % tk == 0 and N % tn == 0, (Kw, tk, N, tn)

    Mp = _round_up(M, tm)
    if Mp > M:
        x = jnp.pad(x, ((0, 0), (0, Mp - M), (0, 0)))

    has_bias = bias is not None

    def kernel(*refs):
        if has_bias:
            x_ref, w_ref, b_ref, o_ref, acc_ref = refs
        else:
            x_ref, w_ref, o_ref, acc_ref = refs
            b_ref = None

        @pl.when(pl.program_id(3) == 0)
        def _():
            acc_ref[...] = jnp.zeros_like(acc_ref)

        acc_ref[...] += jnp.dot(x_ref[...], w_ref[...],
                                preferred_element_type=jnp.float32)

        @pl.when(pl.program_id(3) == pl.num_programs(3) - 1)
        def _():
            y = acc_ref[...]
            if has_bias:
                y = y + b_ref[...]
            if act == "tanh":
                y = jnp.tanh(y)
            o_ref[...] = y.astype(o_ref.dtype)

    in_specs = [
        pl.BlockSpec((None, tm, tk), lambda p, i, j, k: (p, i, k)),
        pl.BlockSpec((None, tk, tn), lambda p, i, j, k: (p, k, j)),
    ]
    args = [x, w]
    if has_bias:
        in_specs.append(pl.BlockSpec((1, tn), lambda p, i, j, k: (0, j)))
        args.append(bias)

    out = pl.pallas_call(
        kernel,
        out_shape=jax.ShapeDtypeStruct((P, Mp, N), out_dtype),
        grid_spec=pltpu.PrefetchScalarGridSpec(
            num_scalar_prefetch=0,
            grid=(P, Mp // tm, N // tn, Kw // tk),
            in_specs=in_specs,
            out_specs=pl.BlockSpec((None, tm, tn), lambda p, i, j, k: (p, i, j)),
            scratch_shapes=[pltpu.VMEM((tm, tn), jnp.float32)],
        ),
        compiler_params=pltpu.CompilerParams(
            dimension_semantics=("parallel", "parallel", "parallel", "arbitrary")),
    )(*args)
    return out[:, :M, :] if Mp > M else out


# --------------------------------------------------------------------------
# Tiled two-pass BatchNorm (training-mode batch statistics over all rows).
# Pass 1: per-channel sum / sum-of-squares, accumulated over a 1-D grid.
# Pass 2: tiled normalize (+ optional ReLU).
# --------------------------------------------------------------------------
def _bn_stats_kernel(x_ref, s_ref):
    @pl.when(pl.program_id(0) == 0)
    def _():
        s_ref[...] = jnp.zeros_like(s_ref)

    x = x_ref[...].astype(jnp.float32)
    s_ref[...] += jnp.concatenate(
        [jnp.sum(x, axis=0, keepdims=True),
         jnp.sum(x * x, axis=0, keepdims=True)], axis=0)


def batch_stats(x, tmb=1024):
    M, C = x.shape
    tmb = min(tmb, _round_up(M, 8))
    Mp = _round_up(M, tmb)
    xp = jnp.pad(x, ((0, Mp - M), (0, 0))) if Mp > M else x   # zero rows: safe for sums
    sums = pl.pallas_call(
        _bn_stats_kernel,
        out_shape=jax.ShapeDtypeStruct((2, C), jnp.float32),
        grid=(Mp // tmb,),
        in_specs=[pl.BlockSpec((tmb, C), lambda i: (i, 0))],
        out_specs=pl.BlockSpec((2, C), lambda i: (0, 0)),
        compiler_params=pltpu.CompilerParams(dimension_semantics=("arbitrary",)),
    )(xp)
    mean = sums[0] / M
    var = sums[1] / M - mean * mean
    return mean, var


def _bn_apply_kernel(x_ref, sc_ref, sh_ref, o_ref, *, relu):
    y = x_ref[...].astype(jnp.float32) * sc_ref[...] + sh_ref[...]
    if relu:
        y = jnp.maximum(y, 0.0)
    o_ref[...] = y.astype(o_ref.dtype)


def bn_apply(x, scale, shift, relu, out_dtype=jnp.bfloat16, tmb=1024):
    M, C = x.shape
    tmb = min(tmb, _round_up(M, 8))
    Mp = _round_up(M, tmb)
    xp = jnp.pad(x, ((0, Mp - M), (0, 0))) if Mp > M else x
    out = pl.pallas_call(
        functools.partial(_bn_apply_kernel, relu=relu),
        out_shape=jax.ShapeDtypeStruct((Mp, C), out_dtype),
        grid=(Mp // tmb,),
        in_specs=[pl.BlockSpec((tmb, C), lambda i: (i, 0)),
                  pl.BlockSpec((1, C), lambda i: (0, 0)),
                  pl.BlockSpec((1, C), lambda i: (0, 0))],
        out_specs=pl.BlockSpec((tmb, C), lambda i: (i, 0)),
        compiler_params=pltpu.CompilerParams(dimension_semantics=("parallel",)),
    )(xp, scale[None, :], shift[None, :])
    return out[:M] if Mp > M else out


def batchnorm(x2d, gamma, beta, relu, eps=1e-5, out_dtype=jnp.bfloat16):
    mean, var = batch_stats(x2d)
    scale = gamma.astype(jnp.float32) * jax.lax.rsqrt(var + eps)
    shift = beta.astype(jnp.float32) - mean * scale
    return bn_apply(x2d, scale, shift, relu, out_dtype)


# --------------------------------------------------------------------------
# 4-phase (sub-pixel) decomposition of ConvTranspose2d(k=4, s=2, p=1).
# Output pixel (2m+py, 2n+px) = sum over a dense 2x2 input window with the
# phase-specific kernel taps w[:, :, 3-py-2*dy, 3-px-2*dx].
# --------------------------------------------------------------------------
def _phase_weights(w):
    """PyTorch ConvTranspose2d weight (Cin, Cout, 4, 4) -> (4, 4*Cin, Cout)."""
    mats = []
    for py in (0, 1):
        for px in (0, 1):
            taps = []
            for dy in (0, 1):
                for dx in (0, 1):
                    taps.append(w[:, :, 3 - py - 2 * dy, 3 - px - 2 * dx])
            mats.append(jnp.concatenate(taps, axis=0))      # (4*Cin, Cout)
    return jnp.stack(mats, axis=0)                          # (4, 4*Cin, Cout)


def _phase_patches(x):
    """x: (B, H, W, Cin) -> (4, B*H*W, 4*Cin) dense 2x2-tap patches per phase."""
    B, H, W, Cin = x.shape
    xp = jnp.pad(x, ((0, 0), (1, 1), (1, 1), (0, 0)))
    phases = []
    for py in (0, 1):
        for px in (0, 1):
            taps = []
            for dy in (0, 1):
                for dx in (0, 1):
                    taps.append(xp[:, py + dy:py + dy + H, px + dx:px + dx + W, :])
            phases.append(jnp.concatenate(taps, axis=-1).reshape(B * H * W, 4 * Cin))
    return jnp.stack(phases, axis=0)


def _interleave_phases(y, B, H, W, C):
    """y: (4, B*H*W, C) phase outputs -> (B, 2H, 2W, C)."""
    y = y.reshape(2, 2, B, H, W, C)
    y = jnp.transpose(y, (2, 3, 0, 4, 1, 5))
    return y.reshape(B, 2 * H, 2 * W, C)


# ------------------------------ parameters ---------------------------------
def init_params(key, noise_dim=NOISE_DIM):
    ks = jax.random.split(key, 8)
    s = 0.05
    return {
        "fc_w": s * jax.random.normal(ks[0], (256 * 8 * 8, noise_dim), jnp.float32),
        "fc_b": s * jax.random.normal(ks[1], (256 * 8 * 8,), jnp.float32),
        "bn0_g": jnp.ones((256,), jnp.float32), "bn0_b": jnp.zeros((256,), jnp.float32),
        "dc1_w": s * jax.random.normal(ks[2], (256, 128, 4, 4), jnp.float32),
        "dc1_b": s * jax.random.normal(ks[3], (128,), jnp.float32),
        "bn1_g": jnp.ones((128,), jnp.float32), "bn1_b": jnp.zeros((128,), jnp.float32),
        "dc2_w": s * jax.random.normal(ks[4], (128, 64, 4, 4), jnp.float32),
        "dc2_b": s * jax.random.normal(ks[5], (64,), jnp.float32),
        "bn2_g": jnp.ones((64,), jnp.float32), "bn2_b": jnp.zeros((64,), jnp.float32),
        "dc3_w": s * jax.random.normal(ks[6], (64, 3, 4, 4), jnp.float32),
        "dc3_b": s * jax.random.normal(ks[7], (3,), jnp.float32),
    }


def prepare_params(params, noise_dim=NOISE_DIM):
    """One-time weight prep: permute/transpose/pad/cast outside the hot path."""
    bf16, f32 = jnp.bfloat16, jnp.float32

    def pad_n(w3, n):
        return jnp.pad(w3, ((0, 0), (0, 0), (0, n - w3.shape[2])))

    # fc: permute output features so the fc result is directly channels-last
    # (B, 8, 8, 256); transpose to (K, N) and pad K 100 -> 128.
    perm = jnp.arange(256 * 64).reshape(256, 64).T.reshape(-1)   # n=(hw*256+c) -> f=(c*64+hw)
    fc_w = params["fc_w"][perm]
    fc_b = params["fc_b"][perm]
    kpad = _round_up(noise_dim, 128)
    fc_wT = jnp.pad(fc_w.T, ((0, kpad - noise_dim), (0, 0)))     # (128, 16384)

    return {
        "fc_w": fc_wT[None].astype(bf16),                        # (1, 128, 16384)
        "fc_b": fc_b.astype(f32)[None, :],                       # (1, 16384)  (kept: per-feature)
        "bn0_g": params["bn0_g"], "bn0_b": params["bn0_b"],
        # dc1_b / dc2_b dropped: per-channel bias before training-mode BN is a no-op.
        "dc1_w": _phase_weights(params["dc1_w"]).astype(bf16),            # (4, 1024, 128)
        "bn1_g": params["bn1_g"], "bn1_b": params["bn1_b"],
        "dc2_w": pad_n(_phase_weights(params["dc2_w"]), 128).astype(bf16),  # (4, 512, 128)
        "bn2_g": params["bn2_g"], "bn2_b": params["bn2_b"],
        "dc3_w": pad_n(_phase_weights(params["dc3_w"]), 128).astype(bf16),  # (4, 256, 128)
        "dc3_b": jnp.pad(params["dc3_b"].astype(f32), (0, 125))[None, :],   # (1, 128)
    }


# ------------------------------- forward -----------------------------------
def generator_forward(z, prep):
    """z: (B, noise_dim) -> (B, 3, 64, 64) NCHW, tanh-activated."""
    B = z.shape[0]
    bf16 = jnp.bfloat16

    # fc (bias fused in epilogue), output already channels-last (B, 8*8*256)
    h = fused_matmul(z.astype(bf16)[None], prep["fc_w"], bias=prep["fc_b"],
                     out_dtype=bf16, tn=2048)[0]                     # (B, 16384)

    # BN(256) (no ReLU in the module here)
    x0 = batchnorm(h.reshape(B * 64, 256), prep["bn0_g"], prep["bn0_b"], relu=False)
    x0 = x0.reshape(B, 8, 8, 256)

    # ConvTranspose2d(256 -> 128): 4-phase batched matmul (bias dropped, BN follows)
    y1 = fused_matmul(_phase_patches(x0), prep["dc1_w"], out_dtype=bf16)   # (4, B*64, 128)
    x1 = batchnorm(y1.reshape(4 * B * 64, 128), prep["bn1_g"], prep["bn1_b"], relu=True)
    x1 = _interleave_phases(x1.reshape(4, B * 64, 128), B, 8, 8, 128)      # (B, 16, 16, 128)

    # ConvTranspose2d(128 -> 64)
    y2 = fused_matmul(_phase_patches(x1), prep["dc2_w"], out_dtype=bf16)[..., :64]
    x2 = batchnorm(y2.reshape(4 * B * 256, 64), prep["bn2_g"], prep["bn2_b"], relu=True)
    x2 = _interleave_phases(x2.reshape(4, B * 256, 64), B, 16, 16, 64)     # (B, 32, 32, 64)

    # ConvTranspose2d(64 -> 3) + bias + tanh fused in the epilogue
    y3 = fused_matmul(_phase_patches(x2), prep["dc3_w"], bias=prep["dc3_b"],
                      act="tanh", out_dtype=jnp.float32)[..., :3]          # (4, B*1024, 3)
    img = _interleave_phases(y3, B, 32, 32, 3)                             # (B, 64, 64, 3)
    return jnp.transpose(img, (0, 3, 1, 2))                                # NCHW


# ------------------------- pure-JAX f32 reference ---------------------------
def _ref_conv_transpose(x, w, b):
    wf = jnp.transpose(w[:, :, ::-1, ::-1], (1, 0, 2, 3))          # (Cout, Cin, 4, 4)
    y = jax.lax.conv_general_dilated(
        x, wf, window_strides=(1, 1), padding=((2, 2), (2, 2)),
        lhs_dilation=(2, 2), rhs_dilation=(1, 1),
        dimension_numbers=("NCHW", "OIHW", "NCHW"))
    return y + b.reshape(1, -1, 1, 1)


def _ref_bn(x, g, b, eps=1e-5):
    mean = x.mean(axis=(0, 2, 3), keepdims=True)
    var = x.var(axis=(0, 2, 3), keepdims=True)
    return (x - mean) * jax.lax.rsqrt(var + eps) * g.reshape(1, -1, 1, 1) + b.reshape(1, -1, 1, 1)


def generator_reference(z, params):
    h = z @ params["fc_w"].T + params["fc_b"]
    x = h.reshape(-1, 256, 8, 8)
    x = _ref_bn(x, params["bn0_g"], params["bn0_b"])
    x = _ref_conv_transpose(x, params["dc1_w"], params["dc1_b"])
    x = jnp.maximum(_ref_bn(x, params["bn1_g"], params["bn1_b"]), 0.0)
    x = _ref_conv_transpose(x, params["dc2_w"], params["dc2_b"])
    x = jnp.maximum(_ref_bn(x, params["bn2_g"], params["bn2_b"]), 0.0)
    x = _ref_conv_transpose(x, params["dc3_w"], params["dc3_b"])
    return jnp.tanh(x)


if __name__ == "__main__":
    key = jax.random.PRNGKey(0)
    k_z, k_p = jax.random.split(key)
    batch = 2
    z = jax.random.normal(k_z, (batch, NOISE_DIM), jnp.float32)
    params = init_params(k_p)
    prep = prepare_params(params)            # one-time weight prep (outside hot path)

    out = jax.block_until_ready(jax.jit(generator_forward)(z, prep))

    assert out.shape == (batch, 3, 64, 64), out.shape
    assert bool(jnp.all(jnp.isfinite(out)))
    assert bool(jnp.all(jnp.abs(out) <= 1.0 + 1e-6))   # tanh range

    ref = jax.block_until_ready(jax.jit(generator_reference)(z, params))
    err = float(jnp.max(jnp.abs(out - ref)))
    assert err < 1e-1, f"max abs err vs f32 reference: {err}"

    print("KERNEL_OK")
</pallas_src>

<mosaic_0001>
module attributes {stable_mosaic.version = 11 : i64} {
  func.func @kernel(%arg0: i32, %arg1: i32, %arg2: i32, %arg3: i32, %arg4: memref<1x8x128xbf16, #tpu.memory_space<vmem>>, %arg5: memref<1x128x2048xbf16, #tpu.memory_space<vmem>>, %arg6: memref<1x2048xf32, #tpu.memory_space<vmem>>, %arg7: memref<1x8x2048xbf16, #tpu.memory_space<vmem>>, %arg8: memref<8x2048xf32, #tpu.memory_space<vmem>>) attributes {dimension_semantics = [#tpu.dimension_semantics<parallel>, #tpu.dimension_semantics<parallel>, #tpu.dimension_semantics<parallel>, #tpu.dimension_semantics<arbitrary>], iteration_bounds = array<i64: 1, 1, 8, 1>, scalar_prefetch = 0 : i64, scratch_operands = 1 : i64, tpu.core_type = #tpu.core_type<tc>, window_params = [{transform_indices = @transform_0, window_bounds = array<i64: 1, 8, 128>}, {transform_indices = @transform_1, window_bounds = array<i64: 1, 128, 2048>}, {transform_indices = @transform_2, window_bounds = array<i64: 1, 2048>}, {transform_indices = @transform_3, window_bounds = array<i64: 1, 8, 2048>}]} {
    %c0_i32 = arith.constant 0 : i32
    %0 = arith.cmpi eq, %arg3, %c0_i32 : i32
    %1 = arith.extui %0 : i1 to i32
    %c0_i32_0 = arith.constant 0 : i32
    %2 = arith.cmpi ne, %1, %c0_i32_0 : i32
    scf.if %2 {
      %cst_12 = arith.constant 0.000000e+00 : f32
      %14 = vector.broadcast %cst_12 : f32 to vector<8x2048xf32>
      %c0_13 = arith.constant 0 : index
      %c0_14 = arith.constant 0 : index
      %15 = vector.load %arg8[%c0_13, %c0_14] : memref<8x2048xf32, #tpu.memory_space<vmem>>, vector<8x2048xf32>
      tpu.vector_store %arg8[%c0_13, %c0_14], %14 {strides = array<i32>} : memref<8x2048xf32, #tpu.memory_space<vmem>>, vector<8x2048xf32>,
    } else {
    }
    %c0 = arith.constant 0 : index
    %c0_1 = arith.constant 0 : index
    %3 = vector.load %arg8[%c0, %c0_1] : memref<8x2048xf32, #tpu.memory_space<vmem>>, vector<8x2048xf32>
    %c0_2 = arith.constant 0 : index
    %c0_3 = arith.constant 0 : index
    %c0_4 = arith.constant 0 : index
    %4 = vector.load %arg4[%c0_2, %c0_3, %c0_4] : memref<1x8x128xbf16, #tpu.memory_space<vmem>>, vector<1x8x128xbf16>
    %5 = vector.shape_cast %4 : vector<1x8x128xbf16> to vector<8x128xbf16>
    %c0_5 = arith.constant 0 : index
    %c0_6 = arith.constant 0 : index
    %c0_7 = arith.constant 0 : index
    %6 = vector.load %arg5[%c0_5, %c0_6, %c0_7] : memref<1x128x2048xbf16, #tpu.memory_space<vmem>>, vector<1x128x2048xbf16>
    %7 = vector.shape_cast %6 : vector<1x128x2048xbf16> to vector<128x2048xbf16>
    %cst = arith.constant dense<0.000000e+00> : vector<8x2048xf32>
    %8 = tpu.matmul %5, %7, %cst {dimension_numbers = #tpu.dot_dimension_numbers<[1], [0], [0], [1], [0, 0, 1, 1], [], []>} : vector<8x128xbf16>, vector<128x2048xbf16>, vector<8x2048xf32> -> vector<8x2048xf32>
    %9 = arith.addf %3, %8 : vector<8x2048xf32>
    %c0_8 = arith.constant 0 : index
    %c0_9 = arith.constant 0 : index
    %10 = vector.load %arg8[%c0_8, %c0_9] : memref<8x2048xf32, #tpu.memory_space<vmem>>, vector<8x2048xf32>
    tpu.vector_store %arg8[%c0_8, %c0_9], %9 {strides = array<i32>} : memref<8x2048xf32, #tpu.memory_space<vmem>>, vector<8x2048xf32>,
    %c0_i32_10 = arith.constant 0 : i32
    %11 = arith.cmpi eq, %arg3, %c0_i32_10 : i32
    %12 = arith.extui %11 : i1 to i32
    %c0_i32_11 = arith.constant 0 : i32
    %13 = arith.cmpi ne, %12, %c0_i32_11 : i32
    scf.if %13 {
      %c0_12 = arith.constant 0 : index
      %c0_13 = arith.constant 0 : index
      %14 = vector.load %arg8[%c0_12, %c0_13] : memref<8x2048xf32, #tpu.memory_space<vmem>>, vector<8x2048xf32>
      %c0_14 = arith.constant 0 : index
      %c0_15 = arith.constant 0 : index
      %15 = vector.load %arg6[%c0_14, %c0_15] : memref<1x2048xf32, #tpu.memory_space<vmem>>, vector<1x2048xf32>
      %16 = vector.broadcast %15 : vector<1x2048xf32> to vector<8x2048xf32>
      %17 = arith.addf %14, %16 : vector<8x2048xf32>
      %18 = arith.truncf %17 : vector<8x2048xf32> to vector<8x2048xbf16>
      %c0_16 = arith.constant 0 : index
      %c0_17 = arith.constant 0 : index
      %c0_18 = arith.constant 0 : index
      %19 = vector.load %arg7[%c0_16, %c0_17, %c0_18] : memref<1x8x2048xbf16, #tpu.memory_space<vmem>>, vector<1x8x2048xbf16>
      %20 = vector.shape_cast %19 : vector<1x8x2048xbf16> to vector<8x2048xbf16>
      %21 = vector.shape_cast %18 : vector<8x2048xbf16> to vector<1x8x2048xbf16>
      tpu.vector_store %arg7[%c0_16, %c0_17, %c0_18], %21 {strides = array<i32>} : memref<1x8x2048xbf16, #tpu.memory_space<vmem>>, vector<1x8x2048xbf16>,
    } else {
    }
    return
  }
  func.func @transform_0(%arg0: i32, %arg1: i32, %arg2: i32, %arg3: i32) -> (i32, i32, i32) {
    %c0_i32 = arith.constant 0 : i32
    return %arg0, %arg1, %arg3 : i32, i32, i32
  }
  func.func @transform_1(%arg0: i32, %arg1: i32, %arg2: i32, %arg3: i32) -> (i32, i32, i32) {
    %c0_i32 = arith.constant 0 : i32
    return %arg0, %arg3, %arg2 : i32, i32, i32
  }
  func.func @transform_2(%arg0: i32, %arg1: i32, %arg2: i32, %arg3: i32) -> (i32, i32) {
    %c0_i32 = arith.constant 0 : i32
    %c0_i32_0 = arith.constant 0 : i32
    return %c0_i32, %arg2 : i32, i32
  }
  func.func @transform_3(%arg0: i32, %arg1: i32, %arg2: i32, %arg3: i32) -> (i32, i32, i32) {
    %c0_i32 = arith.constant 0 : i32
    return %arg0, %arg1, %arg2 : i32, i32, i32
  }
}

module attributes {stable_mosaic.version = 11 : i64} {
  func.func @_bn_stats_kernel(%arg0: i32, %arg1: memref<128x256xbf16, #tpu.memory_space<vmem>>, %arg2: memref<2x256xf32, #tpu.memory_space<vmem>>) attributes {dimension_semantics = [#tpu.dimension_semantics<arbitrary>], iteration_bounds = array<i64: 1>, scalar_prefetch = 0 : i64, scratch_operands = 0 : i64, tpu.core_type = #tpu.core_type<tc>, window_params = [{transform_indices = @transform_0, window_bounds = array<i64: 128, 256>}, {pipeline_mode = #tpu.pipeline_mode<synchronous>, transform_indices = @transform_1, window_bounds = array<i64: 2, 256>}]} {
    %c0_i32 = arith.constant 0 : i32
    %0 = arith.cmpi eq, %arg0, %c0_i32 : i32
    %1 = arith.extui %0 : i1 to i32
    %c0_i32_0 = arith.constant 0 : i32
    %2 = arith.cmpi ne, %1, %c0_i32_0 : i32
    scf.if %2 {
      %cst_7 = arith.constant 0.000000e+00 : f32
      %14 = vector.broadcast %cst_7 : f32 to vector<2x256xf32>
      %c0_8 = arith.constant 0 : index
      %c0_9 = arith.constant 0 : index
      %15 = vector.load %arg2[%c0_8, %c0_9] : memref<2x256xf32, #tpu.memory_space<vmem>>, vector<2x256xf32>
      tpu.vector_store %arg2[%c0_8, %c0_9], %14 {strides = array<i32>} : memref<2x256xf32, #tpu.memory_space<vmem>>, vector<2x256xf32>,
    } else {
    }
    %c0 = arith.constant 0 : index
    %c0_1 = arith.constant 0 : index
    %3 = vector.load %arg1[%c0, %c0_1] : memref<128x256xbf16, #tpu.memory_space<vmem>>, vector<128x256xbf16>
    %4 = arith.extf %3 : vector<128x256xbf16> to vector<128x256xf32>
    %c0_2 = arith.constant 0 : index
    %c0_3 = arith.constant 0 : index
    %5 = vector.load %arg2[%c0_2, %c0_3] : memref<2x256xf32, #tpu.memory_space<vmem>>, vector<2x256xf32>
    %cst = arith.constant dense<0.000000e+00> : vector<256xf32>
    %6 = vector.multi_reduction <add>, %4, %cst [0] : vector<128x256xf32> to vector<256xf32>
    %7 = vector.shape_cast %6 : vector<256xf32> to vector<1x256xf32>
    %8 = arith.mulf %4, %4 : vector<128x256xf32>
    %cst_4 = arith.constant dense<0.000000e+00> : vector<256xf32>
    %9 = vector.multi_reduction <add>, %8, %cst_4 [0] : vector<128x256xf32> to vector<256xf32>
    %10 = vector.shape_cast %9 : vector<256xf32> to vector<1x256xf32>
    %11 = tpu.concatenate %7, %10 in 0 : vector<1x256xf32>, vector<1x256xf32> -> vector<2x256xf32>
    %12 = arith.addf %5, %11 : vector<2x256xf32>
    %c0_5 = arith.constant 0 : index
    %c0_6 = arith.constant 0 : index
    %13 = vector.load %arg2[%c0_5, %c0_6] : memref<2x256xf32, #tpu.memory_space<vmem>>, vector<2x256xf32>
    tpu.vector_store %arg2[%c0_5, %c0_6], %12 {strides = array<i32>} : memref<2x256xf32, #tpu.memory_space<vmem>>, vector<2x256xf32>,
    return
  }
  func.func @transform_0(%arg0: i32) -> (i32, i32) {
    %c0_i32 = arith.constant 0 : i32
    %c0_i32_0 = arith.constant 0 : i32
    return %arg0, %c0_i32 : i32, i32
  }
  func.func @transform_1(%arg0: i32) -> (i32, i32) {
    %c0_i32 = arith.constant 0 : i32
    %c0_i32_0 = arith.constant 0 : i32
    %c0_i32_1 = arith.constant 0 : i32
    return %c0_i32, %c0_i32_0 : i32, i32
  }
}

module attributes {stable_mosaic.version = 11 : i64} {
  func.func @_bn_apply_kernel(%arg0: i32, %arg1: memref<128x256xbf16, #tpu.memory_space<vmem>>, %arg2: memref<1x256xf32, #tpu.memory_space<vmem>>, %arg3: memref<1x256xf32, #tpu.memory_space<vmem>>, %arg4: memref<128x256xbf16, #tpu.memory_space<vmem>>) attributes {dimension_semantics = [#tpu.dimension_semantics<parallel>], iteration_bounds = array<i64: 1>, scalar_prefetch = 0 : i64, scratch_operands = 0 : i64, tpu.core_type = #tpu.core_type<tc>, window_params = [{transform_indices = @transform_0, window_bounds = array<i64: 128, 256>}, {pipeline_mode = #tpu.pipeline_mode<synchronous>, transform_indices = @transform_1, window_bounds = array<i64: 1, 256>}, {pipeline_mode = #tpu.pipeline_mode<synchronous>, transform_indices = @transform_2, window_bounds = array<i64: 1, 256>}, {transform_indices = @transform_3, window_bounds = array<i64: 128, 256>}]} {
    %c0 = arith.constant 0 : index
    %c0_0 = arith.constant 0 : index
    %0 = vector.load %arg1[%c0, %c0_0] : memref<128x256xbf16, #tpu.memory_space<vmem>>, vector<128x256xbf16>
    %1 = arith.extf %0 : vector<128x256xbf16> to vector<128x256xf32>
    %c0_1 = arith.constant 0 : index
    %c0_2 = arith.constant 0 : index
    %2 = vector.load %arg2[%c0_1, %c0_2] : memref<1x256xf32, #tpu.memory_space<vmem>>, vector<1x256xf32>
    %3 = vector.broadcast %2 : vector<1x256xf32> to vector<128x256xf32>
    %4 = arith.mulf %1, %3 : vector<128x256xf32>
    %c0_3 = arith.constant 0 : index
    %c0_4 = arith.constant 0 : index
    %5 = vector.load %arg3[%c0_3, %c0_4] : memref<1x256xf32, #tpu.memory_space<vmem>>, vector<1x256xf32>
    %6 = vector.broadcast %5 : vector<1x256xf32> to vector<128x256xf32>
    %7 = arith.addf %4, %6 : vector<128x256xf32>
    %8 = arith.truncf %7 : vector<128x256xf32> to vector<128x256xbf16>
    %c0_5 = arith.constant 0 : index
    %c0_6 = arith.constant 0 : index
    %9 = vector.load %arg4[%c0_5, %c0_6] : memref<128x256xbf16, #tpu.memory_space<vmem>>, vector<128x256xbf16>
    tpu.vector_store %arg4[%c0_5, %c0_6], %8 {strides = array<i32>} : memref<128x256xbf16, #tpu.memory_space<vmem>>, vector<128x256xbf16>,
    return
  }
  func.func @transform_0(%arg0: i32) -> (i32, i32) {
    %c0_i32 = arith.constant 0 : i32
    %c0_i32_0 = arith.constant 0 : i32
    return %arg0, %c0_i32 : i32, i32
  }
  func.func @transform_1(%arg0: i32) -> (i32, i32) {
    %c0_i32 = arith.constant 0 : i32
    %c0_i32_0 = arith.constant 0 : i32
    %c0_i32_1 = arith.constant 0 : i32
    return %c0_i32, %c0_i32_0 : i32, i32
  }
  func.func @transform_2(%arg0: i32) -> (i32, i32) {
    %c0_i32 = arith.constant 0 : i32
    %c0_i32_0 = arith.constant 0 : i32
    %c0_i32_1 = arith.constant 0 : i32
    return %c0_i32, %c0_i32_0 : i32, i32
  }
  func.func @transform_3(%arg0: i32) -> (i32, i32) {
    %c0_i32 = arith.constant 0 : i32
    %c0_i32_0 = arith.constant 0 : i32
    return %arg0, %c0_i32 : i32, i32
  }
}

module attributes {stable_mosaic.version = 11 : i64} {
  func.func @kernel(%arg0: i32, %arg1: i32, %arg2: i32, %arg3: i32, %arg4: memref<1x128x512xbf16, #tpu.memory_space<vmem>>, %arg5: memref<1x512x128xbf16, #tpu.memory_space<vmem>>, %arg6: memref<1x128x128xbf16, #tpu.memory_space<vmem>>, %arg7: memref<128x128xf32, #tpu.memory_space<vmem>>) attributes {dimension_semantics = [#tpu.dimension_semantics<parallel>, #tpu.dimension_semantics<parallel>, #tpu.dimension_semantics<parallel>, #tpu.dimension_semantics<arbitrary>], iteration_bounds = array<i64: 4, 1, 1, 2>, scalar_prefetch = 0 : i64, scratch_operands = 1 : i64, tpu.core_type = #tpu.core_type<tc>, window_params = [{transform_indices = @transform_0, window_bounds = array<i64: 1, 128, 512>}, {transform_indices = @transform_1, window_bounds = array<i64: 1, 512, 128>}, {transform_indices = @transform_2, window_bounds = array<i64: 1, 128, 128>}]} {
    %c0_i32 = arith.constant 0 : i32
    %0 = arith.cmpi eq, %arg3, %c0_i32 : i32
    %1 = arith.extui %0 : i1 to i32
    %c0_i32_0 = arith.constant 0 : i32
    %2 = arith.cmpi ne, %1, %c0_i32_0 : i32
    scf.if %2 {
      %cst_11 = arith.constant 0.000000e+00 : f32
      %14 = vector.broadcast %cst_11 : f32 to vector<128x128xf32>
      %c0_12 = arith.constant 0 : index
      %c0_13 = arith.constant 0 : index
      %15 = vector.load %arg7[%c0_12, %c0_13] : memref<128x128xf32, #tpu.memory_space<vmem>>, vector<128x128xf32>
      tpu.vector_store %arg7[%c0_12, %c0_13], %14 {strides = array<i32>} : memref<128x128xf32, #tpu.memory_space<vmem>>, vector<128x128xf32>,
    } else {
    }
    %c0 = arith.constant 0 : index
    %c0_1 = arith.constant 0 : index
    %3 = vector.load %arg7[%c0, %c0_1] : memref<128x128xf32, #tpu.memory_space<vmem>>, vector<128x128xf32>
    %c0_2 = arith.constant 0 : index
    %c0_3 = arith.constant 0 : index
    %c0_4 = arith.constant 0 : index
    %4 = vector.load %arg4[%c0_2, %c0_3, %c0_4] : memref<1x128x512xbf16, #tpu.memory_space<vmem>>, vector<1x128x512xbf16>
    %5 = vector.shape_cast %4 : vector<1x128x512xbf16> to vector<128x512xbf16>
    %c0_5 = arith.constant 0 : index
    %c0_6 = arith.constant 0 : index
    %c0_7 = arith.constant 0 : index
    %6 = vector.load %arg5[%c0_5, %c0_6, %c0_7] : memref<1x512x128xbf16, #tpu.memory_space<vmem>>, vector<1x512x128xbf16>
    %7 = vector.shape_cast %6 : vector<1x512x128xbf16> to vector<512x128xbf16>
    %cst = arith.constant dense<0.000000e+00> : vector<128x128xf32>
    %8 = tpu.matmul %5, %7, %cst {dimension_numbers = #tpu.dot_dimension_numbers<[1], [0], [0], [1], [0, 0, 1, 1], [], []>} : vector<128x512xbf16>, vector<512x128xbf16>, vector<128x128xf32> -> vector<128x128xf32>
    %9 = arith.addf %3, %8 : vector<128x128xf32>
    %c0_8 = arith.constant 0 : index
    %c0_9 = arith.constant 0 : index
    %10 = vector.load %arg7[%c0_8, %c0_9] : memref<128x128xf32, #tpu.memory_space<vmem>>, vector<128x128xf32>
    tpu.vector_store %arg7[%c0_8, %c0_9], %9 {strides = array<i32>} : memref<128x128xf32, #tpu.memory_space<vmem>>, vector<128x128xf32>,
    %c1_i32 = arith.constant 1 : i32
    %11 = arith.cmpi eq, %arg3, %c1_i32 : i32
    %12 = arith.extui %11 : i1 to i32
    %c0_i32_10 = arith.constant 0 : i32
    %13 = arith.cmpi ne, %12, %c0_i32_10 : i32
    scf.if %13 {
      %c0_11 = arith.constant 0 : index
      %c0_12 = arith.constant 0 : index
      %14 = vector.load %arg7[%c0_11, %c0_12] : memref<128x128xf32, #tpu.memory_space<vmem>>, vector<128x128xf32>
      %15 = arith.truncf %14 : vector<128x128xf32> to vector<128x128xbf16>
      %c0_13 = arith.constant 0 : index
      %c0_14 = arith.constant 0 : index
      %c0_15 = arith.constant 0 : index
      %16 = vector.load %arg6[%c0_13, %c0_14, %c0_15] : memref<1x128x128xbf16, #tpu.memory_space<vmem>>, vector<1x128x128xbf16>
      %17 = vector.shape_cast %16 : vector<1x128x128xbf16> to vector<128x128xbf16>
      %18 = vector.shape_cast %15 : vector<128x128xbf16> to vector<1x128x128xbf16>
      tpu.vector_store %arg6[%c0_13, %c0_14, %c0_15], %18 {strides = array<i32>} : memref<1x128x128xbf16, #tpu.memory_space<vmem>>, vector<1x128x128xbf16>,
    } else {
    }
    return
  }
  func.func @transform_0(%arg0: i32, %arg1: i32, %arg2: i32, %arg3: i32) -> (i32, i32, i32) {
    %c0_i32 = arith.constant 0 : i32
    return %arg0, %arg1, %arg3 : i32, i32, i32
  }
  func.func @transform_1(%arg0: i32, %arg1: i32, %arg2: i32, %arg3: i32) -> (i32, i32, i32) {
    %c0_i32 = arith.constant 0 : i32
    return %arg0, %arg3, %arg2 : i32, i32, i32
  }
  func.func @transform_2(%arg0: i32, %arg1: i32, %arg2: i32, %arg3: i32) -> (i32, i32, i32) {
    %c0_i32 = arith.constant 0 : i32
    return %arg0, %arg1, %arg2 : i32, i32, i32
  }
}

module attributes {stable_mosaic.version = 11 : i64} {
  func.func @_bn_stats_kernel(%arg0: i32, %arg1: memref<512x128xbf16, #tpu.memory_space<vmem>>, %arg2: memref<2x128xf32, #tpu.memory_space<vmem>>) attributes {dimension_semantics = [#tpu.dimension_semantics<arbitrary>], iteration_bounds = array<i64: 1>, scalar_prefetch = 0 : i64, scratch_operands = 0 : i64, tpu.core_type = #tpu.core_type<tc>, window_params = [{transform_indices = @transform_0, window_bounds = array<i64: 512, 128>}, {pipeline_mode = #tpu.pipeline_mode<synchronous>, transform_indices = @transform_1, window_bounds = array<i64: 2, 128>}]} {
    %c0_i32 = arith.constant 0 : i32
    %0 = arith.cmpi eq, %arg0, %c0_i32 : i32
    %1 = arith.extui %0 : i1 to i32
    %c0_i32_0 = arith.constant 0 : i32
    %2 = arith.cmpi ne, %1, %c0_i32_0 : i32
    scf.if %2 {
      %cst_7 = arith.constant 0.000000e+00 : f32
      %14 = vector.broadcast %cst_7 : f32 to vector<2x128xf32>
      %c0_8 = arith.constant 0 : index
      %c0_9 = arith.constant 0 : index
      %15 = vector.load %arg2[%c0_8, %c0_9] : memref<2x128xf32, #tpu.memory_space<vmem>>, vector<2x128xf32>
      tpu.vector_store %arg2[%c0_8, %c0_9], %14 {strides = array<i32>} : memref<2x128xf32, #tpu.memory_space<vmem>>, vector<2x128xf32>,
    } else {
    }
    %c0 = arith.constant 0 : index
    %c0_1 = arith.constant 0 : index
    %3 = vector.load %arg1[%c0, %c0_1] : memref<512x128xbf16, #tpu.memory_space<vmem>>, vector<512x128xbf16>
    %4 = arith.extf %3 : vector<512x128xbf16> to vector<512x128xf32>
    %c0_2 = arith.constant 0 : index
    %c0_3 = arith.constant 0 : index
    %5 = vector.load %arg2[%c0_2, %c0_3] : memref<2x128xf32, #tpu.memory_space<vmem>>, vector<2x128xf32>
    %cst = arith.constant dense<0.000000e+00> : vector<128xf32>
    %6 = vector.multi_reduction <add>, %4, %cst [0] : vector<512x128xf32> to vector<128xf32>
    %7 = vector.shape_cast %6 : vector<128xf32> to vector<1x128xf32>
    %8 = arith.mulf %4, %4 : vector<512x128xf32>
    %cst_4 = arith.constant dense<0.000000e+00> : vector<128xf32>
    %9 = vector.multi_reduction <add>, %8, %cst_4 [0] : vector<512x128xf32> to vector<128xf32>
    %10 = vector.shape_cast %9 : vector<128xf32> to vector<1x128xf32>
    %11 = tpu.concatenate %7, %10 in 0 : vector<1x128xf32>, vector<1x128xf32> -> vector<2x128xf32>
    %12 = arith.addf %5, %11 : vector<2x128xf32>
    %c0_5 = arith.constant 0 : index
    %c0_6 = arith.constant 0 : index
    %13 = vector.load %arg2[%c0_5, %c0_6] : memref<2x128xf32, #tpu.memory_space<vmem>>, vector<2x128xf32>
    tpu.vector_store %arg2[%c0_5, %c0_6], %12 {strides = array<i32>} : memref<2x128xf32, #tpu.memory_space<vmem>>, vector<2x128xf32>,
    return
  }
  func.func @transform_0(%arg0: i32) -> (i32, i32) {
    %c0_i32 = arith.constant 0 : i32
    %c0_i32_0 = arith.constant 0 : i32
    return %arg0, %c0_i32 : i32, i32
  }
  func.func @transform_1(%arg0: i32) -> (i32, i32) {
    %c0_i32 = arith.constant 0 : i32
    %c0_i32_0 = arith.constant 0 : i32
    %c0_i32_1 = arith.constant 0 : i32
    return %c0_i32, %c0_i32_0 : i32, i32
  }
}

module attributes {stable_mosaic.version = 11 : i64} {
  func.func @_bn_apply_kernel(%arg0: i32, %arg1: memref<512x128xbf16, #tpu.memory_space<vmem>>, %arg2: memref<1x128xf32, #tpu.memory_space<vmem>>, %arg3: memref<1x128xf32, #tpu.memory_space<vmem>>, %arg4: memref<512x128xbf16, #tpu.memory_space<vmem>>) attributes {dimension_semantics = [#tpu.dimension_semantics<parallel>], iteration_bounds = array<i64: 1>, scalar_prefetch = 0 : i64, scratch_operands = 0 : i64, tpu.core_type = #tpu.core_type<tc>, window_params = [{transform_indices = @transform_0, window_bounds = array<i64: 512, 128>}, {pipeline_mode = #tpu.pipeline_mode<synchronous>, transform_indices = @transform_1, window_bounds = array<i64: 1, 128>}, {pipeline_mode = #tpu.pipeline_mode<synchronous>, transform_indices = @transform_2, window_bounds = array<i64: 1, 128>}, {transform_indices = @transform_3, window_bounds = array<i64: 512, 128>}]} {
    %c0 = arith.constant 0 : index
    %c0_0 = arith.constant 0 : index
    %0 = vector.load %arg1[%c0, %c0_0] : memref<512x128xbf16, #tpu.memory_space<vmem>>, vector<512x128xbf16>
    %1 = arith.extf %0 : vector<512x128xbf16> to vector<512x128xf32>
    %c0_1 = arith.constant 0 : index
    %c0_2 = arith.constant 0 : index
    %2 = vector.load %arg2[%c0_1, %c0_2] : memref<1x128xf32, #tpu.memory_space<vmem>>, vector<1x128xf32>
    %3 = vector.broadcast %2 : vector<1x128xf32> to vector<512x128xf32>
    %4 = arith.mulf %1, %3 : vector<512x128xf32>
    %c0_3 = arith.constant 0 : index
    %c0_4 = arith.constant 0 : index
    %5 = vector.load %arg3[%c0_3, %c0_4] : memref<1x128xf32, #tpu.memory_space<vmem>>, vector<1x128xf32>
    %6 = vector.broadcast %5 : vector<1x128xf32> to vector<512x128xf32>
    %7 = arith.addf %4, %6 : vector<512x128xf32>
    %cst = arith.constant 0.000000e+00 : f32
    %8 = vector.broadcast %cst : f32 to vector<512x128xf32>
    %9 = arith.maximumf %7, %8 : vector<512x128xf32>
    %10 = arith.truncf %9 : vector<512x128xf32> to vector<512x128xbf16>
    %c0_5 = arith.constant 0 : index
    %c0_6 = arith.constant 0 : index
    %11 = vector.load %arg4[%c0_5, %c0_6] : memref<512x128xbf16, #tpu.memory_space<vmem>>, vector<512x128xbf16>
    tpu.vector_store %arg4[%c0_5, %c0_6], %10 {strides = array<i32>} : memref<512x128xbf16, #tpu.memory_space<vmem>>, vector<512x128xbf16>,
    return
  }
  func.func @transform_0(%arg0: i32) -> (i32, i32) {
    %c0_i32 = arith.constant 0 : i32
    %c0_i32_0 = arith.constant 0 : i32
    return %arg0, %c0_i32 : i32, i32
  }
  func.func @transform_1(%arg0: i32) -> (i32, i32) {
    %c0_i32 = arith.constant 0 : i32
    %c0_i32_0 = arith.constant 0 : i32
    %c0_i32_1 = arith.constant 0 : i32
    return %c0_i32, %c0_i32_0 : i32, i32
  }
  func.func @transform_2(%arg0: i32) -> (i32, i32) {
    %c0_i32 = arith.constant 0 : i32
    %c0_i32_0 = arith.constant 0 : i32
    %c0_i32_1 = arith.constant 0 : i32
    return %c0_i32, %c0_i32_0 : i32, i32
  }
  func.func @transform_3(%arg0: i32) -> (i32, i32) {
    %c0_i32 = arith.constant 0 : i32
    %c0_i32_0 = arith.constant 0 : i32
    return %arg0, %c0_i32 : i32, i32
  }
}

module attributes {stable_mosaic.version = 11 : i64} {
  func.func @kernel(%arg0: i32, %arg1: i32, %arg2: i32, %arg3: i32, %arg4: memref<1x512x512xbf16, #tpu.memory_space<vmem>>, %arg5: memref<1x512x128xbf16, #tpu.memory_space<vmem>>, %arg6: memref<1x512x128xbf16, #tpu.memory_space<vmem>>, %arg7: memref<512x128xf32, #tpu.memory_space<vmem>>) attributes {dimension_semantics = [#tpu.dimension_semantics<parallel>, #tpu.dimension_semantics<parallel>, #tpu.dimension_semantics<parallel>, #tpu.dimension_semantics<arbitrary>], iteration_bounds = array<i64: 4, 1, 1, 1>, scalar_prefetch = 0 : i64, scratch_operands = 1 : i64, tpu.core_type = #tpu.core_type<tc>, window_params = [{transform_indices = @transform_0, window_bounds = array<i64: 1, 512, 512>}, {transform_indices = @transform_1, window_bounds = array<i64: 1, 512, 128>}, {transform_indices = @transform_2, window_bounds = array<i64: 1, 512, 128>}]} {
    %c0_i32 = arith.constant 0 : i32
    %0 = arith.cmpi eq, %arg3, %c0_i32 : i32
    %1 = arith.extui %0 : i1 to i32
    %c0_i32_0 = arith.constant 0 : i32
    %2 = arith.cmpi ne, %1, %c0_i32_0 : i32
    scf.if %2 {
      %cst_12 = arith.constant 0.000000e+00 : f32
      %14 = vector.broadcast %cst_12 : f32 to vector<512x128xf32>
      %c0_13 = arith.constant 0 : index
      %c0_14 = arith.constant 0 : index
      %15 = vector.load %arg7[%c0_13, %c0_14] : memref<512x128xf32, #tpu.memory_space<vmem>>, vector<512x128xf32>
      tpu.vector_store %arg7[%c0_13, %c0_14], %14 {strides = array<i32>} : memref<512x128xf32, #tpu.memory_space<vmem>>, vector<512x128xf32>,
    } else {
    }
    %c0 = arith.constant 0 : index
    %c0_1 = arith.constant 0 : index
    %3 = vector.load %arg7[%c0, %c0_1] : memref<512x128xf32, #tpu.memory_space<vmem>>, vector<512x128xf32>
    %c0_2 = arith.constant 0 : index
    %c0_3 = arith.constant 0 : index
    %c0_4 = arith.constant 0 : index
    %4 = vector.load %arg4[%c0_2, %c0_3, %c0_4] : memref<1x512x512xbf16, #tpu.memory_space<vmem>>, vector<1x512x512xbf16>
    %5 = vector.shape_cast %4 : vector<1x512x512xbf16> to vector<512x512xbf16>
    %c0_5 = arith.constant 0 : index
    %c0_6 = arith.constant 0 : index
    %c0_7 = arith.constant 0 : index
    %6 = vector.load %arg5[%c0_5, %c0_6, %c0_7] : memref<1x512x128xbf16, #tpu.memory_space<vmem>>, vector<1x512x128xbf16>
    %7 = vector.shape_cast %6 : vector<1x512x128xbf16> to vector<512x128xbf16>
    %cst = arith.constant dense<0.000000e+00> : vector<512x128xf32>
    %8 = tpu.matmul %5, %7, %cst {dimension_numbers = #tpu.dot_dimension_numbers<[1], [0], [0], [1], [0, 0, 1, 1], [], []>} : vector<512x512xbf16>, vector<512x128xbf16>, vector<512x128xf32> -> vector<512x128xf32>
    %9 = arith.addf %3, %8 : vector<512x128xf32>
    %c0_8 = arith.constant 0 : index
    %c0_9 = arith.constant 0 : index
    %10 = vector.load %arg7[%c0_8, %c0_9] : memref<512x128xf32, #tpu.memory_space<vmem>>, vector<512x128xf32>
    tpu.vector_store %arg7[%c0_8, %c0_9], %9 {strides = array<i32>} : memref<512x128xf32, #tpu.memory_space<vmem>>, vector<512x128xf32>,
    %c0_i32_10 = arith.constant 0 : i32
    %11 = arith.cmpi eq, %arg3, %c0_i32_10 : i32
    %12 = arith.extui %11 : i1 to i32
    %c0_i32_11 = arith.constant 0 : i32
    %13 = arith.cmpi ne, %12, %c0_i32_11 : i32
    scf.if %13 {
      %c0_12 = arith.constant 0 : index
      %c0_13 = arith.constant 0 : index
      %14 = vector.load %arg7[%c0_12, %c0_13] : memref<512x128xf32, #tpu.memory_space<vmem>>, vector<512x128xf32>
      %15 = arith.truncf %14 : vector<512x128xf32> to vector<512x128xbf16>
      %c0_14 = arith.constant 0 : index
      %c0_15 = arith.constant 0 : index
      %c0_16 = arith.constant 0 : index
      %16 = vector.load %arg6[%c0_14, %c0_15, %c0_16] : memref<1x512x128xbf16, #tpu.memory_space<vmem>>, vector<1x512x128xbf16>
      %17 = vector.shape_cast %16 : vector<1x512x128xbf16> to vector<512x128xbf16>
      %18 = vector.shape_cast %15 : vector<512x128xbf16> to vector<1x512x128xbf16>
      tpu.vector_store %arg6[%c0_14, %c0_15, %c0_16], %18 {strides = array<i32>} : memref<1x512x128xbf16, #tpu.memory_space<vmem>>, vector<1x512x128xbf16>,
    } else {
    }
    return
  }
  func.func @transform_0(%arg0: i32, %arg1: i32, %arg2: i32, %arg3: i32) -> (i32, i32, i32) {
    %c0_i32 = arith.constant 0 : i32
    return %arg0, %arg1, %arg3 : i32, i32, i32
  }
  func.func @transform_1(%arg0: i32, %arg1: i32, %arg2: i32, %arg3: i32) -> (i32, i32, i32) {
    %c0_i32 = arith.constant 0 : i32
    return %arg0, %arg3, %arg2 : i32, i32, i32
  }
  func.func @transform_2(%arg0: i32, %arg1: i32, %arg2: i32, %arg3: i32) -> (i32, i32, i32) {
    %c0_i32 = arith.constant 0 : i32
    return %arg0, %arg1, %arg2 : i32, i32, i32
  }
}

module attributes {stable_mosaic.version = 11 : i64} {
  func.func @_bn_stats_kernel(%arg0: i32, %arg1: memref<1024x64xbf16, #tpu.memory_space<vmem>>, %arg2: memref<2x64xf32, #tpu.memory_space<vmem>>) attributes {dimension_semantics = [#tpu.dimension_semantics<arbitrary>], iteration_bounds = array<i64: 2>, scalar_prefetch = 0 : i64, scratch_operands = 0 : i64, tpu.core_type = #tpu.core_type<tc>, window_params = [{transform_indices = @transform_0, window_bounds = array<i64: 1024, 64>}, {pipeline_mode = #tpu.pipeline_mode<synchronous>, transform_indices = @transform_1, window_bounds = array<i64: 2, 64>}]} {
    %c0_i32 = arith.constant 0 : i32
    %0 = arith.cmpi eq, %arg0, %c0_i32 : i32
    %1 = arith.extui %0 : i1 to i32
    %c0_i32_0 = arith.constant 0 : i32
    %2 = arith.cmpi ne, %1, %c0_i32_0 : i32
    scf.if %2 {
      %cst_7 = arith.constant 0.000000e+00 : f32
      %14 = vector.broadcast %cst_7 : f32 to vector<2x64xf32>
      %c0_8 = arith.constant 0 : index
      %c0_9 = arith.constant 0 : index
      %15 = vector.load %arg2[%c0_8, %c0_9] : memref<2x64xf32, #tpu.memory_space<vmem>>, vector<2x64xf32>
      tpu.vector_store %arg2[%c0_8, %c0_9], %14 {strides = array<i32>} : memref<2x64xf32, #tpu.memory_space<vmem>>, vector<2x64xf32>,
    } else {
    }
    %c0 = arith.constant 0 : index
    %c0_1 = arith.constant 0 : index
    %3 = vector.load %arg1[%c0, %c0_1] : memref<1024x64xbf16, #tpu.memory_space<vmem>>, vector<1024x64xbf16>
    %4 = arith.extf %3 : vector<1024x64xbf16> to vector<1024x64xf32>
    %c0_2 = arith.constant 0 : index
    %c0_3 = arith.constant 0 : index
    %5 = vector.load %arg2[%c0_2, %c0_3] : memref<2x64xf32, #tpu.memory_space<vmem>>, vector<2x64xf32>
    %cst = arith.constant dense<0.000000e+00> : vector<64xf32>
    %6 = vector.multi_reduction <add>, %4, %cst [0] : vector<1024x64xf32> to vector<64xf32>
    %7 = vector.shape_cast %6 : vector<64xf32> to vector<1x64xf32>
    %8 = arith.mulf %4, %4 : vector<1024x64xf32>
    %cst_4 = arith.constant dense<0.000000e+00> : vector<64xf32>
    %9 = vector.multi_reduction <add>, %8, %cst_4 [0] : vector<1024x64xf32> to vector<64xf32>
    %10 = vector.shape_cast %9 : vector<64xf32> to vector<1x64xf32>
    %11 = tpu.concatenate %7, %10 in 0 : vector<1x64xf32>, vector<1x64xf32> -> vector<2x64xf32>
    %12 = arith.addf %5, %11 : vector<2x64xf32>
    %c0_5 = arith.constant 0 : index
    %c0_6 = arith.constant 0 : index
    %13 = vector.load %arg2[%c0_5, %c0_6] : memref<2x64xf32, #tpu.memory_space<vmem>>, vector<2x64xf32>
    tpu.vector_store %arg2[%c0_5, %c0_6], %12 {strides = array<i32>} : memref<2x64xf32, #tpu.memory_space<vmem>>, vector<2x64xf32>,
    return
  }
  func.func @transform_0(%arg0: i32) -> (i32, i32) {
    %c0_i32 = arith.constant 0 : i32
    %c0_i32_0 = arith.constant 0 : i32
    return %arg0, %c0_i32 : i32, i32
  }
  func.func @transform_1(%arg0: i32) -> (i32, i32) {
    %c0_i32 = arith.constant 0 : i32
    %c0_i32_0 = arith.constant 0 : i32
    %c0_i32_1 = arith.constant 0 : i32
    return %c0_i32, %c0_i32_0 : i32, i32
  }
}

module attributes {stable_mosaic.version = 11 : i64} {
  func.func @_bn_apply_kernel(%arg0: i32, %arg1: memref<1024x64xbf16, #tpu.memory_space<vmem>>, %arg2: memref<1x64xf32, #tpu.memory_space<vmem>>, %arg3: memref<1x64xf32, #tpu.memory_space<vmem>>, %arg4: memref<1024x64xbf16, #tpu.memory_space<vmem>>) attributes {dimension_semantics = [#tpu.dimension_semantics<parallel>], iteration_bounds = array<i64: 2>, scalar_prefetch = 0 : i64, scratch_operands = 0 : i64, tpu.core_type = #tpu.core_type<tc>, window_params = [{transform_indices = @transform_0, window_bounds = array<i64: 1024, 64>}, {pipeline_mode = #tpu.pipeline_mode<synchronous>, transform_indices = @transform_1, window_bounds = array<i64: 1, 64>}, {pipeline_mode = #tpu.pipeline_mode<synchronous>, transform_indices = @transform_2, window_bounds = array<i64: 1, 64>}, {transform_indices = @transform_3, window_bounds = array<i64: 1024, 64>}]} {
    %c0 = arith.constant 0 : index
    %c0_0 = arith.constant 0 : index
    %0 = vector.load %arg1[%c0, %c0_0] : memref<1024x64xbf16, #tpu.memory_space<vmem>>, vector<1024x64xbf16>
    %1 = arith.extf %0 : vector<1024x64xbf16> to vector<1024x64xf32>
    %c0_1 = arith.constant 0 : index
    %c0_2 = arith.constant 0 : index
    %2 = vector.load %arg2[%c0_1, %c0_2] : memref<1x64xf32, #tpu.memory_space<vmem>>, vector<1x64xf32>
    %3 = vector.broadcast %2 : vector<1x64xf32> to vector<1024x64xf32>
    %4 = arith.mulf %1, %3 : vector<1024x64xf32>
    %c0_3 = arith.constant 0 : index
    %c0_4 = arith.constant 0 : index
    %5 = vector.load %arg3[%c0_3, %c0_4] : memref<1x64xf32, #tpu.memory_space<vmem>>, vector<1x64xf32>
    %6 = vector.broadcast %5 : vector<1x64xf32> to vector<1024x64xf32>
    %7 = arith.addf %4, %6 : vector<1024x64xf32>
    %cst = arith.constant 0.000000e+00 : f32
    %8 = vector.broadcast %cst : f32 to vector<1024x64xf32>
    %9 = arith.maximumf %7, %8 : vector<1024x64xf32>
    %10 = arith.truncf %9 : vector<1024x64xf32> to vector<1024x64xbf16>
    %c0_5 = arith.constant 0 : index
    %c0_6 = arith.constant 0 : index
    %11 = vector.load %arg4[%c0_5, %c0_6] : memref<1024x64xbf16, #tpu.memory_space<vmem>>, vector<1024x64xbf16>
    tpu.vector_store %arg4[%c0_5, %c0_6], %10 {strides = array<i32>} : memref<1024x64xbf16, #tpu.memory_space<vmem>>, vector<1024x64xbf16>,
    return
  }
  func.func @transform_0(%arg0: i32) -> (i32, i32) {
    %c0_i32 = arith.constant 0 : i32
    %c0_i32_0 = arith.constant 0 : i32
    return %arg0, %c0_i32 : i32, i32
  }
  func.func @transform_1(%arg0: i32) -> (i32, i32) {
    %c0_i32 = arith.constant 0 : i32
    %c0_i32_0 = arith.constant 0 : i32
    %c0_i32_1 = arith.constant 0 : i32
    return %c0_i32, %c0_i32_0 : i32, i32
  }
  func.func @transform_2(%arg0: i32) -> (i32, i32) {
    %c0_i32 = arith.constant 0 : i32
    %c0_i32_0 = arith.constant 0 : i32
    %c0_i32_1 = arith.constant 0 : i32
    return %c0_i32, %c0_i32_0 : i32, i32
  }
  func.func @transform_3(%arg0: i32) -> (i32, i32) {
    %c0_i32 = arith.constant 0 : i32
    %c0_i32_0 = arith.constant 0 : i32
    return %arg0, %c0_i32 : i32, i32
  }
}

module attributes {stable_mosaic.version = 11 : i64} {
  func.func @kernel(%arg0: i32, %arg1: i32, %arg2: i32, %arg3: i32, %arg4: memref<1x512x256xbf16, #tpu.memory_space<vmem>>, %arg5: memref<1x256x128xbf16, #tpu.memory_space<vmem>>, %arg6: memref<1x128xf32, #tpu.memory_space<vmem>>, %arg7: memref<1x512x128xf32, #tpu.memory_space<vmem>>, %arg8: memref<512x128xf32, #tpu.memory_space<vmem>>) attributes {dimension_semantics = [#tpu.dimension_semantics<parallel>, #tpu.dimension_semantics<parallel>, #tpu.dimension_semantics<parallel>, #tpu.dimension_semantics<arbitrary>], iteration_bounds = array<i64: 4, 4, 1, 1>, scalar_prefetch = 0 : i64, scratch_operands = 1 : i64, tpu.core_type = #tpu.core_type<tc>, window_params = [{transform_indices = @transform_0, window_bounds = array<i64: 1, 512, 256>}, {transform_indices = @transform_1, window_bounds = array<i64: 1, 256, 128>}, {transform_indices = @transform_2, window_bounds = array<i64: 1, 128>}, {transform_indices = @transform_3, window_bounds = array<i64: 1, 512, 128>}]} {
    %c0_i32 = arith.constant 0 : i32
    %0 = arith.cmpi eq, %arg3, %c0_i32 : i32
    %1 = arith.extui %0 : i1 to i32
    %c0_i32_0 = arith.constant 0 : i32
    %2 = arith.cmpi ne, %1, %c0_i32_0 : i32
    scf.if %2 {
      %cst_12 = arith.constant 0.000000e+00 : f32
      %14 = vector.broadcast %cst_12 : f32 to vector<512x128xf32>
      %c0_13 = arith.constant 0 : index
      %c0_14 = arith.constant 0 : index
      %15 = vector.load %arg8[%c0_13, %c0_14] : memref<512x128xf32, #tpu.memory_space<vmem>>, vector<512x128xf32>
      tpu.vector_store %arg8[%c0_13, %c0_14], %14 {strides = array<i32>} : memref<512x128xf32, #tpu.memory_space<vmem>>, vector<512x128xf32>,
    } else {
    }
    %c0 = arith.constant 0 : index
    %c0_1 = arith.constant 0 : index
    %3 = vector.load %arg8[%c0, %c0_1] : memref<512x128xf32, #tpu.memory_space<vmem>>, vector<512x128xf32>
    %c0_2 = arith.constant 0 : index
    %c0_3 = arith.constant 0 : index
    %c0_4 = arith.constant 0 : index
    %4 = vector.load %arg4[%c0_2, %c0_3, %c0_4] : memref<1x512x256xbf16, #tpu.memory_space<vmem>>, vector<1x512x256xbf16>
    %5 = vector.shape_cast %4 : vector<1x512x256xbf16> to vector<512x256xbf16>
    %c0_5 = arith.constant 0 : index
    %c0_6 = arith.constant 0 : index
    %c0_7 = arith.constant 0 : index
    %6 = vector.load %arg5[%c0_5, %c0_6, %c0_7] : memref<1x256x128xbf16, #tpu.memory_space<vmem>>, vector<1x256x128xbf16>
    %7 = vector.shape_cast %6 : vector<1x256x128xbf16> to vector<256x128xbf16>
    %cst = arith.constant dense<0.000000e+00> : vector<512x128xf32>
    %8 = tpu.matmul %5, %7, %cst {dimension_numbers = #tpu.dot_dimension_numbers<[1], [0], [0], [1], [0, 0, 1, 1], [], []>} : vector<512x256xbf16>, vector<256x128xbf16>, vector<512x128xf32> -> vector<512x128xf32>
    %9 = arith.addf %3, %8 : vector<512x128xf32>
    %c0_8 = arith.constant 0 : index
    %c0_9 = arith.constant 0 : index
    %10 = vector.load %arg8[%c0_8, %c0_9] : memref<512x128xf32, #tpu.memory_space<vmem>>, vector<512x128xf32>
    tpu.vector_store %arg8[%c0_8, %c0_9], %9 {strides = array<i32>} : memref<512x128xf32, #tpu.memory_space<vmem>>, vector<512x128xf32>,
    %c0_i32_10 = arith.constant 0 : i32
    %11 = arith.cmpi eq, %arg3, %c0_i32_10 : i32
    %12 = arith.extui %11 : i1 to i32
    %c0_i32_11 = arith.constant 0 : i32
    %13 = arith.cmpi ne, %12, %c0_i32_11 : i32
    scf.if %13 {
      %c0_12 = arith.constant 0 : index
      %c0_13 = arith.constant 0 : index
      %14 = vector.load %arg8[%c0_12, %c0_13] : memref<512x128xf32, #tpu.memory_space<vmem>>, vector<512x128xf32>
      %c0_14 = arith.constant 0 : index
      %c0_15 = arith.constant 0 : index
      %15 = vector.load %arg6[%c0_14, %c0_15] : memref<1x128xf32, #tpu.memory_space<vmem>>, vector<1x128xf32>
      %16 = vector.broadcast %15 : vector<1x128xf32> to vector<512x128xf32>
      %17 = arith.addf %14, %16 : vector<512x128xf32>
      %18 = math.tanh %17 : vector<512x128xf32>
      %c0_16 = arith.constant 0 : index
      %c0_17 = arith.constant 0 : index
      %c0_18 = arith.constant 0 : index
      %19 = vector.load %arg7[%c0_16, %c0_17, %c0_18] : memref<1x512x128xf32, #tpu.memory_space<vmem>>, vector<1x512x128xf32>
      %20 = vector.shape_cast %19 : vector<1x512x128xf32> to vector<512x128xf32>
      %21 = vector.shape_cast %18 : vector<512x128xf32> to vector<1x512x128xf32>
      tpu.vector_store %arg7[%c0_16, %c0_17, %c0_18], %21 {strides = array<i32>} : memref<1x512x128xf32, #tpu.memory_space<vmem>>, vector<1x512x128xf32>,
    } else {
    }
    return
  }
  func.func @transform_0(%arg0: i32, %arg1: i32, %arg2: i32, %arg3: i32) -> (i32, i32, i32) {
    %c0_i32 = arith.constant 0 : i32
    return %arg0, %arg1, %arg3 : i32, i32, i32
  }
  func.func @transform_1(%arg0: i32, %arg1: i32, %arg2: i32, %arg3: i32) -> (i32, i32, i32) {
    %c0_i32 = arith.constant 0 : i32
    return %arg0, %arg3, %arg2 : i32, i32, i32
  }
  func.func @transform_2(%arg0: i32, %arg1: i32, %arg2: i32, %arg3: i32) -> (i32, i32) {
    %c0_i32 = arith.constant 0 : i32
    %c0_i32_0 = arith.constant 0 : i32
    return %c0_i32, %arg2 : i32, i32
  }
  func.func @transform_3(%arg0: i32, %arg1: i32, %arg2: i32, %arg3: i32) -> (i32, i32, i32) {
    %c0_i32 = arith.constant 0 : i32
    return %arg0, %arg1, %arg2 : i32, i32, i32
  }
}

</mosaic_0001>

<bundles_post_ra>
// kernel: squeeze.7
= control target key start
LH: loop header
LB: loop body
LE: loop exit
PB: predicated region body
PF: predicated region fallthrough
CT: control target
= control target key end

     0   :  { %s3924_s0 = inlined_call_operand.vmem [shape: bf16[1,2,16384], index: 0, kind: input, shape index: {}]   ;;  %s3925_s1 = inlined_call_operand.vmem [shape: bf16[128,256], index: 1, kind: output, shape index: {}]  }
   0x1   :  { %v3229_v0 = vld [vmem:[%s3924_s0 + $0x7f] sm:$0x1]  ;;  %v3230_v1 = vld [vmem:[%s3924_s0 + $0x7e] sm:$0x1]  ;;  %v3231_v2 = vld [vmem:[%s3924_s0 + $0x7d] sm:$0x1] }
   0x2   :  { %v18_v3 = vunpack.c.l.bf16 %v3229_v0  ;;  %v34_v4 = vunpack.c.l.bf16 %v3230_v1  ;;  %v50_v5 = vunpack.c.l.bf16 %v3231_v2  ;;  %v3232_v6 = vld [vmem:[%s3924_s0 + $0x7c] sm:$0x1]  ;;  %v3233_v7 = vld [vmem:[%s3924_s0 + $0x7b] sm:$0x1]  ;;  %v3234_v8 = vld [vmem:[%s3924_s0 + $0x7a] sm:$0x1] }
   0x3   :  { %v66_v9 = vunpack.c.l.bf16 %v3232_v6  ;;  %v82_v10 = vunpack.c.l.bf16 %v3233_v7  ;;  %v98_v11 = vunpack.c.l.bf16 %v3234_v8  ;;  %v3235_v12 = vld [vmem:[%s3924_s0 + $0x79] sm:$0x1]  ;;  %v3236_v13 = vld [vmem:[%s3924_s0 + $0x78] sm:$0x1]  ;;  %v3237_v14 = vld [vmem:[%s3924_s0 + $0x77] sm:$0x1] }
   0x4   :  { %21 = vst [vmem:[#allocation1 + $0x148] sm:$0x3] %v18_v3  ;;  %37 = vst [vmem:[#allocation1 + $0x48] sm:$0x3] %v34_v4  ;;  %v114_v15 = vunpack.c.l.bf16 %v3235_v12  ;;  %v130_v16 = vunpack.c.l.bf16 %v3236_v13  ;;  %v146_v17 = vunpack.c.l.bf16 %v3237_v14  ;;  %v3238_v18 = vld [vmem:[%s3924_s0 + $0x76] sm:$0x1] }
   0x5   :  { %53 = vst [vmem:[#allocation1 + $0x320] sm:$0x3] %v50_v5  ;;  %v3239_v19 = vld [vmem:[%s3924_s0 + $0x75] sm:$0x1]  ;;  %v3240_v20 = vld [vmem:[%s3924_s0 + $0x74] sm:$0x1]  ;;  %v162_v21 = vunpack.c.l.bf16 %v3238_v18 }
   0x6   :  { %69 = vst [vmem:[#allocation1 + $0x3e0] sm:$0x3] %v66_v9  ;;  %85 = vst [vmem:[#allocation1 + $0x3a8] sm:$0x3] %v82_v10  ;;  %v178_v22 = vunpack.c.l.bf16 %v3239_v19  ;;  %v194_v23 = vunpack.c.l.bf16 %v3240_v20  ;;  %v3241_v24 = vld [vmem:[%s3924_s0 + $0x73] sm:$0x1] }
   0x7   :  { %101 = vst [vmem:[#allocation1 + $0x90] sm:$0x3] %v98_v11  ;;  %v3242_v25 = vld [vmem:[%s3924_s0 + $0x72] sm:$0x1]  ;;  %v3243_v26 = vld [vmem:[%s3924_s0 + $0x71] sm:$0x1]  ;;  %v210_v27 = vunpack.c.l.bf16 %v3241_v24 }
   0x8   :  { %117 = vst [vmem:[#allocation1 + $0xc8] sm:$0x3] %v114_v15  ;;  %133 = vst [vmem:[#allocation1 + $0x3b0] sm:$0x3] %v130_v16  ;;  %v226_v28 = vunpack.c.l.bf16 %v3242_v25  ;;  %v242_v29 = vunpack.c.l.bf16 %v3243_v26  ;;  %v3244_v30 = vld [vmem:[%s3924_s0 + $0x70] sm:$0x1] }
   0x9   :  { %149 = vst [vmem:[#allocation1 + $0x78] sm:$0x3] %v146_v17  ;;  %v3245_v31 = vld [vmem:[%s3924_s0 + $0x6f] sm:$0x1]  ;;  %v3246_v32 = vld [vmem:[%s3924_s0 + $0x6e] sm:$0x1]  ;;  %v258_v33 = vunpack.c.l.bf16 %v3244_v30 }
   0xa   :  { %165 = vst [vmem:[#allocation1 + $0x2e8] sm:$0x3] %v162_v21  ;;  %181 = vst [vmem:[#allocation1 + $0x2e0] sm:$0x3] %v178_v22  ;;  %v274_v34 = vunpack.c.l.bf16 %v3245_v31  ;;  %v290_v35 = vunpack.c.l.bf16 %v3246_v32  ;;  %v3247_v36 = vld [vmem:[%s3924_s0 + $0x6d] sm:$0x1] }
   0xb   :  { %197 = vst [vmem:[#allocation1 + $0x360] sm:$0x3] %v194_v23  ;;  %v3248_v37 = vld [vmem:[%s3924_s0 + $0x6c] sm:$0x1]  ;;  %v3249_v38 = vld [vmem:[%s3924_s0 + $0x6b] sm:$0x1]  ;;  %v306_v39 = vunpack.c.l.bf16 %v3247_v36 }
   0xc   :  { %213 = vst [vmem:[#allocation1 + $0xd8] sm:$0x3] %v210_v27  ;;  %229 = vst [vmem:[#allocation1 + $0x2a8] sm:$0x3] %v226_v28  ;;  %v322_v40 = vunpack.c.l.bf16 %v3248_v37  ;;  %v338_v41 = vunpack.c.l.bf16 %v3249_v38  ;;  %v3250_v42 = vld [vmem:[%s3924_s0 + $0x6a] sm:$0x1] }
   0xd   :  { %245 = vst [vmem:[#allocation1 + $0x2f0] sm:$0x3] %v242_v29  ;;  %v3251_v43 = vld [vmem:[%s3924_s0 + $0x69] sm:$0x1]  ;;  %v3252_v44 = vld [vmem:[%s3924_s0 + $0x68] sm:$0x1]  ;;  %v354_v45 = vunpack.c.l.bf16 %v3250_v42 }
   0xe   :  { %261 = vst [vmem:[#allocation1 + $0x398] sm:$0x3] %v258_v33  ;;  %277 = vst [vmem:[#allocation1 + $0x118] sm:$0x3] %v274_v34  ;;  %v370_v46 = vunpack.c.l.bf16 %v3251_v43  ;;  %v386_v47 = vunpack.c.l.bf16 %v3252_v44  ;;  %v3253_v48 = vld [vmem:[%s3924_s0 + $0x67] sm:$0x1] }
   0xf   :  { %293 = vst [vmem:[#allocation1 + $0x70] sm:$0x3] %v290_v35  ;;  %v3254_v49 = vld [vmem:[%s3924_s0 + $0x66] sm:$0x1]  ;;  %v3255_v50 = vld [vmem:[%s3924_s0 + $0x65] sm:$0x1]  ;;  %v402_v51 = vunpack.c.l.bf16 %v3253_v48 }
  0x10   :  { %309 = vst [vmem:[#allocation1 + $0xc0] sm:$0x3] %v306_v39  ;;  %325 = vst [vmem:[#allocation1 + $0xb8] sm:$0x3] %v322_v40  ;;  %v418_v52 = vunpack.c.l.bf16 %v3254_v49  ;;  %v434_v53 = vunpack.c.l.bf16 %v3255_v50  ;;  %v3256_v54 = vld [vmem:[%s3924_s0 + $0x64] sm:$0x1] }
  0x11   :  { %341 = vst [vmem:[#allocation1 + $0x378] sm:$0x3] %v338_v41  ;;  %v3257_v55 = vld [vmem:[%s3924_s0 + $0x63] sm:$0x1]  ;;  %v3258_v56 = vld [vmem:[%s3924_s0 + $0x62] sm:$0x1]  ;;  %v450_v57 = vunpack.c.l.bf16 %v3256_v54 }
  0x12   :  { %357 = vst [vmem:[#allocation1 + $0x250] sm:$0x3] %v354_v45  ;;  %373 = vst [vmem:[#allocation1 + $0x240] sm:$0x3] %v370_v46  ;;  %v466_v58 = vunpack.c.l.bf16 %v3257_v55  ;;  %v482_v59 = vunpack.c.l.bf16 %v3258_v56  ;;  %v3259_v60 = vld [vmem:[%s3924_s0 + $0x61] sm:$0x1] }
  0x13   :  { %389 = vst [vmem:[#allocation1 + $0x290] sm:$0x3] %v386_v47  ;;  %v3260_v61 = vld [vmem:[%s3924_s0 + $0x60] sm:$0x1]  ;;  %v3261_v62 = vld [vmem:[%s3924_s0 + $0x5f] sm:$0x1]  ;;  %v498_v63 = vunpack.c.l.bf16 %v3259_v60 }
  0x14   :  { %405 = vst [vmem:[#allocation1 + $0x10] sm:$0x3] %v402_v51  ;;  %421 = vst [vmem:[#allocation1 + $0x100] sm:$0x3] %v418_v52  ;;  %v514_v0 = vunpack.c.l.bf16 %v3260_v61  ;;  %v530_v1 = vunpack.c.l.bf16 %v3261_v62  ;;  %v3262_v2 = vld [vmem:[%s3924_s0 + $0x5e] sm:$0x1] }
  0x15   :  { %437 = vst [vmem:[#allocation1 + $0x168] sm:$0x3] %v434_v53  ;;  %v3263_v3 = vld [vmem:[%s3924_s0 + $0x5d] sm:$0x1]  ;;  %v3264_v4 = vld [vmem:[%s3924_s0 + $0x5c] sm:$0x1]  ;;  %v546_v5 = vunpack.c.l.bf16 %v3262_v2 }
  0x16   :  { %453 = vst [vmem:[#allocation1 + $0x3d0] sm:$0x3] %v450_v57  ;;  %469 = vst [vmem:[#allocation1 + $0x2c0] sm:$0x3] %v466_v58  ;;  %v562_v6 = vunpack.c.l.bf16 %v3263_v3  ;;  %v578_v7 = vunpack.c.l.bf16 %v3264_v4  ;;  %v3265_v8 = vld [vmem:[%s3924_s0 + $0x5b] sm:$0x1] }
  0x17   :  { %485 = vst [vmem:[#allocation1 + $0x338] sm:$0x3] %v482_v59  ;;  %v3266_v9 = vld [vmem:[%s3924_s0 + $0x5a] sm:$0x1]  ;;  %v3267_v10 = vld [vmem:[%s3924_s0 + $0x59] sm:$0x1]  ;;  %v594_v11 = vunpack.c.l.bf16 %v3265_v8 }
  0x18   :  { %501 = vst [vmem:[#allocation1 + $0x238] sm:$0x3] %v498_v63  ;;  %517 = vst [vmem:[#allocation1 + $0x178] sm:$0x3] %v514_v0  ;;  %v610_v12 = vunpack.c.l.bf16 %v3266_v9  ;;  %v626_v13 = vunpack.c.l.bf16 %v3267_v10  ;;  %v3268_v14 = vld [vmem:[%s3924_s0 + $0x58] sm:$0x1] }
  0x19   :  { %533 = vst [vmem:[#allocation1 + $0x2f8] sm:$0x3] %v530_v1  ;;  %v3269_v15 = vld [vmem:[%s3924_s0 + $0x57] sm:$0x1]  ;;  %v3270_v16 = vld [vmem:[%s3924_s0 + $0x56] sm:$0x1]  ;;  %v642_v17 = vunpack.c.l.bf16 %v3268_v14 }
  0x1a   :  { %549 = vst [vmem:[#allocation1 + $0x38] sm:$0x3] %v546_v5  ;;  %565 = vst [vmem:[#allocation1 + $0x2a0] sm:$0x3] %v562_v6  ;;  %v658_v18 = vunpack.c.l.bf16 %v3269_v15  ;;  %v674_v19 = vunpack.c.l.bf16 %v3270_v16  ;;  %v3271_v20 = vld [vmem:[%s3924_s0 + $0x55] sm:$0x1] }
  0x1b   :  { %581 = vst [vmem:[#allocation1 + $0x18] sm:$0x3] %v578_v7  ;;  %v3272_v21 = vld [vmem:[%s3924_s0 + $0x54] sm:$0x1]  ;;  %v3273_v22 = vld [vmem:[%s3924_s0 + $0x53] sm:$0x1]  ;;  %v690_v23 = vunpack.c.l.bf16 %v3271_v20 }
  0x1c   :  { %597 = vst [vmem:[#allocation1 + $0x1e0] sm:$0x3] %v594_v11  ;;  %613 = vst [vmem:[#allocation1] sm:$0x3] %v610_v12  ;;  %v706_v24 = vunpack.c.l.bf16 %v3272_v21  ;;  %v722_v25 = vunpack.c.l.bf16 %v3273_v22  ;;  %v3274_v26 = vld [vmem:[%s3924_s0 + $0x52] sm:$0x1] }
  0x1d   :  { %629 = vst [vmem:[#allocation1 + $0x3f0] sm:$0x3] %v626_v13  ;;  %v3275_v27 = vld [vmem:[%s3924_s0 + $0x51] sm:$0x1]  ;;  %v3276_v28 = vld [vmem:[%s3924_s0 + $0x50] sm:$0x1]  ;;  %v738_v29 = vunpack.c.l.bf16 %v3274_v26 }
  0x1e   :  { %645 = vst [vmem:[#allocation1 + $0x2d0] sm:$0x3] %v642_v17  ;;  %661 = vst [vmem:[#allocation1 + $0x158] sm:$0x3] %v658_v18  ;;  %v754_v30 = vunpack.c.l.bf16 %v3275_v27  ;;  %v770_v31 = vunpack.c.l.bf16 %v3276_v28  ;;  %v3277_v32 = vld [vmem:[%s3924_s0 + $0x4f] sm:$0x1] }
  0x1f   :  { %677 = vst [vmem:[#allocation1 + $0x8] sm:$0x3] %v674_v19  ;;  %v3278_v33 = vld [vmem:[%s3924_s0 + $0x4e] sm:$0x1]  ;;  %v3279_v34 = vld [vmem:[%s3924_s0 + $0x4d] sm:$0x1]  ;;  %v786_v35 = vunpack.c.l.bf16 %v3277_v32 }
  0x20   :  { %693 = vst [vmem:[#allocation1 + $0x358] sm:$0x3] %v690_v23  ;;  %709 = vst [vmem:[#allocation1 + $0x138] sm:$0x3] %v706_v24  ;;  %v802_v36 = vunpack.c.l.bf16 %v3278_v33  ;;  %v818_v37 = vunpack.c.l.bf16 %v3279_v34  ;;  %v3280_v38 = vld [vmem:[%s3924_s0 + $0x4c] sm:$0x1] }
  0x21   :  { %725 = vst [vmem:[#allocation1 + $0x348] sm:$0x3] %v722_v25  ;;  %v3281_v39 = vld [vmem:[%s3924_s0 + $0x4b] sm:$0x1]  ;;  %v3282_v40 = vld [vmem:[%s3924_s0 + $0x4a] sm:$0x1]  ;;  %v834_v41 = vunpack.c.l.bf16 %v3280_v38 }
  0x22   :  { %741 = vst [vmem:[#allocation1 + $0x218] sm:$0x3] %v738_v29  ;;  %757 = vst [vmem:[#allocation1 + $0x208] sm:$0x3] %v754_v30  ;;  %v850_v42 = vunpack.c.l.bf16 %v3281_v39  ;;  %v866_v43 = vunpack.c.l.bf16 %v3282_v40  ;;  %v3283_v44 = vld [vmem:[%s3924_s0 + $0x49] sm:$0x1] }
  0x23   :  { %773 = vst [vmem:[#allocation1 + $0x3e8] sm:$0x3] %v770_v31  ;;  %v3284_v45 = vld [vmem:[%s3924_s0 + $0x48] sm:$0x1]  ;;  %v3285_v46 = vld [vmem:[%s3924_s0 + $0x47] sm:$0x1]  ;;  %v882_v47 = vunpack.c.l.bf16 %v3283_v44 }
  0x24   :  { %789 = vst [vmem:[#allocation1 + $0x1c8] sm:$0x3] %v786_v35  ;;  %805 = vst [vmem:[#allocation1 + $0x1b8] sm:$0x3] %v802_v36  ;;  %v898_v48 = vunpack.c.l.bf16 %v3284_v45  ;;  %v914_v49 = vunpack.c.l.bf16 %v3285_v46  ;;  %v3286_v50 = vld [vmem:[%s3924_s0 + $0x46] sm:$0x1] }
  0x25   :  { %821 = vst [vmem:[#allocation1 + $0x368] sm:$0x3] %v818_v37  ;;  %v3287_v51 = vld [vmem:[%s3924_s0 + $0x45] sm:$0x1]  ;;  %v3288_v52 = vld [vmem:[%s3924_s0 + $0x44] sm:$0x1]  ;;  %v930_v53 = vunpack.c.l.bf16 %v3286_v50 }
  0x26   :  { %837 = vst [vmem:[#allocation1 + $0x58] sm:$0x3] %v834_v41  ;;  %853 = vst [vmem:[#allocation1 + $0x1f0] sm:$0x3] %v850_v42  ;;  %v946_v54 = vunpack.c.l.bf16 %v3287_v51  ;;  %v962_v55 = vunpack.c.l.bf16 %v3288_v52  ;;  %v3289_v56 = vld [vmem:[%s3924_s0 + $0x43] sm:$0x1] }
  0x27   :  { %869 = vst [vmem:[#allocation1 + $0x328] sm:$0x3] %v866_v43  ;;  %v3290_v57 = vld [vmem:[%s3924_s0 + $0x42] sm:$0x1]  ;;  %v3291_v58 = vld [vmem:[%s3924_s0 + $0x41] sm:$0x1]  ;;  %v978_v59 = vunpack.c.l.bf16 %v3289_v56 }
  0x28   :  { %885 = vst [vmem:[#allocation1 + $0x370] sm:$0x3] %v882_v47  ;;  %901 = vst [vmem:[#allocation1 + $0x108] sm:$0x3] %v898_v48  ;;  %v994_v60 = vunpack.c.l.bf16 %v3290_v57  ;;  %v1010_v61 = vunpack.c.l.bf16 %v3291_v58  ;;  %v3292_v62 = vld [vmem:[%s3924_s0 + $0x40] sm:$0x1] }
  0x29   :  { %917 = vst [vmem:[#allocation1 + $0xa0] sm:$0x3] %v914_v49  ;;  %v3293_v63 = vld [vmem:[%s3924_s0 + $0x3f] sm:$0x1]  ;;  %v3294_v0 = vld [vmem:[%s3924_s0 + $0x3e] sm:$0x1]  ;;  %v1026_v1 = vunpack.c.l.bf16 %v3292_v62 }
  0x2a   :  { %933 = vst [vmem:[#allocation1 + $0x190] sm:$0x3] %v930_v53  ;;  %949 = vst [vmem:[#allocation1 + $0xa8] sm:$0x3] %v946_v54  ;;  %v1042_v2 = vunpack.c.l.bf16 %v3293_v63  ;;  %v1058_v3 = vunpack.c.l.bf16 %v3294_v0  ;;  %v3295_v4 = vld [vmem:[%s3924_s0 + $0x3d] sm:$0x1] }
  0x2b   :  { %965 = vst [vmem:[#allocation1 + $0x270] sm:$0x3] %v962_v55  ;;  %v3296_v5 = vld [vmem:[%s3924_s0 + $0x3c] sm:$0x1]  ;;  %v3297_v6 = vld [vmem:[%s3924_s0 + $0x3b] sm:$0x1]  ;;  %v1074_v7 = vunpack.c.l.bf16 %v3295_v4 }
  0x2c   :  { %981 = vst [vmem:[#allocation1 + $0x220] sm:$0x3] %v978_v59  ;;  %997 = vst [vmem:[#allocation1 + $0x3c8] sm:$0x3] %v994_v60  ;;  %v1090_v8 = vunpack.c.l.bf16 %v3296_v5  ;;  %v1106_v9 = vunpack.c.l.bf16 %v3297_v6  ;;  %v3298_v10 = vld [vmem:[%s3924_s0 + $0x3a] sm:$0x1] }
  0x2d   :  { %1013 = vst [vmem:[#allocation1 + $0x2b8] sm:$0x3] %v1010_v61  ;;  %v3299_v11 = vld [vmem:[%s3924_s0 + $0x39] sm:$0x1]  ;;  %v3300_v12 = vld [vmem:[%s3924_s0 + $0x38] sm:$0x1]  ;;  %v1122_v13 = vunpack.c.l.bf16 %v3298_v10 }
  0x2e   :  { %1029 = vst [vmem:[#allocation1 + $0x150] sm:$0x3] %v1026_v1  ;;  %1045 = vst [vmem:[#allocation1 + $0x2c8] sm:$0x3] %v1042_v2  ;;  %v1138_v14 = vunpack.c.l.bf16 %v3299_v11  ;;  %v1154_v15 = vunpack.c.l.bf16 %v3300_v12  ;;  %v3301_v16 = vld [vmem:[%s3924_s0 + $0x37] sm:$0x1] }
  0x2f   :  { %1061 = vst [vmem:[#allocation1 + $0x1f8] sm:$0x3] %v1058_v3  ;;  %v3302_v17 = vld [vmem:[%s3924_s0 + $0x36] sm:$0x1]  ;;  %v3303_v18 = vld [vmem:[%s3924_s0 + $0x35] sm:$0x1]  ;;  %v1170_v19 = vunpack.c.l.bf16 %v3301_v16 }
  0x30   :  { %1077 = vst [vmem:[#allocation1 + $0xe0] sm:$0x3] %v1074_v7  ;;  %1093 = vst [vmem:[#allocation1 + $0x1d8] sm:$0x3] %v1090_v8  ;;  %v1186_v20 = vunpack.c.l.bf16 %v3302_v17  ;;  %v1202_v21 = vunpack.c.l.bf16 %v3303_v18  ;;  %v3304_v22 = vld [vmem:[%s3924_s0 + $0x34] sm:$0x1] }
  0x31   :  { %1109 = vst [vmem:[#allocation1 + $0x388] sm:$0x3] %v1106_v9  ;;  %v3305_v23 = vld [vmem:[%s3924_s0 + $0x33] sm:$0x1]  ;;  %v3306_v24 = vld [vmem:[%s3924_s0 + $0x32] sm:$0x1]  ;;  %v1218_v25 = vunpack.c.l.bf16 %v3304_v22 }
  0x32   :  { %1125 = vst [vmem:[#allocation1 + $0xf8] sm:$0x3] %v1122_v13  ;;  %1141 = vst [vmem:[#allocation1 + $0x318] sm:$0x3] %v1138_v14  ;;  %v1234_v26 = vunpack.c.l.bf16 %v3305_v23  ;;  %v1250_v27 = vunpack.c.l.bf16 %v3306_v24  ;;  %v3307_v28 = vld [vmem:[%s3924_s0 + $0x31] sm:$0x1] }
  0x33   :  { %1157 = vst [vmem:[#allocation1 + $0x280] sm:$0x3] %v1154_v15  ;;  %v3308_v29 = vld [vmem:[%s3924_s0 + $0x30] sm:$0x1]  ;;  %v3309_v30 = vld [vmem:[%s3924_s0 + $0x2f] sm:$0x1]  ;;  %v1266_v31 = vunpack.c.l.bf16 %v3307_v28 }
  0x34   :  { %1173 = vst [vmem:[#allocation1 + $0xd0] sm:$0x3] %v1170_v19  ;;  %1189 = vst [vmem:[#allocation1 + $0x198] sm:$0x3] %v1186_v20  ;;  %v1282_v32 = vunpack.c.l.bf16 %v3308_v29  ;;  %v1298_v33 = vunpack.c.l.bf16 %v3309_v30  ;;  %v3310_v34 = vld [vmem:[%s3924_s0 + $0x2e] sm:$0x1] }
  0x35   :  { %1205 = vst [vmem:[#allocation1 + $0x40] sm:$0x3] %v1202_v21  ;;  %v3311_v35 = vld [vmem:[%s3924_s0 + $0x2d] sm:$0x1]  ;;  %v3312_v36 = vld [vmem:[%s3924_s0 + $0x2c] sm:$0x1]  ;;  %v1314_v37 = vunpack.c.l.bf16 %v3310_v34 }
  0x36   :  { %1221 = vst [vmem:[#allocation1 + $0x140] sm:$0x3] %v1218_v25  ;;  %1237 = vst [vmem:[#allocation1 + $0x1b0] sm:$0x3] %v1234_v26  ;;  %v1330_v38 = vunpack.c.l.bf16 %v3311_v35  ;;  %v1346_v39 = vunpack.c.l.bf16 %v3312_v36  ;;  %v3313_v40 = vld [vmem:[%s3924_s0 + $0x2b] sm:$0x1] }
  0x37   :  { %1253 = vst [vmem:[#allocation1 + $0x3b8] sm:$0x3] %v1250_v27  ;;  %v3314_v41 = vld [vmem:[%s3924_s0 + $0x2a] sm:$0x1]  ;;  %v3315_v42 = vld [vmem:[%s3924_s0 + $0x29] sm:$0x1]  ;;  %v1362_v43 = vunpack.c.l.bf16 %v3313_v40 }
  0x38   :  { %1269 = vst [vmem:[#allocation1 + $0x3d8] sm:$0x3] %v1266_v31  ;;  %1285 = vst [vmem:[#allocation1 + $0x310] sm:$0x3] %v1282_v32  ;;  %v1378_v44 = vunpack.c.l.bf16 %v3314_v41  ;;  %v1394_v45 = vunpack.c.l.bf16 %v3315_v42  ;;  %v3316_v46 = vld [vmem:[%s3924_s0 + $0x28] sm:$0x1] }
  0x39   :  { %1301 = vst [vmem:[#allocation1 + $0x170] sm:$0x3] %v1298_v33  ;;  %v3317_v47 = vld [vmem:[%s3924_s0 + $0x27] sm:$0x1]  ;;  %v3318_v48 = vld [vmem:[%s3924_s0 + $0x26] sm:$0x1]  ;;  %v1410_v49 = vunpack.c.l.bf16 %v3316_v46 }
  0x3a   :  { %1317 = vst [vmem:[#allocation1 + $0x50] sm:$0x3] %v1314_v37  ;;  %1333 = vst [vmem:[#allocation1 + $0x30] sm:$0x3] %v1330_v38  ;;  %v1426_v50 = vunpack.c.l.bf16 %v3317_v47  ;;  %v1442_v51 = vunpack.c.l.bf16 %v3318_v48  ;;  %v3319_v52 = vld [vmem:[%s3924_s0 + $0x25] sm:$0x1] }
  0x3b   :  { %1349 = vst [vmem:[#allocation1 + $0x298] sm:$0x3] %v1346_v39  ;;  %v3320_v53 = vld [vmem:[%s3924_s0 + $0x24] sm:$0x1]  ;;  %v3321_v54 = vld [vmem:[%s3924_s0 + $0x23] sm:$0x1]  ;;  %v1458_v55 = vunpack.c.l.bf16 %v3319_v52 }
  0x3c   :  { %1365 = vst [vmem:[#allocation1 + $0x130] sm:$0x3] %v1362_v43  ;;  %1381 = vst [vmem:[#allocation1 + $0x1e8] sm:$0x3] %v1378_v44  ;;  %v1474_v56 = vunpack.c.l.bf16 %v3320_v53  ;;  %v1490_v57 = vunpack.c.l.bf16 %v3321_v54  ;;  %v3322_v58 = vld [vmem:[%s3924_s0 + $0x22] sm:$0x1] }
  0x3d   :  { %1397 = vst [vmem:[#allocation1 + $0x20] sm:$0x3] %v1394_v45  ;;  %v3323_v59 = vld [vmem:[%s3924_s0 + $0x21] sm:$0x1]  ;;  %v3324_v60 = vld [vmem:[%s3924_s0 + $0x20] sm:$0x1]  ;;  %v1506_v61 = vunpack.c.l.bf16 %v3322_v58 }
  0x3e   :  { %1413 = vst [vmem:[#allocation1 + $0x210] sm:$0x3] %v1410_v49  ;;  %1429 = vst [vmem:[#allocation1 + $0x248] sm:$0x3] %v1426_v50  ;;  %v1522_v62 = vunpack.c.l.bf16 %v3323_v59  ;;  %v1538_v63 = vunpack.c.l.bf16 %v3324_v60  ;;  %v3325_v0 = vld [vmem:[%s3924_s0 + $0x1f] sm:$0x1] }
  0x3f   :  { %1445 = vst [vmem:[#allocation1 + $0x230] sm:$0x3] %v1442_v51  ;;  %v3326_v1 = vld [vmem:[%s3924_s0 + $0x1e] sm:$0x1]  ;;  %v3327_v2 = vld [vmem:[%s3924_s0 + $0x1d] sm:$0x1]  ;;  %v1554_v3 = vunpack.c.l.bf16 %v3325_v0 }
  0x40   :  { %1461 = vst [vmem:[#allocation1 + $0x128] sm:$0x3] %v1458_v55  ;;  %1477 = vst [vmem:[#allocation1 + $0x228] sm:$0x3] %v1474_v56  ;;  %v1570_v4 = vunpack.c.l.bf16 %v3326_v1  ;;  %v1586_v5 = vunpack.c.l.bf16 %v3327_v2  ;;  %v3328_v6 = vld [vmem:[%s3924_s0 + $0x1c] sm:$0x1] }
  0x41   :  { %1493 = vst [vmem:[#allocation1 + $0x3a0] sm:$0x3] %v1490_v57  ;;  %v3329_v7 = vld [vmem:[%s3924_s0 + $0x1b] sm:$0x1]  ;;  %v3330_v8 = vld [vmem:[%s3924_s0 + $0x1a] sm:$0x1]  ;;  %v1602_v9 = vunpack.c.l.bf16 %v3328_v6 }
  0x42   :  { %1509 = vst [vmem:[#allocation1 + $0x2d8] sm:$0x3] %v1506_v61  ;;  %1525 = vst [vmem:[#allocation1 + $0x260] sm:$0x3] %v1522_v62  ;;  %v1618_v10 = vunpack.c.l.bf16 %v3329_v7  ;;  %v1634_v11 = vunpack.c.l.bf16 %v3330_v8  ;;  %v3331_v12 = vld [vmem:[%s3924_s0 + $0x19] sm:$0x1] }
  0x43   :  { %1541 = vst [vmem:[#allocation1 + $0x110] sm:$0x3] %v1538_v63  ;;  %v3332_v13 = vld [vmem:[%s3924_s0 + $0x18] sm:$0x1]  ;;  %v3333_v14 = vld [vmem:[%s3924_s0 + $0x17] sm:$0x1]  ;;  %v1650_v15 = vunpack.c.l.bf16 %v3331_v12 }
  0x44   :  { %1557 = vst [vmem:[#allocation1 + $0x200] sm:$0x3] %v1554_v3  ;;  %1573 = vst [vmem:[#allocation1 + $0x1c0] sm:$0x3] %v1570_v4  ;;  %v1666_v16 = vunpack.c.l.bf16 %v3332_v13  ;;  %v1682_v17 = vunpack.c.l.bf16 %v3333_v14  ;;  %v3334_v18 = vld [vmem:[%s3924_s0 + $0x16] sm:$0x1] }
  0x45   :  { %1589 = vst [vmem:[#allocation1 + $0x60] sm:$0x3] %v1586_v5  ;;  %v3335_v19 = vld [vmem:[%s3924_s0 + $0x15] sm:$0x1]  ;;  %v3336_v20 = vld [vmem:[%s3924_s0 + $0x14] sm:$0x1]  ;;  %v1698_v21 = vunpack.c.l.bf16 %v3334_v18 }
  0x46   :  { %1605 = vst [vmem:[#allocation1 + $0x68] sm:$0x3] %v1602_v9  ;;  %1621 = vst [vmem:[#allocation1 + $0x258] sm:$0x3] %v1618_v10  ;;  %v1714_v22 = vunpack.c.l.bf16 %v3335_v19  ;;  %v1730_v23 = vunpack.c.l.bf16 %v3336_v20  ;;  %v3337_v24 = vld [vmem:[%s3924_s0 + $0x13] sm:$0x1] }
  0x47   :  { %1637 = vst [vmem:[#allocation1 + $0x350] sm:$0x3] %v1634_v11  ;;  %v3338_v25 = vld [vmem:[%s3924_s0 + $0x12] sm:$0x1]  ;;  %v3339_v26 = vld [vmem:[%s3924_s0 + $0x11] sm:$0x1]  ;;  %v1746_v27 = vunpack.c.l.bf16 %v3337_v24 }
  0x48   :  { %1653 = vst [vmem:[#allocation1 + $0x1a0] sm:$0x3] %v1650_v15  ;;  %1669 = vst [vmem:[#allocation1 + $0x120] sm:$0x3] %v1666_v16  ;;  %v1762_v28 = vunpack.c.l.bf16 %v3338_v25  ;;  %v1778_v29 = vunpack.c.l.bf16 %v3339_v26  ;;  %v3340_v30 = vld [vmem:[%s3924_s0 + $0x10] sm:$0x1] }
  0x49   :  { %1685 = vst [vmem:[#allocation1 + $0x308] sm:$0x3] %v1682_v17  ;;  %v3341_v31 = vld [vmem:[%s3924_s0 + $0xf] sm:$0x1]  ;;  %v3342_v32 = vld [vmem:[%s3924_s0 + $0xe] sm:$0x1]  ;;  %v1794_v33 = vunpack.c.l.bf16 %v3340_v30 }
  0x4a   :  { %1701 = vst [vmem:[#allocation1 + $0x278] sm:$0x3] %v1698_v21  ;;  %1717 = vst [vmem:[#allocation1 + $0x288] sm:$0x3] %v1714_v22  ;;  %v1810_v34 = vunpack.c.l.bf16 %v3341_v31  ;;  %v1826_v35 = vunpack.c.l.bf16 %v3342_v32  ;;  %v3343_v36 = vld [vmem:[%s3924_s0 + $0xd] sm:$0x1] }
  0x4b   :  { %1733 = vst [vmem:[#allocation1 + $0x28] sm:$0x3] %v1730_v23  ;;  %v3344_v37 = vld [vmem:[%s3924_s0 + $0xc] sm:$0x1]  ;;  %v3345_v38 = vld [vmem:[%s3924_s0 + $0xb] sm:$0x1]  ;;  %v1842_v39 = vunpack.c.l.bf16 %v3343_v36 }
  0x4c   :  { %1749 = vst [vmem:[#allocation1 + $0x1a8] sm:$0x3] %v1746_v27  ;;  %1765 = vst [vmem:[#allocation1 + $0x80] sm:$0x3] %v1762_v28  ;;  %v1858_v40 = vunpack.c.l.bf16 %v3344_v37  ;;  %v1874_v41 = vunpack.c.l.bf16 %v3345_v38  ;;  %v3346_v42 = vld [vmem:[%s3924_s0 + $0xa] sm:$0x1] }
  0x4d   :  { %1781 = vst [vmem:[#allocation1 + $0x340] sm:$0x3] %v1778_v29  ;;  %v3347_v43 = vld [vmem:[%s3924_s0 + $0x9] sm:$0x1]  ;;  %v3348_v44 = vld [vmem:[%s3924_s0 + $0x8] sm:$0x1]  ;;  %v1890_v45 = vunpack.c.l.bf16 %v3346_v42 }
  0x4e   :  { %1797 = vst [vmem:[#allocation1 + $0x3c0] sm:$0x3] %v1794_v33  ;;  %1813 = vst [vmem:[#allocation1 + $0x380] sm:$0x3] %v1810_v34  ;;  %v1906_v46 = vunpack.c.l.bf16 %v3347_v43  ;;  %v1922_v47 = vunpack.c.l.bf16 %v3348_v44  ;;  %v3349_v48 = vld [vmem:[%s3924_s0 + $0x7] sm:$0x1] }
  0x4f   :  { %1829 = vst [vmem:[#allocation1 + $0xf0] sm:$0x3] %v1826_v35  ;;  %v3350_v49 = vld [vmem:[%s3924_s0 + $0x6] sm:$0x1]  ;;  %v3351_v50 = vld [vmem:[%s3924_s0 + $0x5] sm:$0x1]  ;;  %v1938_v51 = vunpack.c.l.bf16 %v3349_v48 }
  0x50   :  { %1845 = vst [vmem:[#allocation1 + $0x88] sm:$0x3] %v1842_v39  ;;  %1861 = vst [vmem:[#allocation1 + $0x330] sm:$0x3] %v1858_v40  ;;  %v1954_v52 = vunpack.c.l.bf16 %v3350_v49  ;;  %v1970_v53 = vunpack.c.l.bf16 %v3351_v50  ;;  %v3352_v54 = vld [vmem:[%s3924_s0 + $0x4] sm:$0x1] }
  0x51   :  { %1877 = vst [vmem:[#allocation1 + $0x180] sm:$0x3] %v1874_v41  ;;  %v3353_v55 = vld [vmem:[%s3924_s0 + $0x3] sm:$0x1]  ;;  %v3354_v56 = vld [vmem:[%s3924_s0 + $0x2] sm:$0x1]  ;;  %v1986_v57 = vunpack.c.l.bf16 %v3352_v54 }
  0x52   :  { %1893 = vst [vmem:[#allocation1 + $0x98] sm:$0x3] %v1890_v45  ;;  %1909 = vst [vmem:[#allocation1 + $0x1d0] sm:$0x3] %v1906_v46  ;;  %v2002_v58 = vunpack.c.l.bf16 %v3353_v55  ;;  %v2018_v59 = vunpack.c.l.bf16 %v3354_v56  ;;  %v3355_v60 = vld [vmem:[%s3924_s0 + $0x1] sm:$0x1] }
  0x53   :  { %1925 = vst [vmem:[#allocation1 + $0xb0] sm:$0x3] %v1922_v47  ;;  %v2046_v61 = vld [vmem:[%s3924_s0] sm:$0x1]  ;;  %1941 = vst [vmem:[#allocation1 + $0x2b0] sm:$0x3] %v1938_v51  ;;  %v2033_v63 = vunpack.c.l.bf16 %v3355_v60 }
  0x54   :  { %v2223_v62 = vld [vmem:[#allocation1 + $0x60] sm:$0x3]   ;;  %1957 = vst [vmem:[#allocation1 + $0x300] sm:$0x3] %v1954_v52  ;;  %1973 = vst [vmem:[#allocation1 + $0x390] sm:$0x3] %v1970_v53  ;;  %v2047_v0 = vunpack.c.l.bf16 %v2046_v61 }
  0x55   :  { %v2205_v1 = vld [vmem:[#allocation1 + $0x350] sm:$0x3]   ;;  %v2211_v2 = vld [vmem:[#allocation1 + $0x258] sm:$0x3]   ;;  %v2217_v3 = vld [vmem:[#allocation1 + $0x68] sm:$0x3]  }
  0x56   :  { %2225 = vst [vmem:[#allocation0 + $0x1e] sm:$0x1] %v2223_v62   ;;  %2227 = vst [vmem:[#allocation0 + $0x9d] sm:$0x2] %v2223_v62   ;;  %v2187_v4 = vld [vmem:[#allocation1 + $0x308] sm:$0x3]  }
  0x57   :  { %1989 = vst [vmem:[#allocation1 + $0x3f8] sm:$0x3] %v1986_v57  ;;  %2005 = vst [vmem:[#allocation1 + $0x160] sm:$0x3] %v2002_v58  ;;  %v2193_v5 = vld [vmem:[#allocation1 + $0x120] sm:$0x3]  }
  0x58   :  { %2021 = vst [vmem:[#allocation1 + $0x188] sm:$0x3] %v2018_v59  ;;  %v2199_v6 = vld [vmem:[#allocation1 + $0x1a0] sm:$0x3]   ;;  %2207 = vst [vmem:[#allocation0 + $0x15] sm:$0x1] %v2205_v1  }
  0x59   :  { %2209 = vst [vmem:[#allocation0 + $0x94] sm:$0x2] %v2205_v1   ;;  %2213 = vst [vmem:[#allocation0 + $0x1d] sm:$0x1] %v2211_v2   ;;  %v2169_v7 = vld [vmem:[#allocation1 + $0x28] sm:$0x3]  }
  0x5a   :  { %2215 = vst [vmem:[#allocation0 + $0x9c] sm:$0x2] %v2211_v2   ;;  %2219 = vst [vmem:[#allocation0 + $0x16] sm:$0x1] %v2217_v3   ;;  %v2175_v8 = vld [vmem:[#allocation1 + $0x288] sm:$0x3]  }
  0x5b   :  { %2221 = vst [vmem:[#allocation0 + $0x95] sm:$0x2] %v2217_v3   ;;  %2036 = vst [vmem:[#allocation1 + $0xe8] sm:$0x3] %v2033_v63  ;;  %v2181_v9 = vld [vmem:[#allocation1 + $0x278] sm:$0x3]  }
  0x5c   :  { %2049 = vst [vmem:[#allocation1 + $0x268] sm:$0x3] %v2047_v0  ;;  %2189 = vst [vmem:[#allocation0 + $0x1b] sm:$0x1] %v2187_v4   ;;  %v2151_v10 = vld [vmem:[#allocation1 + $0x340] sm:$0x3]  }
  0x5d   :  { %2191 = vst [vmem:[#allocation0 + $0x9a] sm:$0x2] %v2187_v4   ;;  %2195 = vst [vmem:[#allocation0 + $0x14] sm:$0x1] %v2193_v5   ;;  %v2157_v11 = vld [vmem:[#allocation1 + $0x80] sm:$0x3]  }
  0x5e   :  { %2197 = vst [vmem:[#allocation0 + $0x93] sm:$0x2] %v2193_v5   ;;  %2201 = vst [vmem:[#allocation0 + $0x1c] sm:$0x1] %v2199_v6   ;;  %v2163_v12 = vld [vmem:[#allocation1 + $0x1a8] sm:$0x3]  }
  0x5f   :  { %2203 = vst [vmem:[#allocation0 + $0x9b] sm:$0x2] %v2199_v6   ;;  %2171 = vst [vmem:[#allocation0 + $0x12] sm:$0x1] %v2169_v7   ;;  %v2133_v13 = vld [vmem:[#allocation1 + $0xf0] sm:$0x3]  }
  0x60   :  { %2173 = vst [vmem:[#allocation0 + $0x91] sm:$0x2] %v2169_v7   ;;  %2177 = vst [vmem:[#allocation0 + $0x1a] sm:$0x1] %v2175_v8   ;;  %v2139_v14 = vld [vmem:[#allocation1 + $0x380] sm:$0x3]  }
  0x61   :  { %2179 = vst [vmem:[#allocation0 + $0x99] sm:$0x2] %v2175_v8   ;;  %2183 = vst [vmem:[#allocation0 + $0x13] sm:$0x1] %v2181_v9   ;;  %v2145_v15 = vld [vmem:[#allocation1 + $0x3c0] sm:$0x3]  }
  0x62   :  { %2185 = vst [vmem:[#allocation0 + $0x92] sm:$0x2] %v2181_v9   ;;  %2153 = vst [vmem:[#allocation0 + $0x18] sm:$0x1] %v2151_v10   ;;  %v2115_v16 = vld [vmem:[#allocation1 + $0x180] sm:$0x3]  }
  0x63   :  { %2155 = vst [vmem:[#allocation0 + $0x97] sm:$0x2] %v2151_v10   ;;  %2159 = vst [vmem:[#allocation0 + $0x11] sm:$0x1] %v2157_v11   ;;  %v2121_v17 = vld [vmem:[#allocation1 + $0x330] sm:$0x3]  }
  0x64   :  { %2161 = vst [vmem:[#allocation0 + $0x90] sm:$0x2] %v2157_v11   ;;  %2165 = vst [vmem:[#allocation0 + $0x19] sm:$0x1] %v2163_v12   ;;  %v2127_v18 = vld [vmem:[#allocation1 + $0x88] sm:$0x3]  }
  0x65   :  { %2167 = vst [vmem:[#allocation0 + $0x98] sm:$0x2] %v2163_v12   ;;  %2135 = vst [vmem:[#allocation0 + $0x7] sm:$0x1] %v2133_v13   ;;  %v2097_v19 = vld [vmem:[#allocation1 + $0xb0] sm:$0x3]  }
  0x66   :  { %2137 = vst [vmem:[#allocation0 + $0x86] sm:$0x2] %v2133_v13   ;;  %2141 = vst [vmem:[#allocation0 + $0xf] sm:$0x1] %v2139_v14   ;;  %v2103_v20 = vld [vmem:[#allocation1 + $0x1d0] sm:$0x3]  }
  0x67   :  { %2143 = vst [vmem:[#allocation0 + $0x8e] sm:$0x2] %v2139_v14   ;;  %2147 = vst [vmem:[#allocation0 + $0x10] sm:$0x1] %v2145_v15   ;;  %v2109_v21 = vld [vmem:[#allocation1 + $0x98] sm:$0x3]  }
  0x68   :  { %2149 = vst [vmem:[#allocation0 + $0x8f] sm:$0x2] %v2145_v15   ;;  %2117 = vst [vmem:[#allocation0 + $0xd] sm:$0x1] %v2115_v16   ;;  %v2079_v22 = vld [vmem:[#allocation1 + $0x390] sm:$0x3]  }
  0x69   :  { %2119 = vst [vmem:[#allocation0 + $0x8c] sm:$0x2] %v2115_v16   ;;  %2123 = vst [vmem:[#allocation0 + $0x6] sm:$0x1] %v2121_v17   ;;  %v2085_v23 = vld [vmem:[#allocation1 + $0x300] sm:$0x3]  }
  0x6a   :  { %2125 = vst [vmem:[#allocation0 + $0x85] sm:$0x2] %v2121_v17   ;;  %2129 = vst [vmem:[#allocation0 + $0xe] sm:$0x1] %v2127_v18   ;;  %v2091_v24 = vld [vmem:[#allocation1 + $0x2b0] sm:$0x3]  }
  0x6b   :  { %2131 = vst [vmem:[#allocation0 + $0x8d] sm:$0x2] %v2127_v18   ;;  %2099 = vst [vmem:[#allocation0 + $0x4] sm:$0x1] %v2097_v19   ;;  %v2061_v25 = vld [vmem:[#allocation1 + $0x188] sm:$0x3]  }
  0x6c   :  { %2101 = vst [vmem:[#allocation0 + $0x83] sm:$0x2] %v2097_v19   ;;  %2105 = vst [vmem:[#allocation0 + $0xc] sm:$0x1] %v2103_v20   ;;  %v2067_v26 = vld [vmem:[#allocation1 + $0x160] sm:$0x3]  }
  0x6d   :  { %2107 = vst [vmem:[#allocation0 + $0x8b] sm:$0x2] %v2103_v20   ;;  %2111 = vst [vmem:[#allocation0 + $0x5] sm:$0x1] %v2109_v21   ;;  %v2073_v27 = vld [vmem:[#allocation1 + $0x3f8] sm:$0x3]  }
  0x6e   :  { %2113 = vst [vmem:[#allocation0 + $0x84] sm:$0x2] %v2109_v21   ;;  %2081 = vst [vmem:[#allocation0 + $0xa] sm:$0x1] %v2079_v22   ;;  %v2050_v28 = vld [vmem:[#allocation1 + $0x268] sm:$0x3]  }
  0x6f   :  { %2083 = vst [vmem:[#allocation0 + $0x89] sm:$0x2] %v2079_v22   ;;  %2087 = vst [vmem:[#allocation0 + $0x3] sm:$0x1] %v2085_v23   ;;  %v2055_v29 = vld [vmem:[#allocation1 + $0xe8] sm:$0x3]  }
  0x70   :  { %2089 = vst [vmem:[#allocation0 + $0x82] sm:$0x2] %v2085_v23   ;;  %2093 = vst [vmem:[#allocation0 + $0xb] sm:$0x1] %v2091_v24   ;;  %v2229_v30 = vld [vmem:[#allocation1 + $0x1c0] sm:$0x3]  }
  0x71   :  { %2095 = vst [vmem:[#allocation0 + $0x8a] sm:$0x2] %v2091_v24   ;;  %2063 = vst [vmem:[#allocation0 + $0x1] sm:$0x1] %v2061_v25   ;;  %v2235_v31 = vld [vmem:[#allocation1 + $0x200] sm:$0x3]  }
  0x72   :  { %2065 = vst [vmem:[#allocation0 + $0x80] sm:$0x2] %v2061_v25   ;;  %2069 = vst [vmem:[#allocation0 + $0x9] sm:$0x1] %v2067_v26   ;;  %v2241_v32 = vld [vmem:[#allocation1 + $0x110] sm:$0x3]  }
  0x73   :  { %2071 = vst [vmem:[#allocation0 + $0x88] sm:$0x2] %v2067_v26   ;;  %2075 = vst [vmem:[#allocation0 + $0x2] sm:$0x1] %v2073_v27   ;;  %v2247_v33 = vld [vmem:[#allocation1 + $0x260] sm:$0x3]  }
  0x74   :  { %2077 = vst [vmem:[#allocation0 + $0x81] sm:$0x2] %v2073_v27   ;;  %2051 = vst [vmem:[#allocation0] sm:$0x1] %v2050_v28   ;;  %v2253_v34 = vld [vmem:[#allocation1 + $0x2d8] sm:$0x3]  }
  0x75   :  { %2053 = vst [vmem:[#allocation0 + $0x7f] sm:$0x2] %v2050_v28   ;;  %2057 = vst [vmem:[#allocation0 + $0x8] sm:$0x1] %v2055_v29   ;;  %v2259_v35 = vld [vmem:[#allocation1 + $0x3a0] sm:$0x3]  }
  0x76   :  { %2059 = vst [vmem:[#allocation0 + $0x87] sm:$0x2] %v2055_v29   ;;  %2231 = vst [vmem:[#allocation0 + $0x17] sm:$0x1] %v2229_v30   ;;  %v2265_v36 = vld [vmem:[#allocation1 + $0x228] sm:$0x3]  }
  0x77   :  { %2233 = vst [vmem:[#allocation0 + $0x96] sm:$0x2] %v2229_v30   ;;  %2237 = vst [vmem:[#allocation0 + $0x1f] sm:$0x1] %v2235_v31   ;;  %v2271_v37 = vld [vmem:[#allocation1 + $0x128] sm:$0x3]  }
  0x78   :  { %2239 = vst [vmem:[#allocation0 + $0x9e] sm:$0x2] %v2235_v31   ;;  %2243 = vst [vmem:[#allocation0 + $0x20] sm:$0x1] %v2241_v32   ;;  %v2277_v38 = vld [vmem:[#allocation1 + $0x230] sm:$0x3]  }
  0x79   :  { %2245 = vst [vmem:[#allocation0 + $0x9f] sm:$0x2] %v2241_v32   ;;  %2249 = vst [vmem:[#allocation0 + $0x28] sm:$0x1] %v2247_v33   ;;  %v2283_v39 = vld [vmem:[#allocation1 + $0x248] sm:$0x3]  }
  0x7a   :  { %2251 = vst [vmem:[#allocation0 + $0xa7] sm:$0x2] %v2247_v33   ;;  %2255 = vst [vmem:[#allocation0 + $0x21] sm:$0x1] %v2253_v34   ;;  %v2289_v40 = vld [vmem:[#allocation1 + $0x210] sm:$0x3]  }
  0x7b   :  { %2257 = vst [vmem:[#allocation0 + $0xa0] sm:$0x2] %v2253_v34   ;;  %2261 = vst [vmem:[#allocation0 + $0x29] sm:$0x1] %v2259_v35   ;;  %v2295_v41 = vld [vmem:[#allocation1 + $0x20] sm:$0x3]  }
  0x7c   :  { %2263 = vst [vmem:[#allocation0 + $0xa8] sm:$0x2] %v2259_v35   ;;  %2267 = vst [vmem:[#allocation0 + $0x22] sm:$0x1] %v2265_v36   ;;  %v2301_v42 = vld [vmem:[#allocation1 + $0x1e8] sm:$0x3]  }
  0x7d   :  { %2269 = vst [vmem:[#allocation0 + $0xa1] sm:$0x2] %v2265_v36   ;;  %2273 = vst [vmem:[#allocation0 + $0x2a] sm:$0x1] %v2271_v37   ;;  %v2307_v43 = vld [vmem:[#allocation1 + $0x130] sm:$0x3]  }
  0x7e   :  { %2275 = vst [vmem:[#allocation0 + $0xa9] sm:$0x2] %v2271_v37   ;;  %2279 = vst [vmem:[#allocation0 + $0x23] sm:$0x1] %v2277_v38   ;;  %v2313_v44 = vld [vmem:[#allocation1 + $0x298] sm:$0x3]  }
  0x7f   :  { %2281 = vst [vmem:[#allocation0 + $0xa2] sm:$0x2] %v2277_v38   ;;  %2285 = vst [vmem:[#allocation0 + $0x2b] sm:$0x1] %v2283_v39   ;;  %v2319_v45 = vld [vmem:[#allocation1 + $0x30] sm:$0x3]  }
  0x80   :  { %2287 = vst [vmem:[#allocation0 + $0xaa] sm:$0x2] %v2283_v39   ;;  %2291 = vst [vmem:[#allocation0 + $0x24] sm:$0x1] %v2289_v40   ;;  %v2325_v46 = vld [vmem:[#allocation1 + $0x50] sm:$0x3]  }
  0x81   :  { %2293 = vst [vmem:[#allocation0 + $0xa3] sm:$0x2] %v2289_v40   ;;  %2297 = vst [vmem:[#allocation0 + $0x2c] sm:$0x1] %v2295_v41   ;;  %v2331_v47 = vld [vmem:[#allocation1 + $0x170] sm:$0x3]  }
  0x82   :  { %2299 = vst [vmem:[#allocation0 + $0xab] sm:$0x2] %v2295_v41   ;;  %2303 = vst [vmem:[#allocation0 + $0x25] sm:$0x1] %v2301_v42   ;;  %v2337_v48 = vld [vmem:[#allocation1 + $0x310] sm:$0x3]  }
  0x83   :  { %2305 = vst [vmem:[#allocation0 + $0xa4] sm:$0x2] %v2301_v42   ;;  %2309 = vst [vmem:[#allocation0 + $0x2d] sm:$0x1] %v2307_v43   ;;  %v2343_v49 = vld [vmem:[#allocation1 + $0x3d8] sm:$0x3]  }
  0x84   :  { %2311 = vst [vmem:[#allocation0 + $0xac] sm:$0x2] %v2307_v43   ;;  %2315 = vst [vmem:[#allocation0 + $0x26] sm:$0x1] %v2313_v44   ;;  %v2349_v50 = vld [vmem:[#allocation1 + $0x3b8] sm:$0x3]  }
  0x85   :  { %2317 = vst [vmem:[#allocation0 + $0xa5] sm:$0x2] %v2313_v44   ;;  %2321 = vst [vmem:[#allocation0 + $0x2e] sm:$0x1] %v2319_v45   ;;  %v2355_v51 = vld [vmem:[#allocation1 + $0x1b0] sm:$0x3]  }
  0x86   :  { %2323 = vst [vmem:[#allocation0 + $0xad] sm:$0x2] %v2319_v45   ;;  %2327 = vst [vmem:[#allocation0 + $0x27] sm:$0x1] %v2325_v46   ;;  %v2361_v52 = vld [vmem:[#allocation1 + $0x140] sm:$0x3]  }
  0x87   :  { %2329 = vst [vmem:[#allocation0 + $0xa6] sm:$0x2] %v2325_v46   ;;  %2333 = vst [vmem:[#allocation0 + $0x2f] sm:$0x1] %v2331_v47   ;;  %v2367_v53 = vld [vmem:[#allocation1 + $0x40] sm:$0x3]  }
  0x88   :  { %2335 = vst [vmem:[#allocation0 + $0xae] sm:$0x2] %v2331_v47   ;;  %2339 = vst [vmem:[#allocation0 + $0x30] sm:$0x1] %v2337_v48   ;;  %v2373_v54 = vld [vmem:[#allocation1 + $0x198] sm:$0x3]  }
  0x89   :  { %2341 = vst [vmem:[#allocation0 + $0xaf] sm:$0x2] %v2337_v48   ;;  %2345 = vst [vmem:[#allocation0 + $0x38] sm:$0x1] %v2343_v49   ;;  %v2379_v55 = vld [vmem:[#allocation1 + $0xd0] sm:$0x3]  }
  0x8a   :  { %2347 = vst [vmem:[#allocation0 + $0xb7] sm:$0x2] %v2343_v49   ;;  %2351 = vst [vmem:[#allocation0 + $0x31] sm:$0x1] %v2349_v50   ;;  %v2385_v56 = vld [vmem:[#allocation1 + $0x280] sm:$0x3]  }
  0x8b   :  { %2353 = vst [vmem:[#allocation0 + $0xb0] sm:$0x2] %v2349_v50   ;;  %2357 = vst [vmem:[#allocation0 + $0x39] sm:$0x1] %v2355_v51   ;;  %v2391_v57 = vld [vmem:[#allocation1 + $0x318] sm:$0x3]  }
  0x8c   :  { %2359 = vst [vmem:[#allocation0 + $0xb8] sm:$0x2] %v2355_v51   ;;  %2363 = vst [vmem:[#allocation0 + $0x32] sm:$0x1] %v2361_v52   ;;  %v2397_v58 = vld [vmem:[#allocation1 + $0xf8] sm:$0x3]  }
  0x8d   :  { %2365 = vst [vmem:[#allocation0 + $0xb1] sm:$0x2] %v2361_v52   ;;  %2369 = vst [vmem:[#allocation0 + $0x3a] sm:$0x1] %v2367_v53   ;;  %v2403_v59 = vld [vmem:[#allocation1 + $0x388] sm:$0x3]  }
  0x8e   :  { %2371 = vst [vmem:[#allocation0 + $0xb9] sm:$0x2] %v2367_v53   ;;  %2375 = vst [vmem:[#allocation0 + $0x33] sm:$0x1] %v2373_v54   ;;  %v2409_v60 = vld [vmem:[#allocation1 + $0x1d8] sm:$0x3]  }
  0x8f   :  { %2377 = vst [vmem:[#allocation0 + $0xb2] sm:$0x2] %v2373_v54   ;;  %2381 = vst [vmem:[#allocation0 + $0x3b] sm:$0x1] %v2379_v55   ;;  %v2415_v61 = vld [vmem:[#allocation1 + $0xe0] sm:$0x3]  }
  0x90   :  { %2383 = vst [vmem:[#allocation0 + $0xba] sm:$0x2] %v2379_v55   ;;  %2387 = vst [vmem:[#allocation0 + $0x34] sm:$0x1] %v2385_v56   ;;  %v2421_v62 = vld [vmem:[#allocation1 + $0x1f8] sm:$0x3]  }
  0x91   :  { %2389 = vst [vmem:[#allocation0 + $0xb3] sm:$0x2] %v2385_v56   ;;  %2393 = vst [vmem:[#allocation0 + $0x3c] sm:$0x1] %v2391_v57   ;;  %v2427_v63 = vld [vmem:[#allocation1 + $0x2c8] sm:$0x3]  }
  0x92   :  { %2395 = vst [vmem:[#allocation0 + $0xbb] sm:$0x2] %v2391_v57   ;;  %2399 = vst [vmem:[#allocation0 + $0x35] sm:$0x1] %v2397_v58   ;;  %v2433_v0 = vld [vmem:[#allocation1 + $0x150] sm:$0x3]  }
  0x93   :  { %2401 = vst [vmem:[#allocation0 + $0xb4] sm:$0x2] %v2397_v58   ;;  %2405 = vst [vmem:[#allocation0 + $0x3d] sm:$0x1] %v2403_v59   ;;  %v2439_v1 = vld [vmem:[#allocation1 + $0x2b8] sm:$0x3]  }
  0x94   :  { %2407 = vst [vmem:[#allocation0 + $0xbc] sm:$0x2] %v2403_v59   ;;  %2411 = vst [vmem:[#allocation0 + $0x36] sm:$0x1] %v2409_v60   ;;  %v2445_v2 = vld [vmem:[#allocation1 + $0x3c8] sm:$0x3]  }
  0x95   :  { %2413 = vst [vmem:[#allocation0 + $0xb5] sm:$0x2] %v2409_v60   ;;  %2417 = vst [vmem:[#allocation0 + $0x3e] sm:$0x1] %v2415_v61   ;;  %v2451_v3 = vld [vmem:[#allocation1 + $0x220] sm:$0x3]  }
  0x96   :  { %2419 = vst [vmem:[#allocation0 + $0xbd] sm:$0x2] %v2415_v61   ;;  %2423 = vst [vmem:[#allocation0 + $0x37] sm:$0x1] %v2421_v62   ;;  %v2457_v4 = vld [vmem:[#allocation1 + $0x270] sm:$0x3]  }
  0x97   :  { %2425 = vst [vmem:[#allocation0 + $0xb6] sm:$0x2] %v2421_v62   ;;  %2429 = vst [vmem:[#allocation0 + $0x3f] sm:$0x1] %v2427_v63   ;;  %v2463_v5 = vld [vmem:[#allocation1 + $0xa8] sm:$0x3]  }
  0x98   :  { %2431 = vst [vmem:[#allocation0 + $0xbe] sm:$0x2] %v2427_v63   ;;  %2435 = vst [vmem:[#allocation0 + $0x40] sm:$0x1] %v2433_v0   ;;  %v2469_v6 = vld [vmem:[#allocation1 + $0x190] sm:$0x3]  }
  0x99   :  { %2437 = vst [vmem:[#allocation0 + $0xbf] sm:$0x2] %v2433_v0   ;;  %2441 = vst [vmem:[#allocation0 + $0x48] sm:$0x1] %v2439_v1   ;;  %v2475_v7 = vld [vmem:[#allocation1 + $0xa0] sm:$0x3]  }
  0x9a   :  { %2443 = vst [vmem:[#allocation0 + $0xc7] sm:$0x2] %v2439_v1   ;;  %2447 = vst [vmem:[#allocation0 + $0x41] sm:$0x1] %v2445_v2   ;;  %v2481_v8 = vld [vmem:[#allocation1 + $0x108] sm:$0x3]  }
  0x9b   :  { %2449 = vst [vmem:[#allocation0 + $0xc0] sm:$0x2] %v2445_v2   ;;  %2453 = vst [vmem:[#allocation0 + $0x49] sm:$0x1] %v2451_v3   ;;  %v2487_v9 = vld [vmem:[#allocation1 + $0x370] sm:$0x3]  }
  0x9c   :  { %2455 = vst [vmem:[#allocation0 + $0xc8] sm:$0x2] %v2451_v3   ;;  %2459 = vst [vmem:[#allocation0 + $0x42] sm:$0x1] %v2457_v4   ;;  %v2493_v10 = vld [vmem:[#allocation1 + $0x328] sm:$0x3]  }
  0x9d   :  { %2461 = vst [vmem:[#allocation0 + $0xc1] sm:$0x2] %v2457_v4   ;;  %2465 = vst [vmem:[#allocation0 + $0x4a] sm:$0x1] %v2463_v5   ;;  %v2499_v11 = vld [vmem:[#allocation1 + $0x1f0] sm:$0x3]  }
  0x9e   :  { %2467 = vst [vmem:[#allocation0 + $0xc9] sm:$0x2] %v2463_v5   ;;  %2471 = vst [vmem:[#allocation0 + $0x43] sm:$0x1] %v2469_v6   ;;  %v2505_v12 = vld [vmem:[#allocation1 + $0x58] sm:$0x3]  }
  0x9f   :  { %2473 = vst [vmem:[#allocation0 + $0xc2] sm:$0x2] %v2469_v6   ;;  %2477 = vst [vmem:[#allocation0 + $0x4b] sm:$0x1] %v2475_v7   ;;  %v2511_v13 = vld [vmem:[#allocation1 + $0x368] sm:$0x3]  }
  0xa0   :  { %2479 = vst [vmem:[#allocation0 + $0xca] sm:$0x2] %v2475_v7   ;;  %2483 = vst [vmem:[#allocation0 + $0x44] sm:$0x1] %v2481_v8   ;;  %v2517_v14 = vld [vmem:[#allocation1 + $0x1b8] sm:$0x3]  }
  0xa1   :  { %2485 = vst [vmem:[#allocation0 + $0xc3] sm:$0x2] %v2481_v8   ;;  %2489 = vst [vmem:[#allocation0 + $0x4c] sm:$0x1] %v2487_v9   ;;  %v2523_v15 = vld [vmem:[#allocation1 + $0x1c8] sm:$0x3]  }
  0xa2   :  { %2491 = vst [vmem:[#allocation0 + $0xcb] sm:$0x2] %v2487_v9   ;;  %2495 = vst [vmem:[#allocation0 + $0x45] sm:$0x1] %v2493_v10   ;;  %v2529_v16 = vld [vmem:[#allocation1 + $0x3e8] sm:$0x3]  }
  0xa3   :  { %2497 = vst [vmem:[#allocation0 + $0xc4] sm:$0x2] %v2493_v10   ;;  %2501 = vst [vmem:[#allocation0 + $0x4d] sm:$0x1] %v2499_v11   ;;  %v2535_v17 = vld [vmem:[#allocation1 + $0x208] sm:$0x3]  }
  0xa4   :  { %2503 = vst [vmem:[#allocation0 + $0xcc] sm:$0x2] %v2499_v11   ;;  %2507 = vst [vmem:[#allocation0 + $0x46] sm:$0x1] %v2505_v12   ;;  %v2541_v18 = vld [vmem:[#allocation1 + $0x218] sm:$0x3]  }
  0xa5   :  { %2509 = vst [vmem:[#allocation0 + $0xc5] sm:$0x2] %v2505_v12   ;;  %2513 = vst [vmem:[#allocation0 + $0x4e] sm:$0x1] %v2511_v13   ;;  %v2547_v19 = vld [vmem:[#allocation1 + $0x348] sm:$0x3]  }
  0xa6   :  { %2515 = vst [vmem:[#allocation0 + $0xcd] sm:$0x2] %v2511_v13   ;;  %2519 = vst [vmem:[#allocation0 + $0x47] sm:$0x1] %v2517_v14   ;;  %v2553_v20 = vld [vmem:[#allocation1 + $0x138] sm:$0x3]  }
  0xa7   :  { %2521 = vst [vmem:[#allocation0 + $0xc6] sm:$0x2] %v2517_v14   ;;  %2525 = vst [vmem:[#allocation0 + $0x4f] sm:$0x1] %v2523_v15   ;;  %v2559_v21 = vld [vmem:[#allocation1 + $0x358] sm:$0x3]  }
  0xa8   :  { %2527 = vst [vmem:[#allocation0 + $0xce] sm:$0x2] %v2523_v15   ;;  %2531 = vst [vmem:[#allocation0 + $0x50] sm:$0x1] %v2529_v16   ;;  %v2565_v22 = vld [vmem:[#allocation1 + $0x8] sm:$0x3]  }
  0xa9   :  { %2533 = vst [vmem:[#allocation0 + $0xcf] sm:$0x2] %v2529_v16   ;;  %2537 = vst [vmem:[#allocation0 + $0x58] sm:$0x1] %v2535_v17   ;;  %v2571_v23 = vld [vmem:[#allocation1 + $0x158] sm:$0x3]  }
  0xaa   :  { %2539 = vst [vmem:[#allocation0 + $0xd7] sm:$0x2] %v2535_v17   ;;  %2543 = vst [vmem:[#allocation0 + $0x51] sm:$0x1] %v2541_v18   ;;  %v2577_v24 = vld [vmem:[#allocation1 + $0x2d0] sm:$0x3]  }
  0xab   :  { %2545 = vst [vmem:[#allocation0 + $0xd0] sm:$0x2] %v2541_v18   ;;  %2549 = vst [vmem:[#allocation0 + $0x59] sm:$0x1] %v2547_v19   ;;  %v2583_v25 = vld [vmem:[#allocation1 + $0x3f0] sm:$0x3]  }
  0xac   :  { %2551 = vst [vmem:[#allocation0 + $0xd8] sm:$0x2] %v2547_v19   ;;  %2555 = vst [vmem:[#allocation0 + $0x52] sm:$0x1] %v2553_v20   ;;  %v2589_v26 = vld [vmem:[#allocation1] sm:$0x3]  }
  0xad   :  { %2557 = vst [vmem:[#allocation0 + $0xd1] sm:$0x2] %v2553_v20   ;;  %2561 = vst [vmem:[#allocation0 + $0x5a] sm:$0x1] %v2559_v21   ;;  %v2595_v27 = vld [vmem:[#allocation1 + $0x1e0] sm:$0x3]  }
  0xae   :  { %2563 = vst [vmem:[#allocation0 + $0xd9] sm:$0x2] %v2559_v21   ;;  %2567 = vst [vmem:[#allocation0 + $0x53] sm:$0x1] %v2565_v22   ;;  %v2601_v28 = vld [vmem:[#allocation1 + $0x18] sm:$0x3]  }
  0xaf   :  { %2569 = vst [vmem:[#allocation0 + $0xd2] sm:$0x2] %v2565_v22   ;;  %2573 = vst [vmem:[#allocation0 + $0x5b] sm:$0x1] %v2571_v23   ;;  %v2607_v29 = vld [vmem:[#allocation1 + $0x2a0] sm:$0x3]  }
  0xb0   :  { %2575 = vst [vmem:[#allocation0 + $0xda] sm:$0x2] %v2571_v23   ;;  %2579 = vst [vmem:[#allocation0 + $0x54] sm:$0x1] %v2577_v24   ;;  %v2613_v30 = vld [vmem:[#allocation1 + $0x38] sm:$0x3]  }
  0xb1   :  { %2581 = vst [vmem:[#allocation0 + $0xd3] sm:$0x2] %v2577_v24   ;;  %2585 = vst [vmem:[#allocation0 + $0x5c] sm:$0x1] %v2583_v25   ;;  %v2619_v31 = vld [vmem:[#allocation1 + $0x2f8] sm:$0x3]  }
  0xb2   :  { %2587 = vst [vmem:[#allocation0 + $0xdb] sm:$0x2] %v2583_v25   ;;  %2591 = vst [vmem:[#allocation0 + $0x55] sm:$0x1] %v2589_v26   ;;  %v2625_v32 = vld [vmem:[#allocation1 + $0x178] sm:$0x3]  }
  0xb3   :  { %2593 = vst [vmem:[#allocation0 + $0xd4] sm:$0x2] %v2589_v26   ;;  %2597 = vst [vmem:[#allocation0 + $0x5d] sm:$0x1] %v2595_v27   ;;  %v2631_v33 = vld [vmem:[#allocation1 + $0x238] sm:$0x3]  }
  0xb4   :  { %2599 = vst [vmem:[#allocation0 + $0xdc] sm:$0x2] %v2595_v27   ;;  %2603 = vst [vmem:[#allocation0 + $0x56] sm:$0x1] %v2601_v28   ;;  %v2637_v34 = vld [vmem:[#allocation1 + $0x338] sm:$0x3]  }
  0xb5   :  { %2605 = vst [vmem:[#allocation0 + $0xd5] sm:$0x2] %v2601_v28   ;;  %2609 = vst [vmem:[#allocation0 + $0x5e] sm:$0x1] %v2607_v29   ;;  %v2643_v35 = vld [vmem:[#allocation1 + $0x2c0] sm:$0x3]  }
  0xb6   :  { %2611 = vst [vmem:[#allocation0 + $0xdd] sm:$0x2] %v2607_v29   ;;  %2615 = vst [vmem:[#allocation0 + $0x57] sm:$0x1] %v2613_v30   ;;  %v2649_v36 = vld [vmem:[#allocation1 + $0x3d0] sm:$0x3]  }
  0xb7   :  { %2617 = vst [vmem:[#allocation0 + $0xd6] sm:$0x2] %v2613_v30   ;;  %2621 = vst [vmem:[#allocation0 + $0x5f] sm:$0x1] %v2619_v31   ;;  %v2655_v37 = vld [vmem:[#allocation1 + $0x168] sm:$0x3]  }
  0xb8   :  { %2623 = vst [vmem:[#allocation0 + $0xde] sm:$0x2] %v2619_v31   ;;  %2627 = vst [vmem:[#allocation0 + $0x60] sm:$0x1] %v2625_v32   ;;  %v2661_v38 = vld [vmem:[#allocation1 + $0x100] sm:$0x3]  }
  0xb9   :  { %2629 = vst [vmem:[#allocation0 + $0xdf] sm:$0x2] %v2625_v32   ;;  %2633 = vst [vmem:[#allocation0 + $0x68] sm:$0x1] %v2631_v33   ;;  %v2667_v39 = vld [vmem:[#allocation1 + $0x10] sm:$0x3]  }
  0xba   :  { %2635 = vst [vmem:[#allocation0 + $0xe7] sm:$0x2] %v2631_v33   ;;  %2639 = vst [vmem:[#allocation0 + $0x61] sm:$0x1] %v2637_v34   ;;  %v2673_v40 = vld [vmem:[#allocation1 + $0x290] sm:$0x3]  }
  0xbb   :  { %2641 = vst [vmem:[#allocation0 + $0xe0] sm:$0x2] %v2637_v34   ;;  %2645 = vst [vmem:[#allocation0 + $0x69] sm:$0x1] %v2643_v35   ;;  %v2679_v41 = vld [vmem:[#allocation1 + $0x240] sm:$0x3]  }
  0xbc   :  { %2647 = vst [vmem:[#allocation0 + $0xe8] sm:$0x2] %v2643_v35   ;;  %2651 = vst [vmem:[#allocation0 + $0x62] sm:$0x1] %v2649_v36   ;;  %v2685_v42 = vld [vmem:[#allocation1 + $0x250] sm:$0x3]  }
  0xbd   :  { %2653 = vst [vmem:[#allocation0 + $0xe1] sm:$0x2] %v2649_v36   ;;  %2657 = vst [vmem:[#allocation0 + $0x6a] sm:$0x1] %v2655_v37   ;;  %v2691_v43 = vld [vmem:[#allocation1 + $0x378] sm:$0x3]  }
  0xbe   :  { %2659 = vst [vmem:[#allocation0 + $0xe9] sm:$0x2] %v2655_v37   ;;  %2663 = vst [vmem:[#allocation0 + $0x63] sm:$0x1] %v2661_v38   ;;  %v2697_v44 = vld [vmem:[#allocation1 + $0xb8] sm:$0x3]  }
  0xbf   :  { %2665 = vst [vmem:[#allocation0 + $0xe2] sm:$0x2] %v2661_v38   ;;  %2669 = vst [vmem:[#allocation0 + $0x6b] sm:$0x1] %v2667_v39   ;;  %v2703_v45 = vld [vmem:[#allocation1 + $0xc0] sm:$0x3]  }
  0xc0   :  { %2671 = vst [vmem:[#allocation0 + $0xea] sm:$0x2] %v2667_v39   ;;  %2675 = vst [vmem:[#allocation0 + $0x64] sm:$0x1] %v2673_v40   ;;  %v2709_v46 = vld [vmem:[#allocation1 + $0x70] sm:$0x3]  }
  0xc1   :  { %2677 = vst [vmem:[#allocation0 + $0xe3] sm:$0x2] %v2673_v40   ;;  %2681 = vst [vmem:[#allocation0 + $0x6c] sm:$0x1] %v2679_v41   ;;  %v2715_v47 = vld [vmem:[#allocation1 + $0x118] sm:$0x3]  }
  0xc2   :  { %2683 = vst [vmem:[#allocation0 + $0xeb] sm:$0x2] %v2679_v41   ;;  %2687 = vst [vmem:[#allocation0 + $0x65] sm:$0x1] %v2685_v42   ;;  %v2721_v48 = vld [vmem:[#allocation1 + $0x398] sm:$0x3]  }
  0xc3   :  { %2689 = vst [vmem:[#allocation0 + $0xe4] sm:$0x2] %v2685_v42   ;;  %2693 = vst [vmem:[#allocation0 + $0x6d] sm:$0x1] %v2691_v43   ;;  %v2727_v49 = vld [vmem:[#allocation1 + $0x2f0] sm:$0x3]  }
  0xc4   :  { %2695 = vst [vmem:[#allocation0 + $0xec] sm:$0x2] %v2691_v43   ;;  %2699 = vst [vmem:[#allocation0 + $0x66] sm:$0x1] %v2697_v44   ;;  %v2733_v50 = vld [vmem:[#allocation1 + $0x2a8] sm:$0x3]  }
  0xc5   :  { %2701 = vst [vmem:[#allocation0 + $0xe5] sm:$0x2] %v2697_v44   ;;  %2705 = vst [vmem:[#allocation0 + $0x6e] sm:$0x1] %v2703_v45   ;;  %v2739_v51 = vld [vmem:[#allocation1 + $0xd8] sm:$0x3]  }
  0xc6   :  { %2707 = vst [vmem:[#allocation0 + $0xed] sm:$0x2] %v2703_v45   ;;  %2711 = vst [vmem:[#allocation0 + $0x67] sm:$0x1] %v2709_v46   ;;  %v2745_v52 = vld [vmem:[#allocation1 + $0x360] sm:$0x3]  }
  0xc7   :  { %2713 = vst [vmem:[#allocation0 + $0xe6] sm:$0x2] %v2709_v46   ;;  %2717 = vst [vmem:[#allocation0 + $0x6f] sm:$0x1] %v2715_v47   ;;  %v2751_v53 = vld [vmem:[#allocation1 + $0x2e0] sm:$0x3]  }
  0xc8   :  { %2719 = vst [vmem:[#allocation0 + $0xee] sm:$0x2] %v2715_v47   ;;  %2723 = vst [vmem:[#allocation0 + $0x70] sm:$0x1] %v2721_v48   ;;  %v2757_v54 = vld [vmem:[#allocation1 + $0x2e8] sm:$0x3]  }
  0xc9   :  { %2725 = vst [vmem:[#allocation0 + $0xef] sm:$0x2] %v2721_v48   ;;  %2729 = vst [vmem:[#allocation0 + $0x78] sm:$0x1] %v2727_v49   ;;  %v2763_v55 = vld [vmem:[#allocation1 + $0x78] sm:$0x3]  }
  0xca   :  { %2731 = vst [vmem:[#allocation0 + $0xf7] sm:$0x2] %v2727_v49   ;;  %2735 = vst [vmem:[#allocation0 + $0x71] sm:$0x1] %v2733_v50   ;;  %v2769_v56 = vld [vmem:[#allocation1 + $0x3b0] sm:$0x3]  }
  0xcb   :  { %2737 = vst [vmem:[#allocation0 + $0xf0] sm:$0x2] %v2733_v50   ;;  %2741 = vst [vmem:[#allocation0 + $0x79] sm:$0x1] %v2739_v51   ;;  %v2775_v57 = vld [vmem:[#allocation1 + $0xc8] sm:$0x3]  }
  0xcc   :  { %2743 = vst [vmem:[#allocation0 + $0xf8] sm:$0x2] %v2739_v51   ;;  %2747 = vst [vmem:[#allocation0 + $0x72] sm:$0x1] %v2745_v52   ;;  %v2781_v58 = vld [vmem:[#allocation1 + $0x90] sm:$0x3]  }
  0xcd   :  { %2749 = vst [vmem:[#allocation0 + $0xf1] sm:$0x2] %v2745_v52   ;;  %2753 = vst [vmem:[#allocation0 + $0x7a] sm:$0x1] %v2751_v53   ;;  %v2787_v59 = vld [vmem:[#allocation1 + $0x3a8] sm:$0x3]  }
  0xce   :  { %2755 = vst [vmem:[#allocation0 + $0xf9] sm:$0x2] %v2751_v53   ;;  %2759 = vst [vmem:[#allocation0 + $0x73] sm:$0x1] %v2757_v54   ;;  %v2793_v60 = vld [vmem:[#allocation1 + $0x3e0] sm:$0x3]  }
  0xcf   :  { %2761 = vst [vmem:[#allocation0 + $0xf2] sm:$0x2] %v2757_v54   ;;  %2765 = vst [vmem:[#allocation0 + $0x7b] sm:$0x1] %v2763_v55   ;;  %v2799_v61 = vld [vmem:[#allocation1 + $0x320] sm:$0x3]  }
  0xd0   :  { %2767 = vst [vmem:[#allocation0 + $0xfa] sm:$0x2] %v2763_v55   ;;  %2771 = vst [vmem:[#allocation0 + $0x74] sm:$0x1] %v2769_v56   ;;  %v2805_v62 = vld [vmem:[#allocation1 + $0x48] sm:$0x3]  }
  0xd1   :  { %2773 = vst [vmem:[#allocation0 + $0xf3] sm:$0x2] %v2769_v56   ;;  %2777 = vst [vmem:[#allocation0 + $0x7c] sm:$0x1] %v2775_v57   ;;  %v2811_v63 = vld [vmem:[#allocation1 + $0x148] sm:$0x3]  }
  0xd2   :  { %2779 = vst [vmem:[#allocation0 + $0xfb] sm:$0x2] %v2775_v57   ;;  %2783 = vst [vmem:[#allocation0 + $0x75] sm:$0x1] %v2781_v58   ;;  %v2821_v0 = vld [vmem:[#allocation0] sm:$0xff]  ;;  %v2827_v1 = vld [vmem:[#allocation0 + $0x8] sm:$0xff] }
  0xd3   :  { %2785 = vst [vmem:[#allocation0 + $0xf4] sm:$0x2] %v2781_v58   ;;  %2789 = vst [vmem:[#allocation0 + $0x7d] sm:$0x1] %v2787_v59   ;;  %v3390_v2 = vpack.c.bf16 %v2827_v1, %v2821_v0  ;;  %v2834_v3 = vld [vmem:[#allocation0 + $0x10] sm:$0xff]  ;;  %v2842_v4 = vld [vmem:[#allocation0 + $0x18] sm:$0xff] }
  0xd4   :  { %2791 = vst [vmem:[#allocation0 + $0xfc] sm:$0x2] %v2787_v59   ;;  %2795 = vst [vmem:[#allocation0 + $0x76] sm:$0x1] %v2793_v60   ;;  %v2850_v5 = vld [vmem:[#allocation0 + $0x20] sm:$0xff]  ;;  %v3395_v6 = vpack.c.bf16 %v2842_v4, %v2834_v3  ;;  %v2858_v7 = vld [vmem:[#allocation0 + $0x28] sm:$0xff] }
  0xd5   :  { %2797 = vst [vmem:[#allocation0 + $0xf5] sm:$0x2] %v2793_v60   ;;  %2801 = vst [vmem:[#allocation0 + $0x7e] sm:$0x1] %v2799_v61   ;;  %v2866_v8 = vld [vmem:[#allocation0 + $0x30] sm:$0xff]  ;;  %v2874_v9 = vld [vmem:[#allocation0 + $0x38] sm:$0xff]  ;;  %v3400_v10 = vpack.c.bf16 %v2858_v7, %v2850_v5 }
  0xd6   :  { %2803 = vst [vmem:[#allocation0 + $0xfd] sm:$0x2] %v2799_v61   ;;  %2807 = vst [vmem:[#allocation0 + $0x77] sm:$0x1] %v2805_v62   ;;  %v3405_v11 = vpack.c.bf16 %v2874_v9, %v2866_v8  ;;  %v2882_v12 = vld [vmem:[#allocation0 + $0x40] sm:$0xff]  ;;  %v2890_v13 = vld [vmem:[#allocation0 + $0x48] sm:$0xff] }
  0xd7   :  { %2809 = vst [vmem:[#allocation0 + $0xf6] sm:$0x2] %v2805_v62   ;;  %2813 = vst [vmem:[#allocation0 + $0x7f] sm:$0x1] %v2811_v63   ;;  %v2898_v14 = vld [vmem:[#allocation0 + $0x50] sm:$0xff]  ;;  %v3410_v15 = vpack.c.bf16 %v2890_v13, %v2882_v12  ;;  %v2906_v16 = vld [vmem:[#allocation0 + $0x58] sm:$0xff] }
  0xd8   :  { %2815 = vst [vmem:[#allocation0 + $0xfe] sm:$0x2] %v2811_v63   ;;  %3391 = vst [vmem:[%s3925_s1] sm:$0xff] %v3390_v2   ;;  %v2914_v17 = vld [vmem:[#allocation0 + $0x60] sm:$0xff]  ;;  %v2922_v18 = vld [vmem:[#allocation0 + $0x68] sm:$0xff]  ;;  %v3415_v19 = vpack.c.bf16 %v2906_v16, %v2898_v14 }
  0xd9   :  { %3467 = vst [vmem:[%s3925_s1 + $0x8] sm:$0xff] %v3395_v6   ;;  %3468 = vst [vmem:[%s3925_s1 + $0x10] sm:$0xff] %v3400_v10   ;;  %v3420_v20 = vpack.c.bf16 %v2922_v18, %v2914_v17  ;;  %v2946_v21 = vld [vmem:[#allocation0 + $0x80] sm:$0xff]  ;;  %v2954_v22 = vld [vmem:[#allocation0 + $0x88] sm:$0xff] }
  0xda   :  { %3469 = vst [vmem:[%s3925_s1 + $0x18] sm:$0xff] %v3405_v11   ;;  %v2962_v23 = vld [vmem:[#allocation0 + $0x90] sm:$0xff]  ;;  %3470 = vst [vmem:[%s3925_s1 + $0x20] sm:$0xff] %v3410_v15   ;;  %v3430_v24 = vpack.c.bf16 %v2954_v22, %v2946_v21  ;;  %v2970_v25 = vld [vmem:[#allocation0 + $0x98] sm:$0xff] }
  0xdb   :  { %v2978_v26 = vld [vmem:[#allocation0 + $0xa0] sm:$0xff]  ;;  %v2986_v27 = vld [vmem:[#allocation0 + $0xa8] sm:$0xff]  ;;  %3471 = vst [vmem:[%s3925_s1 + $0x28] sm:$0xff] %v3415_v19   ;;  %3472 = vst [vmem:[%s3925_s1 + $0x30] sm:$0xff] %v3420_v20   ;;  %v3435_v29 = vpack.c.bf16 %v2970_v25, %v2962_v23 }
  0xdc   :  { %v3440_v30 = vpack.c.bf16 %v2986_v27, %v2978_v26  ;;  %v2994_v31 = vld [vmem:[#allocation0 + $0xb0] sm:$0xff]  ;;  %v3002_v32 = vld [vmem:[#allocation0 + $0xb8] sm:$0xff]  ;;  %3474 = vst [vmem:[%s3925_s1 + $0x40] sm:$0xff] %v3430_v24   ;;  %v3010_v35 = vld [vmem:[#allocation0 + $0xc0] sm:$0xff] }
  0xdd   :  { %v2930_v28 = vld [vmem:[#allocation0 + $0x70] sm:$0xff]  ;;  %v3445_v34 = vpack.c.bf16 %v3002_v32, %v2994_v31  ;;  %v3018_v36 = vld [vmem:[#allocation0 + $0xc8] sm:$0xff]  ;;  %3475 = vst [vmem:[%s3925_s1 + $0x48] sm:$0xff] %v3435_v29   ;;  %v3034_v40 = vld [vmem:[#allocation0 + $0xd8] sm:$0xff] }
  0xde   :  { %v2938_v33 = vld [vmem:[#allocation0 + $0x78] sm:$0xff]  ;;  %3476 = vst [vmem:[%s3925_s1 + $0x50] sm:$0xff] %v3440_v30   ;;  %v3450_v38 = vpack.c.bf16 %v3018_v36, %v3010_v35  ;;  %v3026_v39 = vld [vmem:[#allocation0 + $0xd0] sm:$0xff]  ;;  %v3042_v41 = vld [vmem:[#allocation0 + $0xe0] sm:$0xff] }
  0xdf   :  { %v3425_v37 = vpack.c.bf16 %v2938_v33, %v2930_v28  ;;  %3477 = vst [vmem:[%s3925_s1 + $0x58] sm:$0xff] %v3445_v34   ;;  %v3455_v42 = vpack.c.bf16 %v3034_v40, %v3026_v39  ;;  %v3050_v43 = vld [vmem:[#allocation0 + $0xe8] sm:$0xff]  ;;  %v3058_v44 = vld [vmem:[#allocation0 + $0xf0] sm:$0xff]  ;;  %v3066_v45 = vld [vmem:[#allocation0 + $0xf8] sm:$0xff] }
  0xe0   :  { %3478 = vst [vmem:[%s3925_s1 + $0x60] sm:$0xff] %v3450_v38   ;;  %v3460_v46 = vpack.c.bf16 %v3050_v43, %v3042_v41  ;;  %v3465_v47 = vpack.c.bf16 %v3066_v45, %v3058_v44 }
  0xe1   :  { %3473 = vst [vmem:[%s3925_s1 + $0x38] sm:$0xff] %v3425_v37   ;;  %3479 = vst [vmem:[%s3925_s1 + $0x68] sm:$0xff] %v3455_v42  }
  0xe2   :  { %3480 = vst [vmem:[%s3925_s1 + $0x70] sm:$0xff] %v3460_v46   ;;  %3481 = vst [vmem:[%s3925_s1 + $0x78] sm:$0xff] %v3465_v47  }

// kernel: generator_forward.11
= control target key start
LH: loop header
LB: loop body
LE: loop exit
PB: predicated region body
PF: predicated region fallthrough
CT: control target
= control target key end

     0   :  { %v232_v0 = vmov 0.0   ;;  %vm178_vm0 = vcmask 1040384   ;;  %s302_s1 = inlined_call_operand.vmem [shape: f32[2,256], index: 1, kind: output, shape index: {}]   ;;  %s303_s0 = inlined_call_operand.vmem [shape: bf16[128,256], index: 0, kind: input, shape index: {}]  }
   0x1   :  { %12 = vst [vmem:[%s302_s1] sm:$0xf] %v232_v0  ;;  %v13_v1 = vld [vmem:[%s303_s0] sm:$0xff]  ;;  %v14_v2 = vld [vmem:[%s303_s0 + $0x8] sm:$0xff]  ;;  %v15_v3 = vld [vmem:[%s303_s0 + $0x10] sm:$0xff] }
   0x2   :  { %v29_v4 = vunpack.c.l.bf16 %v13_v1  ;;  %v30_v5 = vunpack.c.h.bf16 %v13_v1  ;;  %v31_v6 = vunpack.c.l.bf16 %v14_v2  ;;  %v32_v7 = vunpack.c.h.bf16 %v14_v2  ;;  %v16_v8 = vld [vmem:[%s303_s0 + $0x18] sm:$0xff]  ;;  %v17_v13 = vld [vmem:[%s303_s0 + $0x20] sm:$0xff]  ;;  %v18_v18 = vld [vmem:[%s303_s0 + $0x28] sm:$0xff] }
   0x3   :  { %v33_v9 = vunpack.c.l.bf16 %v15_v3  ;;  %v34_v10 = vunpack.c.h.bf16 %v15_v3  ;;  %v35_v14 = vunpack.c.l.bf16 %v16_v8  ;;  %v36_v15 = vunpack.c.h.bf16 %v16_v8  ;;  %v19_v23 = vld [vmem:[%s303_s0 + $0x30] sm:$0xff]  ;;  %v20_v28 = vld [vmem:[%s303_s0 + $0x38] sm:$0xff]  ;;  %v21_v33 = vld [vmem:[%s303_s0 + $0x40] sm:$0xff] }
   0x4   :  { %v62_v11 = vadd.f32 %v31_v6, %v29_v4  ;;  %v83_v12 = vadd.f32 %v32_v7, %v30_v5  ;;  %v37_v19 = vunpack.c.l.bf16 %v17_v13  ;;  %v38_v20 = vunpack.c.h.bf16 %v17_v13  ;;  %v22_v38 = vld [vmem:[%s303_s0 + $0x48] sm:$0xff]  ;;  %v23_v43 = vld [vmem:[%s303_s0 + $0x50] sm:$0xff]  ;;  %v24_v48 = vld [vmem:[%s303_s0 + $0x58] sm:$0xff] }
   0x5   :  { %v39_v24 = vunpack.c.l.bf16 %v18_v18  ;;  %v40_v25 = vunpack.c.h.bf16 %v18_v18  ;;  %v41_v29 = vunpack.c.l.bf16 %v19_v23  ;;  %v42_v30 = vunpack.c.h.bf16 %v19_v23  ;;  %v25_v53 = vld [vmem:[%s303_s0 + $0x60] sm:$0xff]  ;;  %v26_v58 = vld [vmem:[%s303_s0 + $0x68] sm:$0xff]  ;;  %v27_v63 = vld [vmem:[%s303_s0 + $0x70] sm:$0xff] }
   0x6   :  { %v63_v16 = vadd.f32 %v62_v11, %v33_v9  ;;  %v84_v17 = vadd.f32 %v83_v12, %v34_v10  ;;  %v43_v34 = vunpack.c.l.bf16 %v20_v28  ;;  %v44_v35 = vunpack.c.h.bf16 %v20_v28  ;;  %v28_v4 = vld [vmem:[%s303_s0 + $0x78] sm:$0xff] }
   0x7   :  { %200 = vmul.bf16.f32.vacc0 %v13_v1, %v13_v1  ;;  %v45_v39 = vunpack.c.l.bf16 %v21_v33  ;;  %v46_v40 = vunpack.c.h.bf16 %v21_v33  ;;  %v47_v44 = vunpack.c.l.bf16 %v22_v38 }
   0x8   :  { %v64_v21 = vadd.f32 %v63_v16, %v35_v14  ;;  %v85_v22 = vadd.f32 %v84_v17, %v36_v15  ;;  %201 = vmac.bf16.f32.vacc0 %v14_v2, %v14_v2  ;;  %v48_v45 = vunpack.c.h.bf16 %v22_v38 }
   0x9   :  { %202 = vmac.bf16.f32.vacc0 %v15_v3, %v15_v3  ;;  %v49_v49 = vunpack.c.l.bf16 %v23_v43  ;;  %v50_v50 = vunpack.c.h.bf16 %v23_v43  ;;  %v51_v54 = vunpack.c.l.bf16 %v24_v48 }
   0xa   :  { %v65_v26 = vadd.f32 %v64_v21, %v37_v19  ;;  %v86_v27 = vadd.f32 %v85_v22, %v38_v20  ;;  %203 = vmac.bf16.f32.vacc0 %v16_v8, %v16_v8  ;;  %v52_v55 = vunpack.c.h.bf16 %v24_v48 }
   0xb   :  { %204 = vmac.bf16.f32.vacc0 %v17_v13, %v17_v13  ;;  %v53_v59 = vunpack.c.l.bf16 %v25_v53  ;;  %v54_v60 = vunpack.c.h.bf16 %v25_v53  ;;  %v55_v0 = vunpack.c.l.bf16 %v26_v58 }
   0xc   :  { %v66_v31 = vadd.f32 %v65_v26, %v39_v24  ;;  %v87_v32 = vadd.f32 %v86_v27, %v40_v25  ;;  %205 = vmac.bf16.f32.vacc0 %v18_v18, %v18_v18  ;;  %v56_v1 = vunpack.c.h.bf16 %v26_v58 }
   0xd   :  { %206 = vmac.bf16.f32.vacc0 %v19_v23, %v19_v23  ;;  %v57_v5 = vunpack.c.l.bf16 %v27_v63  ;;  %v58_v6 = vunpack.c.h.bf16 %v27_v63  ;;  %v59_v9 = vunpack.c.l.bf16 %v28_v4 }
   0xe   :  { %v67_v36 = vadd.f32 %v66_v31, %v41_v29  ;;  %v88_v37 = vadd.f32 %v87_v32, %v42_v30  ;;  %207 = vmac.bf16.f32.vacc0 %v20_v28, %v20_v28  ;;  %v60_v10 = vunpack.c.h.bf16 %v28_v4 }
   0xf   :  { %208 = vmac.bf16.f32.vacc0 %v21_v33, %v21_v33  ;;  %v233_v25 = vmov 1935823168   ;;  %v222_v28 = vlaneseq }
  0x10   :  { %v68_v41 = vadd.f32 %v67_v36, %v43_v34  ;;  %v89_v42 = vadd.f32 %v88_v37, %v44_v35  ;;  %209 = vmac.bf16.f32.vacc0 %v22_v38, %v22_v38  ;;  %v220_v26 = vunpack.c.l.s4 %v233_v25 }
  0x11   :  { %210 = vmac.bf16.f32.vacc0 %v23_v43, %v23_v43  ;;  %v223_v29 = vshrl.u32 %v222_v28, 7 }
  0x12   :  { %v69_v46 = vadd.f32 %v68_v41, %v45_v39  ;;  %v90_v47 = vadd.f32 %v89_v42, %v46_v40  ;;  %211 = vmac.bf16.f32.vacc0 %v24_v48, %v24_v48  ;;  %v221_v27 = vunpack.c.0.s8 %v220_v26 }
  0x13   :  { %212 = vmac.bf16.f32.vacc0 %v25_v53, %v25_v53  ;;  %v234_v39 = vmov 1983009808  }
  0x14   :  { %v70_v51 = vadd.f32 %v69_v46, %v47_v44  ;;  %v91_v52 = vadd.f32 %v90_v47, %v48_v45  ;;  %213 = vmac.bf16.f32.vacc0 %v26_v58, %v26_v58  ;;  %v224_v30 = vsub.s32 %v221_v27, %v223_v29  ;;  %v61_v58 = vld [vmem:[%s302_s1] sm:$0xf] }
  0x15   :  { %214 = vmac.bf16.f32.vacc0 %v27_v63, %v27_v63  ;;  %v185_v40 = vunpack.c.l.s4 %v234_v39 }
  0x16   :  { %v71_v56 = vadd.f32 %v70_v51, %v49_v49  ;;  %v92_v57 = vadd.f32 %v91_v52, %v50_v50  ;;  %215 = vmac.bf16.f32.vacc0 %v28_v4, %v28_v4 }
  0x17   :  { %v186_v47 = vunpack.c.0.s8 %v185_v40 }
  0x18   :  { %v72_v61 = vadd.f32 %v71_v56, %v51_v54  ;;  %v93_v62 = vadd.f32 %v92_v57, %v52_v55  ;;  %v216_v21 = vmovacc.add.low.vacc0 }
  0x19   :  { %v217_v22 = vmovacc.add.high.vacc0  ;;  %v189_v54 = vsub.s32 %v186_v47, %v223_v29 }
  0x1a   :  { %v73_v2 = vadd.f32 %v72_v61, %v53_v59  ;;  %v94_v3 = vadd.f32 %v93_v62, %v54_v60 }
  0x1b   :  { %v218_v23 = vcombine.low %v216_v21, %v217_v22  ;;  %v219_v24 = vcombine.high %v216_v21, %v217_v22 }
  0x1c   :  { %v74_v7 = vadd.f32 %v73_v2, %v55_v0  ;;  %v95_v8 = vadd.f32 %v94_v3, %v56_v1 }
  0x1d   :  { %v225_v31 = vrot.slane %v218_v23, %v224_v30  ;;  %v231_v32 = vrot.slane %v219_v24, %v224_v30 }
  0x1e   :  { %v75_v11 = vadd.f32 %v74_v7, %v57_v5  ;;  %v96_v12 = vadd.f32 %v95_v8, %v58_v6 }
  0x1f   :  { %v151_v35 = vrot.slane %v225_v31, 4  ;;  %v172_v36 = vrot.slane %v231_v32, 4 }
  0x20   :  { %v76_v13 = vadd.f32 %v75_v11, %v59_v9  ;;  %v97_v14 = vadd.f32 %v96_v12, %v60_v10 }
  0x21   :  { %v152_v37 = vadd.f32 %v225_v31, %v151_v35  ;;  %v173_v38 = vadd.f32 %v231_v32, %v172_v36 }
  0x22   :  { %v77_v15 = vrot.slane %v76_v13, 4  ;;  %v98_v16 = vrot.slane %v97_v14, 4 }
  0x23   :  { %v153_v43 = vrot.slane %v152_v37, 2  ;;  %v174_v44 = vrot.slane %v173_v38, 2 }
  0x24   :  { %v78_v17 = vadd.f32 %v77_v15, %v76_v13  ;;  %v99_v18 = vadd.f32 %v98_v16, %v97_v14 }
  0x25   :  { %v154_v45 = vadd.f32 %v153_v43, %v152_v37  ;;  %v175_v46 = vadd.f32 %v174_v44, %v173_v38 }
  0x26   :  { %v79_v19 = vrot.slane %v78_v17, 2  ;;  %v100_v20 = vrot.slane %v99_v18, 2 }
  0x27   :  { %v155_v50 = vrot.slane %v154_v45, 1  ;;  %v176_v51 = vrot.slane %v175_v46, 1 }
  0x28   :  { %v80_v33 = vadd.f32 %v79_v19, %v78_v17  ;;  %v101_v34 = vadd.f32 %v100_v20, %v99_v18 }
  0x29   :  { %v156_v52 = vadd.f32 %v155_v50, %v154_v45  ;;  %v177_v53 = vadd.f32 %v176_v51, %v175_v46 }
  0x2a   :  { %v81_v41 = vrot.slane %v80_v33, 1  ;;  %v102_v42 = vrot.slane %v101_v34, 1 }
  0x2c   :  { %v82_v48 = vadd.f32 %v81_v41, %v80_v33  ;;  %v103_v49 = vadd.f32 %v102_v42, %v101_v34 }
  0x2e   :  { %v179_v55 = vsel %vm178_vm0, %v82_v48, %v156_v52  ;;  %v180_v56 = vsel %vm178_vm0, %v103_v49, %v177_v53 }
  0x2f   :  { %v183_v57 = vcombine.low %v179_v55, %v180_v56 }
  0x31   :  { %v190_v59 = vrot.slane %v183_v57, %v189_v54 }
  0x33   :  { %v192_v60 = vadd.f32 %v190_v59, %v61_v58 }
  0x35   :  { %193 = vst [vmem:[%s302_s1] sm:$0xf] %v192_v60 }

// kernel: generator_forward.12
= control target key start
LH: loop header
LB: loop body
LE: loop exit
PB: predicated region body
PF: predicated region fallthrough
CT: control target
= control target key end

     0   :  { %v64_v0 = vlaneseq  ;;  %s492_s0 = inlined_call_operand.vmem [shape: bf16[128,256], index: 0, kind: input, shape index: {}]   ;;  %s493_s1 = inlined_call_operand.vmem [shape: f32[1,256], index: 1, kind: input, shape index: {}]   ;;  %s494_s2 = inlined_call_operand.vmem [shape: f32[1,256], index: 2, kind: input, shape index: {}]   ;;  %s495_s3 = inlined_call_operand.vmem [shape: bf16[128,256], index: 3, kind: output, shape index: {}]  }
   0x1   :  { %v14_v1 = vld [vmem:[%s492_s0] sm:$0xff]  ;;  %v15_v6 = vld [vmem:[%s492_s0 + $0x8] sm:$0xff]  ;;  %v16_v7 = vld [vmem:[%s492_s0 + $0x10] sm:$0xff] }
   0x2   :  { %v62_v2 = vld [vmem:[%s493_s1] sm:$0x3]  ;;  %v30_v3 = vunpack.c.l.bf16 %v14_v1  ;;  %v31_v4 = vunpack.c.h.bf16 %v14_v1  ;;  %v65_v5 = vshrl.u32 %v64_v0, 7  ;;  %v17_v8 = vld [vmem:[%s492_s0 + $0x18] sm:$0xff]  ;;  %v32_v10 = vunpack.c.l.bf16 %v15_v6  ;;  %v19_v15 = vld [vmem:[%s492_s0 + $0x28] sm:$0xff] }
   0x3   :  { %v106_v9 = vld [vmem:[%s494_s2] sm:$0x3]  ;;  %v33_v11 = vunpack.c.h.bf16 %v15_v6  ;;  %v34_v12 = vunpack.c.l.bf16 %v16_v7  ;;  %v35_v13 = vunpack.c.h.bf16 %v16_v7  ;;  %v36_v18 = vunpack.c.l.bf16 %v17_v8  ;;  %v20_v20 = vld [vmem:[%s492_s0 + $0x30] sm:$0xff]  ;;  %v21_v21 = vld [vmem:[%s492_s0 + $0x38] sm:$0xff] }
   0x4   :  { %v18_v14 = vld [vmem:[%s492_s0 + $0x20] sm:$0xff]  ;;  %v66_v16 = vsub.s32 0, %v65_v5  ;;  %v70_v17 = vsub.s32 1, %v65_v5  ;;  %v37_v19 = vunpack.c.h.bf16 %v17_v8  ;;  %v40_v24 = vunpack.c.l.bf16 %v19_v15  ;;  %v24_v8 = vld [vmem:[%s492_s0 + $0x50] sm:$0xff] }
   0x5   :  { %v38_v22 = vunpack.c.l.bf16 %v18_v14  ;;  %v39_v23 = vunpack.c.h.bf16 %v18_v14  ;;  %v41_v25 = vunpack.c.h.bf16 %v19_v15  ;;  %v42_v30 = vunpack.c.l.bf16 %v20_v20  ;;  %v22_v58 = vld [vmem:[%s492_s0 + $0x40] sm:$0xff] }
   0x6   :  { %v348_v26 = vrot.slane %v62_v2, %v66_v16  ;;  %v350_v27 = vrot.slane %v62_v2, %v70_v17  ;;  %v352_v28 = vrot.slane %v106_v9, %v66_v16  ;;  %v354_v29 = vrot.slane %v106_v9, %v70_v17 }
   0x7   :  { %v43_v31 = vunpack.c.h.bf16 %v20_v20  ;;  %v44_v32 = vunpack.c.l.bf16 %v21_v21  ;;  %v45_v33 = vunpack.c.h.bf16 %v21_v21  ;;  %v46_v7 = vunpack.c.l.bf16 %v22_v58 }
   0x8   :  { %v74_v34 = vmul.f32 %v348_v26, %v30_v3  ;;  %v75_v35 = vmul.f32 %v350_v27, %v31_v4  ;;  %v76_v36 = vmul.f32 %v348_v26, %v32_v10  ;;  %v77_v37 = vmul.f32 %v350_v27, %v33_v11  ;;  %v23_v3 = vld [vmem:[%s492_s0 + $0x48] sm:$0xff] }
   0x9   :  { %v78_v38 = vmul.f32 %v348_v26, %v34_v12  ;;  %v79_v39 = vmul.f32 %v350_v27, %v35_v13  ;;  %v80_v40 = vmul.f32 %v348_v26, %v36_v18  ;;  %v81_v41 = vmul.f32 %v350_v27, %v37_v19  ;;  %v25_v13 = vld [vmem:[%s492_s0 + $0x58] sm:$0xff] }
   0xa   :  { %v118_v42 = vadd.f32 %v352_v28, %v74_v34  ;;  %v119_v43 = vadd.f32 %v354_v29, %v75_v35  ;;  %v120_v44 = vadd.f32 %v352_v28, %v76_v36  ;;  %v121_v45 = vadd.f32 %v354_v29, %v77_v37 }
   0xb   :  { %v122_v46 = vadd.f32 %v352_v28, %v78_v38  ;;  %v123_v47 = vadd.f32 %v354_v29, %v79_v39  ;;  %v124_v48 = vadd.f32 %v352_v28, %v80_v40  ;;  %v125_v49 = vadd.f32 %v354_v29, %v81_v41  ;;  %v27_v39 = vld [vmem:[%s492_s0 + $0x68] sm:$0xff] }
   0xc   :  { %v282_v50 = vpack.c.bf16 %v119_v43, %v118_v42  ;;  %v283_v51 = vpack.c.bf16 %v121_v45, %v120_v44  ;;  %v82_v52 = vmul.f32 %v348_v26, %v38_v22  ;;  %v83_v53 = vmul.f32 %v350_v27, %v39_v23  ;;  %v26_v22 = vld [vmem:[%s492_s0 + $0x60] sm:$0xff]  ;;  %v28_v44 = vld [vmem:[%s492_s0 + $0x70] sm:$0xff] }
   0xd   :  { %v284_v54 = vpack.c.bf16 %v123_v47, %v122_v46  ;;  %v285_v55 = vpack.c.bf16 %v125_v49, %v124_v48  ;;  %v84_v56 = vmul.f32 %v348_v26, %v40_v24  ;;  %v85_v57 = vmul.f32 %v350_v27, %v41_v25  ;;  %v29_v49 = vld [vmem:[%s492_s0 + $0x78] sm:$0xff] }
   0xe   :  { %246 = vst [vmem:[%s495_s3] sm:$0xff] %v282_v50  ;;  %247 = vst [vmem:[%s495_s3 + $0x8] sm:$0xff] %v283_v51  ;;  %v126_v59 = vadd.f32 %v352_v28, %v82_v52  ;;  %v127_v60 = vadd.f32 %v354_v29, %v83_v53  ;;  %v86_v61 = vmul.f32 %v348_v26, %v42_v30  ;;  %v47_v12 = vunpack.c.h.bf16 %v22_v58 }
   0xf   :  { %v87_v62 = vmul.f32 %v350_v27, %v43_v31  ;;  %248 = vst [vmem:[%s495_s3 + $0x10] sm:$0xff] %v284_v54  ;;  %249 = vst [vmem:[%s495_s3 + $0x18] sm:$0xff] %v285_v55  ;;  %v128_v63 = vadd.f32 %v352_v28, %v84_v56  ;;  %v129_v0 = vadd.f32 %v354_v29, %v85_v57  ;;  %v48_v16 = vunpack.c.l.bf16 %v23_v3 }
  0x10   :  { %v88_v1 = vmul.f32 %v348_v26, %v44_v32  ;;  %v89_v2 = vmul.f32 %v350_v27, %v45_v33  ;;  %v286_v4 = vpack.c.bf16 %v127_v60, %v126_v59  ;;  %v130_v5 = vadd.f32 %v352_v28, %v86_v61 }
  0x11   :  { %v131_v6 = vadd.f32 %v354_v29, %v87_v62  ;;  %v287_v9 = vpack.c.bf16 %v129_v0, %v128_v63  ;;  %v90_v15 = vmul.f32 %v348_v26, %v46_v7  ;;  %v49_v17 = vunpack.c.h.bf16 %v23_v3 }
  0x12   :  { %v132_v10 = vadd.f32 %v352_v28, %v88_v1  ;;  %v133_v11 = vadd.f32 %v354_v29, %v89_v2  ;;  %250 = vst [vmem:[%s495_s3 + $0x20] sm:$0xff] %v286_v4  ;;  %v91_v19 = vmul.f32 %v350_v27, %v47_v12  ;;  %v50_v20 = vunpack.c.l.bf16 %v24_v8 }
  0x13   :  { %v288_v14 = vpack.c.bf16 %v131_v6, %v130_v5  ;;  %251 = vst [vmem:[%s495_s3 + $0x28] sm:$0xff] %v287_v9  ;;  %v51_v21 = vunpack.c.h.bf16 %v24_v8  ;;  %v134_v23 = vadd.f32 %v352_v28, %v90_v15  ;;  %v92_v24 = vmul.f32 %v348_v26, %v48_v16 }
  0x14   :  { %v289_v18 = vpack.c.bf16 %v133_v11, %v132_v10  ;;  %v93_v25 = vmul.f32 %v350_v27, %v49_v17  ;;  %v52_v30 = vunpack.c.l.bf16 %v25_v13  ;;  %v135_v31 = vadd.f32 %v354_v29, %v91_v19 }
  0x15   :  { %252 = vst [vmem:[%s495_s3 + $0x30] sm:$0xff] %v288_v14  ;;  %v94_v32 = vmul.f32 %v348_v26, %v50_v20  ;;  %v95_v33 = vmul.f32 %v350_v27, %v51_v21  ;;  %v53_v34 = vunpack.c.h.bf16 %v25_v13  ;;  %v136_v35 = vadd.f32 %v352_v28, %v92_v24 }
  0x16   :  { %253 = vst [vmem:[%s495_s3 + $0x38] sm:$0xff] %v289_v18  ;;  %v137_v36 = vadd.f32 %v354_v29, %v93_v25  ;;  %v96_v37 = vmul.f32 %v348_v26, %v52_v30  ;;  %v54_v38 = vunpack.c.l.bf16 %v26_v22  ;;  %v290_v40 = vpack.c.bf16 %v135_v31, %v134_v23 }
  0x17   :  { %v138_v41 = vadd.f32 %v352_v28, %v94_v32  ;;  %v139_v42 = vadd.f32 %v354_v29, %v95_v33  ;;  %v97_v43 = vmul.f32 %v350_v27, %v53_v34  ;;  %v55_v47 = vunpack.c.h.bf16 %v26_v22 }
  0x18   :  { %v291_v45 = vpack.c.bf16 %v137_v36, %v136_v35  ;;  %v140_v46 = vadd.f32 %v352_v28, %v96_v37  ;;  %v98_v48 = vmul.f32 %v348_v26, %v54_v38  ;;  %254 = vst [vmem:[%s495_s3 + $0x40] sm:$0xff] %v290_v40  ;;  %v56_v52 = vunpack.c.l.bf16 %v27_v39 }
  0x19   :  { %v292_v50 = vpack.c.bf16 %v139_v42, %v138_v41  ;;  %v141_v51 = vadd.f32 %v354_v29, %v97_v43  ;;  %v57_v53 = vunpack.c.h.bf16 %v27_v39  ;;  %v99_v54 = vmul.f32 %v350_v27, %v55_v47 }
  0x1a   :  { %255 = vst [vmem:[%s495_s3 + $0x48] sm:$0xff] %v291_v45  ;;  %v142_v55 = vadd.f32 %v352_v28, %v98_v48  ;;  %v58_v56 = vunpack.c.l.bf16 %v28_v44  ;;  %v59_v57 = vunpack.c.h.bf16 %v28_v44  ;;  %v100_v59 = vmul.f32 %v348_v26, %v56_v52 }
  0x1b   :  { %256 = vst [vmem:[%s495_s3 + $0x50] sm:$0xff] %v292_v50  ;;  %v293_v58 = vpack.c.bf16 %v141_v51, %v140_v46  ;;  %v101_v60 = vmul.f32 %v350_v27, %v57_v53  ;;  %v60_v61 = vunpack.c.l.bf16 %v29_v49  ;;  %v143_v62 = vadd.f32 %v354_v29, %v99_v54 }
  0x1c   :  { %v102_v63 = vmul.f32 %v348_v26, %v58_v56  ;;  %v103_v0 = vmul.f32 %v350_v27, %v59_v57  ;;  %v61_v1 = vunpack.c.h.bf16 %v29_v49  ;;  %v144_v2 = vadd.f32 %v352_v28, %v100_v59 }
  0x1d   :  { %257 = vst [vmem:[%s495_s3 + $0x58] sm:$0xff] %v293_v58  ;;  %v145_v3 = vadd.f32 %v354_v29, %v101_v60  ;;  %v104_v4 = vmul.f32 %v348_v26, %v60_v61  ;;  %v294_v5 = vpack.c.bf16 %v143_v62, %v142_v55 }
  0x1e   :  { %v146_v6 = vadd.f32 %v352_v28, %v102_v63  ;;  %v147_v7 = vadd.f32 %v354_v29, %v103_v0  ;;  %v105_v8 = vmul.f32 %v350_v27, %v61_v1 }
  0x1f   :  { %v295_v9 = vpack.c.bf16 %v145_v3, %v144_v2  ;;  %v148_v10 = vadd.f32 %v352_v28, %v104_v4  ;;  %258 = vst [vmem:[%s495_s3 + $0x60] sm:$0xff] %v294_v5 }
  0x20   :  { %v296_v11 = vpack.c.bf16 %v147_v7, %v146_v6  ;;  %v149_v12 = vadd.f32 %v354_v29, %v105_v8 }
  0x21   :  { %259 = vst [vmem:[%s495_s3 + $0x68] sm:$0xff] %v295_v9 }
  0x22   :  { %260 = vst [vmem:[%s495_s3 + $0x70] sm:$0xff] %v296_v11  ;;  %v297_v26 = vpack.c.bf16 %v149_v12, %v148_v10 }
  0x24   :  { %261 = vst [vmem:[%s495_s3 + $0x78] sm:$0xff] %v297_v26 }

// kernel: generator_forward.10
= control target key start
LH: loop header
LB: loop body
LE: loop exit
PB: predicated region body
PF: predicated region fallthrough
CT: control target
= control target key end

     0   :  { %8 = vsyncpa [#allocation4], 0  ;;  %s2513_s0 = inlined_call_operand.vmem [shape: bf16[1,8,128], index: 0, kind: input, shape index: {}]   ;;  %s2514_s1 = inlined_call_operand.hbm [shape: bf16[1,128,16384], index: 1, kind: input, shape index: {}]   ;;  %s2515_s2 = inlined_call_operand.hbm [shape: f32[1,16384], index: 2, kind: input, shape index: {}]   ;;  %s2516_s3 = inlined_call_operand.vmem [shape: bf16[1,8,16384], index: 3, kind: output, shape index: {}]  }
   0x1   :  { %10 = vsyncpa [#allocation4 + $0x1], 0 }
   0x2   :  { %11 = vsyncpa [#allocation6], 0 }
   0x3   :  { %13 = vsyncpa [#allocation6 + $0x1], 0  ;;  %s2213_s12 = smov 0   ;;  %s2215_s13 = smov 0  }
   0x4   :  { %s2217_s14 = smov 0   ;;  %s2219_s15 = smov 0  }
   0x5   :  { %s2221_s16 = smov 0   ;;  %s2223_s17 = smov 0  }
   0x6 LB: > { %s1847_s18 = sadd.s32 4294967295, %s2185_s17   ;;  %s37_s19 = sadd.s32 1, %s2181_s16  ;;  %s2185_s17 = sphi %s2223_s17, %s19_s17   ;;  %s2181_s16 = sphi %s2221_s16, %s2525_s16   ;;  %s2177_s15 = sphi %s2219_s15, %s2524_s15   ;;  %s2173_s14 = sphi %s2217_s14, %s2523_s14   ;;  %s2169_s13 = sphi %s2215_s13, %s2522_s13   ;;  %s2165_s12 = sphi %s2213_s12, %s2521_s12  }
   0x7   : > { %p39_p0 = scmp.ge.s32.totalorder %s37_s19, 8  ;;  %s86_s20 = sadd.s32 1, %s2173_s14 }
   0x8   : > { %p93_p1 = scmp.ne.s32.totalorder %s2173_s14, %s2169_s13  ;;  %p94_p2 = scmp.eq.s32.totalorder %s2185_s17, 0 }
   0x9   : > { %s2527_s19 = smov (%p39_p0, %s37_s19), 0  ;;  %p99_p4 = scmp.ne.s32.totalorder %s2169_s13, %s2165_s12 }
   0xa   : > { %p2249_p3 = por %p94_p2, %p93_p1  ;;  %s82_s22 = ssub.s32 %s2181_s16, %s2527_s19 }
   0xb   : > { %p100_p5 = scmp.eq.s32.totalorder %s1847_s18, 0  ;;  %p84_p6 = scmp.eq.s32.totalorder %s82_s22, 0 }
   0xc   : > { %p2022_p8 = scmp.lt.s32.totalorder %s2185_s17, 8  ;;  %s2265_s25 = sand.u32 1, %s2173_s14  }
   0xd   : > { %p2256_p7 = por %p100_p5, %p99_p4  ;;  %s2001_s26 = sshll.u32 %s2181_s16, 10 }
   0xe   : > { %s2262_s24 = scalar_select %p84_p6, %s2173_s14, %s86_s20  }
   0xf   : > { %s1852_s27 = sshll.u32 %s2265_s25, 10  ;;  %s207_s30 = scalar_lea.hbm %s2514_s1, %s2001_s26 }
  0x10   : > { %s196_s4 = scalar_lea.vmem [#allocation3], %s1852_s27  ;;  %p2274_p9 = pnand %p2022_p8, %p2249_p3 }
  0x11   : > { %s208_s5 = sshll.u32 %s196_s4, 4  ;;  %p1858_p10 = scmp.ge.s32.totalorder %s2185_s17, 1  ;;  %s209_s5 = int_to_ptr.vmem [resolvable:$true] %s208_s5 }
  0x12   : > { %s193_s7 = scalar_lea.sflag [#allocation4], %s2265_s25  ;;  %p2077_p11 = pneg %p2274_p9 }
  0x13   : > { %s2088_s8 = scalar_lea.vmem %s209_s5, 16384  ;;  %s2187_s9 = smov [#allocation3]  }
  0x14   : > { %p2089_p12 = scmp.ne.s32.totalorder %s209_s5, %s2088_s8  ;;  %s2093_s10 = sshll.u32 %s2187_s9, 4  ;;  %s2094_s10 = int_to_ptr.vmem [resolvable:$false] %s2093_s10 }
  0x15   : > { %s2095_s11 = scalar_lea.vmem %s2094_s10, 32768  ;;  %p2096_p1 = scmp.lt.s32.totalorder %s209_s5, %s2094_s10 }
  0x16   : > { %p2091_p13 = pnand %p2089_p12, %p2077_p11  ;;  %p2097_p2 = scmp.lt.s32.totalorder %s2095_s11, %s2088_s8 }
  0x18   : > { %p2092_p0 = pneg %p2091_p13  ;;  %p2098_p3 = por %p2097_p2, %p2096_p1 }
  0x1a   : > { %p2099_p4 = pnand %p2098_p3, %p2092_p0 }
  0x1c   : > { %2102 = shalt.err (!%p2099_p4)
}
  0x1d   : > { %s2188_s12 = smov 8192   ;;  %s2189_s18 = smov 1024  }
  0x1e   : > { %s2190_s20 = smov 64   ;;  %p235_p5 = scmp.lt.s32.totalorder %s2185_s17, 9 }
  0x1f   : > { %2018 = dma.hbm_to_vmem [thread:$0]  (!%p2274_p9), %s207_s30, 16384, %s209_s5, %s193_s7, %s2188_s12, %s2189_s18, %s2190_s20  }
  0x20   : > { %s1855_s21 = sshll.u32 %s2265_s25, 4  ;;  %s2002_s22 = sshll.u32 %s2181_s16, 8 }
  0x21   : > { %p2292_p6 = pnand %p1858_p10, %p235_p5  ;;  %s228_s29 = scalar_lea.hbm %s2515_s2, %s2002_s22 }
  0x22   : > { %s222_s4 = scalar_lea.vmem [#allocation5], %s1855_s21  ;;  %s219_s9 = scalar_lea.sflag [#allocation6], %s2265_s25 }
  0x23   : > { %s230_s8 = sshll.u32 %s222_s4, 4  ;;  %s2191_s30 = smov [#allocation5]   ;;  %s231_s8 = int_to_ptr.vmem [resolvable:$true] %s230_s8 }
  0x24   : > { %s2116_s10 = scalar_lea.vmem %s231_s8, 256  ;;  %s2121_s5 = sshll.u32 %s2191_s30, 4  ;;  %s2122_s5 = int_to_ptr.vmem [resolvable:$false] %s2121_s5 }
  0x25   : > { %p2117_p8 = scmp.ne.s32.totalorder %s231_s8, %s2116_s10  ;;  %s2123_s7 = scalar_lea.vmem %s2122_s5, 512 }
  0x26   : > { %p2124_p10 = scmp.lt.s32.totalorder %s231_s8, %s2122_s5  ;;  %p2125_p0 = scmp.lt.s32.totalorder %s2123_s7, %s2116_s10 }
  0x27   : > { %p2119_p12 = pnand %p2117_p8, %p2077_p11 }
  0x28   : > { %p2126_p1 = por %p2125_p0, %p2124_p10 }
  0x29   : > { %p2120_p13 = pneg %p2119_p12 }
  0x2b   : > { %p2127_p2 = pnand %p2126_p1, %p2120_p13 }
  0x2d   : > { %2130 = shalt.err (!%p2127_p2)
}
  0x2e   : > { %2021 = dma.hbm_to_vmem [thread:$0]  (!%p2274_p9), %s228_s29, 256, %s231_s8, %s219_s9  }
  0x2f   : > { %239 = sbr.rel (%p2292_p6) target bundleno = 388 (0x184), region = 32  ;;  %s241_s25 = sand.u32 (!%p2292_p6), 1, %s2169_s13  }
  0x30   : > { %s1859_s11 = sshll.u32 (!%p2292_p6), %s241_s25, 10  ;;  %s242_s12 = scalar_lea.sflag (!%p2292_p6), [#allocation4], %s241_s25 }
  0x31   : > { %s2308_s18 = scalar_lea.vmem (!%p2292_p6), [#allocation3], %s1859_s11 }
  0x34   : > { %2156 = dma.done.wait (%p2256_p7), %s242_s12, 16384  }
  0x35   : > { %2158 = vsyncadd (%p2256_p7), %s242_s12, 4294950912  ;;  %s1860_s20 = sshll.u32 %s241_s25, 4  ;;  %s251_s21 = scalar_lea.sflag [#allocation6], %s241_s25 }
  0x36   : > { %s2314_s6 = scalar_lea.vmem [#allocation5], %s1860_s20 }
  0x37   : > { %2160 = dma.done.wait (%p2256_p7), %s251_s21, 256  }
  0x38   : > { %2162 = vsyncadd (%p2256_p7), %s251_s21, 4294967040  ;;  %v2192_v0 = vmov 0   ;;  %v477_v1 = vld [vmem:[%s2308_s18 + $0x380] sm:$0xff]  ;;  %v478_v3 = vld [vmem:[%s2308_s18 + $0x388] sm:$0xff]  ;;  %s1861_s26 = sshll.u32 %s2177_s15, 4 }
  0x39   : > { %1165 = vmatprep.mubr.bf16.mxu0 %v2192_v0  ;;  %1206 = vmatprep.mubr.bf16.mxu1 %v2192_v0  ;;  %v485_v2 = vld [vmem:[%s2308_s18 + $0x3c0] sm:$0xff]  ;;  %v486_v5 = vld [vmem:[%s2308_s18 + $0x3c8] sm:$0xff]  ;;  %v479_v63 = vld [vmem:[%s2308_s18 + $0x390] sm:$0xff]  ;;  %p318_p7 = scmp.lt.s32.totalorder %s1861_s26, 127 }
  0x3a   : > { %v1976_v4 = vcombine.high %v477_v1, %v485_v2  ;;  %v1975_v6 = vcombine.low %v477_v1, %v485_v2  ;;  %v461_v7 = vld [vmem:[%s2308_s18 + $0x300] sm:$0xff]  ;;  %v1978_v9 = vcombine.high %v478_v3, %v486_v5  ;;  %v1977_v10 = vcombine.low %v478_v3, %v486_v5  ;;  %v462_v12 = vld [vmem:[%s2308_s18 + $0x308] sm:$0xff]  ;;  %v487_v1 = vld [vmem:[%s2308_s18 + $0x3d0] sm:$0xff] }
  0x3b   : > { %v469_v8 = vld [vmem:[%s2308_s18 + $0x340] sm:$0xff]  ;;  %v470_v13 = vld [vmem:[%s2308_s18 + $0x348] sm:$0xff]  ;;  %v480_v2 = vld [vmem:[%s2308_s18 + $0x398] sm:$0xff]  ;;  %s2529_s26 = smov (!%p318_p7, %s1861_s26), 127 }
  0x3c   : > { %v1960_v11 = vcombine.high %v461_v7, %v469_v8  ;;  %v445_v14 = vld [vmem:[%s2308_s18 + $0x280] sm:$0xff]  ;;  %1133 = vmatprep.subr.bf16.mxu0 %v1976_v4  ;;  %v1962_v15 = vcombine.high %v462_v12, %v470_v13  ;;  %v446_v17 = vld [vmem:[%s2308_s18 + $0x288] sm:$0xff]  ;;  %1174 = vmatprep.subr.bf16.mxu1 %v1978_v9  ;;  %v1959_v19 = vcombine.low %v461_v7, %v469_v8  ;;  %v488_v3 = vld [vmem:[%s2308_s18 + $0x3d8] sm:$0xff]  ;;  %s1862_s27 = sshll.u32 %s2529_s26, 2 }
  0x3d   : > { %v453_v16 = vld [vmem:[%s2308_s18 + $0x2c0] sm:$0xff]  ;;  %v454_v18 = vld [vmem:[%s2308_s18 + $0x2c8] sm:$0xff]  ;;  %1134 = vmatpush1.bf16.msra.mxu0 %v1975_v6  ;;  %1175 = vmatpush1.bf16.msra.mxu1 %v1977_v10  ;;  %v1961_v20 = vcombine.low %v462_v12, %v470_v13  ;;  %v1980_v6 = vcombine.high %v479_v63, %v487_v1  ;;  %v1982_v7 = vcombine.high %v480_v2, %v488_v3  ;;  %v463_v8 = vld [vmem:[%s2308_s18 + $0x310] sm:$0xff]  ;;  %s2480_s29 = scalar_lea.vmem %s2516_s3, %s1862_s27 }
  0x3e   : > { %1135 = vmatprep.subr.bf16.mxu0 %v1960_v11  ;;  %v1944_v21 = vcombine.high %v445_v14, %v453_v16  ;;  %1176 = vmatprep.subr.bf16.mxu1 %v1962_v15  ;;  %v1946_v22 = vcombine.high %v446_v17, %v454_v18  ;;  %v429_v23 = vld [vmem:[%s2308_s18 + $0x200] sm:$0xff]  ;;  %v430_v25 = vld [vmem:[%s2308_s18 + $0x208] sm:$0xff]  ;;  %v1943_v27 = vcombine.low %v445_v14, %v453_v16  ;;  %v471_v9 = vld [vmem:[%s2308_s18 + $0x350] sm:$0xff] }
  0x3f   : > { %v437_v24 = vld [vmem:[%s2308_s18 + $0x240] sm:$0xff]  ;;  %v438_v26 = vld [vmem:[%s2308_s18 + $0x248] sm:$0xff]  ;;  %v1945_v28 = vcombine.low %v446_v17, %v454_v18  ;;  %v464_v10 = vld [vmem:[%s2308_s18 + $0x318] sm:$0xff]  ;;  %v1979_v13 = vcombine.low %v479_v63, %v487_v1  ;;  %v1981_v14 = vcombine.low %v480_v2, %v488_v3  ;;  %v1964_v15 = vcombine.high %v463_v8, %v471_v9 }
  0x40   : > { %v1928_v29 = vcombine.high %v429_v23, %v437_v24  ;;  %v1930_v30 = vcombine.high %v430_v25, %v438_v26  ;;  %v413_v31 = vld [vmem:[%s2308_s18 + $0x180] sm:$0xff]  ;;  %v414_v33 = vld [vmem:[%s2308_s18 + $0x188] sm:$0xff]  ;;  %v1927_v35 = vcombine.low %v429_v23, %v437_v24  ;;  %v1929_v36 = vcombine.low %v430_v25, %v438_v26  ;;  %v472_v11 = vld [vmem:[%s2308_s18 + $0x358] sm:$0xff] }
  0x41   : > { %1136 = vmatpush1.bf16.msra.mxu0 %v1959_v19  ;;  %1177 = vmatpush1.bf16.msra.mxu1 %v1961_v20  ;;  %v421_v32 = vld [vmem:[%s2308_s18 + $0x1c0] sm:$0xff]  ;;  %v422_v34 = vld [vmem:[%s2308_s18 + $0x1c8] sm:$0xff]  ;;  %v1966_v16 = vcombine.high %v464_v10, %v472_v11  ;;  %v447_v17 = vld [vmem:[%s2308_s18 + $0x290] sm:$0xff] }
  0x42   : > { %1137 = vmatprep.subr.bf16.mxu0 %v1944_v21  ;;  %1178 = vmatprep.subr.bf16.mxu1 %v1946_v22  ;;  %v1912_v37 = vcombine.high %v413_v31, %v421_v32  ;;  %v1914_v38 = vcombine.high %v414_v33, %v422_v34  ;;  %v397_v39 = vld [vmem:[%s2308_s18 + $0x100] sm:$0xff]  ;;  %v398_v41 = vld [vmem:[%s2308_s18 + $0x108] sm:$0xff]  ;;  %v1911_v43 = vcombine.low %v413_v31, %v421_v32  ;;  %v455_v18 = vld [vmem:[%s2308_s18 + $0x2d0] sm:$0xff] }
  0x43   : > { %v405_v40 = vld [vmem:[%s2308_s18 + $0x140] sm:$0xff]  ;;  %v406_v42 = vld [vmem:[%s2308_s18 + $0x148] sm:$0xff]  ;;  %v1913_v44 = vcombine.low %v414_v33, %v422_v34  ;;  %v448_v19 = vld [vmem:[%s2308_s18 + $0x298] sm:$0xff]  ;;  %v1963_v21 = vcombine.low %v463_v8, %v471_v9  ;;  %v1965_v22 = vcombine.low %v464_v10, %v472_v11  ;;  %v1948_v23 = vcombine.high %v447_v17, %v455_v18 }
  0x44   : > { %v1896_v45 = vcombine.high %v397_v39, %v405_v40  ;;  %v1898_v46 = vcombine.high %v398_v41, %v406_v42  ;;  %v381_v47 = vld [vmem:[%s2308_s18 + $0x80] sm:$0xff]  ;;  %v382_v49 = vld [vmem:[%s2308_s18 + $0x88] sm:$0xff]  ;;  %v1895_v51 = vcombine.low %v397_v39, %v405_v40  ;;  %v1897_v52 = vcombine.low %v398_v41, %v406_v42  ;;  %v456_v20 = vld [vmem:[%s2308_s18 + $0x2d8] sm:$0xff] }
  0x45   : > { %1138 = vmatpush1.bf16.msra.mxu0 %v1943_v27  ;;  %1179 = vmatpush1.bf16.msra.mxu1 %v1945_v28  ;;  %v389_v48 = vld [vmem:[%s2308_s18 + $0xc0] sm:$0xff]  ;;  %v390_v50 = vld [vmem:[%s2308_s18 + $0xc8] sm:$0xff]  ;;  %v1950_v24 = vcombine.high %v448_v19, %v456_v20  ;;  %v431_v25 = vld [vmem:[%s2308_s18 + $0x210] sm:$0xff] }
  0x46   : > { %1139 = vmatprep.subr.bf16.mxu0 %v1928_v29  ;;  %1180 = vmatprep.subr.bf16.mxu1 %v1930_v30  ;;  %v1880_v53 = vcombine.high %v381_v47, %v389_v48  ;;  %v1882_v54 = vcombine.high %v382_v49, %v390_v50  ;;  %v365_v55 = vld [vmem:[%s2308_s18] sm:$0xff]  ;;  %v366_v57 = vld [vmem:[%s2308_s18 + $0x8] sm:$0xff]  ;;  %v1879_v59 = vcombine.low %v381_v47, %v389_v48  ;;  %v439_v26 = vld [vmem:[%s2308_s18 + $0x250] sm:$0xff] }
  0x47   : > { %v373_v56 = vld [vmem:[%s2308_s18 + $0x40] sm:$0xff]  ;;  %v374_v58 = vld [vmem:[%s2308_s18 + $0x48] sm:$0xff]  ;;  %v1881_v60 = vcombine.low %v382_v49, %v390_v50  ;;  %v432_v27 = vld [vmem:[%s2308_s18 + $0x218] sm:$0xff]  ;;  %v1947_v29 = vcombine.low %v447_v17, %v455_v18  ;;  %v1949_v30 = vcombine.low %v448_v19, %v456_v20  ;;  %v1932_v31 = vcombine.high %v431_v25, %v439_v26 }
  0x48   : > { %v1864_v61 = vcombine.high %v365_v55, %v373_v56  ;;  %v1866_v62 = vcombine.high %v366_v57, %v374_v58  ;;  %v1863_v4 = vcombine.low %v365_v55, %v373_v56  ;;  %v1865_v5 = vcombine.low %v366_v57, %v374_v58  ;;  %v2365_v12 = vld [vmem:[%s2513_s0] sm:$0xf]  ;;  %v440_v28 = vld [vmem:[%s2308_s18 + $0x258] sm:$0xff]  ;;  %v415_v33 = vld [vmem:[%s2308_s18 + $0x190] sm:$0xff] }
  0x49   : > { %1140 = vmatpush1.bf16.msra.mxu0 %v1927_v35  ;;  %1181 = vmatpush1.bf16.msra.mxu1 %v1929_v36  ;;  %v1934_v32 = vcombine.high %v432_v27, %v440_v28  ;;  %v423_v34 = vld [vmem:[%s2308_s18 + $0x1d0] sm:$0xff]  ;;  %v416_v35 = vld [vmem:[%s2308_s18 + $0x198] sm:$0xff]  ;;  %v481_v2 = vld [vmem:[%s2308_s18 + $0x3a0] sm:$0xff] }
  0x4a   : > { %1141 = vmatprep.subr.bf16.mxu0 %v1912_v37  ;;  %1182 = vmatprep.subr.bf16.mxu1 %v1914_v38  ;;  %v424_v36 = vld [vmem:[%s2308_s18 + $0x1d8] sm:$0xff]  ;;  %v1931_v37 = vcombine.low %v431_v25, %v439_v26  ;;  %v1933_v38 = vcombine.low %v432_v27, %v440_v28  ;;  %v1916_v39 = vcombine.high %v415_v33, %v423_v34  ;;  %v399_v41 = vld [vmem:[%s2308_s18 + $0x110] sm:$0xff]  ;;  %v489_v3 = vld [vmem:[%s2308_s18 + $0x3e0] sm:$0xff] }
  0x4b   : > { %v1918_v40 = vcombine.high %v416_v35, %v424_v36  ;;  %v407_v42 = vld [vmem:[%s2308_s18 + $0x150] sm:$0xff]  ;;  %v1984_v8 = vcombine.high %v481_v2, %v489_v3  ;;  %v465_v10 = vld [vmem:[%s2308_s18 + $0x320] sm:$0xff] }
  0x4c   : > { %v1900_v47 = vcombine.high %v399_v41, %v407_v42  ;;  %v383_v49 = vld [vmem:[%s2308_s18 + $0x90] sm:$0xff]  ;;  %v473_v11 = vld [vmem:[%s2308_s18 + $0x360] sm:$0xff] }
  0x4d   : > { %1142 = vmatpush1.bf16.msra.mxu0 %v1911_v43  ;;  %1183 = vmatpush1.bf16.msra.mxu1 %v1913_v44  ;;  %v400_v43 = vld [vmem:[%s2308_s18 + $0x118] sm:$0xff]  ;;  %v391_v50 = vld [vmem:[%s2308_s18 + $0xd0] sm:$0xff]  ;;  %v1968_v17 = vcombine.high %v465_v10, %v473_v11  ;;  %v449_v19 = vld [vmem:[%s2308_s18 + $0x2a0] sm:$0xff] }
  0x4e   : > { %1143 = vmatprep.subr.bf16.mxu0 %v1896_v45  ;;  %1184 = vmatprep.subr.bf16.mxu1 %v1898_v46  ;;  %v408_v44 = vld [vmem:[%s2308_s18 + $0x158] sm:$0xff]  ;;  %v1915_v45 = vcombine.low %v415_v33, %v423_v34  ;;  %v1917_v46 = vcombine.low %v416_v35, %v424_v36  ;;  %v1884_v55 = vcombine.high %v383_v49, %v391_v50  ;;  %v367_v57 = vld [vmem:[%s2308_s18 + $0x10] sm:$0xff]  ;;  %v457_v20 = vld [vmem:[%s2308_s18 + $0x2e0] sm:$0xff] }
  0x4f   : > { %v1902_v48 = vcombine.high %v400_v43, %v408_v44  ;;  %v375_v58 = vld [vmem:[%s2308_s18 + $0x50] sm:$0xff]  ;;  %v1952_v25 = vcombine.high %v449_v19, %v457_v20  ;;  %v433_v27 = vld [vmem:[%s2308_s18 + $0x220] sm:$0xff] }
  0x50   : > { %v1868_v63 = vcombine.high %v367_v57, %v375_v58  ;;  %v441_v28 = vld [vmem:[%s2308_s18 + $0x260] sm:$0xff] }
  0x51   : > { %1144 = vmatpush1.bf16.msra.mxu0 %v1895_v51  ;;  %1185 = vmatpush1.bf16.msra.mxu1 %v1897_v52  ;;  %v384_v51 = vld [vmem:[%s2308_s18 + $0x98] sm:$0xff]  ;;  %v1936_v33 = vcombine.high %v433_v27, %v441_v28  ;;  %v417_v35 = vld [vmem:[%s2308_s18 + $0x1a0] sm:$0xff] }
  0x52   : > { %1145 = vmatprep.subr.bf16.mxu0 %v1880_v53  ;;  %1186 = vmatprep.subr.bf16.mxu1 %v1882_v54  ;;  %v392_v52 = vld [vmem:[%s2308_s18 + $0xd8] sm:$0xff]  ;;  %v1899_v53 = vcombine.low %v399_v41, %v407_v42  ;;  %v1901_v54 = vcombine.low %v400_v43, %v408_v44  ;;  %v425_v36 = vld [vmem:[%s2308_s18 + $0x1e0] sm:$0xff] }
  0x53   : > { %v1886_v56 = vcombine.high %v384_v51, %v392_v52  ;;  %v1920_v41 = vcombine.high %v417_v35, %v425_v36  ;;  %v401_v43 = vld [vmem:[%s2308_s18 + $0x120] sm:$0xff] }
  0x54   : > { %v409_v44 = vld [vmem:[%s2308_s18 + $0x160] sm:$0xff] }
  0x55   : > { %1146 = vmatpush1.bf16.msra.mxu0 %v1879_v59  ;;  %1187 = vmatpush1.bf16.msra.mxu1 %v1881_v60  ;;  %v368_v59 = vld [vmem:[%s2308_s18 + $0x18] sm:$0xff] }
  0x56   : > { %1147 = vmatprep.subr.bf16.mxu0 %v1864_v61  ;;  %1188 = vmatprep.subr.bf16.mxu1 %v1866_v62  ;;  %v376_v60 = vld [vmem:[%s2308_s18 + $0x58] sm:$0xff]  ;;  %v1883_v61 = vcombine.low %v383_v49, %v391_v50  ;;  %v1885_v62 = vcombine.low %v384_v51, %v392_v52  ;;  %v1904_v49 = vcombine.high %v401_v43, %v409_v44  ;;  %v385_v51 = vld [vmem:[%s2308_s18 + $0xa0] sm:$0xff] }
  0x57   : > { %v1870_v1 = vcombine.high %v368_v59, %v376_v60  ;;  %v393_v52 = vld [vmem:[%s2308_s18 + $0xe0] sm:$0xff] }
  0x59   : > { %1148 = vmatpush1.bf16.msra.mxu0 %v1863_v4  ;;  %1189 = vmatpush1.bf16.msra.mxu1 %v1865_v5  ;;  %v482_v4 = vld [vmem:[%s2308_s18 + $0x3a8] sm:$0xff] }
  0x5a   : > { %1215 = vmatprep.subr.bf16.mxu0 %v1980_v6  ;;  %1256 = vmatprep.subr.bf16.mxu1 %v1982_v7  ;;  %v490_v5 = vld [vmem:[%s2308_s18 + $0x3e8] sm:$0xff]  ;;  %v1867_v6 = vcombine.low %v367_v57, %v375_v58  ;;  %v1869_v7 = vcombine.low %v368_v59, %v376_v60  ;;  %v1888_v57 = vcombine.high %v385_v51, %v393_v52  ;;  %v369_v59 = vld [vmem:[%s2308_s18 + $0x20] sm:$0xff] }
  0x5b   : > { %v1986_v9 = vcombine.high %v482_v4, %v490_v5  ;;  %v377_v60 = vld [vmem:[%s2308_s18 + $0x60] sm:$0xff] }
  0x5c   : > { %1166 = vmatmul.mubr.bf16.vlgmr.msra.gmra.mxu0 %v2365_v12  ;;  %1207 = vmatmul.mubr.bf16.vlgmr.msra.gmra.mxu1 %v2365_v12 }
  0x5d   : > { %1216 = vmatpush1.bf16.msra.mxu0 %v1979_v13  ;;  %1257 = vmatpush1.bf16.msra.mxu1 %v1981_v14  ;;  %v466_v13 = vld [vmem:[%s2308_s18 + $0x328] sm:$0xff] }
  0x5e   : > { %1217 = vmatprep.subr.bf16.mxu0 %v1964_v15  ;;  %1258 = vmatprep.subr.bf16.mxu1 %v1966_v16  ;;  %v474_v14 = vld [vmem:[%s2308_s18 + $0x368] sm:$0xff]  ;;  %v1983_v15 = vcombine.low %v481_v2, %v489_v3  ;;  %v1985_v16 = vcombine.low %v482_v4, %v490_v5  ;;  %v1872_v2 = vcombine.high %v369_v59, %v377_v60  ;;  %v483_v4 = vld [vmem:[%s2308_s18 + $0x3b0] sm:$0xff] }
  0x5f   : > { %1247 = vmatprep.mubr.bf16.mxu0 %v2192_v0  ;;  %1288 = vmatprep.mubr.bf16.mxu1 %v2192_v0  ;;  %v1970_v18 = vcombine.high %v466_v13, %v474_v14  ;;  %v491_v5 = vld [vmem:[%s2308_s18 + $0x3f0] sm:$0xff] }
  0x61   : > { %1218 = vmatpush1.bf16.msra.mxu0 %v1963_v21  ;;  %1259 = vmatpush1.bf16.msra.mxu1 %v1965_v22  ;;  %v450_v21 = vld [vmem:[%s2308_s18 + $0x2a8] sm:$0xff] }
  0x62   : > { %1219 = vmatprep.subr.bf16.mxu0 %v1948_v23  ;;  %1260 = vmatprep.subr.bf16.mxu1 %v1950_v24  ;;  %v458_v22 = vld [vmem:[%s2308_s18 + $0x2e8] sm:$0xff]  ;;  %v1967_v23 = vcombine.low %v465_v10, %v473_v11  ;;  %v1969_v24 = vcombine.low %v466_v13, %v474_v14  ;;  %v1988_v10 = vcombine.high %v483_v4, %v491_v5  ;;  %v467_v13 = vld [vmem:[%s2308_s18 + $0x330] sm:$0xff] }
  0x63   : > { %v1954_v26 = vcombine.high %v450_v21, %v458_v22  ;;  %v475_v14 = vld [vmem:[%s2308_s18 + $0x370] sm:$0xff] }
  0x65   : > { %1220 = vmatpush1.bf16.msra.mxu0 %v1947_v29  ;;  %1261 = vmatpush1.bf16.msra.mxu1 %v1949_v30  ;;  %v434_v29 = vld [vmem:[%s2308_s18 + $0x228] sm:$0xff] }
  0x66   : > { %1221 = vmatprep.subr.bf16.mxu0 %v1932_v31  ;;  %1262 = vmatprep.subr.bf16.mxu1 %v1934_v32  ;;  %v442_v30 = vld [vmem:[%s2308_s18 + $0x268] sm:$0xff]  ;;  %v1951_v31 = vcombine.low %v449_v19, %v457_v20  ;;  %v1953_v32 = vcombine.low %v450_v21, %v458_v22  ;;  %v1972_v19 = vcombine.high %v467_v13, %v475_v14  ;;  %v451_v21 = vld [vmem:[%s2308_s18 + $0x2b0] sm:$0xff] }
  0x67   : > { %v1938_v34 = vcombine.high %v434_v29, %v442_v30  ;;  %v459_v22 = vld [vmem:[%s2308_s18 + $0x2f0] sm:$0xff] }
  0x69   : > { %1222 = vmatpush1.bf16.msra.mxu0 %v1931_v37  ;;  %1263 = vmatpush1.bf16.msra.mxu1 %v1933_v38  ;;  %v418_v37 = vld [vmem:[%s2308_s18 + $0x1a8] sm:$0xff] }
  0x6a   : > { %1223 = vmatprep.subr.bf16.mxu0 %v1916_v39  ;;  %1264 = vmatprep.subr.bf16.mxu1 %v1918_v40  ;;  %v426_v38 = vld [vmem:[%s2308_s18 + $0x1e8] sm:$0xff]  ;;  %v1935_v39 = vcombine.low %v433_v27, %v441_v28  ;;  %v1937_v40 = vcombine.low %v434_v29, %v442_v30  ;;  %v1956_v27 = vcombine.high %v451_v21, %v459_v22  ;;  %v435_v29 = vld [vmem:[%s2308_s18 + $0x230] sm:$0xff] }
  0x6b   : > { %v1922_v42 = vcombine.high %v418_v37, %v426_v38  ;;  %v443_v30 = vld [vmem:[%s2308_s18 + $0x270] sm:$0xff] }
  0x6d   : > { %1224 = vmatpush1.bf16.msra.mxu0 %v1915_v45  ;;  %1265 = vmatpush1.bf16.msra.mxu1 %v1917_v46  ;;  %v402_v45 = vld [vmem:[%s2308_s18 + $0x128] sm:$0xff] }
  0x6e   : > { %1225 = vmatprep.subr.bf16.mxu0 %v1900_v47  ;;  %1266 = vmatprep.subr.bf16.mxu1 %v1902_v48  ;;  %v410_v46 = vld [vmem:[%s2308_s18 + $0x168] sm:$0xff]  ;;  %v1919_v47 = vcombine.low %v417_v35, %v425_v36  ;;  %v1921_v48 = vcombine.low %v418_v37, %v426_v38  ;;  %v1940_v35 = vcombine.high %v435_v29, %v443_v30  ;;  %v419_v37 = vld [vmem:[%s2308_s18 + $0x1b0] sm:$0xff] }
  0x6f   : > { %v1906_v50 = vcombine.high %v402_v45, %v410_v46  ;;  %v427_v38 = vld [vmem:[%s2308_s18 + $0x1f0] sm:$0xff] }
  0x71   : > { %1226 = vmatpush1.bf16.msra.mxu0 %v1899_v53  ;;  %1267 = vmatpush1.bf16.msra.mxu1 %v1901_v54  ;;  %v386_v53 = vld [vmem:[%s2308_s18 + $0xa8] sm:$0xff] }
  0x72   : > { %1227 = vmatprep.subr.bf16.mxu0 %v1884_v55  ;;  %1268 = vmatprep.subr.bf16.mxu1 %v1886_v56  ;;  %v394_v54 = vld [vmem:[%s2308_s18 + $0xe8] sm:$0xff]  ;;  %v1903_v55 = vcombine.low %v401_v43, %v409_v44  ;;  %v1905_v56 = vcombine.low %v402_v45, %v410_v46  ;;  %v403_v44 = vld [vmem:[%s2308_s18 + $0x130] sm:$0xff]  ;;  %v404_v46 = vld [vmem:[%s2308_s18 + $0x138] sm:$0xff] }
  0x73   : > { %v1890_v58 = vcombine.high %v386_v53, %v394_v54  ;;  %v411_v45 = vld [vmem:[%s2308_s18 + $0x170] sm:$0xff] }
  0x75   : > { %1228 = vmatpush1.bf16.msra.mxu0 %v1883_v61  ;;  %1269 = vmatpush1.bf16.msra.mxu1 %v1885_v62  ;;  %v370_v61 = vld [vmem:[%s2308_s18 + $0x28] sm:$0xff] }
  0x76   : > { %1229 = vmatprep.subr.bf16.mxu0 %v1868_v63  ;;  %1270 = vmatprep.subr.bf16.mxu1 %v1870_v1  ;;  %v378_v62 = vld [vmem:[%s2308_s18 + $0x68] sm:$0xff]  ;;  %v1887_v63 = vcombine.low %v385_v51, %v393_v52  ;;  %v1889_v1 = vcombine.low %v386_v53, %v394_v54  ;;  %v387_v52 = vld [vmem:[%s2308_s18 + $0xb0] sm:$0xff]  ;;  %v388_v54 = vld [vmem:[%s2308_s18 + $0xb8] sm:$0xff] }
  0x77   : > { %v1874_v3 = vcombine.high %v370_v61, %v378_v62  ;;  %v395_v53 = vld [vmem:[%s2308_s18 + $0xf0] sm:$0xff] }
  0x79   : > { %1230 = vmatpush1.bf16.msra.mxu0 %v1867_v6  ;;  %1271 = vmatpush1.bf16.msra.mxu1 %v1869_v7  ;;  %v484_v6 = vld [vmem:[%s2308_s18 + $0x3b8] sm:$0xff] }
  0x7a   : > { %1297 = vmatprep.subr.bf16.mxu0 %v1984_v8  ;;  %1338 = vmatprep.subr.bf16.mxu1 %v1986_v9  ;;  %v492_v7 = vld [vmem:[%s2308_s18 + $0x3f8] sm:$0xff]  ;;  %v1871_v8 = vcombine.low %v369_v59, %v377_v60  ;;  %v1873_v9 = vcombine.low %v370_v61, %v378_v62  ;;  %v371_v60 = vld [vmem:[%s2308_s18 + $0x30] sm:$0xff] }
  0x7b   : > { %v1990_v11 = vcombine.high %v484_v6, %v492_v7  ;;  %v379_v61 = vld [vmem:[%s2308_s18 + $0x70] sm:$0xff]  ;;  %v372_v62 = vld [vmem:[%s2308_s18 + $0x38] sm:$0xff] }
  0x7c   : > { %1248 = vmatmul.mubr.bf16.vlgmr.msra.gmra.mxu0 %v2365_v12  ;;  %1289 = vmatmul.mubr.bf16.vlgmr.msra.gmra.mxu1 %v2365_v12 }
  0x7d   : > { %1298 = vmatpush1.bf16.msra.mxu0 %v1983_v15  ;;  %1339 = vmatpush1.bf16.msra.mxu1 %v1985_v16  ;;  %v468_v15 = vld [vmem:[%s2308_s18 + $0x338] sm:$0xff] }
  0x7e   : > { %1299 = vmatprep.subr.bf16.mxu0 %v1968_v17  ;;  %1340 = vmatprep.subr.bf16.mxu1 %v1970_v18  ;;  %v476_v16 = vld [vmem:[%s2308_s18 + $0x378] sm:$0xff]  ;;  %v1987_v17 = vcombine.low %v483_v4, %v491_v5  ;;  %v1989_v18 = vcombine.low %v484_v6, %v492_v7  ;;  %v1875_v5 = vcombine.low %v371_v60, %v379_v61  ;;  %v1516_v7 = vlaneseq }
  0x7f   : > { %1329 = vmatprep.mubr.bf16.mxu0 %v2192_v0  ;;  %1370 = vmatprep.mubr.bf16.mxu1 %v2192_v0  ;;  %v1974_v20 = vcombine.high %v468_v15, %v476_v16 }
  0x81   : > { %1300 = vmatpush1.bf16.msra.mxu0 %v1967_v23  ;;  %1341 = vmatpush1.bf16.msra.mxu1 %v1969_v24  ;;  %v452_v23 = vld [vmem:[%s2308_s18 + $0x2b8] sm:$0xff] }
  0x82   : > { %1301 = vmatprep.subr.bf16.mxu0 %v1952_v25  ;;  %1342 = vmatprep.subr.bf16.mxu1 %v1954_v26  ;;  %v460_v24 = vld [vmem:[%s2308_s18 + $0x2f8] sm:$0xff]  ;;  %v1971_v25 = vcombine.low %v467_v13, %v475_v14  ;;  %v1973_v26 = vcombine.low %v468_v15, %v476_v16 }
  0x83   : > { %v1958_v28 = vcombine.high %v452_v23, %v460_v24 }
  0x85   : > { %1302 = vmatpush1.bf16.msra.mxu0 %v1951_v31  ;;  %1343 = vmatpush1.bf16.msra.mxu1 %v1953_v32  ;;  %v436_v31 = vld [vmem:[%s2308_s18 + $0x238] sm:$0xff] }
  0x86   : > { %1303 = vmatprep.subr.bf16.mxu0 %v1936_v33  ;;  %1344 = vmatprep.subr.bf16.mxu1 %v1938_v34  ;;  %v444_v32 = vld [vmem:[%s2308_s18 + $0x278] sm:$0xff]  ;;  %v1955_v33 = vcombine.low %v451_v21, %v459_v22  ;;  %v1957_v34 = vcombine.low %v452_v23, %v460_v24 }
  0x87   : > { %v1942_v36 = vcombine.high %v436_v31, %v444_v32 }
  0x89   : > { %1304 = vmatpush1.bf16.msra.mxu0 %v1935_v39  ;;  %1345 = vmatpush1.bf16.msra.mxu1 %v1937_v40  ;;  %v420_v39 = vld [vmem:[%s2308_s18 + $0x1b8] sm:$0xff] }
  0x8a   : > { %1305 = vmatprep.subr.bf16.mxu0 %v1920_v41  ;;  %1346 = vmatprep.subr.bf16.mxu1 %v1922_v42  ;;  %v428_v40 = vld [vmem:[%s2308_s18 + $0x1f8] sm:$0xff]  ;;  %v1939_v41 = vcombine.low %v435_v29, %v443_v30  ;;  %v1924_v42 = vcombine.high %v419_v37, %v427_v38 }
  0x8b   : > { %v1926_v43 = vcombine.high %v420_v39, %v428_v40 }
  0x8d   : > { %1306 = vmatpush1.bf16.msra.mxu0 %v1919_v47  ;;  %1347 = vmatpush1.bf16.msra.mxu1 %v1921_v48  ;;  %v412_v47 = vld [vmem:[%s2308_s18 + $0x178] sm:$0xff]  ;;  %v1923_v48 = vcombine.low %v419_v37, %v427_v38 }
  0x8e   : > { %1307 = vmatprep.subr.bf16.mxu0 %v1904_v49  ;;  %1348 = vmatprep.subr.bf16.mxu1 %v1906_v50  ;;  %v1925_v49 = vcombine.low %v420_v39, %v428_v40  ;;  %v1908_v50 = vcombine.high %v403_v44, %v411_v45  ;;  %v1910_v51 = vcombine.high %v404_v46, %v412_v47 }
  0x91   : > { %1308 = vmatpush1.bf16.msra.mxu0 %v1903_v55  ;;  %1349 = vmatpush1.bf16.msra.mxu1 %v1905_v56  ;;  %v396_v55 = vld [vmem:[%s2308_s18 + $0xf8] sm:$0xff]  ;;  %v1907_v56 = vcombine.low %v403_v44, %v411_v45 }
  0x92   : > { %1309 = vmatprep.subr.bf16.mxu0 %v1888_v57  ;;  %1350 = vmatprep.subr.bf16.mxu1 %v1890_v58  ;;  %v1909_v57 = vcombine.low %v404_v46, %v412_v47  ;;  %v1892_v58 = vcombine.high %v387_v52, %v395_v53  ;;  %v1894_v59 = vcombine.high %v388_v54, %v396_v55 }
  0x95   : > { %1310 = vmatpush1.bf16.msra.mxu0 %v1887_v63  ;;  %1351 = vmatpush1.bf16.msra.mxu1 %v1889_v1  ;;  %v380_v63 = vld [vmem:[%s2308_s18 + $0x78] sm:$0xff]  ;;  %v1891_v1 = vcombine.low %v387_v52, %v395_v53 }
  0x96   : > { %1311 = vmatprep.subr.bf16.mxu0 %v1872_v2  ;;  %1352 = vmatprep.subr.bf16.mxu1 %v1874_v3  ;;  %v1893_v2 = vcombine.low %v388_v54, %v396_v55  ;;  %v1876_v3 = vcombine.high %v371_v60, %v379_v61  ;;  %v1878_v4 = vcombine.high %v372_v62, %v380_v63  ;;  %v1513_v53 = vld [vmem:[%s2314_s6 + $0x8] sm:$0xff] }
  0x97   : > { %v1877_v6 = vcombine.low %v372_v62, %v380_v63 }
  0x99   : > { %1312 = vmatpush1.bf16.msra.mxu0 %v1871_v8  ;;  %1353 = vmatpush1.bf16.msra.mxu1 %v1873_v9  ;;  %v2469_v8 = vshrl.u32 %v1516_v7, 7 }
  0x9a   : > { %1379 = vmatprep.subr.bf16.mxu0 %v1988_v10  ;;  %1420 = vmatprep.subr.bf16.mxu1 %v1990_v11  ;;  %v1512_v10 = vld [vmem:[%s2314_s6] sm:$0xff] }
  0x9b   : > { %v1518_v9 = vsub.s32 0, %v2469_v8  ;;  %v1526_v11 = vsub.s32 2, %v2469_v8  ;;  %v1522_v13 = vsub.s32 1, %v2469_v8  ;;  %v1530_v14 = vsub.s32 3, %v2469_v8 }
  0x9c   : > { %1330 = vmatmul.mubr.bf16.vlgmr.msra.gmra.mxu0 %v2365_v12  ;;  %1371 = vmatmul.mubr.bf16.vlgmr.msra.gmra.mxu1 %v2365_v12 }
  0x9d   : > { %1380 = vmatpush1.bf16.msra.mxu0 %v1987_v17  ;;  %1421 = vmatpush1.bf16.msra.mxu1 %v1989_v18  ;;  %v1519_v15 = vrot.slane %v1512_v10, %v1518_v9  ;;  %v1527_v16 = vrot.slane %v1512_v10, %v1526_v11  ;;  %v1523_v17 = vrot.slane %v1512_v10, %v1522_v13 }
  0x9e   : > { %1381 = vmatprep.subr.bf16.mxu0 %v1972_v19  ;;  %1422 = vmatprep.subr.bf16.mxu1 %v1974_v20  ;;  %v1551_v54 = vrot.slane %v1513_v53, %v1518_v9  ;;  %v1559_v55 = vrot.slane %v1513_v53, %v1526_v11 }
  0x9f   : > { %1411 = vmatprep.mubr.bf16.mxu0 %v2192_v0  ;;  %1452 = vmatprep.mubr.bf16.mxu1 %v2192_v0  ;;  %v1941_v0 = vcombine.low %v436_v31, %v444_v32  ;;  %v1534_v32 = vsub.s32 4, %v2469_v8 }
  0xa1   : > { %1382 = vmatpush1.bf16.msra.mxu0 %v1971_v25  ;;  %1423 = vmatpush1.bf16.msra.mxu1 %v1973_v26  ;;  %v1567_v9 = vrot.slane %v1513_v53, %v1534_v32 }
  0xa2   : > { %1383 = vmatprep.subr.bf16.mxu0 %v1956_v27  ;;  %1424 = vmatprep.subr.bf16.mxu1 %v1958_v28 }
  0xa5   : > { %1384 = vmatpush1.bf16.msra.mxu0 %v1955_v33  ;;  %1425 = vmatpush1.bf16.msra.mxu1 %v1957_v34  ;;  %v1542_v33 = vsub.s32 6, %v2469_v8  ;;  %v1538_v34 = vsub.s32 5, %v2469_v8 }
  0xa6   : > { %1385 = vmatprep.subr.bf16.mxu0 %v1940_v35  ;;  %1426 = vmatprep.subr.bf16.mxu1 %v1942_v36  ;;  %v1546_v35 = vsub.s32 7, %v2469_v8  ;;  %v1535_v36 = vrot.slane %v1512_v10, %v1534_v32 }
  0xa7   : > { %v1543_v37 = vrot.slane %v1512_v10, %v1542_v33  ;;  %v1539_v38 = vrot.slane %v1512_v10, %v1538_v34 }
  0xa8   : > { %v1547_v40 = vrot.slane %v1512_v10, %v1546_v35 }
  0xa9   : > { %1386 = vmatpush1.bf16.msra.mxu0 %v1939_v41  ;;  %1427 = vmatpush1.bf16.msra.mxu1 %v1941_v0 }
  0xaa   : > { %1387 = vmatprep.subr.bf16.mxu0 %v1924_v42  ;;  %1428 = vmatprep.subr.bf16.mxu1 %v1926_v43 }
  0xad   : > { %1388 = vmatpush1.bf16.msra.mxu0 %v1923_v48  ;;  %1429 = vmatpush1.bf16.msra.mxu1 %v1925_v49 }
  0xae   : > { %1389 = vmatprep.subr.bf16.mxu0 %v1908_v50  ;;  %1430 = vmatprep.subr.bf16.mxu1 %v1910_v51 }
  0xb1   : > { %1390 = vmatpush1.bf16.msra.mxu0 %v1907_v56  ;;  %1431 = vmatpush1.bf16.msra.mxu1 %v1909_v57  ;;  %v1555_v56 = vrot.slane %v1513_v53, %v1522_v13  ;;  %v1575_v13 = vrot.slane %v1513_v53, %v1542_v33 }
  0xb2   : > { %1391 = vmatprep.subr.bf16.mxu0 %v1892_v58  ;;  %1432 = vmatprep.subr.bf16.mxu1 %v1894_v59  ;;  %v1563_v58 = vrot.slane %v1513_v53, %v1530_v14 }
  0xb5   : > { %1392 = vmatpush1.bf16.msra.mxu0 %v1891_v1  ;;  %1433 = vmatpush1.bf16.msra.mxu1 %v1893_v2 }
  0xb6   : > { %1393 = vmatprep.subr.bf16.mxu0 %v1876_v3  ;;  %1434 = vmatprep.subr.bf16.mxu1 %v1878_v4 }
  0xb9   : > { %1394 = vmatpush1.bf16.msra.mxu0 %v1875_v5  ;;  %1435 = vmatpush1.bf16.msra.mxu1 %v1877_v6 }
  0xbc   : > { %1412 = vmatmul.mubr.bf16.vlgmr.msra.gmra.mxu0 %v2365_v12  ;;  %1453 = vmatmul.mubr.bf16.vlgmr.msra.gmra.mxu1 %v2365_v12  ;;  %v1531_v12 = vrot.slane %v1512_v10, %v1530_v14  ;;  %v1571_v10 = vrot.slane %v1513_v53, %v1538_v34  ;;  %v1579_v14 = vrot.slane %v1513_v53, %v1546_v35 }
 0x11c   : > { %v1167_v18 = vpop.f32.mrf.mxu0  ;;  %v1208_v20 = vpop.f32.mrf.mxu1 }
 0x11d   : > { %v1596_v19 = vadd.f32 %v1519_v15, %v1167_v18  ;;  %v1598_v21 = vadd.f32 %v1527_v16, %v1208_v20 }
 0x11e   : > { %v1169_v22 = vpop.f32.mrf.mxu0  ;;  %v1210_v24 = vpop.f32.mrf.mxu1 }
 0x11f   : > { %v1597_v23 = vadd.f32 %v1523_v17, %v1169_v22  ;;  %v1599_v25 = vadd.f32 %v1531_v12, %v1210_v24 }
 0x120   : > { %v1171_v26 = vpop.f32.mrf.mxu0  ;;  %v1212_v28 = vpop.f32.mrf.mxu1 }
 0x121   : > { %v2003_v27 = vpack.c.bf16 %v1597_v23, %v1596_v19  ;;  %v2004_v29 = vpack.c.bf16 %v1599_v25, %v1598_v21 }
 0x122   : > { %v1172_v30 = vpop.f32.mrf.mxu0  ;;  %v1213_v31 = vpop.f32.mrf.mxu1 }
 0x123   : > { %1676 = vst [vmem:[%s2480_s29] sm:$0xff] %v2003_v27  ;;  %1677 = vst [vmem:[%s2480_s29 + $0x8] sm:$0xff] %v2004_v29 }
 0x13c   : > { %v1249_v39 = vpop.f32.mrf.mxu0  ;;  %v1290_v0 = vpop.f32.mrf.mxu1 }
 0x13d   : > { %v1600_v41 = vadd.f32 %v1535_v36, %v1249_v39  ;;  %v1602_v42 = vadd.f32 %v1543_v37, %v1290_v0 }
 0x13e   : > { %v1251_v43 = vpop.f32.mrf.mxu0  ;;  %v1292_v45 = vpop.f32.mrf.mxu1 }
 0x13f   : > { %v1601_v44 = vadd.f32 %v1539_v38, %v1251_v43  ;;  %v1603_v46 = vadd.f32 %v1547_v40, %v1292_v45 }
 0x140   : > { %v1253_v47 = vpop.f32.mrf.mxu0  ;;  %v1294_v49 = vpop.f32.mrf.mxu1 }
 0x141   : > { %v2005_v48 = vpack.c.bf16 %v1601_v44, %v1600_v41  ;;  %v2006_v50 = vpack.c.bf16 %v1603_v46, %v1602_v42 }
 0x142   : > { %v1254_v51 = vpop.f32.mrf.mxu0  ;;  %v1295_v52 = vpop.f32.mrf.mxu1 }
 0x143   : > { %1678 = vst [vmem:[%s2480_s29 + $0x10] sm:$0xff] %v2005_v48  ;;  %1679 = vst [vmem:[%s2480_s29 + $0x18] sm:$0xff] %v2006_v50 }
 0x15c   : > { %v1331_v57 = vpop.f32.mrf.mxu0  ;;  %v1372_v60 = vpop.f32.mrf.mxu1 }
 0x15d   : > { %v1604_v59 = vadd.f32 %v1551_v54, %v1331_v57  ;;  %v1606_v61 = vadd.f32 %v1559_v55, %v1372_v60 }
 0x15e   : > { %v1333_v62 = vpop.f32.mrf.mxu0  ;;  %v1374_v1 = vpop.f32.mrf.mxu1 }
 0x15f   : > { %v1605_v63 = vadd.f32 %v1555_v56, %v1333_v62  ;;  %v1607_v2 = vadd.f32 %v1563_v58, %v1374_v1 }
 0x160   : > { %v1335_v3 = vpop.f32.mrf.mxu0  ;;  %v1376_v5 = vpop.f32.mrf.mxu1 }
 0x161   : > { %v2007_v4 = vpack.c.bf16 %v1605_v63, %v1604_v59  ;;  %v2008_v6 = vpack.c.bf16 %v1607_v2, %v1606_v61 }
 0x162   : > { %v1336_v7 = vpop.f32.mrf.mxu0  ;;  %v1377_v8 = vpop.f32.mrf.mxu1 }
 0x163   : > { %1680 = vst [vmem:[%s2480_s29 + $0x20] sm:$0xff] %v2007_v4  ;;  %1681 = vst [vmem:[%s2480_s29 + $0x28] sm:$0xff] %v2008_v6 }
 0x17c   : > { %v1413_v11 = vpop.f32.mrf.mxu0  ;;  %v1454_v15 = vpop.f32.mrf.mxu1 }
 0x17d   : > { %v1608_v17 = vadd.f32 %v1567_v9, %v1413_v11  ;;  %v1610_v19 = vadd.f32 %v1575_v13, %v1454_v15 }
 0x17e   : > { %v1415_v16 = vpop.f32.mrf.mxu0  ;;  %v1456_v12 = vpop.f32.mrf.mxu1 }
 0x17f   : > { %v1609_v18 = vadd.f32 %v1571_v10, %v1415_v16  ;;  %v1611_v20 = vadd.f32 %v1579_v14, %v1456_v12 }
 0x180   : > { %v1417_v21 = vpop.f32.mrf.mxu0  ;;  %v1458_v23 = vpop.f32.mrf.mxu1 }
 0x181   : > { %v2009_v22 = vpack.c.bf16 %v1609_v18, %v1608_v17  ;;  %v2010_v24 = vpack.c.bf16 %v1611_v20, %v1610_v19 }
 0x182   : > { %v1418_v25 = vpop.f32.mrf.mxu0  ;;  %v1459_v26 = vpop.f32.mrf.mxu1 }
 0x183   : > { %1682 = vst [vmem:[%s2480_s29 + $0x30] sm:$0xff] %v2009_v22  ;;  %1683 = vst [vmem:[%s2480_s29 + $0x38] sm:$0xff] %v2010_v24 }
 0x184 PF: > { %s19_s17 = sadd.s32 1, %s2185_s17   ;;  %s2521_s12 = smov %s2169_s13 }
 0x185   : > { %p16_p9 = scmp.ge.s32.totalorder %s19_s17, 10   ;;  %s2522_s13 = smov %s2173_s14 }
 0x186   : > { %s2523_s14 = smov %s2262_s24  ;;  %s2524_s15 = smov %s2181_s16 }
 0x187   : > { %s2525_s16 = smov %s2527_s19  ;;  %18 = sbr.rel (!%p16_p9) target bundleno = 6 (0x6), region = 96 }
 0x18c   :  { %1722 = vsyncpa [#allocation4], 1 }
 0x18d   :  { %1724 = vsyncpa [#allocation4 + $0x1], 1 }
 0x18e   :  { %1725 = vsyncpa [#allocation6], 1 }
 0x18f   :  { %1727 = vsyncpa [#allocation6 + $0x1], 1 }

// kernel: generator_forward.14
= control target key start
LH: loop header
LB: loop body
LE: loop exit
PB: predicated region body
PF: predicated region fallthrough
CT: control target
= control target key end

     0   :  { %v512_v0 = vmov 0.0   ;;  %vm344_vm0 = vcmask 1040384   ;;  %s628_s1 = inlined_call_operand.vmem [shape: f32[2,128], index: 1, kind: output, shape index: {}]   ;;  %s629_s0 = inlined_call_operand.vmem [shape: bf16[512,128], index: 0, kind: input, shape index: {}]  }
   0x1   :  { %12 = vst [vmem:[%s628_s1] sm:$0x3] %v512_v0  ;;  %v353_v1 = vld [vmem:[%s629_s0] sm:$0xff]   ;;  %v480_v2 = vld [vmem:[%s629_s0 + $0x8] sm:$0xff]   ;;  %v481_v7 = vld [vmem:[%s629_s0 + $0x10] sm:$0xff]  }
   0x2   :  { %v354_v3 = vunpack.c.l.bf16 %v353_v1  ;;  %v355_v4 = vunpack.c.h.bf16 %v353_v1  ;;  %v358_v5 = vunpack.c.l.bf16 %v480_v2  ;;  %v359_v8 = vunpack.c.h.bf16 %v480_v2  ;;  %v482_v12 = vld [vmem:[%s629_s0 + $0x18] sm:$0xff]   ;;  %v483_v17 = vld [vmem:[%s629_s0 + $0x20] sm:$0xff]   ;;  %v484_v22 = vld [vmem:[%s629_s0 + $0x28] sm:$0xff]  }
   0x3   :  { %v362_v10 = vunpack.c.l.bf16 %v481_v7  ;;  %v363_v13 = vunpack.c.h.bf16 %v481_v7  ;;  %v366_v15 = vunpack.c.l.bf16 %v482_v12  ;;  %v367_v18 = vunpack.c.h.bf16 %v482_v12  ;;  %v485_v30 = vld [vmem:[%s629_s0 + $0x30] sm:$0xff]   ;;  %v486_v39 = vld [vmem:[%s629_s0 + $0x38] sm:$0xff]   ;;  %v487_v48 = vld [vmem:[%s629_s0 + $0x40] sm:$0xff]  }
   0x4   :  { %v142_v6 = vadd.f32 %v355_v4, %v354_v3  ;;  %v370_v20 = vunpack.c.l.bf16 %v483_v17  ;;  %v371_v23 = vunpack.c.h.bf16 %v483_v17  ;;  %v211_v25 = vmul.f32 %v354_v3, %v354_v3  ;;  %v488_v57 = vld [vmem:[%s629_s0 + $0x48] sm:$0xff]   ;;  %v489_v2 = vld [vmem:[%s629_s0 + $0x50] sm:$0xff]  }
   0x5   :  { %v212_v26 = vmul.f32 %v355_v4, %v355_v4  ;;  %v374_v27 = vunpack.c.l.bf16 %v484_v22  ;;  %v213_v29 = vmul.f32 %v358_v5, %v358_v5  ;;  %v375_v31 = vunpack.c.h.bf16 %v484_v22 }
   0x6   :  { %v143_v9 = vadd.f32 %v358_v5, %v142_v6  ;;  %v214_v33 = vmul.f32 %v359_v8, %v359_v8  ;;  %v378_v35 = vunpack.c.l.bf16 %v485_v30  ;;  %v215_v37 = vmul.f32 %v362_v10, %v362_v10 }
   0x7   :  { %v275_v34 = vadd.f32 %v212_v26, %v211_v25  ;;  %v379_v40 = vunpack.c.h.bf16 %v485_v30  ;;  %v216_v42 = vmul.f32 %v363_v13, %v363_v13  ;;  %v382_v44 = vunpack.c.l.bf16 %v486_v39 }
   0x8   :  { %v144_v11 = vadd.f32 %v359_v8, %v143_v9  ;;  %v217_v46 = vmul.f32 %v366_v15, %v366_v15  ;;  %v383_v49 = vunpack.c.h.bf16 %v486_v39  ;;  %v218_v51 = vmul.f32 %v367_v18, %v367_v18 }
   0x9   :  { %v276_v38 = vadd.f32 %v275_v34, %v213_v29  ;;  %v386_v53 = vunpack.c.l.bf16 %v487_v48  ;;  %v219_v55 = vmul.f32 %v370_v20, %v370_v20  ;;  %v387_v58 = vunpack.c.h.bf16 %v487_v48  ;;  %v492_v29 = vld [vmem:[%s629_s0 + $0x68] sm:$0xff]  }
   0xa   :  { %v145_v14 = vadd.f32 %v362_v10, %v144_v11  ;;  %v220_v60 = vmul.f32 %v371_v23, %v371_v23  ;;  %v390_v62 = vunpack.c.l.bf16 %v488_v57  ;;  %v221_v0 = vmul.f32 %v374_v27, %v374_v27  ;;  %v490_v11 = vld [vmem:[%s629_s0 + $0x58] sm:$0xff]  }
   0xb   :  { %v277_v43 = vadd.f32 %v276_v38, %v214_v33  ;;  %v391_v3 = vunpack.c.h.bf16 %v488_v57  ;;  %v222_v5 = vmul.f32 %v375_v31, %v375_v31  ;;  %v394_v7 = vunpack.c.l.bf16 %v489_v2  ;;  %v493_v38 = vld [vmem:[%s629_s0 + $0x70] sm:$0xff]  }
   0xc   :  { %v146_v16 = vadd.f32 %v363_v13, %v145_v14  ;;  %v223_v9 = vmul.f32 %v378_v35, %v378_v35  ;;  %v395_v12 = vunpack.c.h.bf16 %v489_v2  ;;  %v224_v14 = vmul.f32 %v379_v40, %v379_v40 }
   0xd   :  { %v278_v47 = vadd.f32 %v277_v43, %v215_v37  ;;  %v406_v34 = vunpack.c.l.bf16 %v492_v29  ;;  %v407_v39 = vunpack.c.h.bf16 %v492_v29  ;;  %v410_v43 = vunpack.c.l.bf16 %v493_v38 }
   0xe   :  { %v147_v19 = vadd.f32 %v366_v15, %v146_v16  ;;  %v398_v16 = vunpack.c.l.bf16 %v490_v11  ;;  %v411_v48 = vunpack.c.h.bf16 %v493_v38 }
   0xf   :  { %v279_v52 = vadd.f32 %v278_v47, %v216_v42  ;;  %v494_v47 = vld [vmem:[%s629_s0 + $0x78] sm:$0xff]  }
  0x10   :  { %v148_v21 = vadd.f32 %v367_v18, %v147_v19  ;;  %v225_v18 = vmul.f32 %v382_v44, %v382_v44  ;;  %v415_v57 = vunpack.c.h.bf16 %v494_v47 }
  0x11   :  { %v280_v56 = vadd.f32 %v279_v52, %v217_v46  ;;  %v414_v52 = vunpack.c.l.bf16 %v494_v47 }
  0x12   :  { %v149_v24 = vadd.f32 %v370_v20, %v148_v21  ;;  %v491_v20 = vld [vmem:[%s629_s0 + $0x60] sm:$0xff]   ;;  %v399_v21 = vunpack.c.h.bf16 %v490_v11 }
  0x13   :  { %v281_v61 = vadd.f32 %v280_v56, %v218_v51  ;;  %v402_v25 = vunpack.c.l.bf16 %v491_v20  ;;  %v403_v30 = vunpack.c.h.bf16 %v491_v20  ;;  %v495_v56 = vld [vmem:[%s629_s0 + $0x80] sm:$0xff]  }
  0x14   :  { %v150_v28 = vadd.f32 %v371_v23, %v149_v24  ;;  %v226_v23 = vmul.f32 %v383_v49, %v383_v49  ;;  %v419_v2 = vunpack.c.h.bf16 %v495_v56 }
  0x15   :  { %v282_v1 = vadd.f32 %v281_v61, %v219_v55  ;;  %v418_v61 = vunpack.c.l.bf16 %v495_v56 }
  0x16   :  { %v151_v32 = vadd.f32 %v374_v27, %v150_v28  ;;  %v227_v27 = vmul.f32 %v386_v53, %v386_v53 }
  0x17   :  { %v283_v6 = vadd.f32 %v282_v1, %v220_v60  ;;  %v496_v1 = vld [vmem:[%s629_s0 + $0x88] sm:$0xff]  }
  0x18   :  { %v152_v36 = vadd.f32 %v375_v31, %v151_v32  ;;  %v228_v32 = vmul.f32 %v387_v58, %v387_v58  ;;  %v423_v11 = vunpack.c.h.bf16 %v496_v1 }
  0x19   :  { %v284_v10 = vadd.f32 %v283_v6, %v221_v0  ;;  %v422_v6 = vunpack.c.l.bf16 %v496_v1 }
  0x1a   :  { %v153_v41 = vadd.f32 %v378_v35, %v152_v36  ;;  %v229_v36 = vmul.f32 %v390_v62, %v390_v62 }
  0x1b   :  { %v285_v15 = vadd.f32 %v284_v10, %v222_v5  ;;  %v497_v10 = vld [vmem:[%s629_s0 + $0x90] sm:$0xff]  }
  0x1c   :  { %v154_v45 = vadd.f32 %v379_v40, %v153_v41  ;;  %v230_v41 = vmul.f32 %v391_v3, %v391_v3  ;;  %v427_v20 = vunpack.c.h.bf16 %v497_v10 }
  0x1d   :  { %v286_v19 = vadd.f32 %v285_v15, %v223_v9  ;;  %v426_v15 = vunpack.c.l.bf16 %v497_v10 }
  0x1e   :  { %v155_v50 = vadd.f32 %v382_v44, %v154_v45  ;;  %v231_v45 = vmul.f32 %v394_v7, %v394_v7 }
  0x1f   :  { %v287_v24 = vadd.f32 %v286_v19, %v224_v14  ;;  %v498_v19 = vld [vmem:[%s629_s0 + $0x98] sm:$0xff]  }
  0x20   :  { %v156_v54 = vadd.f32 %v383_v49, %v155_v50  ;;  %v232_v50 = vmul.f32 %v395_v12, %v395_v12  ;;  %v431_v29 = vunpack.c.h.bf16 %v498_v19 }
  0x21   :  { %v288_v28 = vadd.f32 %v287_v24, %v225_v18  ;;  %v430_v24 = vunpack.c.l.bf16 %v498_v19 }
  0x22   :  { %v157_v59 = vadd.f32 %v386_v53, %v156_v54  ;;  %v233_v54 = vmul.f32 %v398_v16, %v398_v16 }
  0x23   :  { %v289_v33 = vadd.f32 %v288_v28, %v226_v23  ;;  %v499_v28 = vld [vmem:[%s629_s0 + $0xa0] sm:$0xff]  }
  0x24   :  { %v158_v63 = vadd.f32 %v387_v58, %v157_v59  ;;  %v234_v59 = vmul.f32 %v399_v21, %v399_v21  ;;  %v435_v38 = vunpack.c.h.bf16 %v499_v28 }
  0x25   :  { %v290_v37 = vadd.f32 %v289_v33, %v227_v27  ;;  %v434_v33 = vunpack.c.l.bf16 %v499_v28 }
  0x26   :  { %v159_v4 = vadd.f32 %v390_v62, %v158_v63  ;;  %v235_v63 = vmul.f32 %v402_v25, %v402_v25 }
  0x27   :  { %v291_v42 = vadd.f32 %v290_v37, %v228_v32  ;;  %v500_v37 = vld [vmem:[%s629_s0 + $0xa8] sm:$0xff]  }
  0x28   :  { %v160_v8 = vadd.f32 %v391_v3, %v159_v4  ;;  %v236_v4 = vmul.f32 %v403_v30, %v403_v30  ;;  %v439_v47 = vunpack.c.h.bf16 %v500_v37 }
  0x29   :  { %v292_v46 = vadd.f32 %v291_v42, %v229_v36  ;;  %v438_v42 = vunpack.c.l.bf16 %v500_v37 }
  0x2a   :  { %v161_v13 = vadd.f32 %v394_v7, %v160_v8  ;;  %v237_v8 = vmul.f32 %v406_v34, %v406_v34 }
  0x2b   :  { %v293_v51 = vadd.f32 %v292_v46, %v230_v41  ;;  %v501_v46 = vld [vmem:[%s629_s0 + $0xb0] sm:$0xff]  }
  0x2c   :  { %v162_v17 = vadd.f32 %v395_v12, %v161_v13  ;;  %v238_v13 = vmul.f32 %v407_v39, %v407_v39  ;;  %v443_v56 = vunpack.c.h.bf16 %v501_v46 }
  0x2d   :  { %v294_v55 = vadd.f32 %v293_v51, %v231_v45  ;;  %v442_v51 = vunpack.c.l.bf16 %v501_v46 }
  0x2e   :  { %v163_v22 = vadd.f32 %v398_v16, %v162_v17  ;;  %v239_v17 = vmul.f32 %v410_v43, %v410_v43 }
  0x2f   :  { %v295_v60 = vadd.f32 %v294_v55, %v232_v50  ;;  %v502_v55 = vld [vmem:[%s629_s0 + $0xb8] sm:$0xff]  }
  0x30   :  { %v164_v26 = vadd.f32 %v399_v21, %v163_v22  ;;  %v240_v22 = vmul.f32 %v411_v48, %v411_v48  ;;  %v447_v1 = vunpack.c.h.bf16 %v502_v55 }
  0x31   :  { %v296_v0 = vadd.f32 %v295_v60, %v233_v54  ;;  %v446_v60 = vunpack.c.l.bf16 %v502_v55 }
  0x32   :  { %v165_v31 = vadd.f32 %v402_v25, %v164_v26  ;;  %v241_v26 = vmul.f32 %v414_v52, %v414_v52 }
  0x33   :  { %v297_v5 = vadd.f32 %v296_v0, %v234_v59  ;;  %v503_v0 = vld [vmem:[%s629_s0 + $0xc0] sm:$0xff]  }
  0x34   :  { %v166_v35 = vadd.f32 %v403_v30, %v165_v31  ;;  %v242_v31 = vmul.f32 %v415_v57, %v415_v57  ;;  %v451_v10 = vunpack.c.h.bf16 %v503_v0 }
  0x35   :  { %v298_v9 = vadd.f32 %v297_v5, %v235_v63  ;;  %v450_v5 = vunpack.c.l.bf16 %v503_v0 }
  0x36   :  { %v167_v40 = vadd.f32 %v406_v34, %v166_v35  ;;  %v243_v35 = vmul.f32 %v418_v61, %v418_v61 }
  0x37   :  { %v299_v14 = vadd.f32 %v298_v9, %v236_v4  ;;  %v504_v9 = vld [vmem:[%s629_s0 + $0xc8] sm:$0xff]  }
  0x38   :  { %v168_v44 = vadd.f32 %v407_v39, %v167_v40  ;;  %v244_v40 = vmul.f32 %v419_v2, %v419_v2  ;;  %v455_v19 = vunpack.c.h.bf16 %v504_v9 }
  0x39   :  { %v300_v18 = vadd.f32 %v299_v14, %v237_v8  ;;  %v454_v14 = vunpack.c.l.bf16 %v504_v9 }
  0x3a   :  { %v169_v49 = vadd.f32 %v410_v43, %v168_v44  ;;  %v245_v44 = vmul.f32 %v422_v6, %v422_v6 }
  0x3b   :  { %v301_v23 = vadd.f32 %v300_v18, %v238_v13  ;;  %v505_v18 = vld [vmem:[%s629_s0 + $0xd0] sm:$0xff]  }
  0x3c   :  { %v170_v53 = vadd.f32 %v411_v48, %v169_v49  ;;  %v246_v49 = vmul.f32 %v423_v11, %v423_v11  ;;  %v459_v28 = vunpack.c.h.bf16 %v505_v18 }
  0x3d   :  { %v302_v27 = vadd.f32 %v301_v23, %v239_v17  ;;  %v458_v23 = vunpack.c.l.bf16 %v505_v18 }
  0x3e   :  { %v171_v58 = vadd.f32 %v414_v52, %v170_v53  ;;  %v247_v53 = vmul.f32 %v426_v15, %v426_v15 }
  0x3f   :  { %v303_v32 = vadd.f32 %v302_v27, %v240_v22  ;;  %v506_v27 = vld [vmem:[%s629_s0 + $0xd8] sm:$0xff]  }
  0x40   :  { %v172_v62 = vadd.f32 %v415_v57, %v171_v58  ;;  %v248_v58 = vmul.f32 %v427_v20, %v427_v20  ;;  %v463_v37 = vunpack.c.h.bf16 %v506_v27 }
  0x41   :  { %v304_v36 = vadd.f32 %v303_v32, %v241_v26  ;;  %v462_v32 = vunpack.c.l.bf16 %v506_v27 }
  0x42   :  { %v173_v3 = vadd.f32 %v418_v61, %v172_v62  ;;  %v249_v62 = vmul.f32 %v430_v24, %v430_v24 }
  0x43   :  { %v305_v41 = vadd.f32 %v304_v36, %v242_v31  ;;  %v507_v36 = vld [vmem:[%s629_s0 + $0xe0] sm:$0xff]  }
  0x44   :  { %v174_v7 = vadd.f32 %v419_v2, %v173_v3  ;;  %v250_v3 = vmul.f32 %v431_v29, %v431_v29  ;;  %v467_v46 = vunpack.c.h.bf16 %v507_v36 }
  0x45   :  { %v306_v45 = vadd.f32 %v305_v41, %v243_v35  ;;  %v466_v41 = vunpack.c.l.bf16 %v507_v36 }
  0x46   :  { %v175_v12 = vadd.f32 %v422_v6, %v174_v7  ;;  %v251_v7 = vmul.f32 %v434_v33, %v434_v33 }
  0x47   :  { %v307_v50 = vadd.f32 %v306_v45, %v244_v40  ;;  %v508_v45 = vld [vmem:[%s629_s0 + $0xe8] sm:$0xff]  }
  0x48   :  { %v176_v16 = vadd.f32 %v423_v11, %v175_v12  ;;  %v252_v12 = vmul.f32 %v435_v38, %v435_v38  ;;  %v471_v55 = vunpack.c.h.bf16 %v508_v45 }
  0x49   :  { %v308_v54 = vadd.f32 %v307_v50, %v245_v44  ;;  %v470_v50 = vunpack.c.l.bf16 %v508_v45 }
  0x4a   :  { %v177_v21 = vadd.f32 %v426_v15, %v176_v16  ;;  %v253_v16 = vmul.f32 %v438_v42, %v438_v42 }
  0x4b   :  { %v309_v59 = vadd.f32 %v308_v54, %v246_v49  ;;  %v509_v54 = vld [vmem:[%s629_s0 + $0xf0] sm:$0xff]  }
  0x4c   :  { %v178_v25 = vadd.f32 %v427_v20, %v177_v21  ;;  %v254_v21 = vmul.f32 %v439_v47, %v439_v47 }
  0x4d   :  { %v310_v63 = vadd.f32 %v309_v59, %v247_v53  ;;  %v474_v59 = vunpack.c.l.bf16 %v509_v54 }
  0x4e   :  { %v179_v30 = vadd.f32 %v430_v24, %v178_v25  ;;  %v255_v25 = vmul.f32 %v442_v51, %v442_v51 }
  0x4f   :  { %v311_v4 = vadd.f32 %v310_v63, %v248_v58  ;;  %v475_v63 = vunpack.c.h.bf16 %v509_v54 }
  0x50   :  { %v180_v34 = vadd.f32 %v431_v29, %v179_v30  ;;  %v256_v30 = vmul.f32 %v443_v56, %v443_v56 }
  0x51   :  { %v312_v8 = vadd.f32 %v311_v4, %v249_v62 }
  0x52   :  { %v181_v39 = vadd.f32 %v434_v33, %v180_v34  ;;  %v257_v34 = vmul.f32 %v446_v60, %v446_v60 }
  0x53   :  { %v313_v13 = vadd.f32 %v312_v8, %v250_v3  ;;  %v510_v3 = vld [vmem:[%s629_s0 + $0xf8] sm:$0xff]   ;;  %v266_v8 = vmul.f32 %v463_v37, %v463_v37 }
  0x54   :  { %v182_v43 = vadd.f32 %v435_v38, %v181_v39  ;;  %v258_v39 = vmul.f32 %v447_v1, %v447_v1 }
  0x55   :  { %v314_v17 = vadd.f32 %v313_v13, %v251_v7  ;;  %v478_v7 = vunpack.c.l.bf16 %v510_v3  ;;  %v479_v13 = vunpack.c.h.bf16 %v510_v3 }
  0x56   :  { %v183_v48 = vadd.f32 %v438_v42, %v182_v43  ;;  %v259_v43 = vmul.f32 %v450_v5, %v450_v5 }
  0x57   :  { %v315_v22 = vadd.f32 %v314_v17, %v252_v12  ;;  %v269_v17 = vmul.f32 %v470_v50, %v470_v50  ;;  %v273_v27 = vmul.f32 %v478_v7, %v478_v7 }
  0x58   :  { %v184_v52 = vadd.f32 %v439_v47, %v183_v48  ;;  %v260_v48 = vmul.f32 %v451_v10, %v451_v10 }
  0x59   :  { %v316_v26 = vadd.f32 %v315_v22, %v253_v16  ;;  %v271_v22 = vmul.f32 %v474_v59, %v474_v59 }
  0x5a   :  { %v185_v57 = vadd.f32 %v442_v51, %v184_v52  ;;  %v261_v52 = vmul.f32 %v454_v14, %v454_v14 }
  0x5b   :  { %v317_v31 = vadd.f32 %v316_v26, %v254_v21 }
  0x5c   :  { %v186_v61 = vadd.f32 %v443_v56, %v185_v57  ;;  %v262_v57 = vmul.f32 %v455_v19, %v455_v19 }
  0x5d   :  { %v318_v35 = vadd.f32 %v317_v31, %v255_v25 }
  0x5e   :  { %v187_v2 = vadd.f32 %v446_v60, %v186_v61  ;;  %v263_v61 = vmul.f32 %v458_v23, %v458_v23 }
  0x5f   :  { %v319_v40 = vadd.f32 %v318_v35, %v256_v30 }
  0x60   :  { %v188_v6 = vadd.f32 %v447_v1, %v187_v2  ;;  %v264_v1 = vmul.f32 %v459_v28, %v459_v28 }
  0x61   :  { %v320_v44 = vadd.f32 %v319_v40, %v257_v34 }
  0x62   :  { %v189_v11 = vadd.f32 %v450_v5, %v188_v6  ;;  %v265_v5 = vmul.f32 %v462_v32, %v462_v32 }
  0x63   :  { %v321_v49 = vadd.f32 %v320_v44, %v258_v39 }
  0x64   :  { %v190_v15 = vadd.f32 %v451_v10, %v189_v11  ;;  %v267_v11 = vmul.f32 %v466_v41, %v466_v41 }
  0x65   :  { %v322_v53 = vadd.f32 %v321_v49, %v259_v43 }
  0x66   :  { %v191_v20 = vadd.f32 %v454_v14, %v190_v15  ;;  %v268_v14 = vmul.f32 %v467_v46, %v467_v46 }
  0x67   :  { %v323_v58 = vadd.f32 %v322_v53, %v260_v48 }
  0x68   :  { %v192_v24 = vadd.f32 %v455_v19, %v191_v20  ;;  %v270_v19 = vmul.f32 %v471_v55, %v471_v55 }
  0x69   :  { %v324_v62 = vadd.f32 %v323_v58, %v261_v52 }
  0x6a   :  { %v193_v29 = vadd.f32 %v458_v23, %v192_v24  ;;  %v272_v24 = vmul.f32 %v475_v63, %v475_v63 }
  0x6b   :  { %v325_v2 = vadd.f32 %v324_v62, %v262_v57 }
  0x6c   :  { %v194_v33 = vadd.f32 %v459_v28, %v193_v29  ;;  %v274_v29 = vmul.f32 %v479_v13, %v479_v13 }
  0x6d   :  { %v326_v6 = vadd.f32 %v325_v2, %v263_v61 }
  0x6e   :  { %v195_v38 = vadd.f32 %v462_v32, %v194_v33 }
  0x6f   :  { %v327_v9 = vadd.f32 %v326_v6, %v264_v1 }
  0x70   :  { %v196_v42 = vadd.f32 %v463_v37, %v195_v38 }
  0x71   :  { %v328_v12 = vadd.f32 %v327_v9, %v265_v5 }
  0x72   :  { %v197_v47 = vadd.f32 %v466_v41, %v196_v42  ;;  %v141_v42 = vld [vmem:[%s628_s1] sm:$0x3] }
  0x73   :  { %v329_v15 = vadd.f32 %v328_v12, %v266_v8 }
  0x74   :  { %v198_v51 = vadd.f32 %v467_v46, %v197_v47 }
  0x75   :  { %v330_v18 = vadd.f32 %v329_v15, %v267_v11 }
  0x76   :  { %v199_v56 = vadd.f32 %v470_v50, %v198_v51 }
  0x77   :  { %v331_v20 = vadd.f32 %v330_v18, %v268_v14 }
  0x78   :  { %v200_v60 = vadd.f32 %v471_v55, %v199_v56 }
  0x79   :  { %v332_v23 = vadd.f32 %v331_v20, %v269_v17 }
  0x7a   :  { %v201_v0 = vadd.f32 %v474_v59, %v200_v60 }
  0x7b   :  { %v333_v25 = vadd.f32 %v332_v23, %v270_v19 }
  0x7c   :  { %v202_v4 = vadd.f32 %v475_v63, %v201_v0 }
  0x7d   :  { %v334_v28 = vadd.f32 %v333_v25, %v271_v22 }
  0x7e   :  { %v203_v10 = vadd.f32 %v478_v7, %v202_v4 }
  0x7f   :  { %v335_v30 = vadd.f32 %v334_v28, %v272_v24 }
  0x80   :  { %v204_v16 = vadd.f32 %v479_v13, %v203_v10 }
  0x81   :  { %v336_v32 = vadd.f32 %v335_v30, %v273_v27 }
  0x82   :  { %v205_v21 = vrot.slane %v204_v16, 4 }
  0x83   :  { %v337_v33 = vadd.f32 %v336_v32, %v274_v29 }
  0x84   :  { %v206_v26 = vadd.f32 %v205_v21, %v204_v16 }
  0x85   :  { %v338_v35 = vrot.slane %v337_v33, 4 }
  0x86   :  { %v207_v31 = vrot.slane %v206_v26, 2 }
  0x87   :  { %v339_v36 = vadd.f32 %v338_v35, %v337_v33 }
  0x88   :  { %v208_v34 = vadd.f32 %v207_v31, %v206_v26 }
  0x89   :  { %v340_v38 = vrot.slane %v339_v36, 2 }
  0x8a   :  { %v209_v37 = vrot.slane %v208_v34, 1 }
  0x8b   :  { %v341_v39 = vadd.f32 %v340_v38, %v339_v36 }
  0x8c   :  { %v210_v40 = vadd.f32 %v209_v37, %v208_v34 }
  0x8d   :  { %v342_v41 = vrot.slane %v341_v39, 1 }
  0x8f   :  { %v343_v43 = vadd.f32 %v342_v41, %v341_v39 }
  0x91   :  { %v345_v44 = vsel %vm344_vm0, %v210_v40, %v343_v43 }
  0x92   :  { %v346_v45 = vadd.f32 %v345_v44, %v141_v42 }
  0x94   :  { %347 = vst [vmem:[%s628_s1] sm:$0x3] %v346_v45 }

// kernel: generator_forward.13
= control target key start
LH: loop header
LB: loop body
LE: loop exit
PB: predicated region body
PF: predicated region fallthrough
CT: control target
= control target key end

     0   :  { %s1772_s9 = smov 0   ;;  %s1774_s10 = smov 0   ;;  %s2013_s0 = inlined_call_operand.vmem [shape: bf16[4,128,1024], index: 0, kind: input, shape index: {}]   ;;  %s2014_s1 = inlined_call_operand.vmem [shape: bf16[4,1024,128], index: 1, kind: input, shape index: {}]   ;;  %s2015_s2 = inlined_call_operand.vmem [shape: bf16[4,128,128], index: 2, kind: output, shape index: {}]  }
   0x1   :  { %s1776_s11 = smov 0   ;;  %s1778_s12 = smov 0  }
   0x2   :  { %s1780_s13 = smov 0   ;;  %s1782_s14 = smov 0  }
   0x3   :  { %s1784_s15 = smov 0  }
   0x4 LB: > { %s27_s16 = sadd.s32 1, %s1746_s13  ;;  %s38_s17 = sadd.s32 1, %s1750_s14  ;;  %s1754_s15 = sphi %s1784_s15, %s12_s15   ;;  %s1750_s14 = sphi %s1782_s14, %s2021_s14   ;;  %s1746_s13 = sphi %s1780_s13, %s2020_s13   ;;  %s1742_s12 = sphi %s1778_s12, %s2019_s12   ;;  %s1738_s11 = sphi %s1776_s11, %s2018_s11   ;;  %s1734_s10 = sphi %s1774_s10, %s2017_s10   ;;  %s1730_s9 = sphi %s1772_s9, %s2016_s9  }
   0x5   : > { %p28_p0 = scmp.ge.s32.totalorder %s27_s16, 2  ;;  %p56_p1 = scmp.ne.s32.totalorder %s1734_s10, %s1730_s9 }
   0x6   : > { %p57_p2 = scmp.eq.s32.totalorder %s1754_s15, 0  ;;  %s49_s21 = sadd.s32 1, %s1734_s10 }
   0x7   : > { %s2023_s16 = smov (%p28_p0, %s27_s16), 0  ;;  %s2025_s17 = smov (!%p28_p0, %s38_s17), %s1750_s14 }
   0x8   : > { %p58_p3 = por %p57_p2, %p56_p1  ;;  %p40_p4 = scmp.ge.s32.totalorder %s2025_s17, 4 }
   0x9   : > { %s45_s18 = ssub.s32 %s1746_s13, %s2023_s16  ;;  %p1275_p6 = scmp.ge.s32.totalorder %s1754_s15, 8 }
   0xa   : > { %s2027_s17 = smov (%p40_p4, %s2025_s17), 0 }
   0xb   : > { %s42_s19 = ssub.s32 %s1750_s14, %s2027_s17  ;;  %142 = sbr.rel (%p1275_p6) target bundleno = 39 (0x27), region = 16 }
   0xc   : > { %s46_s20 = sor.u32 %s45_s18, %s42_s19 }
   0xd   : > { %p47_p5 = scmp.eq.s32.totalorder %s46_s20, 0 }
   0xf   : > { %s1823_s22 = scalar_select %p47_p5, %s1734_s10, %s49_s21  }
  0x10   : > { %145 = sbr.rel (!%p58_p3) target bundleno = 39 (0x27), region = 20  ;;  %s147_s23 = sand.u32 (%p58_p3), 1, %s1734_s10  }
  0x11   : > { %s1277_s24 = sshll.u32 (%p58_p3), %s1746_s13, 2  ;;  %s1276_s25 = sshll.u32 (%p58_p3), %s147_s23, 8 }
  0x12   : > { %s1278_s26 = sshll.u32 (%p58_p3), %s1750_s14, 7  ;;  %s1837_s4 = scalar_lea.vmem (%p58_p3), [#allocation3], %s1276_s25 }
  0x13   : > { %s155_s27 = sadd.s32 (%p58_p3), %s1278_s26, %s1277_s24 }
  0x14   : > { %s1279_s28 = sshll.u32 (%p58_p3), %s155_s27, 2 }
  0x15   : > { %s1832_s3 = scalar_lea.vmem %s2013_s0, %s1279_s28 }
  0x16   : > { %v170_v0 = vld [vmem:[%s1832_s3] sm:$0xff]  ;;  %v172_v1 = vld [vmem:[%s1832_s3 + $0x8] sm:$0xff] }
  0x17   : > { %v174_v2 = vld [vmem:[%s1832_s3 + $0x20] sm:$0xff]  ;;  %171 = vst [vmem:[%s1837_s4] sm:$0xff] %v170_v0  ;;  %173 = vst [vmem:[%s1837_s4 + $0x8] sm:$0xff] %v172_v1  ;;  %v176_v3 = vld [vmem:[%s1832_s3 + $0x28] sm:$0xff] }
  0x18   : > { %175 = vst [vmem:[%s1837_s4 + $0x10] sm:$0xff] %v174_v2  ;;  %v178_v4 = vld [vmem:[%s1832_s3 + $0x40] sm:$0xff]  ;;  %v180_v5 = vld [vmem:[%s1832_s3 + $0x48] sm:$0xff]  ;;  %177 = vst [vmem:[%s1837_s4 + $0x18] sm:$0xff] %v176_v3 }
  0x19   : > { %179 = vst [vmem:[%s1837_s4 + $0x20] sm:$0xff] %v178_v4  ;;  %181 = vst [vmem:[%s1837_s4 + $0x28] sm:$0xff] %v180_v5  ;;  %v182_v6 = vld [vmem:[%s1832_s3 + $0x60] sm:$0xff]  ;;  %v184_v7 = vld [vmem:[%s1832_s3 + $0x68] sm:$0xff] }
  0x1a   : > { %v186_v8 = vld [vmem:[%s1832_s3 + $0x80] sm:$0xff]  ;;  %183 = vst [vmem:[%s1837_s4 + $0x30] sm:$0xff] %v182_v6  ;;  %185 = vst [vmem:[%s1837_s4 + $0x38] sm:$0xff] %v184_v7  ;;  %v188_v9 = vld [vmem:[%s1832_s3 + $0x88] sm:$0xff] }
  0x1b   : > { %187 = vst [vmem:[%s1837_s4 + $0x40] sm:$0xff] %v186_v8  ;;  %v190_v10 = vld [vmem:[%s1832_s3 + $0xa0] sm:$0xff]  ;;  %v192_v11 = vld [vmem:[%s1832_s3 + $0xa8] sm:$0xff]  ;;  %189 = vst [vmem:[%s1837_s4 + $0x48] sm:$0xff] %v188_v9 }
  0x1c   : > { %191 = vst [vmem:[%s1837_s4 + $0x50] sm:$0xff] %v190_v10  ;;  %193 = vst [vmem:[%s1837_s4 + $0x58] sm:$0xff] %v192_v11  ;;  %v194_v12 = vld [vmem:[%s1832_s3 + $0xc0] sm:$0xff]  ;;  %v196_v13 = vld [vmem:[%s1832_s3 + $0xc8] sm:$0xff] }
  0x1d   : > { %v198_v14 = vld [vmem:[%s1832_s3 + $0xe0] sm:$0xff]  ;;  %195 = vst [vmem:[%s1837_s4 + $0x60] sm:$0xff] %v194_v12  ;;  %197 = vst [vmem:[%s1837_s4 + $0x68] sm:$0xff] %v196_v13  ;;  %v200_v15 = vld [vmem:[%s1832_s3 + $0xe8] sm:$0xff] }
  0x1e   : > { %199 = vst [vmem:[%s1837_s4 + $0x70] sm:$0xff] %v198_v14  ;;  %v202_v16 = vld [vmem:[%s1832_s3 + $0x100] sm:$0xff]  ;;  %v204_v17 = vld [vmem:[%s1832_s3 + $0x108] sm:$0xff]  ;;  %201 = vst [vmem:[%s1837_s4 + $0x78] sm:$0xff] %v200_v15 }
  0x1f   : > { %203 = vst [vmem:[%s1837_s4 + $0x80] sm:$0xff] %v202_v16  ;;  %205 = vst [vmem:[%s1837_s4 + $0x88] sm:$0xff] %v204_v17  ;;  %v206_v18 = vld [vmem:[%s1832_s3 + $0x120] sm:$0xff]  ;;  %v208_v19 = vld [vmem:[%s1832_s3 + $0x128] sm:$0xff] }
  0x20   : > { %v210_v20 = vld [vmem:[%s1832_s3 + $0x140] sm:$0xff]  ;;  %207 = vst [vmem:[%s1837_s4 + $0x90] sm:$0xff] %v206_v18  ;;  %209 = vst [vmem:[%s1837_s4 + $0x98] sm:$0xff] %v208_v19  ;;  %v212_v21 = vld [vmem:[%s1832_s3 + $0x148] sm:$0xff] }
  0x21   : > { %211 = vst [vmem:[%s1837_s4 + $0xa0] sm:$0xff] %v210_v20  ;;  %v214_v22 = vld [vmem:[%s1832_s3 + $0x160] sm:$0xff]  ;;  %v216_v23 = vld [vmem:[%s1832_s3 + $0x168] sm:$0xff]  ;;  %213 = vst [vmem:[%s1837_s4 + $0xa8] sm:$0xff] %v212_v21 }
  0x22   : > { %215 = vst [vmem:[%s1837_s4 + $0xb0] sm:$0xff] %v214_v22  ;;  %217 = vst [vmem:[%s1837_s4 + $0xb8] sm:$0xff] %v216_v23  ;;  %v218_v24 = vld [vmem:[%s1832_s3 + $0x180] sm:$0xff]  ;;  %v220_v25 = vld [vmem:[%s1832_s3 + $0x188] sm:$0xff] }
  0x23   : > { %v222_v26 = vld [vmem:[%s1832_s3 + $0x1a0] sm:$0xff]  ;;  %219 = vst [vmem:[%s1837_s4 + $0xc0] sm:$0xff] %v218_v24  ;;  %221 = vst [vmem:[%s1837_s4 + $0xc8] sm:$0xff] %v220_v25  ;;  %v224_v27 = vld [vmem:[%s1832_s3 + $0x1a8] sm:$0xff] }
  0x24   : > { %223 = vst [vmem:[%s1837_s4 + $0xd0] sm:$0xff] %v222_v26  ;;  %v226_v28 = vld [vmem:[%s1832_s3 + $0x1c0] sm:$0xff]  ;;  %v228_v29 = vld [vmem:[%s1832_s3 + $0x1c8] sm:$0xff]  ;;  %225 = vst [vmem:[%s1837_s4 + $0xd8] sm:$0xff] %v224_v27 }
  0x25   : > { %227 = vst [vmem:[%s1837_s4 + $0xe0] sm:$0xff] %v226_v28  ;;  %229 = vst [vmem:[%s1837_s4 + $0xe8] sm:$0xff] %v228_v29  ;;  %v230_v30 = vld [vmem:[%s1832_s3 + $0x1e0] sm:$0xff]  ;;  %v232_v31 = vld [vmem:[%s1832_s3 + $0x1e8] sm:$0xff] }
  0x26   : > { %231 = vst [vmem:[%s1837_s4 + $0xf0] sm:$0xff] %v230_v30  ;;  %233 = vst [vmem:[%s1837_s4 + $0xf8] sm:$0xff] %v232_v31 }
  0x27 PF: > { %p1280_p7 = scmp.ge.s32.totalorder %s1754_s15, 1  ;;  %p254_p8 = scmp.lt.s32.totalorder %s1754_s15, 9 }
  0x29   : > { %p255_p9 = pnand %p1280_p7, %p254_p8 }
  0x2a   : > { %s261_s5 = sand.u32 (!%p255_p9), 1, %s1730_s9   ;;  %s1282_s6 = sshll.u32 (!%p255_p9), %s1738_s11, 6 }
  0x2b   : > { %258 = sbr.rel (%p255_p9) target bundleno = 372 (0x174), region = 47  ;;  %s1281_s7 = sshll.u32 (!%p255_p9), %s261_s5, 8 }
  0x2c   : > { %p304_p10 = scmp.lt.s32.totalorder (!%p255_p9), %s1742_s12, 3  ;;  %p306_p11 = scmp.lt.s32.totalorder (!%p255_p9), %s1282_s6, 127 }
  0x2d   : > { %s1916_s9 = scalar_lea.vmem (!%p255_p9), [#allocation3], %s1281_s7  ;;  %p1287_p12 = scmp.ne.s32.totalorder (!%p255_p9), %s1738_s11, 0 }
  0x30   : > { %s2029_s12 = smov (!%p304_p10, %s1742_s12), 3  ;;  %s2031_s6 = smov (!%p306_p11, %s1282_s6), 127 }
  0x31   : > { %s1283_s8 = sshll.u32 %s2029_s12, 7  ;;  %s1371_s18 = sshll.u32 %s2029_s12, 6 }
  0x32   : > { %s312_s19 = sadd.s32 %s1283_s8, %s2031_s6  ;;  %s1909_s23 = scalar_lea.vmem %s2015_s2, %s1371_s18 }
  0x33   : > { %s1284_s24 = sshll.u32 %s312_s19, 2  ;;  %333 = sbr.rel (%p1287_p12) target bundleno = 65 (0x41), region = 55 }
  0x34   : > { %s1914_s27 = scalar_lea.vmem %s2014_s1, %s1284_s24 }
  0x38   : > { %v1756_v32 = vmov 0.0  }
  0x39   : > { %334 = vst [vmem:[#allocation2 + $0x30] sm:$0xff] %v1756_v32  ;;  %335 = vst [vmem:[#allocation2] sm:$0xff] %v1756_v32 }
  0x3a   : > { %336 = vst [vmem:[#allocation2 + $0x58] sm:$0xff] %v1756_v32  ;;  %337 = vst [vmem:[#allocation2 + $0x18] sm:$0xff] %v1756_v32 }
  0x3b   : > { %338 = vst [vmem:[#allocation2 + $0x50] sm:$0xff] %v1756_v32  ;;  %339 = vst [vmem:[#allocation2 + $0x68] sm:$0xff] %v1756_v32 }
  0x3c   : > { %340 = vst [vmem:[#allocation2 + $0x8] sm:$0xff] %v1756_v32  ;;  %341 = vst [vmem:[#allocation2 + $0x48] sm:$0xff] %v1756_v32 }
  0x3d   : > { %342 = vst [vmem:[#allocation2 + $0x40] sm:$0xff] %v1756_v32  ;;  %343 = vst [vmem:[#allocation2 + $0x20] sm:$0xff] %v1756_v32 }
  0x3e   : > { %344 = vst [vmem:[#allocation2 + $0x10] sm:$0xff] %v1756_v32  ;;  %345 = vst [vmem:[#allocation2 + $0x38] sm:$0xff] %v1756_v32 }
  0x3f   : > { %346 = vst [vmem:[#allocation2 + $0x60] sm:$0xff] %v1756_v32  ;;  %347 = vst [vmem:[#allocation2 + $0x70] sm:$0xff] %v1756_v32 }
  0x40   : > { %348 = vst [vmem:[#allocation2 + $0x78] sm:$0xff] %v1756_v32  ;;  %349 = vst [vmem:[#allocation2 + $0x28] sm:$0xff] %v1756_v32 }
  0x41 PF: > { %v1620_v33 = vld [vmem:[%s1914_s27 + $0x78] sm:$0xff]   ;;  %v1624_v37 = vld [vmem:[%s1914_s27 + $0x70] sm:$0xff]   ;;  %v1628_v41 = vld [vmem:[%s1914_s27 + $0x68] sm:$0xff]   ;;  %p1352_p13 = scmp.ne.s32.totalorder %s1738_s11, 1 }
  0x42   : > { %v1621_v34 = vld [vmem:[%s1914_s27 + $0xf8] sm:$0xff]   ;;  %1435 = vmatprep.subr.bf16.mxu0 %v1620_v33  ;;  %v1625_v38 = vld [vmem:[%s1914_s27 + $0xf0] sm:$0xff]   ;;  %v1629_v42 = vld [vmem:[%s1914_s27 + $0xe8] sm:$0xff]  }
  0x43   : > { %v1622_v35 = vld [vmem:[%s1914_s27 + $0x38] sm:$0xff]   ;;  %1499 = vmatprep.subr.bf16.mxu1 %v1621_v34  ;;  %v1626_v39 = vld [vmem:[%s1914_s27 + $0x30] sm:$0xff]   ;;  %v1630_v43 = vld [vmem:[%s1914_s27 + $0x28] sm:$0xff]  }
  0x44   : > { %v1623_v36 = vld [vmem:[%s1914_s27 + $0xb8] sm:$0xff]   ;;  %1436 = vmatpush3.bf16.msra.mxu0 %v1622_v35  ;;  %v1627_v40 = vld [vmem:[%s1914_s27 + $0xb0] sm:$0xff]   ;;  %v1631_v44 = vld [vmem:[%s1914_s27 + $0xa8] sm:$0xff]  }
  0x45   : > { %1500 = vmatpush3.bf16.msra.mxu1 %v1623_v36  ;;  %1437 = vmatprep.subr.bf16.mxu0 %v1624_v37  ;;  %v1632_v45 = vld [vmem:[%s1914_s27 + $0x60] sm:$0xff]   ;;  %v1636_v49 = vld [vmem:[%s1914_s27 + $0x58] sm:$0xff]   ;;  %v1640_v53 = vld [vmem:[%s1914_s27 + $0x50] sm:$0xff]  }
  0x46   : > { %1501 = vmatprep.subr.bf16.mxu1 %v1625_v38  ;;  %v1633_v46 = vld [vmem:[%s1914_s27 + $0xe0] sm:$0xff]   ;;  %v1637_v50 = vld [vmem:[%s1914_s27 + $0xd8] sm:$0xff]   ;;  %v1641_v54 = vld [vmem:[%s1914_s27 + $0xd0] sm:$0xff]  }
  0x47   : > { %v1634_v47 = vld [vmem:[%s1914_s27 + $0x20] sm:$0xff]   ;;  %v1638_v51 = vld [vmem:[%s1914_s27 + $0x18] sm:$0xff]   ;;  %v1642_v55 = vld [vmem:[%s1914_s27 + $0x10] sm:$0xff]  }
  0x48   : > { %1438 = vmatpush3.bf16.msra.mxu0 %v1626_v39  ;;  %v1635_v48 = vld [vmem:[%s1914_s27 + $0xa0] sm:$0xff]   ;;  %v1639_v52 = vld [vmem:[%s1914_s27 + $0x98] sm:$0xff]   ;;  %v1643_v56 = vld [vmem:[%s1914_s27 + $0x90] sm:$0xff]  }
  0x49   : > { %1502 = vmatpush3.bf16.msra.mxu1 %v1627_v40  ;;  %1439 = vmatprep.subr.bf16.mxu0 %v1628_v41  ;;  %v1644_v57 = vld [vmem:[%s1914_s27 + $0x48] sm:$0xff]   ;;  %v1648_v61 = vld [vmem:[%s1914_s27 + $0x40] sm:$0xff]   ;;  %v350_v40 = vld [vmem:[#allocation2 + $0x30] sm:$0xff] }
  0x4a   : > { %1503 = vmatprep.subr.bf16.mxu1 %v1629_v42  ;;  %v1645_v58 = vld [vmem:[%s1914_s27 + $0xc8] sm:$0xff]   ;;  %v1649_v62 = vld [vmem:[%s1914_s27 + $0xc0] sm:$0xff]  }
  0x4b   : > { %v1646_v59 = vld [vmem:[%s1914_s27 + $0x8] sm:$0xff]   ;;  %v1650_v63 = vld [vmem:[%s1914_s27] sm:$0xff]  }
  0x4c   : > { %1440 = vmatpush3.bf16.msra.mxu0 %v1630_v43  ;;  %v1647_v60 = vld [vmem:[%s1914_s27 + $0x88] sm:$0xff]   ;;  %v1651_v0 = vld [vmem:[%s1914_s27 + $0x80] sm:$0xff]  }
  0x4d   : > { %1504 = vmatpush3.bf16.msra.mxu1 %v1631_v44  ;;  %1441 = vmatprep.subr.bf16.mxu0 %v1632_v45  ;;  %v1652_v1 = vld [vmem:[%s1916_s9] ss:$16 sps:$4 sm:$0xff]   ;;  %v1654_v2 = vld [vmem:[%s1916_s9 + $0x4] ss:$16 sps:$4 sm:$0xff]   ;;  %v1655_v3 = vld [vmem:[%s1916_s9 + $0x8] ss:$16 sps:$4 sm:$0xff]  }
  0x4e   : > { %1505 = vmatprep.subr.bf16.mxu1 %v1633_v46  ;;  %v1657_v4 = vld [vmem:[%s1916_s9 + $0xc] ss:$16 sps:$4 sm:$0xff]   ;;  %846 = vmatprep.mubr.bf16.mxu0 %v1654_v2  ;;  %v1658_v5 = vld [vmem:[%s1916_s9 + $0x24] ss:$16 sps:$4 sm:$0xff]   ;;  %v1662_v7 = vld [vmem:[%s1916_s9 + $0x20] ss:$16 sps:$4 sm:$0xff]  }
  0x4f   : > { %943 = vmatprep.mubr.bf16.mxu1 %v1657_v4  ;;  %v1660_v6 = vld [vmem:[%s1916_s9 + $0x2c] ss:$16 sps:$4 sm:$0xff]   ;;  %v1663_v8 = vld [vmem:[%s1916_s9 + $0x28] ss:$16 sps:$4 sm:$0xff]   ;;  %v1664_v9 = vld [vmem:[%s1916_s9 + $0x44] ss:$16 sps:$4 sm:$0xff]  }
  0x50   : > { %1442 = vmatpush3.bf16.msra.mxu0 %v1634_v47  ;;  %v1666_v10 = vld [vmem:[%s1916_s9 + $0x4c] ss:$16 sps:$4 sm:$0xff]   ;;  %v1668_v11 = vld [vmem:[%s1916_s9 + $0x40] ss:$16 sps:$4 sm:$0xff]   ;;  %v1669_v12 = vld [vmem:[%s1916_s9 + $0x48] ss:$16 sps:$4 sm:$0xff]  }
  0x51   : > { %1506 = vmatpush3.bf16.msra.mxu1 %v1635_v48  ;;  %1443 = vmatprep.subr.bf16.mxu0 %v1636_v49  ;;  %v1670_v13 = vld [vmem:[%s1916_s9 + $0x64] ss:$16 sps:$4 sm:$0xff]   ;;  %v1672_v14 = vld [vmem:[%s1916_s9 + $0x6c] ss:$16 sps:$4 sm:$0xff]   ;;  %v1674_v15 = vld [vmem:[%s1916_s9 + $0x60] ss:$16 sps:$4 sm:$0xff]  }
  0x52   : > { %1507 = vmatprep.subr.bf16.mxu1 %v1637_v50  ;;  %v1675_v16 = vld [vmem:[%s1916_s9 + $0x68] ss:$16 sps:$4 sm:$0xff]   ;;  %v1676_v17 = vld [vmem:[%s1916_s9 + $0x84] ss:$16 sps:$4 sm:$0xff]   ;;  %v1678_v18 = vld [vmem:[%s1916_s9 + $0x8c] ss:$16 sps:$4 sm:$0xff]  }
  0x53   : > { %v1680_v19 = vld [vmem:[%s1916_s9 + $0x80] ss:$16 sps:$4 sm:$0xff]   ;;  %v1681_v20 = vld [vmem:[%s1916_s9 + $0x88] ss:$16 sps:$4 sm:$0xff]   ;;  %v1682_v21 = vld [vmem:[%s1916_s9 + $0xa4] ss:$16 sps:$4 sm:$0xff]  }
  0x54   : > { %1444 = vmatpush3.bf16.msra.mxu0 %v1638_v51  ;;  %v1684_v22 = vld [vmem:[%s1916_s9 + $0xac] ss:$16 sps:$4 sm:$0xff]   ;;  %v1686_v23 = vld [vmem:[%s1916_s9 + $0xa0] ss:$16 sps:$4 sm:$0xff]   ;;  %v1687_v24 = vld [vmem:[%s1916_s9 + $0xa8] ss:$16 sps:$4 sm:$0xff]  }
  0x55   : > { %1508 = vmatpush3.bf16.msra.mxu1 %v1639_v52  ;;  %1445 = vmatprep.subr.bf16.mxu0 %v1640_v53  ;;  %v1688_v25 = vld [vmem:[%s1916_s9 + $0xc4] ss:$16 sps:$4 sm:$0xff]   ;;  %v1690_v26 = vld [vmem:[%s1916_s9 + $0xcc] ss:$16 sps:$4 sm:$0xff]   ;;  %v1692_v27 = vld [vmem:[%s1916_s9 + $0xc0] ss:$16 sps:$4 sm:$0xff]  }
  0x56   : > { %1509 = vmatprep.subr.bf16.mxu1 %v1641_v54  ;;  %v1693_v28 = vld [vmem:[%s1916_s9 + $0xc8] ss:$16 sps:$4 sm:$0xff]   ;;  %v1694_v29 = vld [vmem:[%s1916_s9 + $0xe4] ss:$16 sps:$4 sm:$0xff]   ;;  %v1696_v30 = vld [vmem:[%s1916_s9 + $0xec] ss:$16 sps:$4 sm:$0xff]  }
  0x57   : > { %v1698_v31 = vld [vmem:[%s1916_s9 + $0xe0] ss:$16 sps:$4 sm:$0xff]   ;;  %v1699_v32 = vld [vmem:[%s1916_s9 + $0xe8] ss:$16 sps:$4 sm:$0xff]  }
  0x58   : > { %1446 = vmatpush3.bf16.msra.mxu0 %v1642_v55  ;;  %v351_v49 = vld [vmem:[#allocation2] sm:$0xff] }
  0x59   : > { %1510 = vmatpush3.bf16.msra.mxu1 %v1643_v56  ;;  %1447 = vmatprep.subr.bf16.mxu0 %v1644_v57 }
  0x5a   : > { %1511 = vmatprep.subr.bf16.mxu1 %v1645_v58  ;;  %v352_v58 = vld [vmem:[#allocation2 + $0x58] sm:$0xff] }
  0x5c   : > { %1448 = vmatpush3.bf16.msra.mxu0 %v1646_v59 }
  0x5d   : > { %1512 = vmatpush3.bf16.msra.mxu1 %v1647_v60  ;;  %1449 = vmatprep.subr.bf16.mxu0 %v1648_v61 }
  0x5e   : > { %1513 = vmatprep.subr.bf16.mxu1 %v1649_v62 }
  0x60   : > { %1450 = vmatpush3.bf16.msra.mxu0 %v1650_v63 }
  0x61   : > { %1514 = vmatpush3.bf16.msra.mxu1 %v1651_v0 }
  0x63   : > { %847 = vmatmul.mubr.bf16.vlgmr.msra.gmra.mxu0 %v1652_v1 }
  0x64   : > { %944 = vmatmul.mubr.bf16.vlgmr.msra.gmra.mxu1 %v1655_v3  ;;  %854 = vmatprep.mubr.bf16.mxu0 %v1658_v5  ;;  %v353_v3 = vld [vmem:[#allocation2 + $0x18] sm:$0xff] }
  0x65   : > { %951 = vmatprep.mubr.bf16.mxu1 %v1660_v6 }
  0x6b   : > { %855 = vmatmul.mubr.bf16.gmra.mxu0 %v1662_v7 }
  0x6c   : > { %952 = vmatmul.mubr.bf16.gmra.mxu1 %v1663_v8  ;;  %862 = vmatprep.mubr.bf16.mxu0 %v1664_v9 }
  0x6d   : > { %959 = vmatprep.mubr.bf16.mxu1 %v1666_v10 }
  0x73   : > { %863 = vmatmul.mubr.bf16.gmra.mxu0 %v1668_v11 }
  0x74   : > { %960 = vmatmul.mubr.bf16.gmra.mxu1 %v1669_v12  ;;  %870 = vmatprep.mubr.bf16.mxu0 %v1670_v13  ;;  %v354_v12 = vld [vmem:[#allocation2 + $0x50] sm:$0xff] }
  0x75   : > { %967 = vmatprep.mubr.bf16.mxu1 %v1672_v14 }
  0x7b   : > { %871 = vmatmul.mubr.bf16.gmra.mxu0 %v1674_v15 }
  0x7c   : > { %968 = vmatmul.mubr.bf16.gmra.mxu1 %v1675_v16  ;;  %878 = vmatprep.mubr.bf16.mxu0 %v1676_v17 }
  0x7d   : > { %975 = vmatprep.mubr.bf16.mxu1 %v1678_v18 }
  0x83   : > { %879 = vmatmul.mubr.bf16.gmra.mxu0 %v1680_v19 }
  0x84   : > { %976 = vmatmul.mubr.bf16.gmra.mxu1 %v1681_v20  ;;  %886 = vmatprep.mubr.bf16.mxu0 %v1682_v21  ;;  %v355_v21 = vld [vmem:[#allocation2 + $0x68] sm:$0xff] }
  0x85   : > { %983 = vmatprep.mubr.bf16.mxu1 %v1684_v22 }
  0x8b   : > { %887 = vmatmul.mubr.bf16.gmra.mxu0 %v1686_v23 }
  0x8c   : > { %984 = vmatmul.mubr.bf16.gmra.mxu1 %v1687_v24  ;;  %894 = vmatprep.mubr.bf16.mxu0 %v1688_v25 }
  0x8d   : > { %991 = vmatprep.mubr.bf16.mxu1 %v1690_v26 }
  0x93   : > { %895 = vmatmul.mubr.bf16.gmra.mxu0 %v1692_v27 }
  0x94   : > { %992 = vmatmul.mubr.bf16.gmra.mxu1 %v1693_v28  ;;  %902 = vmatprep.mubr.bf16.mxu0 %v1694_v29 }
  0x95   : > { %999 = vmatprep.mubr.bf16.mxu1 %v1696_v30  ;;  %v356_v30 = vld [vmem:[#allocation2 + $0x8] sm:$0xff] }
  0x9b   : > { %903 = vmatmul.mubr.bf16.gmra.mxu0 %v1698_v31 }
  0x9c   : > { %1000 = vmatmul.mubr.bf16.gmra.mxu1 %v1699_v32 }
 0x123   : > { %v1451_v33 = vpop.f32.mrf.mxu0 }
 0x124   : > { %v1515_v34 = vpop.f32.mrf.mxu1 }
 0x125   : > { %v1452_v35 = vpop.f32.mrf.mxu0 }
 0x126   : > { %v1453_v36 = vadd.f32 %v1452_v35, %v1451_v33  ;;  %v1516_v37 = vpop.f32.mrf.mxu1 }
 0x127   : > { %v1517_v38 = vadd.f32 %v1516_v37, %v1515_v34  ;;  %v1454_v39 = vpop.f32.mrf.mxu0 }
 0x128   : > { %v1518_v41 = vpop.f32.mrf.mxu1 }
 0x129   : > { %v946_v42 = vadd.f32 %v1517_v38, %v1453_v36  ;;  %v1455_v43 = vpop.f32.mrf.mxu0 }
 0x12a   : > { %v1456_v44 = vadd.f32 %v1455_v43, %v1454_v39  ;;  %v1519_v45 = vpop.f32.mrf.mxu1  ;;  %v357_v39 = vld [vmem:[#allocation2 + $0x48] sm:$0xff] }
 0x12b   : > { %v1008_v46 = vadd.f32 %v946_v42, %v350_v40  ;;  %v1520_v47 = vadd.f32 %v1519_v45, %v1518_v41  ;;  %v1457_v48 = vpop.f32.mrf.mxu0 }
 0x12c   : > { %v1521_v50 = vpop.f32.mrf.mxu1 }
 0x12d   : > { %1024 = vst [vmem:[#allocation2 + $0x30] sm:$0xff] %v1008_v46  ;;  %v949_v51 = vadd.f32 %v1520_v47, %v1456_v44  ;;  %v1458_v52 = vpop.f32.mrf.mxu0 }
 0x12e   : > { %v1459_v53 = vadd.f32 %v1458_v52, %v1457_v48  ;;  %v1522_v54 = vpop.f32.mrf.mxu1  ;;  %v358_v48 = vld [vmem:[#allocation2 + $0x40] sm:$0xff] }
 0x12f   : > { %v1009_v55 = vadd.f32 %v949_v51, %v351_v49  ;;  %v1523_v56 = vadd.f32 %v1522_v54, %v1521_v50  ;;  %v1460_v57 = vpop.f32.mrf.mxu0 }
 0x130   : > { %v1524_v59 = vpop.f32.mrf.mxu1 }
 0x131   : > { %1025 = vst [vmem:[#allocation2] sm:$0xff] %v1009_v55  ;;  %v954_v60 = vadd.f32 %v1523_v56, %v1459_v53  ;;  %v1461_v61 = vpop.f32.mrf.mxu0 }
 0x132   : > { %v1462_v62 = vadd.f32 %v1461_v61, %v1460_v57  ;;  %v1525_v63 = vpop.f32.mrf.mxu1  ;;  %v359_v57 = vld [vmem:[#allocation2 + $0x20] sm:$0xff] }
 0x133   : > { %v1010_v0 = vadd.f32 %v954_v60, %v352_v58  ;;  %v1526_v1 = vadd.f32 %v1525_v63, %v1524_v59  ;;  %v1463_v2 = vpop.f32.mrf.mxu0 }
 0x134   : > { %v1527_v4 = vpop.f32.mrf.mxu1 }
 0x135   : > { %1026 = vst [vmem:[#allocation2 + $0x58] sm:$0xff] %v1010_v0  ;;  %v957_v5 = vadd.f32 %v1526_v1, %v1462_v62  ;;  %v1464_v6 = vpop.f32.mrf.mxu0 }
 0x136   : > { %v1465_v7 = vadd.f32 %v1464_v6, %v1463_v2  ;;  %v1528_v8 = vpop.f32.mrf.mxu1  ;;  %v360_v2 = vld [vmem:[#allocation2 + $0x10] sm:$0xff] }
 0x137   : > { %v1011_v9 = vadd.f32 %v957_v5, %v353_v3  ;;  %v1529_v10 = vadd.f32 %v1528_v8, %v1527_v4  ;;  %v1466_v11 = vpop.f32.mrf.mxu0 }
 0x138   : > { %v1530_v13 = vpop.f32.mrf.mxu1 }
 0x139   : > { %1027 = vst [vmem:[#allocation2 + $0x18] sm:$0xff] %v1011_v9  ;;  %v962_v14 = vadd.f32 %v1529_v10, %v1465_v7  ;;  %v1467_v15 = vpop.f32.mrf.mxu0 }
 0x13a   : > { %v1468_v16 = vadd.f32 %v1467_v15, %v1466_v11  ;;  %v1531_v17 = vpop.f32.mrf.mxu1  ;;  %v361_v11 = vld [vmem:[#allocation2 + $0x38] sm:$0xff] }
 0x13b   : > { %v1012_v18 = vadd.f32 %v962_v14, %v354_v12  ;;  %v1532_v19 = vadd.f32 %v1531_v17, %v1530_v13  ;;  %v1469_v20 = vpop.f32.mrf.mxu0 }
 0x13c   : > { %v1533_v22 = vpop.f32.mrf.mxu1 }
 0x13d   : > { %1028 = vst [vmem:[#allocation2 + $0x50] sm:$0xff] %v1012_v18  ;;  %v965_v23 = vadd.f32 %v1532_v19, %v1468_v16  ;;  %v1470_v24 = vpop.f32.mrf.mxu0 }
 0x13e   : > { %v1471_v25 = vadd.f32 %v1470_v24, %v1469_v20  ;;  %v1534_v26 = vpop.f32.mrf.mxu1  ;;  %v362_v20 = vld [vmem:[#allocation2 + $0x60] sm:$0xff] }
 0x13f   : > { %v1013_v27 = vadd.f32 %v965_v23, %v355_v21  ;;  %v1535_v28 = vadd.f32 %v1534_v26, %v1533_v22  ;;  %v1472_v29 = vpop.f32.mrf.mxu0 }
 0x140   : > { %v1536_v31 = vpop.f32.mrf.mxu1 }
 0x141   : > { %1029 = vst [vmem:[#allocation2 + $0x68] sm:$0xff] %v1013_v27  ;;  %v970_v32 = vadd.f32 %v1535_v28, %v1471_v25  ;;  %v1473_v33 = vpop.f32.mrf.mxu0 }
 0x142   : > { %v1474_v34 = vadd.f32 %v1473_v33, %v1472_v29  ;;  %v1537_v35 = vpop.f32.mrf.mxu1  ;;  %v363_v29 = vld [vmem:[#allocation2 + $0x70] sm:$0xff] }
 0x143   : > { %v1014_v36 = vadd.f32 %v970_v32, %v356_v30  ;;  %v1538_v37 = vadd.f32 %v1537_v35, %v1536_v31  ;;  %v1475_v38 = vpop.f32.mrf.mxu0 }
 0x144   : > { %v1539_v40 = vpop.f32.mrf.mxu1 }
 0x145   : > { %1030 = vst [vmem:[#allocation2 + $0x8] sm:$0xff] %v1014_v36  ;;  %v973_v41 = vadd.f32 %v1538_v37, %v1474_v34  ;;  %v1476_v42 = vpop.f32.mrf.mxu0 }
 0x146   : > { %v1477_v43 = vadd.f32 %v1476_v42, %v1475_v38  ;;  %v1540_v44 = vpop.f32.mrf.mxu1  ;;  %v364_v38 = vld [vmem:[#allocation2 + $0x78] sm:$0xff] }
 0x147   : > { %v1015_v45 = vadd.f32 %v973_v41, %v357_v39  ;;  %v1541_v46 = vadd.f32 %v1540_v44, %v1539_v40  ;;  %v1478_v47 = vpop.f32.mrf.mxu0 }
 0x148   : > { %v1542_v49 = vpop.f32.mrf.mxu1 }
 0x149   : > { %1031 = vst [vmem:[#allocation2 + $0x48] sm:$0xff] %v1015_v45  ;;  %v978_v50 = vadd.f32 %v1541_v46, %v1477_v43  ;;  %v1479_v51 = vpop.f32.mrf.mxu0  ;;  %v365_v46 = vld [vmem:[#allocation2 + $0x28] sm:$0xff] }
 0x14a   : > { %v1480_v52 = vadd.f32 %v1479_v51, %v1478_v47  ;;  %v1543_v53 = vpop.f32.mrf.mxu1 }
 0x14b   : > { %v1016_v54 = vadd.f32 %v978_v50, %v358_v48  ;;  %v1544_v55 = vadd.f32 %v1543_v53, %v1542_v49  ;;  %v1481_v56 = vpop.f32.mrf.mxu0 }
 0x14c   : > { %v1545_v58 = vpop.f32.mrf.mxu1 }
 0x14d   : > { %1032 = vst [vmem:[#allocation2 + $0x40] sm:$0xff] %v1016_v54  ;;  %v981_v59 = vadd.f32 %v1544_v55, %v1480_v52  ;;  %v1482_v60 = vpop.f32.mrf.mxu0 }
 0x14e   : > { %v1483_v61 = vadd.f32 %v1482_v60, %v1481_v56  ;;  %v1546_v62 = vpop.f32.mrf.mxu1 }
 0x14f   : > { %v1017_v63 = vadd.f32 %v981_v59, %v359_v57  ;;  %v1547_v0 = vadd.f32 %v1546_v62, %v1545_v58  ;;  %v1484_v1 = vpop.f32.mrf.mxu0 }
 0x150   : > { %v1548_v3 = vpop.f32.mrf.mxu1 }
 0x151   : > { %1033 = vst [vmem:[#allocation2 + $0x20] sm:$0xff] %v1017_v63  ;;  %v986_v4 = vadd.f32 %v1547_v0, %v1483_v61  ;;  %v1485_v5 = vpop.f32.mrf.mxu0 }
 0x152   : > { %v1486_v6 = vadd.f32 %v1485_v5, %v1484_v1  ;;  %v1549_v7 = vpop.f32.mrf.mxu1 }
 0x153   : > { %v1018_v8 = vadd.f32 %v986_v4, %v360_v2  ;;  %v1550_v9 = vadd.f32 %v1549_v7, %v1548_v3  ;;  %v1487_v10 = vpop.f32.mrf.mxu0 }
 0x154   : > { %v1551_v12 = vpop.f32.mrf.mxu1 }
 0x155   : > { %1034 = vst [vmem:[#allocation2 + $0x10] sm:$0xff] %v1018_v8  ;;  %v989_v13 = vadd.f32 %v1550_v9, %v1486_v6  ;;  %v1488_v14 = vpop.f32.mrf.mxu0 }
 0x156   : > { %v1489_v15 = vadd.f32 %v1488_v14, %v1487_v10  ;;  %v1552_v16 = vpop.f32.mrf.mxu1 }
 0x157   : > { %v1019_v17 = vadd.f32 %v989_v13, %v361_v11  ;;  %v1553_v18 = vadd.f32 %v1552_v16, %v1551_v12  ;;  %v1490_v19 = vpop.f32.mrf.mxu0 }
 0x158   : > { %v1554_v21 = vpop.f32.mrf.mxu1 }
 0x159   : > { %1035 = vst [vmem:[#allocation2 + $0x38] sm:$0xff] %v1019_v17  ;;  %v994_v22 = vadd.f32 %v1553_v18, %v1489_v15  ;;  %v1491_v23 = vpop.f32.mrf.mxu0 }
 0x15a   : > { %v1492_v24 = vadd.f32 %v1491_v23, %v1490_v19  ;;  %v1555_v25 = vpop.f32.mrf.mxu1 }
 0x15b   : > { %v1020_v26 = vadd.f32 %v994_v22, %v362_v20  ;;  %v1556_v27 = vadd.f32 %v1555_v25, %v1554_v21  ;;  %v1493_v28 = vpop.f32.mrf.mxu0 }
 0x15c   : > { %v1557_v30 = vpop.f32.mrf.mxu1 }
 0x15d   : > { %1036 = vst [vmem:[#allocation2 + $0x60] sm:$0xff] %v1020_v26  ;;  %v997_v31 = vadd.f32 %v1556_v27, %v1492_v24  ;;  %v1494_v32 = vpop.f32.mrf.mxu0 }
 0x15e   : > { %v1495_v33 = vadd.f32 %v1494_v32, %v1493_v28  ;;  %v1558_v34 = vpop.f32.mrf.mxu1 }
 0x15f   : > { %v1021_v35 = vadd.f32 %v997_v31, %v363_v29  ;;  %v1559_v36 = vadd.f32 %v1558_v34, %v1557_v30  ;;  %v1496_v37 = vpop.f32.mrf.mxu0 }
 0x160   : > { %v1560_v39 = vpop.f32.mrf.mxu1 }
 0x161   : > { %1037 = vst [vmem:[#allocation2 + $0x70] sm:$0xff] %v1021_v35  ;;  %v1002_v40 = vadd.f32 %v1559_v36, %v1495_v33  ;;  %v1497_v41 = vpop.f32.mrf.mxu0 }
 0x162   : > { %v1498_v42 = vadd.f32 %v1497_v41, %v1496_v37  ;;  %v1561_v43 = vpop.f32.mrf.mxu1 }
 0x163   : > { %v1022_v44 = vadd.f32 %v1002_v40, %v364_v38  ;;  %v1562_v45 = vadd.f32 %v1561_v43, %v1560_v39 }
 0x165   : > { %1038 = vst [vmem:[#allocation2 + $0x78] sm:$0xff] %v1022_v44  ;;  %v1005_v47 = vadd.f32 %v1562_v45, %v1498_v42  ;;  %1043 = sbr.rel (%p1352_p13) target bundleno = 372 (0x174), region = 59 }
 0x167   : > { %v1023_v48 = vadd.f32 %v1005_v47, %v365_v46 }
 0x169   : > { %1039 = vst [vmem:[#allocation2 + $0x28] sm:$0xff] %v1023_v48 }
 0x16a   : > { %v1044_v49 = vld [vmem:[#allocation2 + $0x30] sm:$0xff]  ;;  %v1045_v50 = vld [vmem:[#allocation2] sm:$0xff]  ;;  %v1046_v51 = vld [vmem:[#allocation2 + $0x58] sm:$0xff] }
 0x16b   : > { %v1391_v52 = vpack.c.bf16 %v1045_v50, %v1044_v49  ;;  %v1047_v53 = vld [vmem:[#allocation2 + $0x18] sm:$0xff]  ;;  %v1048_v54 = vld [vmem:[#allocation2 + $0x50] sm:$0xff]  ;;  %v1049_v55 = vld [vmem:[#allocation2 + $0x68] sm:$0xff] }
 0x16c   : > { %v1396_v56 = vpack.c.bf16 %v1047_v53, %v1046_v51  ;;  %v1401_v57 = vpack.c.bf16 %v1049_v55, %v1048_v54  ;;  %v1050_v58 = vld [vmem:[#allocation2 + $0x8] sm:$0xff]  ;;  %v1052_v60 = vld [vmem:[#allocation2 + $0x40] sm:$0xff]  ;;  %v1054_v63 = vld [vmem:[#allocation2 + $0x10] sm:$0xff] }
 0x16d   : > { %v1051_v59 = vld [vmem:[#allocation2 + $0x48] sm:$0xff]  ;;  %1392 = vst [vmem:[%s1909_s23] sm:$0xff] %v1391_v52   ;;  %v1053_v62 = vld [vmem:[#allocation2 + $0x20] sm:$0xff]  ;;  %v1055_v0 = vld [vmem:[#allocation2 + $0x38] sm:$0xff] }
 0x16e   : > { %v1406_v61 = vpack.c.bf16 %v1051_v59, %v1050_v58  ;;  %1428 = vst [vmem:[%s1909_s23 + $0x8] sm:$0xff] %v1396_v56   ;;  %1429 = vst [vmem:[%s1909_s23 + $0x10] sm:$0xff] %v1401_v57   ;;  %v1411_v1 = vpack.c.bf16 %v1053_v62, %v1052_v60  ;;  %v1416_v2 = vpack.c.bf16 %v1055_v0, %v1054_v63  ;;  %v1056_v3 = vld [vmem:[#allocation2 + $0x60] sm:$0xff]  ;;  %v1057_v4 = vld [vmem:[#allocation2 + $0x70] sm:$0xff] }
 0x16f   : > { %v1058_v5 = vld [vmem:[#allocation2 + $0x78] sm:$0xff]  ;;  %v1421_v6 = vpack.c.bf16 %v1057_v4, %v1056_v3 }
 0x170   : > { %1430 = vst [vmem:[%s1909_s23 + $0x18] sm:$0xff] %v1406_v61   ;;  %v1059_v7 = vld [vmem:[#allocation2 + $0x28] sm:$0xff]  ;;  %1431 = vst [vmem:[%s1909_s23 + $0x20] sm:$0xff] %v1411_v1  }
 0x171   : > { %1432 = vst [vmem:[%s1909_s23 + $0x28] sm:$0xff] %v1416_v2   ;;  %v1426_v8 = vpack.c.bf16 %v1059_v7, %v1058_v5  ;;  %1433 = vst [vmem:[%s1909_s23 + $0x30] sm:$0xff] %v1421_v6  }
 0x173   : > { %1434 = vst [vmem:[%s1909_s23 + $0x38] sm:$0xff] %v1426_v8  }
 0x174 PF: > { %s12_s15 = sadd.s32 1, %s1754_s15   ;;  %s2016_s9 = smov %s1734_s10 }
 0x175   : > { %p9_p0 = scmp.ge.s32.totalorder %s12_s15, 10   ;;  %s2017_s10 = smov %s1823_s22 }
 0x176   : > { %s2018_s11 = smov %s1746_s13  ;;  %s2019_s12 = smov %s1750_s14 }
 0x177   : > { %s2020_s13 = smov %s2023_s16  ;;  %s2021_s14 = smov %s2027_s17 }
 0x178   :  { %11 = sbr.rel (!%p9_p0) target bundleno = 4 (0x4), region = 97 }

// kernel: generator_forward.15
= control target key start
LH: loop header
LB: loop body
LE: loop exit
PB: predicated region body
PF: predicated region fallthrough
CT: control target
= control target key end

     0   :  { %s1502_s0 = inlined_call_operand.vmem [shape: bf16[512,128], index: 0, kind: input, shape index: {}]   ;;  %s1503_s1 = inlined_call_operand.vmem [shape: f32[1,128], index: 1, kind: input, shape index: {}]   ;;  %s1504_s2 = inlined_call_operand.vmem [shape: f32[1,128], index: 2, kind: input, shape index: {}]   ;;  %s1505_s3 = inlined_call_operand.vmem [shape: bf16[512,128], index: 3, kind: output, shape index: {}]  }
   0x1   :  { %v803_v0 = vld [vmem:[%s1502_s0] sm:$0xff]   ;;  %v1090_v4 = vld [vmem:[%s1502_s0 + $0x8] sm:$0xff]   ;;  %v1091_v5 = vld [vmem:[%s1502_s0 + $0x10] sm:$0xff]  }
   0x2   :  { %v1178_v1 = vld [vmem:[%s1503_s1] ss:$0 sm:$0xff]  ;;  %v804_v2 = vunpack.c.l.bf16 %v803_v0  ;;  %v805_v3 = vunpack.c.h.bf16 %v803_v0  ;;  %v1092_v6 = vld [vmem:[%s1502_s0 + $0x18] sm:$0xff]   ;;  %v808_v8 = vunpack.c.l.bf16 %v1090_v4  ;;  %v809_v9 = vunpack.c.h.bf16 %v1090_v4  ;;  %v1094_v33 = vld [vmem:[%s1502_s0 + $0x28] sm:$0xff]  }
   0x3   :  { %v1192_v7 = vld [vmem:[%s1504_s2] ss:$0 sm:$0xff]  ;;  %v812_v10 = vunpack.c.l.bf16 %v1091_v5  ;;  %v813_v11 = vunpack.c.h.bf16 %v1091_v5  ;;  %v816_v14 = vunpack.c.l.bf16 %v1092_v6  ;;  %v817_v15 = vunpack.c.h.bf16 %v1092_v6  ;;  %v1095_v38 = vld [vmem:[%s1502_s0 + $0x30] sm:$0xff]   ;;  %v1096_v43 = vld [vmem:[%s1502_s0 + $0x38] sm:$0xff]  }
   0x4   :  { %v149_v12 = vmul.f32 %v804_v2, %v1178_v1  ;;  %v150_v13 = vmul.f32 %v805_v3, %v1178_v1  ;;  %v151_v16 = vmul.f32 %v808_v8, %v1178_v1  ;;  %v152_v17 = vmul.f32 %v809_v9, %v1178_v1  ;;  %v1093_v28 = vld [vmem:[%s1502_s0 + $0x20] sm:$0xff]  }
   0x5   :  { %v153_v18 = vmul.f32 %v812_v10, %v1178_v1  ;;  %v154_v19 = vmul.f32 %v813_v11, %v1178_v1  ;;  %v155_v22 = vmul.f32 %v816_v14, %v1178_v1  ;;  %v156_v23 = vmul.f32 %v817_v15, %v1178_v1  ;;  %v1097_v0 = vld [vmem:[%s1502_s0 + $0x40] sm:$0xff]   ;;  %v1098_v11 = vld [vmem:[%s1502_s0 + $0x48] sm:$0xff]  }
   0x6   :  { %v220_v20 = vadd.f32 %v1192_v7, %v149_v12  ;;  %v221_v21 = vadd.f32 %v1192_v7, %v150_v13  ;;  %v222_v24 = vadd.f32 %v1192_v7, %v151_v16  ;;  %v223_v25 = vadd.f32 %v1192_v7, %v152_v17  ;;  %v1099_v16 = vld [vmem:[%s1502_s0 + $0x50] sm:$0xff]  }
   0x7   :  { %v224_v26 = vadd.f32 %v1192_v7, %v153_v18  ;;  %v225_v27 = vadd.f32 %v1192_v7, %v154_v19  ;;  %v226_v31 = vadd.f32 %v1192_v7, %v155_v22  ;;  %v227_v32 = vadd.f32 %v1192_v7, %v156_v23 }
   0x8   :  { %v284_v29 = vmax.f32 %v220_v20, 0.0  ;;  %v285_v30 = vmax.f32 %v221_v21, 0.0  ;;  %v286_v34 = vmax.f32 %v222_v24, 0.0  ;;  %v287_v35 = vmax.f32 %v223_v25, 0.0  ;;  %v1100_v25 = vld [vmem:[%s1502_s0 + $0x58] sm:$0xff]  }
   0x9   :  { %v288_v36 = vmax.f32 %v224_v26, 0.0  ;;  %v289_v37 = vmax.f32 %v225_v27, 0.0  ;;  %v290_v40 = vmax.f32 %v226_v31, 0.0  ;;  %v291_v41 = vmax.f32 %v227_v32, 0.0 }
   0xa   :  { %v933_v39 = vpack.c.bf16 %v285_v30, %v284_v29  ;;  %v820_v42 = vunpack.c.l.bf16 %v1093_v28  ;;  %v938_v44 = vpack.c.bf16 %v287_v35, %v286_v34  ;;  %v821_v46 = vunpack.c.h.bf16 %v1093_v28 }
   0xb   :  { %v943_v45 = vpack.c.bf16 %v289_v37, %v288_v36  ;;  %v824_v47 = vunpack.c.l.bf16 %v1094_v33  ;;  %v948_v48 = vpack.c.bf16 %v291_v41, %v290_v40  ;;  %v825_v50 = vunpack.c.h.bf16 %v1094_v33 }
   0xc   :  { %934 = vst [vmem:[%s1505_s3] sm:$0xff] %v933_v39   ;;  %v157_v49 = vmul.f32 %v820_v42, %v1178_v1  ;;  %v828_v51 = vunpack.c.l.bf16 %v1095_v38  ;;  %1121 = vst [vmem:[%s1505_s3 + $0x8] sm:$0xff] %v938_v44   ;;  %v158_v52 = vmul.f32 %v821_v46, %v1178_v1  ;;  %v829_v54 = vunpack.c.h.bf16 %v1095_v38  ;;  %v1101_v38 = vld [vmem:[%s1502_s0 + $0x60] sm:$0xff]  }
   0xd   :  { %1122 = vst [vmem:[%s1505_s3 + $0x10] sm:$0xff] %v943_v45   ;;  %v159_v53 = vmul.f32 %v824_v47, %v1178_v1  ;;  %v832_v55 = vunpack.c.l.bf16 %v1096_v43  ;;  %1123 = vst [vmem:[%s1505_s3 + $0x18] sm:$0xff] %v948_v48   ;;  %v160_v57 = vmul.f32 %v825_v50, %v1178_v1  ;;  %v833_v59 = vunpack.c.h.bf16 %v1096_v43 }
   0xe   :  { %v228_v56 = vadd.f32 %v1192_v7, %v157_v49  ;;  %v161_v58 = vmul.f32 %v828_v51, %v1178_v1  ;;  %v229_v60 = vadd.f32 %v1192_v7, %v158_v52  ;;  %v162_v62 = vmul.f32 %v829_v54, %v1178_v1  ;;  %v1102_v51 = vld [vmem:[%s1502_s0 + $0x68] sm:$0xff]  }
   0xf   :  { %v230_v61 = vadd.f32 %v1192_v7, %v159_v53  ;;  %v163_v63 = vmul.f32 %v832_v55, %v1178_v1  ;;  %v231_v3 = vadd.f32 %v1192_v7, %v160_v57  ;;  %v164_v5 = vmul.f32 %v833_v59, %v1178_v1 }
  0x10   :  { %v292_v2 = vmax.f32 %v228_v56, 0.0  ;;  %v232_v4 = vadd.f32 %v1192_v7, %v161_v58  ;;  %v293_v6 = vmax.f32 %v229_v60, 0.0  ;;  %v233_v9 = vadd.f32 %v1192_v7, %v162_v62  ;;  %v1103_v60 = vld [vmem:[%s1502_s0 + $0x70] sm:$0xff]  }
  0x11   :  { %v294_v8 = vmax.f32 %v230_v61, 0.0  ;;  %v234_v10 = vadd.f32 %v1192_v7, %v163_v63  ;;  %v295_v12 = vmax.f32 %v231_v3, 0.0  ;;  %v235_v14 = vadd.f32 %v1192_v7, %v164_v5 }
  0x12   :  { %v296_v13 = vmax.f32 %v232_v4, 0.0  ;;  %v836_v15 = vunpack.c.l.bf16 %v1097_v0  ;;  %v953_v17 = vpack.c.bf16 %v293_v6, %v292_v2  ;;  %v297_v18 = vmax.f32 %v233_v9, 0.0  ;;  %v1104_v2 = vld [vmem:[%s1502_s0 + $0x78] sm:$0xff]  }
  0x13   :  { %v298_v19 = vmax.f32 %v234_v10, 0.0  ;;  %v837_v20 = vunpack.c.h.bf16 %v1097_v0  ;;  %v958_v21 = vpack.c.bf16 %v295_v12, %v294_v8  ;;  %v299_v22 = vmax.f32 %v235_v14, 0.0  ;;  %v1105_v12 = vld [vmem:[%s1502_s0 + $0x80] sm:$0xff]  }
  0x14   :  { %v165_v23 = vmul.f32 %v836_v15, %v1178_v1  ;;  %v840_v24 = vunpack.c.l.bf16 %v1098_v11  ;;  %1124 = vst [vmem:[%s1505_s3 + $0x20] sm:$0xff] %v953_v17   ;;  %v963_v26 = vpack.c.bf16 %v297_v18, %v296_v13  ;;  %v841_v28 = vunpack.c.h.bf16 %v1098_v11 }
  0x15   :  { %v166_v27 = vmul.f32 %v837_v20, %v1178_v1  ;;  %v844_v29 = vunpack.c.l.bf16 %v1099_v16  ;;  %1125 = vst [vmem:[%s1505_s3 + $0x28] sm:$0xff] %v958_v21   ;;  %v968_v30 = vpack.c.bf16 %v299_v22, %v298_v19  ;;  %v845_v33 = vunpack.c.h.bf16 %v1099_v16 }
  0x16   :  { %v236_v31 = vadd.f32 %v1192_v7, %v165_v23  ;;  %v167_v32 = vmul.f32 %v840_v24, %v1178_v1  ;;  %1126 = vst [vmem:[%s1505_s3 + $0x30] sm:$0xff] %v963_v26   ;;  %v168_v35 = vmul.f32 %v841_v28, %v1178_v1  ;;  %v848_v37 = vunpack.c.l.bf16 %v1100_v25 }
  0x17   :  { %v237_v34 = vadd.f32 %v1192_v7, %v166_v27  ;;  %v169_v36 = vmul.f32 %v844_v29, %v1178_v1  ;;  %1127 = vst [vmem:[%s1505_s3 + $0x38] sm:$0xff] %v968_v30   ;;  %v170_v41 = vmul.f32 %v845_v33, %v1178_v1  ;;  %v849_v42 = vunpack.c.h.bf16 %v1100_v25  ;;  %v1106_v29 = vld [vmem:[%s1502_s0 + $0x88] sm:$0xff]  }
  0x18   :  { %v300_v39 = vmax.f32 %v236_v31, 0.0  ;;  %v238_v40 = vadd.f32 %v1192_v7, %v167_v32  ;;  %v239_v44 = vadd.f32 %v1192_v7, %v168_v35  ;;  %v171_v46 = vmul.f32 %v848_v37, %v1178_v1 }
  0x19   :  { %v301_v43 = vmax.f32 %v237_v34, 0.0  ;;  %v240_v45 = vadd.f32 %v1192_v7, %v169_v36  ;;  %v241_v48 = vadd.f32 %v1192_v7, %v170_v41  ;;  %v172_v49 = vmul.f32 %v849_v42, %v1178_v1  ;;  %v1107_v34 = vld [vmem:[%s1502_s0 + $0x90] sm:$0xff]  }
  0x1a   :  { %v302_v47 = vmax.f32 %v238_v40, 0.0  ;;  %v852_v50 = vunpack.c.l.bf16 %v1101_v38  ;;  %v303_v53 = vmax.f32 %v239_v44, 0.0  ;;  %v242_v55 = vadd.f32 %v1192_v7, %v171_v46 }
  0x1b   :  { %v973_v52 = vpack.c.bf16 %v301_v43, %v300_v39  ;;  %v304_v54 = vmax.f32 %v240_v45, 0.0  ;;  %v305_v56 = vmax.f32 %v241_v48, 0.0  ;;  %v243_v57 = vadd.f32 %v1192_v7, %v172_v49  ;;  %v1108_v43 = vld [vmem:[%s1502_s0 + $0x98] sm:$0xff]  }
  0x1c   :  { %v853_v58 = vunpack.c.h.bf16 %v1101_v38  ;;  %v173_v59 = vmul.f32 %v852_v50, %v1178_v1  ;;  %v978_v61 = vpack.c.bf16 %v303_v53, %v302_v47  ;;  %v306_v62 = vmax.f32 %v242_v55, 0.0 }
  0x1d   :  { %1128 = vst [vmem:[%s1505_s3 + $0x40] sm:$0xff] %v973_v52   ;;  %v856_v63 = vunpack.c.l.bf16 %v1102_v51  ;;  %v857_v0 = vunpack.c.h.bf16 %v1102_v51  ;;  %v983_v3 = vpack.c.bf16 %v305_v56, %v304_v54  ;;  %v307_v4 = vmax.f32 %v243_v57, 0.0  ;;  %v1109_v56 = vld [vmem:[%s1502_s0 + $0xa0] sm:$0xff]  }
  0x1e   :  { %v174_v5 = vmul.f32 %v853_v58, %v1178_v1  ;;  %v244_v6 = vadd.f32 %v1192_v7, %v173_v59  ;;  %1129 = vst [vmem:[%s1505_s3 + $0x48] sm:$0xff] %v978_v61   ;;  %v860_v10 = vunpack.c.l.bf16 %v1103_v60  ;;  %v861_v11 = vunpack.c.h.bf16 %v1103_v60 }
  0x1f   :  { %v175_v8 = vmul.f32 %v856_v63, %v1178_v1  ;;  %v176_v9 = vmul.f32 %v857_v0, %v1178_v1  ;;  %1130 = vst [vmem:[%s1505_s3 + $0x50] sm:$0xff] %v983_v3   ;;  %v988_v13 = vpack.c.bf16 %v307_v4, %v306_v62  ;;  %v864_v16 = vunpack.c.l.bf16 %v1104_v2 }
  0x20   :  { %v245_v14 = vadd.f32 %v1192_v7, %v174_v5  ;;  %v308_v15 = vmax.f32 %v244_v6, 0.0  ;;  %v177_v19 = vmul.f32 %v860_v10, %v1178_v1  ;;  %v178_v20 = vmul.f32 %v861_v11, %v1178_v1 }
  0x21   :  { %v246_v17 = vadd.f32 %v1192_v7, %v175_v8  ;;  %v247_v18 = vadd.f32 %v1192_v7, %v176_v9  ;;  %1131 = vst [vmem:[%s1505_s3 + $0x58] sm:$0xff] %v988_v13   ;;  %v865_v22 = vunpack.c.h.bf16 %v1104_v2  ;;  %v179_v23 = vmul.f32 %v864_v16, %v1178_v1  ;;  %v1110_v2 = vld [vmem:[%s1502_s0 + $0xa8] sm:$0xff]   ;;  %v1111_v16 = vld [vmem:[%s1502_s0 + $0xb0] sm:$0xff]  }
  0x22   :  { %v309_v21 = vmax.f32 %v245_v14, 0.0  ;;  %v868_v24 = vunpack.c.l.bf16 %v1105_v12  ;;  %v248_v27 = vadd.f32 %v1192_v7, %v177_v19  ;;  %v249_v28 = vadd.f32 %v1192_v7, %v178_v20 }
  0x23   :  { %v310_v25 = vmax.f32 %v246_v17, 0.0  ;;  %v311_v26 = vmax.f32 %v247_v18, 0.0  ;;  %v180_v31 = vmul.f32 %v865_v22, %v1178_v1  ;;  %v250_v32 = vadd.f32 %v1192_v7, %v179_v23 }
  0x24   :  { %v993_v30 = vpack.c.bf16 %v309_v21, %v308_v15  ;;  %v869_v33 = vunpack.c.h.bf16 %v1105_v12  ;;  %v312_v36 = vmax.f32 %v248_v27, 0.0  ;;  %v313_v37 = vmax.f32 %v249_v28, 0.0  ;;  %v1112_v21 = vld [vmem:[%s1502_s0 + $0xb8] sm:$0xff]  }
  0x25   :  { %v998_v35 = vpack.c.bf16 %v311_v26, %v310_v25  ;;  %v181_v38 = vmul.f32 %v868_v24, %v1178_v1  ;;  %v251_v39 = vadd.f32 %v1192_v7, %v180_v31  ;;  %v314_v40 = vmax.f32 %v250_v32, 0.0 }
  0x26   :  { %1132 = vst [vmem:[%s1505_s3 + $0x60] sm:$0xff] %v993_v30   ;;  %v182_v41 = vmul.f32 %v869_v33, %v1178_v1  ;;  %v872_v42 = vunpack.c.l.bf16 %v1106_v29  ;;  %v1003_v44 = vpack.c.bf16 %v313_v37, %v312_v36  ;;  %v873_v46 = vunpack.c.h.bf16 %v1106_v29 }
  0x27   :  { %1133 = vst [vmem:[%s1505_s3 + $0x68] sm:$0xff] %v998_v35   ;;  %v252_v45 = vadd.f32 %v1192_v7, %v181_v38  ;;  %v876_v47 = vunpack.c.l.bf16 %v1107_v34  ;;  %v315_v48 = vmax.f32 %v251_v39, 0.0  ;;  %v877_v51 = vunpack.c.h.bf16 %v1107_v34  ;;  %v1113_v34 = vld [vmem:[%s1502_s0 + $0xc0] sm:$0xff]  }
  0x28   :  { %v253_v49 = vadd.f32 %v1192_v7, %v182_v41  ;;  %v183_v50 = vmul.f32 %v872_v42, %v1178_v1  ;;  %1134 = vst [vmem:[%s1505_s3 + $0x70] sm:$0xff] %v1003_v44   ;;  %v184_v53 = vmul.f32 %v873_v46, %v1178_v1  ;;  %v880_v55 = vunpack.c.l.bf16 %v1108_v43 }
  0x29   :  { %v316_v52 = vmax.f32 %v252_v45, 0.0  ;;  %v185_v54 = vmul.f32 %v876_v47, %v1178_v1  ;;  %v1008_v57 = vpack.c.bf16 %v315_v48, %v314_v40  ;;  %v186_v60 = vmul.f32 %v877_v51, %v1178_v1  ;;  %v1114_v47 = vld [vmem:[%s1502_s0 + $0xc8] sm:$0xff]  }
  0x2a   :  { %v317_v58 = vmax.f32 %v253_v49, 0.0  ;;  %v254_v59 = vadd.f32 %v1192_v7, %v183_v50  ;;  %v255_v61 = vadd.f32 %v1192_v7, %v184_v53  ;;  %v881_v63 = vunpack.c.h.bf16 %v1108_v43 }
  0x2b   :  { %v256_v62 = vadd.f32 %v1192_v7, %v185_v54  ;;  %v187_v0 = vmul.f32 %v880_v55, %v1178_v1  ;;  %1135 = vst [vmem:[%s1505_s3 + $0x78] sm:$0xff] %v1008_v57   ;;  %v257_v5 = vadd.f32 %v1192_v7, %v186_v60  ;;  %v884_v6 = vunpack.c.l.bf16 %v1109_v56 }
  0x2c   :  { %v1013_v3 = vpack.c.bf16 %v317_v58, %v316_v52  ;;  %v318_v4 = vmax.f32 %v254_v59, 0.0  ;;  %v319_v8 = vmax.f32 %v255_v61, 0.0  ;;  %v188_v10 = vmul.f32 %v881_v63, %v1178_v1  ;;  %v1115_v52 = vld [vmem:[%s1502_s0 + $0xd0] sm:$0xff]   ;;  %v1116_v61 = vld [vmem:[%s1502_s0 + $0xd8] sm:$0xff]  }
  0x2d   :  { %v320_v9 = vmax.f32 %v256_v62, 0.0  ;;  %v258_v11 = vadd.f32 %v1192_v7, %v187_v0  ;;  %v321_v12 = vmax.f32 %v257_v5, 0.0  ;;  %v885_v13 = vunpack.c.h.bf16 %v1109_v56 }
  0x2e   :  { %1136 = vst [vmem:[%s1505_s3 + $0x80] sm:$0xff] %v1013_v3   ;;  %v189_v14 = vmul.f32 %v884_v6, %v1178_v1  ;;  %v888_v15 = vunpack.c.l.bf16 %v1110_v2  ;;  %v1018_v17 = vpack.c.bf16 %v319_v8, %v318_v4  ;;  %v259_v18 = vadd.f32 %v1192_v7, %v188_v10 }
  0x2f   :  { %v322_v19 = vmax.f32 %v258_v11, 0.0  ;;  %v889_v20 = vunpack.c.h.bf16 %v1110_v2  ;;  %v1023_v22 = vpack.c.bf16 %v321_v12, %v320_v9  ;;  %v190_v23 = vmul.f32 %v885_v13, %v1178_v1  ;;  %v1117_v12 = vld [vmem:[%s1502_s0 + $0xe0] sm:$0xff]  }
  0x30   :  { %v260_v24 = vadd.f32 %v1192_v7, %v189_v14  ;;  %v191_v25 = vmul.f32 %v888_v15, %v1178_v1  ;;  %1137 = vst [vmem:[%s1505_s3 + $0x88] sm:$0xff] %v1018_v17   ;;  %v323_v26 = vmax.f32 %v259_v18, 0.0  ;;  %v892_v28 = vunpack.c.l.bf16 %v1111_v16 }
  0x31   :  { %v192_v27 = vmul.f32 %v889_v20, %v1178_v1  ;;  %v893_v29 = vunpack.c.h.bf16 %v1111_v16  ;;  %1138 = vst [vmem:[%s1505_s3 + $0x90] sm:$0xff] %v1023_v22   ;;  %v261_v30 = vadd.f32 %v1192_v7, %v190_v23  ;;  %v896_v33 = vunpack.c.l.bf16 %v1112_v21 }
  0x32   :  { %v324_v31 = vmax.f32 %v260_v24, 0.0  ;;  %v262_v32 = vadd.f32 %v1192_v7, %v191_v25  ;;  %v1028_v35 = vpack.c.bf16 %v323_v26, %v322_v19  ;;  %v193_v37 = vmul.f32 %v892_v28, %v1178_v1 }
  0x33   :  { %v263_v36 = vadd.f32 %v1192_v7, %v192_v27  ;;  %v194_v38 = vmul.f32 %v893_v29, %v1178_v1  ;;  %v325_v39 = vmax.f32 %v261_v30, 0.0  ;;  %v897_v41 = vunpack.c.h.bf16 %v1112_v21  ;;  %v1118_v21 = vld [vmem:[%s1502_s0 + $0xe8] sm:$0xff]  }
  0x34   :  { %v326_v40 = vmax.f32 %v262_v32, 0.0  ;;  %v195_v42 = vmul.f32 %v896_v33, %v1178_v1  ;;  %1139 = vst [vmem:[%s1505_s3 + $0x98] sm:$0xff] %v1028_v35   ;;  %v264_v44 = vadd.f32 %v1192_v7, %v193_v37  ;;  %v900_v46 = vunpack.c.l.bf16 %v1113_v34 }
  0x35   :  { %v327_v43 = vmax.f32 %v263_v36, 0.0  ;;  %v265_v45 = vadd.f32 %v1192_v7, %v194_v38  ;;  %v1033_v48 = vpack.c.bf16 %v325_v39, %v324_v31  ;;  %v196_v49 = vmul.f32 %v897_v41, %v1178_v1  ;;  %v1120_v39 = vld [vmem:[%s1502_s0 + $0xf8] sm:$0xff]  }
  0x36   :  { %v266_v50 = vadd.f32 %v1192_v7, %v195_v42  ;;  %v901_v51 = vunpack.c.h.bf16 %v1113_v34  ;;  %v328_v54 = vmax.f32 %v264_v44, 0.0  ;;  %v197_v56 = vmul.f32 %v900_v46, %v1178_v1  ;;  %v1119_v34 = vld [vmem:[%s1502_s0 + $0xf0] sm:$0xff]  }
  0x37   :  { %v1038_v53 = vpack.c.bf16 %v327_v43, %v326_v40  ;;  %v329_v55 = vmax.f32 %v265_v45, 0.0  ;;  %1140 = vst [vmem:[%s1505_s3 + $0xa0] sm:$0xff] %v1033_v48   ;;  %v267_v57 = vadd.f32 %v1192_v7, %v196_v49  ;;  %v904_v60 = vunpack.c.l.bf16 %v1114_v47 }
  0x38   :  { %v330_v58 = vmax.f32 %v266_v50, 0.0  ;;  %v198_v59 = vmul.f32 %v901_v51, %v1178_v1  ;;  %v268_v63 = vadd.f32 %v1192_v7, %v197_v56  ;;  %v905_v0 = vunpack.c.h.bf16 %v1114_v47 }
  0x39   :  { %1141 = vst [vmem:[%s1505_s3 + $0xa8] sm:$0xff] %v1038_v53   ;;  %v1043_v62 = vpack.c.bf16 %v329_v55, %v328_v54  ;;  %v908_v2 = vunpack.c.l.bf16 %v1115_v52  ;;  %v331_v3 = vmax.f32 %v267_v57, 0.0  ;;  %v199_v5 = vmul.f32 %v904_v60, %v1178_v1 }
  0x3a   :  { %v269_v4 = vadd.f32 %v1192_v7, %v198_v59  ;;  %v909_v6 = vunpack.c.h.bf16 %v1115_v52  ;;  %v332_v8 = vmax.f32 %v268_v63, 0.0  ;;  %v200_v9 = vmul.f32 %v905_v0, %v1178_v1 }
  0x3b   :  { %1142 = vst [vmem:[%s1505_s3 + $0xb0] sm:$0xff] %v1043_v62   ;;  %v201_v10 = vmul.f32 %v908_v2, %v1178_v1  ;;  %v912_v11 = vunpack.c.l.bf16 %v1116_v61  ;;  %v1048_v13 = vpack.c.bf16 %v331_v3, %v330_v58  ;;  %v270_v15 = vadd.f32 %v1192_v7, %v199_v5 }
  0x3c   :  { %v333_v14 = vmax.f32 %v269_v4, 0.0  ;;  %v202_v16 = vmul.f32 %v909_v6, %v1178_v1  ;;  %v271_v17 = vadd.f32 %v1192_v7, %v200_v9  ;;  %v913_v19 = vunpack.c.h.bf16 %v1116_v61 }
  0x3d   :  { %v272_v18 = vadd.f32 %v1192_v7, %v201_v10  ;;  %v203_v20 = vmul.f32 %v912_v11, %v1178_v1  ;;  %1143 = vst [vmem:[%s1505_s3 + $0xb8] sm:$0xff] %v1048_v13   ;;  %v334_v23 = vmax.f32 %v270_v15, 0.0  ;;  %v916_v25 = vunpack.c.l.bf16 %v1117_v12 }
  0x3e   :  { %v1053_v22 = vpack.c.bf16 %v333_v14, %v332_v8  ;;  %v273_v24 = vadd.f32 %v1192_v7, %v202_v16  ;;  %v335_v26 = vmax.f32 %v271_v17, 0.0  ;;  %v204_v28 = vmul.f32 %v913_v19, %v1178_v1 }
  0x3f   :  { %v336_v27 = vmax.f32 %v272_v18, 0.0  ;;  %v274_v29 = vadd.f32 %v1192_v7, %v203_v20  ;;  %v917_v31 = vunpack.c.h.bf16 %v1117_v12  ;;  %v205_v32 = vmul.f32 %v916_v25, %v1178_v1 }
  0x40   :  { %1144 = vst [vmem:[%s1505_s3 + $0xc0] sm:$0xff] %v1053_v22   ;;  %v337_v30 = vmax.f32 %v273_v24, 0.0  ;;  %v920_v33 = vunpack.c.l.bf16 %v1118_v21  ;;  %v1058_v35 = vpack.c.bf16 %v335_v26, %v334_v23  ;;  %v275_v36 = vadd.f32 %v1192_v7, %v204_v28 }
  0x41   :  { %v338_v37 = vmax.f32 %v274_v29, 0.0  ;;  %v921_v38 = vunpack.c.h.bf16 %v1118_v21  ;;  %v206_v41 = vmul.f32 %v917_v31, %v1178_v1  ;;  %v276_v42 = vadd.f32 %v1192_v7, %v205_v32 }
  0x42   :  { %v1063_v40 = vpack.c.bf16 %v337_v30, %v336_v27  ;;  %v207_v43 = vmul.f32 %v920_v33, %v1178_v1  ;;  %1145 = vst [vmem:[%s1505_s3 + $0xc8] sm:$0xff] %v1058_v35   ;;  %v339_v44 = vmax.f32 %v275_v36, 0.0  ;;  %v924_v46 = vunpack.c.l.bf16 %v1119_v34 }
  0x43   :  { %v208_v45 = vmul.f32 %v921_v38, %v1178_v1  ;;  %v925_v47 = vunpack.c.h.bf16 %v1119_v34  ;;  %v277_v48 = vadd.f32 %v1192_v7, %v206_v41  ;;  %v340_v49 = vmax.f32 %v276_v42, 0.0 }
  0x44   :  { %1146 = vst [vmem:[%s1505_s3 + $0xd0] sm:$0xff] %v1063_v40   ;;  %v278_v50 = vadd.f32 %v1192_v7, %v207_v43  ;;  %v928_v51 = vunpack.c.l.bf16 %v1120_v39  ;;  %v1068_v52 = vpack.c.bf16 %v339_v44, %v338_v37  ;;  %v209_v54 = vmul.f32 %v924_v46, %v1178_v1 }
  0x45   :  { %v279_v53 = vadd.f32 %v1192_v7, %v208_v45  ;;  %v210_v55 = vmul.f32 %v925_v47, %v1178_v1  ;;  %v341_v56 = vmax.f32 %v277_v48, 0.0  ;;  %v929_v58 = vunpack.c.h.bf16 %v1120_v39 }
  0x46   :  { %v342_v57 = vmax.f32 %v278_v50, 0.0  ;;  %v211_v59 = vmul.f32 %v928_v51, %v1178_v1  ;;  %1147 = vst [vmem:[%s1505_s3 + $0xd8] sm:$0xff] %v1068_v52   ;;  %v280_v61 = vadd.f32 %v1192_v7, %v209_v54 }
  0x47   :  { %v343_v60 = vmax.f32 %v279_v53, 0.0  ;;  %v281_v62 = vadd.f32 %v1192_v7, %v210_v55  ;;  %v1073_v63 = vpack.c.bf16 %v341_v56, %v340_v49  ;;  %v212_v0 = vmul.f32 %v929_v58, %v1178_v1 }
  0x48   :  { %v282_v2 = vadd.f32 %v1192_v7, %v211_v59  ;;  %v344_v4 = vmax.f32 %v280_v61, 0.0 }
  0x49   :  { %v1078_v3 = vpack.c.bf16 %v343_v60, %v342_v57  ;;  %v345_v5 = vmax.f32 %v281_v62, 0.0  ;;  %1148 = vst [vmem:[%s1505_s3 + $0xe0] sm:$0xff] %v1073_v63   ;;  %v283_v6 = vadd.f32 %v1192_v7, %v212_v0 }
  0x4a   :  { %v346_v8 = vmax.f32 %v282_v2, 0.0 }
  0x4b   :  { %1149 = vst [vmem:[%s1505_s3 + $0xe8] sm:$0xff] %v1078_v3   ;;  %v1083_v9 = vpack.c.bf16 %v345_v5, %v344_v4  ;;  %v347_v10 = vmax.f32 %v283_v6, 0.0 }
  0x4d   :  { %1150 = vst [vmem:[%s1505_s3 + $0xf0] sm:$0xff] %v1083_v9   ;;  %v1088_v1 = vpack.c.bf16 %v347_v10, %v346_v8 }
  0x4f   :  { %1151 = vst [vmem:[%s1505_s3 + $0xf8] sm:$0xff] %v1088_v1  }

// kernel: generator_forward.16
= control target key start
LH: loop header
LB: loop body
LE: loop exit
PB: predicated region body
PF: predicated region fallthrough
CT: control target
= control target key end

     0   :  { %s3435_s9 = smov 0   ;;  %s3437_s10 = smov 0   ;;  %s3709_s0 = inlined_call_operand.vmem [shape: bf16[4,512,512], index: 0, kind: input, shape index: {}]   ;;  %s3710_s1 = inlined_call_operand.vmem [shape: bf16[4,512,128], index: 1, kind: input, shape index: {}]   ;;  %s3711_s2 = inlined_call_operand.vmem [shape: bf16[4,512,128], index: 2, kind: output, shape index: {}]  }
   0x1   :  { %s3439_s11 = smov 0  }
   0x2 LB: > { %s38_s12 = sadd.s32 1, %s3413_s10  ;;  %p2655_p0 = scmp.ge.s32.totalorder %s3417_s11, 1  ;;  %s3417_s11 = sphi %s3439_s11, %s12_s11   ;;  %s3413_s10 = sphi %s3437_s10, %s3713_s10   ;;  %s3409_s9 = sphi %s3435_s9, %s3712_s9  }
   0x3   : > { %p40_p1 = scmp.ge.s32.totalorder %s38_s12, 4  ;;  %p179_p2 = scmp.lt.s32.totalorder %s3417_s11, 5 }
   0x5   : > { %s3715_s12 = smov (%p40_p1, %s38_s12), 0  ;;  %p180_p3 = pnand %p2655_p0, %p179_p2 }
   0x6   : > { %p231_p4 = scmp.lt.s32.totalorder (!%p180_p3), %s3409_s9, 3 }
   0x7   : > { %183 = sbr.rel (%p180_p3) target bundleno = 530 (0x212), region = 28 }
   0xc   : > { %v3419_v0 = vmov 0   ;;  %s3717_s9 = smov (!%p231_p4, %s3409_s9), 3 }
   0xd   : > { %1428 = vmatprep.subr.bf16.mxu0 %v3419_v0  ;;  %1717 = vmatprep.subr.bf16.mxu1 %v3419_v0  ;;  %s2889_s13 = sshll.u32 %s3717_s9, 8  ;;  %s2888_s17 = sshll.u32 %s3717_s9, 10 }
   0xe   : > { %s3463_s16 = scalar_lea.vmem %s3710_s1, %s2889_s13  ;;  %s3499_s20 = scalar_lea.vmem %s3709_s0, %s2888_s17 }
   0xf   : > { %v3171_v1 = vld [vmem:[%s3463_s16 + $0x38] sm:$0xff]   ;;  %v3173_v3 = vld [vmem:[%s3463_s16 + $0x30] sm:$0xff]   ;;  %v3175_v5 = vld [vmem:[%s3463_s16 + $0x28] sm:$0xff]   ;;  %s3644_s23 = scalar_lea.vmem %s3711_s2, %s2889_s13 }
  0x10   : > { %v3172_v2 = vld [vmem:[%s3463_s16 + $0xb8] sm:$0xff]   ;;  %1429 = vmatpush1.bf16.msra.mxu0 %v3171_v1  ;;  %v3174_v4 = vld [vmem:[%s3463_s16 + $0xb0] sm:$0xff]   ;;  %v3176_v6 = vld [vmem:[%s3463_s16 + $0xa8] sm:$0xff]  }
  0x11   : > { %1718 = vmatpush1.bf16.msra.mxu1 %v3172_v2  ;;  %1430 = vmatprep.subr.bf16.mxu0 %v3419_v0  ;;  %v3177_v7 = vld [vmem:[%s3463_s16 + $0x20] sm:$0xff]   ;;  %v3179_v9 = vld [vmem:[%s3463_s16 + $0x18] sm:$0xff]   ;;  %v3181_v11 = vld [vmem:[%s3463_s16 + $0x10] sm:$0xff]  }
  0x12   : > { %1719 = vmatprep.subr.bf16.mxu1 %v3419_v0  ;;  %v3178_v8 = vld [vmem:[%s3463_s16 + $0xa0] sm:$0xff]   ;;  %v3180_v10 = vld [vmem:[%s3463_s16 + $0x98] sm:$0xff]   ;;  %v3182_v12 = vld [vmem:[%s3463_s16 + $0x90] sm:$0xff]  }
  0x13   : > { %v3183_v13 = vld [vmem:[%s3463_s16 + $0x8] sm:$0xff]   ;;  %v3185_v15 = vld [vmem:[%s3463_s16] sm:$0xff]   ;;  %v3187_v17 = vld [vmem:[%s3463_s16 + $0x78] sm:$0xff]  }
  0x14   : > { %1431 = vmatpush1.bf16.msra.mxu0 %v3173_v3  ;;  %v3184_v14 = vld [vmem:[%s3463_s16 + $0x88] sm:$0xff]   ;;  %v3186_v16 = vld [vmem:[%s3463_s16 + $0x80] sm:$0xff]   ;;  %v3188_v18 = vld [vmem:[%s3463_s16 + $0xf8] sm:$0xff]  }
  0x15   : > { %1720 = vmatpush1.bf16.msra.mxu1 %v3174_v4  ;;  %1432 = vmatprep.subr.bf16.mxu0 %v3419_v0  ;;  %v3205_v19 = vld [vmem:[%s3499_s20 + $0x4] ss:$16 sps:$4 sm:$0xff]   ;;  %v3208_v21 = vld [vmem:[%s3499_s20 + $0xc] ss:$16 sps:$4 sm:$0xff]   ;;  %v3203_v35 = vld [vmem:[%s3499_s20] ss:$16 sps:$4 sm:$0xff]  }
  0x16   : > { %1721 = vmatprep.subr.bf16.mxu1 %v3419_v0  ;;  %v3189_v20 = vld [vmem:[%s3463_s16 + $0x70] sm:$0xff]   ;;  %1460 = vmatprep.mubr.bf16.mxu0 %v3205_v19  ;;  %v3191_v23 = vld [vmem:[%s3463_s16 + $0x68] sm:$0xff]   ;;  %v3193_v25 = vld [vmem:[%s3463_s16 + $0x60] sm:$0xff]  }
  0x17   : > { %v3190_v22 = vld [vmem:[%s3463_s16 + $0xf0] sm:$0xff]   ;;  %1749 = vmatprep.mubr.bf16.mxu1 %v3208_v21  ;;  %v3192_v24 = vld [vmem:[%s3463_s16 + $0xe8] sm:$0xff]   ;;  %v3194_v26 = vld [vmem:[%s3463_s16 + $0xe0] sm:$0xff]  }
  0x18   : > { %1433 = vmatpush1.bf16.msra.mxu0 %v3175_v5  ;;  %v3195_v27 = vld [vmem:[%s3463_s16 + $0x58] sm:$0xff]   ;;  %v3197_v29 = vld [vmem:[%s3463_s16 + $0x50] sm:$0xff]   ;;  %v3199_v31 = vld [vmem:[%s3463_s16 + $0x48] sm:$0xff]  }
  0x19   : > { %1722 = vmatpush1.bf16.msra.mxu1 %v3176_v6  ;;  %1434 = vmatprep.subr.bf16.mxu0 %v3419_v0  ;;  %v3196_v28 = vld [vmem:[%s3463_s16 + $0xd8] sm:$0xff]   ;;  %v3198_v30 = vld [vmem:[%s3463_s16 + $0xd0] sm:$0xff]   ;;  %v3200_v32 = vld [vmem:[%s3463_s16 + $0xc8] sm:$0xff]  }
  0x1a   : > { %1723 = vmatprep.subr.bf16.mxu1 %v3419_v0  ;;  %v3201_v33 = vld [vmem:[%s3463_s16 + $0x40] sm:$0xff]   ;;  %v3206_v36 = vld [vmem:[%s3499_s20 + $0x8] ss:$16 sps:$4 sm:$0xff]   ;;  %v3211_v38 = vld [vmem:[%s3499_s20 + $0x2c] ss:$16 sps:$4 sm:$0xff]  }
  0x1b   : > { %v3202_v34 = vld [vmem:[%s3463_s16 + $0xc0] sm:$0xff]   ;;  %v3214_v40 = vld [vmem:[%s3499_s20 + $0x28] ss:$16 sps:$4 sm:$0xff]   ;;  %v3217_v42 = vld [vmem:[%s3499_s20 + $0x4c] ss:$16 sps:$4 sm:$0xff]  }
  0x1c   : > { %1435 = vmatpush1.bf16.msra.mxu0 %v3177_v7  ;;  %v3209_v37 = vld [vmem:[%s3499_s20 + $0x24] ss:$16 sps:$4 sm:$0xff]   ;;  %v3213_v39 = vld [vmem:[%s3499_s20 + $0x20] ss:$16 sps:$4 sm:$0xff]   ;;  %v3220_v44 = vld [vmem:[%s3499_s20 + $0x48] ss:$16 sps:$4 sm:$0xff]  }
  0x1d   : > { %1724 = vmatpush1.bf16.msra.mxu1 %v3178_v8  ;;  %1436 = vmatprep.subr.bf16.mxu0 %v3419_v0  ;;  %v3215_v41 = vld [vmem:[%s3499_s20 + $0x44] ss:$16 sps:$4 sm:$0xff]   ;;  %v3219_v43 = vld [vmem:[%s3499_s20 + $0x40] ss:$16 sps:$4 sm:$0xff]   ;;  %v3223_v46 = vld [vmem:[%s3499_s20 + $0x6c] ss:$16 sps:$4 sm:$0xff]  }
  0x1e   : > { %1725 = vmatprep.subr.bf16.mxu1 %v3419_v0  ;;  %v3221_v45 = vld [vmem:[%s3499_s20 + $0x64] ss:$16 sps:$4 sm:$0xff]   ;;  %v3225_v47 = vld [vmem:[%s3499_s20 + $0x60] ss:$16 sps:$4 sm:$0xff]   ;;  %v3226_v48 = vld [vmem:[%s3499_s20 + $0x68] ss:$16 sps:$4 sm:$0xff]  }
  0x1f   : > { %v3227_v49 = vld [vmem:[%s3499_s20 + $0x84] ss:$16 sps:$4 sm:$0xff]   ;;  %v3229_v50 = vld [vmem:[%s3499_s20 + $0x8c] ss:$16 sps:$4 sm:$0xff]   ;;  %v3231_v51 = vld [vmem:[%s3499_s20 + $0x80] ss:$16 sps:$4 sm:$0xff]  }
  0x20   : > { %1437 = vmatpush1.bf16.msra.mxu0 %v3179_v9  ;;  %v3232_v52 = vld [vmem:[%s3499_s20 + $0x88] ss:$16 sps:$4 sm:$0xff]   ;;  %v3233_v53 = vld [vmem:[%s3499_s20 + $0xa4] ss:$16 sps:$4 sm:$0xff]   ;;  %v3235_v54 = vld [vmem:[%s3499_s20 + $0xac] ss:$16 sps:$4 sm:$0xff]  }
  0x21   : > { %1726 = vmatpush1.bf16.msra.mxu1 %v3180_v10  ;;  %1438 = vmatprep.subr.bf16.mxu0 %v3419_v0  ;;  %v3237_v55 = vld [vmem:[%s3499_s20 + $0xa0] ss:$16 sps:$4 sm:$0xff]   ;;  %v3238_v56 = vld [vmem:[%s3499_s20 + $0xa8] ss:$16 sps:$4 sm:$0xff]   ;;  %v3239_v57 = vld [vmem:[%s3499_s20 + $0xc4] ss:$16 sps:$4 sm:$0xff]  }
  0x22   : > { %1727 = vmatprep.subr.bf16.mxu1 %v3419_v0  ;;  %v3241_v58 = vld [vmem:[%s3499_s20 + $0xcc] ss:$16 sps:$4 sm:$0xff]   ;;  %v3243_v59 = vld [vmem:[%s3499_s20 + $0xc0] ss:$16 sps:$4 sm:$0xff]   ;;  %v3244_v60 = vld [vmem:[%s3499_s20 + $0xc8] ss:$16 sps:$4 sm:$0xff]  }
  0x23   : > { %v3245_v61 = vld [vmem:[%s3499_s20 + $0xe4] ss:$16 sps:$4 sm:$0xff]   ;;  %v3247_v62 = vld [vmem:[%s3499_s20 + $0xec] ss:$16 sps:$4 sm:$0xff]   ;;  %v3249_v63 = vld [vmem:[%s3499_s20 + $0xe0] ss:$16 sps:$4 sm:$0xff]  }
  0x24   : > { %1439 = vmatpush1.bf16.msra.mxu0 %v3181_v11  ;;  %v3251_v1 = vld [vmem:[%s3499_s20 + $0x104] ss:$16 sps:$4 sm:$0xff]   ;;  %v3253_v2 = vld [vmem:[%s3499_s20 + $0x10c] ss:$16 sps:$4 sm:$0xff]   ;;  %v3255_v3 = vld [vmem:[%s3499_s20 + $0x100] ss:$16 sps:$4 sm:$0xff]  }
  0x25   : > { %1728 = vmatpush1.bf16.msra.mxu1 %v3182_v12  ;;  %1440 = vmatprep.subr.bf16.mxu0 %v3419_v0  ;;  %v3256_v4 = vld [vmem:[%s3499_s20 + $0x108] ss:$16 sps:$4 sm:$0xff]   ;;  %v3257_v5 = vld [vmem:[%s3499_s20 + $0x124] ss:$16 sps:$4 sm:$0xff]   ;;  %v3259_v6 = vld [vmem:[%s3499_s20 + $0x12c] ss:$16 sps:$4 sm:$0xff]  }
  0x26   : > { %1729 = vmatprep.subr.bf16.mxu1 %v3419_v0  ;;  %v3261_v7 = vld [vmem:[%s3499_s20 + $0x120] ss:$16 sps:$4 sm:$0xff]   ;;  %v3262_v8 = vld [vmem:[%s3499_s20 + $0x128] ss:$16 sps:$4 sm:$0xff]   ;;  %v3263_v9 = vld [vmem:[%s3499_s20 + $0x144] ss:$16 sps:$4 sm:$0xff]  }
  0x27   : > { %v3265_v10 = vld [vmem:[%s3499_s20 + $0x14c] ss:$16 sps:$4 sm:$0xff]   ;;  %v3267_v11 = vld [vmem:[%s3499_s20 + $0x140] ss:$16 sps:$4 sm:$0xff]   ;;  %v3268_v12 = vld [vmem:[%s3499_s20 + $0x148] ss:$16 sps:$4 sm:$0xff]  }
  0x28   : > { %1441 = vmatpush1.bf16.msra.mxu0 %v3183_v13  ;;  %v3269_v13 = vld [vmem:[%s3499_s20 + $0x164] ss:$16 sps:$4 sm:$0xff]   ;;  %v3279_v19 = vld [vmem:[%s3499_s20 + $0x180] ss:$16 sps:$4 sm:$0xff]  }
  0x29   : > { %1730 = vmatpush1.bf16.msra.mxu1 %v3184_v14  ;;  %1442 = vmatprep.subr.bf16.mxu0 %v3419_v0  ;;  %v3271_v14 = vld [vmem:[%s3499_s20 + $0x16c] ss:$16 sps:$4 sm:$0xff]   ;;  %v3281_v21 = vld [vmem:[%s3499_s20 + $0x1a4] ss:$16 sps:$4 sm:$0xff]  }
  0x2a   : > { %1731 = vmatprep.subr.bf16.mxu1 %v3419_v0 }
  0x2c   : > { %1443 = vmatpush1.bf16.msra.mxu0 %v3185_v15  ;;  %v3273_v15 = vld [vmem:[%s3499_s20 + $0x160] ss:$16 sps:$4 sm:$0xff]  }
  0x2d   : > { %1732 = vmatpush1.bf16.msra.mxu1 %v3186_v16  ;;  %1444 = vmatprep.subr.bf16.mxu0 %v3419_v0  ;;  %v3274_v16 = vld [vmem:[%s3499_s20 + $0x168] ss:$16 sps:$4 sm:$0xff]  }
  0x2e   : > { %1733 = vmatprep.subr.bf16.mxu1 %v3419_v0 }
  0x30   : > { %1445 = vmatpush2.bf16.msra.mxu0 %v3187_v17  ;;  %v3275_v17 = vld [vmem:[%s3499_s20 + $0x184] ss:$16 sps:$4 sm:$0xff]  }
  0x31   : > { %1734 = vmatpush2.bf16.msra.mxu1 %v3188_v18  ;;  %1446 = vmatprep.subr.bf16.mxu0 %v3419_v0  ;;  %v3277_v18 = vld [vmem:[%s3499_s20 + $0x18c] ss:$16 sps:$4 sm:$0xff]  }
  0x32   : > { %1735 = vmatprep.subr.bf16.mxu1 %v3419_v0 }
  0x34   : > { %1447 = vmatpush2.bf16.msra.mxu0 %v3189_v20  ;;  %v3280_v20 = vld [vmem:[%s3499_s20 + $0x188] ss:$16 sps:$4 sm:$0xff]  }
  0x35   : > { %1736 = vmatpush2.bf16.msra.mxu1 %v3190_v22  ;;  %1448 = vmatprep.subr.bf16.mxu0 %v3419_v0  ;;  %v3283_v22 = vld [vmem:[%s3499_s20 + $0x1ac] ss:$16 sps:$4 sm:$0xff]  }
  0x36   : > { %1737 = vmatprep.subr.bf16.mxu1 %v3419_v0 }
  0x38   : > { %1449 = vmatpush2.bf16.msra.mxu0 %v3191_v23  ;;  %v3285_v23 = vld [vmem:[%s3499_s20 + $0x1a0] ss:$16 sps:$4 sm:$0xff]  }
  0x39   : > { %1738 = vmatpush2.bf16.msra.mxu1 %v3192_v24  ;;  %1450 = vmatprep.subr.bf16.mxu0 %v3419_v0  ;;  %v3286_v24 = vld [vmem:[%s3499_s20 + $0x1a8] ss:$16 sps:$4 sm:$0xff]  }
  0x3a   : > { %1739 = vmatprep.subr.bf16.mxu1 %v3419_v0 }
  0x3c   : > { %1451 = vmatpush2.bf16.msra.mxu0 %v3193_v25  ;;  %v3287_v25 = vld [vmem:[%s3499_s20 + $0x1c4] ss:$16 sps:$4 sm:$0xff]  }
  0x3d   : > { %1740 = vmatpush2.bf16.msra.mxu1 %v3194_v26  ;;  %1452 = vmatprep.subr.bf16.mxu0 %v3419_v0  ;;  %v3289_v26 = vld [vmem:[%s3499_s20 + $0x1cc] ss:$16 sps:$4 sm:$0xff]  }
  0x3e   : > { %1741 = vmatprep.subr.bf16.mxu1 %v3419_v0 }
  0x40   : > { %1453 = vmatpush2.bf16.msra.mxu0 %v3195_v27  ;;  %v3291_v27 = vld [vmem:[%s3499_s20 + $0x1c0] ss:$16 sps:$4 sm:$0xff]  }
  0x41   : > { %1742 = vmatpush2.bf16.msra.mxu1 %v3196_v28  ;;  %1454 = vmatprep.subr.bf16.mxu0 %v3419_v0  ;;  %v3292_v28 = vld [vmem:[%s3499_s20 + $0x1c8] ss:$16 sps:$4 sm:$0xff]  }
  0x42   : > { %1743 = vmatprep.subr.bf16.mxu1 %v3419_v0 }
  0x44   : > { %1455 = vmatpush2.bf16.msra.mxu0 %v3197_v29  ;;  %v3293_v29 = vld [vmem:[%s3499_s20 + $0x1e4] ss:$16 sps:$4 sm:$0xff]  }
  0x45   : > { %1744 = vmatpush2.bf16.msra.mxu1 %v3198_v30  ;;  %1456 = vmatprep.subr.bf16.mxu0 %v3419_v0  ;;  %v3295_v30 = vld [vmem:[%s3499_s20 + $0x1ec] ss:$16 sps:$4 sm:$0xff]  }
  0x46   : > { %1745 = vmatprep.subr.bf16.mxu1 %v3419_v0 }
  0x48   : > { %1457 = vmatpush2.bf16.msra.mxu0 %v3199_v31  ;;  %v3297_v31 = vld [vmem:[%s3499_s20 + $0x1e0] ss:$16 sps:$4 sm:$0xff]  }
  0x49   : > { %1746 = vmatpush2.bf16.msra.mxu1 %v3200_v32  ;;  %1458 = vmatprep.subr.bf16.mxu0 %v3419_v0  ;;  %v3298_v32 = vld [vmem:[%s3499_s20 + $0x1e8] ss:$16 sps:$4 sm:$0xff]  }
  0x4a   : > { %1747 = vmatprep.subr.bf16.mxu1 %v3419_v0  ;;  %v3250_v0 = vld [vmem:[%s3499_s20 + $0xe8] ss:$16 sps:$4 sm:$0xff]  }
  0x4c   : > { %1459 = vmatpush2.bf16.msra.mxu0 %v3201_v33  ;;  %v3299_v33 = vld [vmem:[%s3499_s20 + $0x204] ss:$16 sps:$4 sm:$0xff]  }
  0x4d   : > { %1748 = vmatpush2.bf16.msra.mxu1 %v3202_v34  ;;  %v3301_v34 = vld [vmem:[%s3499_s20 + $0x20c] ss:$16 sps:$4 sm:$0xff]  }
  0x4f   : > { %1461 = vmatmul.mubr.bf16.vlgmr.msra.gmra.mxu0 %v3203_v35  ;;  %v3303_v35 = vld [vmem:[%s3499_s20 + $0x200] ss:$16 sps:$4 sm:$0xff]  }
  0x50   : > { %1750 = vmatmul.mubr.bf16.vlgmr.msra.gmra.mxu1 %v3206_v36  ;;  %1468 = vmatprep.mubr.bf16.mxu0 %v3209_v37  ;;  %v3304_v36 = vld [vmem:[%s3499_s20 + $0x208] ss:$16 sps:$4 sm:$0xff]   ;;  %v3305_v37 = vld [vmem:[%s3499_s20 + $0x224] ss:$16 sps:$4 sm:$0xff]  }
  0x51   : > { %1757 = vmatprep.mubr.bf16.mxu1 %v3211_v38  ;;  %v3307_v38 = vld [vmem:[%s3499_s20 + $0x22c] ss:$16 sps:$4 sm:$0xff]  }
  0x57   : > { %1469 = vmatmul.mubr.bf16.gmra.mxu0 %v3213_v39  ;;  %v3309_v39 = vld [vmem:[%s3499_s20 + $0x220] ss:$16 sps:$4 sm:$0xff]  }
  0x58   : > { %1758 = vmatmul.mubr.bf16.gmra.mxu1 %v3214_v40  ;;  %1476 = vmatprep.mubr.bf16.mxu0 %v3215_v41  ;;  %v3310_v40 = vld [vmem:[%s3499_s20 + $0x228] ss:$16 sps:$4 sm:$0xff]   ;;  %v3311_v41 = vld [vmem:[%s3499_s20 + $0x244] ss:$16 sps:$4 sm:$0xff]  }
  0x59   : > { %1765 = vmatprep.mubr.bf16.mxu1 %v3217_v42  ;;  %v3313_v42 = vld [vmem:[%s3499_s20 + $0x24c] ss:$16 sps:$4 sm:$0xff]  }
  0x5f   : > { %1477 = vmatmul.mubr.bf16.gmra.mxu0 %v3219_v43  ;;  %v3315_v43 = vld [vmem:[%s3499_s20 + $0x240] ss:$16 sps:$4 sm:$0xff]  }
  0x60   : > { %1766 = vmatmul.mubr.bf16.gmra.mxu1 %v3220_v44  ;;  %1484 = vmatprep.mubr.bf16.mxu0 %v3221_v45  ;;  %v3316_v44 = vld [vmem:[%s3499_s20 + $0x248] ss:$16 sps:$4 sm:$0xff]   ;;  %v3317_v45 = vld [vmem:[%s3499_s20 + $0x264] ss:$16 sps:$4 sm:$0xff]  }
  0x61   : > { %1773 = vmatprep.mubr.bf16.mxu1 %v3223_v46  ;;  %v3319_v46 = vld [vmem:[%s3499_s20 + $0x26c] ss:$16 sps:$4 sm:$0xff]  }
  0x67   : > { %1485 = vmatmul.mubr.bf16.gmra.mxu0 %v3225_v47  ;;  %v3321_v47 = vld [vmem:[%s3499_s20 + $0x260] ss:$16 sps:$4 sm:$0xff]  }
  0x68   : > { %1774 = vmatmul.mubr.bf16.gmra.mxu1 %v3226_v48  ;;  %1492 = vmatprep.mubr.bf16.mxu0 %v3227_v49  ;;  %v3322_v48 = vld [vmem:[%s3499_s20 + $0x268] ss:$16 sps:$4 sm:$0xff]   ;;  %v3323_v49 = vld [vmem:[%s3499_s20 + $0x284] ss:$16 sps:$4 sm:$0xff]  }
  0x69   : > { %1781 = vmatprep.mubr.bf16.mxu1 %v3229_v50  ;;  %v3325_v50 = vld [vmem:[%s3499_s20 + $0x28c] ss:$16 sps:$4 sm:$0xff]  }
  0x6f   : > { %1493 = vmatmul.mubr.bf16.gmra.mxu0 %v3231_v51  ;;  %v3327_v51 = vld [vmem:[%s3499_s20 + $0x280] ss:$16 sps:$4 sm:$0xff]  }
  0x70   : > { %1782 = vmatmul.mubr.bf16.gmra.mxu1 %v3232_v52  ;;  %1500 = vmatprep.mubr.bf16.mxu0 %v3233_v53  ;;  %v3328_v52 = vld [vmem:[%s3499_s20 + $0x288] ss:$16 sps:$4 sm:$0xff]   ;;  %v3329_v53 = vld [vmem:[%s3499_s20 + $0x2a4] ss:$16 sps:$4 sm:$0xff]  }
  0x71   : > { %1789 = vmatprep.mubr.bf16.mxu1 %v3235_v54  ;;  %v3331_v54 = vld [vmem:[%s3499_s20 + $0x2ac] ss:$16 sps:$4 sm:$0xff]  }
  0x77   : > { %1501 = vmatmul.mubr.bf16.gmra.mxu0 %v3237_v55  ;;  %v3333_v55 = vld [vmem:[%s3499_s20 + $0x2a0] ss:$16 sps:$4 sm:$0xff]  }
  0x78   : > { %1790 = vmatmul.mubr.bf16.gmra.mxu1 %v3238_v56  ;;  %1508 = vmatprep.mubr.bf16.mxu0 %v3239_v57  ;;  %v3334_v56 = vld [vmem:[%s3499_s20 + $0x2a8] ss:$16 sps:$4 sm:$0xff]   ;;  %v3335_v57 = vld [vmem:[%s3499_s20 + $0x2c4] ss:$16 sps:$4 sm:$0xff]  }
  0x79   : > { %1797 = vmatprep.mubr.bf16.mxu1 %v3241_v58  ;;  %v3337_v58 = vld [vmem:[%s3499_s20 + $0x2cc] ss:$16 sps:$4 sm:$0xff]  }
  0x7f   : > { %1509 = vmatmul.mubr.bf16.gmra.mxu0 %v3243_v59  ;;  %v3339_v59 = vld [vmem:[%s3499_s20 + $0x2c0] ss:$16 sps:$4 sm:$0xff]  }
  0x80   : > { %1798 = vmatmul.mubr.bf16.gmra.mxu1 %v3244_v60  ;;  %1516 = vmatprep.mubr.bf16.mxu0 %v3245_v61  ;;  %v3340_v60 = vld [vmem:[%s3499_s20 + $0x2c8] ss:$16 sps:$4 sm:$0xff]   ;;  %v3341_v61 = vld [vmem:[%s3499_s20 + $0x2e4] ss:$16 sps:$4 sm:$0xff]  }
  0x81   : > { %1805 = vmatprep.mubr.bf16.mxu1 %v3247_v62  ;;  %v3343_v62 = vld [vmem:[%s3499_s20 + $0x2ec] ss:$16 sps:$4 sm:$0xff]  }
  0x87   : > { %1517 = vmatmul.mubr.bf16.gmra.mxu0 %v3249_v63  ;;  %v3345_v63 = vld [vmem:[%s3499_s20 + $0x2e0] ss:$16 sps:$4 sm:$0xff]  }
  0x88   : > { %1806 = vmatmul.mubr.bf16.gmra.mxu1 %v3250_v0  ;;  %1524 = vmatprep.mubr.bf16.mxu0 %v3251_v1  ;;  %v3346_v0 = vld [vmem:[%s3499_s20 + $0x2e8] ss:$16 sps:$4 sm:$0xff]   ;;  %v3347_v1 = vld [vmem:[%s3499_s20 + $0x304] ss:$16 sps:$4 sm:$0xff]  }
  0x89   : > { %1813 = vmatprep.mubr.bf16.mxu1 %v3253_v2  ;;  %v3349_v2 = vld [vmem:[%s3499_s20 + $0x30c] ss:$16 sps:$4 sm:$0xff]  }
  0x8f   : > { %1525 = vmatmul.mubr.bf16.gmra.mxu0 %v3255_v3  ;;  %v3351_v3 = vld [vmem:[%s3499_s20 + $0x300] ss:$16 sps:$4 sm:$0xff]  }
  0x90   : > { %1814 = vmatmul.mubr.bf16.gmra.mxu1 %v3256_v4  ;;  %1532 = vmatprep.mubr.bf16.mxu0 %v3257_v5  ;;  %v3352_v4 = vld [vmem:[%s3499_s20 + $0x308] ss:$16 sps:$4 sm:$0xff]   ;;  %v3353_v5 = vld [vmem:[%s3499_s20 + $0x324] ss:$16 sps:$4 sm:$0xff]  }
  0x91   : > { %1821 = vmatprep.mubr.bf16.mxu1 %v3259_v6  ;;  %v3355_v6 = vld [vmem:[%s3499_s20 + $0x32c] ss:$16 sps:$4 sm:$0xff]  }
  0x97   : > { %1533 = vmatmul.mubr.bf16.gmra.mxu0 %v3261_v7 }
  0x98   : > { %1822 = vmatmul.mubr.bf16.gmra.mxu1 %v3262_v8  ;;  %1540 = vmatprep.mubr.bf16.mxu0 %v3263_v9 }
  0x99   : > { %1829 = vmatprep.mubr.bf16.mxu1 %v3265_v10 }
  0x9f   : > { %1541 = vmatmul.mubr.bf16.gmra.mxu0 %v3267_v11 }
  0xa0   : > { %1830 = vmatmul.mubr.bf16.gmra.mxu1 %v3268_v12  ;;  %1548 = vmatprep.mubr.bf16.mxu0 %v3269_v13  ;;  %v3357_v12 = vld [vmem:[%s3499_s20 + $0x320] ss:$16 sps:$4 sm:$0xff]  }
  0xa1   : > { %1837 = vmatprep.mubr.bf16.mxu1 %v3271_v14  ;;  %v3358_v14 = vld [vmem:[%s3499_s20 + $0x328] ss:$16 sps:$4 sm:$0xff]  }
  0xa7   : > { %1549 = vmatmul.mubr.bf16.gmra.mxu0 %v3273_v15  ;;  %v3359_v15 = vld [vmem:[%s3499_s20 + $0x344] ss:$16 sps:$4 sm:$0xff]  }
  0xa8   : > { %1838 = vmatmul.mubr.bf16.gmra.mxu1 %v3274_v16  ;;  %1556 = vmatprep.mubr.bf16.mxu0 %v3275_v17 }
  0xa9   : > { %1845 = vmatprep.mubr.bf16.mxu1 %v3277_v18 }
  0xaf   : > { %1557 = vmatmul.mubr.bf16.gmra.mxu0 %v3279_v19  ;;  %v3361_v19 = vld [vmem:[%s3499_s20 + $0x34c] ss:$16 sps:$4 sm:$0xff]  }
  0xb0   : > { %1846 = vmatmul.mubr.bf16.gmra.mxu1 %v3280_v20  ;;  %1564 = vmatprep.mubr.bf16.mxu0 %v3281_v21 }
  0xb1   : > { %1853 = vmatprep.mubr.bf16.mxu1 %v3283_v22 }
  0xb7   : > { %1565 = vmatmul.mubr.bf16.gmra.mxu0 %v3285_v23 }
  0xb8   : > { %1854 = vmatmul.mubr.bf16.gmra.mxu1 %v3286_v24  ;;  %1572 = vmatprep.mubr.bf16.mxu0 %v3287_v25 }
  0xb9   : > { %1861 = vmatprep.mubr.bf16.mxu1 %v3289_v26 }
  0xbf   : > { %1573 = vmatmul.mubr.bf16.gmra.mxu0 %v3291_v27  ;;  %v3363_v27 = vld [vmem:[%s3499_s20 + $0x340] ss:$16 sps:$4 sm:$0xff]  }
  0xc0   : > { %1862 = vmatmul.mubr.bf16.gmra.mxu1 %v3292_v28  ;;  %1580 = vmatprep.mubr.bf16.mxu0 %v3293_v29  ;;  %v3364_v29 = vld [vmem:[%s3499_s20 + $0x348] ss:$16 sps:$4 sm:$0xff]  }
  0xc1   : > { %1869 = vmatprep.mubr.bf16.mxu1 %v3295_v30  ;;  %v3365_v30 = vld [vmem:[%s3499_s20 + $0x364] ss:$16 sps:$4 sm:$0xff]  }
  0xc7   : > { %1581 = vmatmul.mubr.bf16.gmra.mxu0 %v3297_v31 }
  0xc8   : > { %1870 = vmatmul.mubr.bf16.gmra.mxu1 %v3298_v32  ;;  %1588 = vmatprep.mubr.bf16.mxu0 %v3299_v33 }
  0xc9   : > { %1877 = vmatprep.mubr.bf16.mxu1 %v3301_v34  ;;  %v3367_v34 = vld [vmem:[%s3499_s20 + $0x36c] ss:$16 sps:$4 sm:$0xff]  }
  0xcf   : > { %1589 = vmatmul.mubr.bf16.gmra.mxu0 %v3303_v35 }
  0xd0   : > { %1878 = vmatmul.mubr.bf16.gmra.mxu1 %v3304_v36  ;;  %1596 = vmatprep.mubr.bf16.mxu0 %v3305_v37 }
  0xd1   : > { %1885 = vmatprep.mubr.bf16.mxu1 %v3307_v38 }
  0xd7   : > { %1597 = vmatmul.mubr.bf16.gmra.mxu0 %v3309_v39 }
  0xd8   : > { %1886 = vmatmul.mubr.bf16.gmra.mxu1 %v3310_v40  ;;  %1604 = vmatprep.mubr.bf16.mxu0 %v3311_v41 }
  0xd9   : > { %1893 = vmatprep.mubr.bf16.mxu1 %v3313_v42  ;;  %v3369_v42 = vld [vmem:[%s3499_s20 + $0x360] ss:$16 sps:$4 sm:$0xff]  }
  0xdf   : > { %1605 = vmatmul.mubr.bf16.gmra.mxu0 %v3315_v43 }
  0xe0   : > { %1894 = vmatmul.mubr.bf16.gmra.mxu1 %v3316_v44  ;;  %1612 = vmatprep.mubr.bf16.mxu0 %v3317_v45  ;;  %v3370_v44 = vld [vmem:[%s3499_s20 + $0x368] ss:$16 sps:$4 sm:$0xff]   ;;  %v3373_v45 = vld [vmem:[%s3499_s20 + $0x384] ss:$16 sps:$4 sm:$0xff]  }
  0xe1   : > { %1901 = vmatprep.mubr.bf16.mxu1 %v3319_v46 }
  0xe7   : > { %1613 = vmatmul.mubr.bf16.gmra.mxu0 %v3321_v47 }
  0xe8   : > { %1902 = vmatmul.mubr.bf16.gmra.mxu1 %v3322_v48  ;;  %1620 = vmatprep.mubr.bf16.mxu0 %v3323_v49  ;;  %v3376_v49 = vld [vmem:[%s3499_s20 + $0x38c] ss:$16 sps:$4 sm:$0xff]  }
  0xe9   : > { %1909 = vmatprep.mubr.bf16.mxu1 %v3325_v50 }
  0xef   : > { %1621 = vmatmul.mubr.bf16.gmra.mxu0 %v3327_v51 }
  0xf0   : > { %1910 = vmatmul.mubr.bf16.gmra.mxu1 %v3328_v52  ;;  %1628 = vmatprep.mubr.bf16.mxu0 %v3329_v53 }
  0xf1   : > { %1917 = vmatprep.mubr.bf16.mxu1 %v3331_v54 }
  0xf7   : > { %1629 = vmatmul.mubr.bf16.gmra.mxu0 %v3333_v55 }
  0xf8   : > { %1918 = vmatmul.mubr.bf16.gmra.mxu1 %v3334_v56  ;;  %1636 = vmatprep.mubr.bf16.mxu0 %v3335_v57  ;;  %v3371_v57 = vld [vmem:[%s3499_s20 + $0x380] ss:$16 sps:$4 sm:$0xff]  }
  0xf9   : > { %1925 = vmatprep.mubr.bf16.mxu1 %v3337_v58 }
  0xff   : > { %1637 = vmatmul.mubr.bf16.gmra.mxu0 %v3339_v59  ;;  %v3374_v59 = vld [vmem:[%s3499_s20 + $0x388] ss:$16 sps:$4 sm:$0xff]  }
 0x100   : > { %1926 = vmatmul.mubr.bf16.gmra.mxu1 %v3340_v60  ;;  %1644 = vmatprep.mubr.bf16.mxu0 %v3341_v61  ;;  %v3379_v60 = vld [vmem:[%s3499_s20 + $0x3a4] ss:$16 sps:$4 sm:$0xff]  }
 0x101   : > { %1933 = vmatprep.mubr.bf16.mxu1 %v3343_v62 }
 0x107   : > { %1645 = vmatmul.mubr.bf16.gmra.mxu0 %v3345_v63 }
 0x108   : > { %1934 = vmatmul.mubr.bf16.gmra.mxu1 %v3346_v0  ;;  %1652 = vmatprep.mubr.bf16.mxu0 %v3347_v1  ;;  %v3382_v0 = vld [vmem:[%s3499_s20 + $0x3ac] ss:$16 sps:$4 sm:$0xff]  }
 0x109   : > { %1941 = vmatprep.mubr.bf16.mxu1 %v3349_v2 }
 0x10f   : > { %v1462_v7 = vpop.f32.mrf.mxu0  ;;  %1653 = vmatmul.mubr.bf16.gmra.mxu0 %v3351_v3 }
 0x110   : > { %v1751_v8 = vpop.f32.mrf.mxu1  ;;  %1942 = vmatmul.mubr.bf16.gmra.mxu1 %v3352_v4  ;;  %1660 = vmatprep.mubr.bf16.mxu0 %v3353_v5 }
 0x111   : > { %v1464_v9 = vpop.f32.mrf.mxu0  ;;  %1949 = vmatprep.mubr.bf16.mxu1 %v3355_v6  ;;  %v1752_v16 = vadd.f32 %v1751_v8, %v1462_v7  ;;  %v3377_v8 = vld [vmem:[%s3499_s20 + $0x3a0] ss:$16 sps:$4 sm:$0xff]  }
 0x112   : > { %v1753_v10 = vpop.f32.mrf.mxu1 }
 0x113   : > { %v1465_v11 = vpop.f32.mrf.mxu0  ;;  %v3380_v10 = vld [vmem:[%s3499_s20 + $0x3a8] ss:$16 sps:$4 sm:$0xff]  }
 0x114   : > { %v1754_v13 = vpop.f32.mrf.mxu1 }
 0x115   : > { %v1755_v17 = vadd.f32 %v1754_v13, %v1465_v11  ;;  %v1467_v18 = vpop.f32.mrf.mxu0  ;;  %v3385_v11 = vld [vmem:[%s3499_s20 + $0x3c4] ss:$16 sps:$4 sm:$0xff]  }
 0x116   : > { %v1756_v20 = vpop.f32.mrf.mxu1 }
 0x117   : > { %v2958_v21 = vpack.c.bf16 %v1755_v17, %v1752_v16  ;;  %v1470_v22 = vpop.f32.mrf.mxu0  ;;  %1661 = vmatmul.mubr.bf16.gmra.mxu0 %v3357_v12 }
 0x118   : > { %v1759_v23 = vpop.f32.mrf.mxu1  ;;  %1950 = vmatmul.mubr.bf16.gmra.mxu1 %v3358_v14  ;;  %1668 = vmatprep.mubr.bf16.mxu0 %v3359_v15  ;;  %v3388_v15 = vld [vmem:[%s3499_s20 + $0x3cc] ss:$16 sps:$4 sm:$0xff]  }
 0x119   : > { %2959 = vst [vmem:[%s3644_s23] sm:$0xff] %v2958_v21   ;;  %v1472_v24 = vpop.f32.mrf.mxu0  ;;  %1957 = vmatprep.mubr.bf16.mxu1 %v3361_v19  ;;  %v1760_v31 = vadd.f32 %v1759_v23, %v1470_v22  ;;  %v3383_v23 = vld [vmem:[%s3499_s20 + $0x3c0] ss:$16 sps:$4 sm:$0xff]  }
 0x11a   : > { %v1761_v25 = vpop.f32.mrf.mxu1 }
 0x11b   : > { %v1473_v26 = vpop.f32.mrf.mxu0  ;;  %v3386_v25 = vld [vmem:[%s3499_s20 + $0x3c8] ss:$16 sps:$4 sm:$0xff]  }
 0x11c   : > { %v1762_v28 = vpop.f32.mrf.mxu1 }
 0x11d   : > { %v1763_v32 = vadd.f32 %v1762_v28, %v1473_v26  ;;  %v1475_v33 = vpop.f32.mrf.mxu0  ;;  %v3391_v26 = vld [vmem:[%s3499_s20 + $0x3e4] ss:$16 sps:$4 sm:$0xff]  }
 0x11e   : > { %v1764_v35 = vpop.f32.mrf.mxu1 }
 0x11f   : > { %v2963_v36 = vpack.c.bf16 %v1763_v32, %v1760_v31  ;;  %v1478_v37 = vpop.f32.mrf.mxu0  ;;  %1669 = vmatmul.mubr.bf16.gmra.mxu0 %v3363_v27 }
 0x120   : > { %v1767_v38 = vpop.f32.mrf.mxu1  ;;  %1958 = vmatmul.mubr.bf16.gmra.mxu1 %v3364_v29  ;;  %1676 = vmatprep.mubr.bf16.mxu0 %v3365_v30  ;;  %v3394_v30 = vld [vmem:[%s3499_s20 + $0x3ec] ss:$16 sps:$4 sm:$0xff]  }
 0x121   : > { %3115 = vst [vmem:[%s3644_s23 + $0x8] sm:$0xff] %v2963_v36   ;;  %v1480_v39 = vpop.f32.mrf.mxu0  ;;  %1965 = vmatprep.mubr.bf16.mxu1 %v3367_v34  ;;  %v1768_v46 = vadd.f32 %v1767_v38, %v1478_v37  ;;  %v3389_v38 = vld [vmem:[%s3499_s20 + $0x3e0] ss:$16 sps:$4 sm:$0xff]  }
 0x122   : > { %v1769_v40 = vpop.f32.mrf.mxu1 }
 0x123   : > { %v1481_v41 = vpop.f32.mrf.mxu0  ;;  %v3392_v40 = vld [vmem:[%s3499_s20 + $0x3e8] ss:$16 sps:$4 sm:$0xff]  }
 0x124   : > { %v1770_v43 = vpop.f32.mrf.mxu1 }
 0x125   : > { %v1771_v47 = vadd.f32 %v1770_v43, %v1481_v41  ;;  %v1483_v48 = vpop.f32.mrf.mxu0 }
 0x126   : > { %v1772_v50 = vpop.f32.mrf.mxu1 }
 0x127   : > { %v2968_v51 = vpack.c.bf16 %v1771_v47, %v1768_v46  ;;  %v1486_v52 = vpop.f32.mrf.mxu0  ;;  %1677 = vmatmul.mubr.bf16.gmra.mxu0 %v3369_v42 }
 0x128   : > { %v1775_v53 = vpop.f32.mrf.mxu1  ;;  %1966 = vmatmul.mubr.bf16.gmra.mxu1 %v3370_v44  ;;  %1684 = vmatprep.mubr.bf16.mxu0 %v3373_v45 }
 0x129   : > { %3116 = vst [vmem:[%s3644_s23 + $0x10] sm:$0xff] %v2968_v51   ;;  %v1488_v54 = vpop.f32.mrf.mxu0  ;;  %1973 = vmatprep.mubr.bf16.mxu1 %v3376_v49  ;;  %v1776_v61 = vadd.f32 %v1775_v53, %v1486_v52 }
 0x12a   : > { %v1777_v55 = vpop.f32.mrf.mxu1 }
 0x12b   : > { %v1489_v56 = vpop.f32.mrf.mxu0 }
 0x12c   : > { %v1778_v58 = vpop.f32.mrf.mxu1 }
 0x12d   : > { %v1779_v62 = vadd.f32 %v1778_v58, %v1489_v56  ;;  %v1491_v63 = vpop.f32.mrf.mxu0 }
 0x12e   : > { %v1780_v1 = vpop.f32.mrf.mxu1 }
 0x12f   : > { %v2973_v2 = vpack.c.bf16 %v1779_v62, %v1776_v61  ;;  %v1494_v3 = vpop.f32.mrf.mxu0  ;;  %1685 = vmatmul.mubr.bf16.gmra.mxu0 %v3371_v57 }
 0x130   : > { %v1783_v4 = vpop.f32.mrf.mxu1  ;;  %1974 = vmatmul.mubr.bf16.gmra.mxu1 %v3374_v59  ;;  %1692 = vmatprep.mubr.bf16.mxu0 %v3379_v60 }
 0x131   : > { %3117 = vst [vmem:[%s3644_s23 + $0x18] sm:$0xff] %v2973_v2   ;;  %v1496_v5 = vpop.f32.mrf.mxu0  ;;  %1981 = vmatprep.mubr.bf16.mxu1 %v3382_v0  ;;  %v1784_v12 = vadd.f32 %v1783_v4, %v1494_v3 }
 0x132   : > { %v1785_v6 = vpop.f32.mrf.mxu1 }
 0x133   : > { %v1497_v7 = vpop.f32.mrf.mxu0 }
 0x134   : > { %v1786_v9 = vpop.f32.mrf.mxu1 }
 0x135   : > { %v1787_v13 = vadd.f32 %v1786_v9, %v1497_v7  ;;  %v1499_v14 = vpop.f32.mrf.mxu0 }
 0x136   : > { %v1788_v16 = vpop.f32.mrf.mxu1 }
 0x137   : > { %v2978_v17 = vpack.c.bf16 %v1787_v13, %v1784_v12  ;;  %v1502_v18 = vpop.f32.mrf.mxu0  ;;  %1693 = vmatmul.mubr.bf16.gmra.mxu0 %v3377_v8 }
 0x138   : > { %v1791_v19 = vpop.f32.mrf.mxu1  ;;  %1982 = vmatmul.mubr.bf16.gmra.mxu1 %v3380_v10  ;;  %1700 = vmatprep.mubr.bf16.mxu0 %v3385_v11 }
 0x139   : > { %3118 = vst [vmem:[%s3644_s23 + $0x20] sm:$0xff] %v2978_v17   ;;  %v1504_v20 = vpop.f32.mrf.mxu0  ;;  %1989 = vmatprep.mubr.bf16.mxu1 %v3388_v15  ;;  %v1792_v27 = vadd.f32 %v1791_v19, %v1502_v18 }
 0x13a   : > { %v1793_v21 = vpop.f32.mrf.mxu1 }
 0x13b   : > { %v1505_v22 = vpop.f32.mrf.mxu0 }
 0x13c   : > { %v1794_v24 = vpop.f32.mrf.mxu1 }
 0x13d   : > { %v1795_v28 = vadd.f32 %v1794_v24, %v1505_v22  ;;  %v1507_v29 = vpop.f32.mrf.mxu0 }
 0x13e   : > { %v1796_v31 = vpop.f32.mrf.mxu1 }
 0x13f   : > { %v2983_v32 = vpack.c.bf16 %v1795_v28, %v1792_v27  ;;  %v1510_v33 = vpop.f32.mrf.mxu0  ;;  %1701 = vmatmul.mubr.bf16.gmra.mxu0 %v3383_v23 }
 0x140   : > { %v1799_v34 = vpop.f32.mrf.mxu1  ;;  %1990 = vmatmul.mubr.bf16.gmra.mxu1 %v3386_v25  ;;  %1708 = vmatprep.mubr.bf16.mxu0 %v3391_v26 }
 0x141   : > { %3119 = vst [vmem:[%s3644_s23 + $0x28] sm:$0xff] %v2983_v32   ;;  %v1512_v35 = vpop.f32.mrf.mxu0  ;;  %1997 = vmatprep.mubr.bf16.mxu1 %v3394_v30  ;;  %v1800_v41 = vadd.f32 %v1799_v34, %v1510_v33 }
 0x142   : > { %v1801_v36 = vpop.f32.mrf.mxu1 }
 0x143   : > { %v1513_v37 = vpop.f32.mrf.mxu0 }
 0x144   : > { %v1802_v39 = vpop.f32.mrf.mxu1 }
 0x145   : > { %v1803_v42 = vadd.f32 %v1802_v39, %v1513_v37  ;;  %v1515_v43 = vpop.f32.mrf.mxu0 }
 0x146   : > { %v1804_v44 = vpop.f32.mrf.mxu1 }
 0x147   : > { %v2988_v45 = vpack.c.bf16 %v1803_v42, %v1800_v41  ;;  %v1518_v46 = vpop.f32.mrf.mxu0  ;;  %1709 = vmatmul.mubr.bf16.gmra.mxu0 %v3389_v38 }
 0x148   : > { %v1807_v47 = vpop.f32.mrf.mxu1  ;;  %1998 = vmatmul.mubr.bf16.gmra.mxu1 %v3392_v40 }
 0x149   : > { %3120 = vst [vmem:[%s3644_s23 + $0x30] sm:$0xff] %v2988_v45   ;;  %v1520_v48 = vpop.f32.mrf.mxu0  ;;  %v1808_v52 = vadd.f32 %v1807_v47, %v1518_v46 }
 0x14a   : > { %v1809_v49 = vpop.f32.mrf.mxu1 }
 0x14b   : > { %v1521_v50 = vpop.f32.mrf.mxu0 }
 0x14c   : > { %v1810_v51 = vpop.f32.mrf.mxu1 }
 0x14d   : > { %v1811_v53 = vadd.f32 %v1810_v51, %v1521_v50  ;;  %v1523_v54 = vpop.f32.mrf.mxu0 }
 0x14e   : > { %v1812_v55 = vpop.f32.mrf.mxu1 }
 0x14f   : > { %v2993_v56 = vpack.c.bf16 %v1811_v53, %v1808_v52  ;;  %v1526_v57 = vpop.f32.mrf.mxu0 }
 0x150   : > { %v1815_v58 = vpop.f32.mrf.mxu1 }
 0x151   : > { %3121 = vst [vmem:[%s3644_s23 + $0x38] sm:$0xff] %v2993_v56   ;;  %v1528_v59 = vpop.f32.mrf.mxu0  ;;  %v1816_v63 = vadd.f32 %v1815_v58, %v1526_v57 }
 0x152   : > { %v1817_v60 = vpop.f32.mrf.mxu1 }
 0x153   : > { %v1529_v61 = vpop.f32.mrf.mxu0 }
 0x154   : > { %v1818_v62 = vpop.f32.mrf.mxu1 }
 0x155   : > { %v1819_v0 = vadd.f32 %v1818_v62, %v1529_v61  ;;  %v1531_v1 = vpop.f32.mrf.mxu0 }
 0x156   : > { %v1820_v2 = vpop.f32.mrf.mxu1 }
 0x157   : > { %v2998_v3 = vpack.c.bf16 %v1819_v0, %v1816_v63  ;;  %v1534_v4 = vpop.f32.mrf.mxu0 }
 0x158   : > { %v1823_v5 = vpop.f32.mrf.mxu1 }
 0x159   : > { %3122 = vst [vmem:[%s3644_s23 + $0x40] sm:$0xff] %v2998_v3   ;;  %v1536_v6 = vpop.f32.mrf.mxu0  ;;  %v1824_v10 = vadd.f32 %v1823_v5, %v1534_v4 }
 0x15a   : > { %v1825_v7 = vpop.f32.mrf.mxu1 }
 0x15b   : > { %v1537_v8 = vpop.f32.mrf.mxu0 }
 0x15c   : > { %v1826_v9 = vpop.f32.mrf.mxu1 }
 0x15d   : > { %v1827_v11 = vadd.f32 %v1826_v9, %v1537_v8  ;;  %v1539_v12 = vpop.f32.mrf.mxu0 }
 0x15e   : > { %v1828_v13 = vpop.f32.mrf.mxu1 }
 0x15f   : > { %v3003_v14 = vpack.c.bf16 %v1827_v11, %v1824_v10  ;;  %v1542_v15 = vpop.f32.mrf.mxu0 }
 0x160   : > { %v1831_v16 = vpop.f32.mrf.mxu1 }
 0x161   : > { %3123 = vst [vmem:[%s3644_s23 + $0x48] sm:$0xff] %v3003_v14   ;;  %v1544_v17 = vpop.f32.mrf.mxu0  ;;  %v1832_v21 = vadd.f32 %v1831_v16, %v1542_v15 }
 0x162   : > { %v1833_v18 = vpop.f32.mrf.mxu1 }
 0x163   : > { %v1545_v19 = vpop.f32.mrf.mxu0 }
 0x164   : > { %v1834_v20 = vpop.f32.mrf.mxu1 }
 0x165   : > { %v1835_v22 = vadd.f32 %v1834_v20, %v1545_v19  ;;  %v1547_v23 = vpop.f32.mrf.mxu0 }
 0x166   : > { %v1836_v24 = vpop.f32.mrf.mxu1 }
 0x167   : > { %v3008_v25 = vpack.c.bf16 %v1835_v22, %v1832_v21  ;;  %v1550_v26 = vpop.f32.mrf.mxu0 }
 0x168   : > { %v1839_v27 = vpop.f32.mrf.mxu1 }
 0x169   : > { %3124 = vst [vmem:[%s3644_s23 + $0x50] sm:$0xff] %v3008_v25   ;;  %v1552_v28 = vpop.f32.mrf.mxu0  ;;  %v1840_v32 = vadd.f32 %v1839_v27, %v1550_v26 }
 0x16a   : > { %v1841_v29 = vpop.f32.mrf.mxu1 }
 0x16b   : > { %v1553_v30 = vpop.f32.mrf.mxu0 }
 0x16c   : > { %v1842_v31 = vpop.f32.mrf.mxu1 }
 0x16d   : > { %v1843_v33 = vadd.f32 %v1842_v31, %v1553_v30  ;;  %v1555_v34 = vpop.f32.mrf.mxu0 }
 0x16e   : > { %v1844_v35 = vpop.f32.mrf.mxu1 }
 0x16f   : > { %v3013_v36 = vpack.c.bf16 %v1843_v33, %v1840_v32  ;;  %v1558_v37 = vpop.f32.mrf.mxu0 }
 0x170   : > { %v1847_v38 = vpop.f32.mrf.mxu1 }
 0x171   : > { %3125 = vst [vmem:[%s3644_s23 + $0x58] sm:$0xff] %v3013_v36   ;;  %v1560_v39 = vpop.f32.mrf.mxu0  ;;  %v1848_v43 = vadd.f32 %v1847_v38, %v1558_v37 }
 0x172   : > { %v1849_v40 = vpop.f32.mrf.mxu1 }
 0x173   : > { %v1561_v41 = vpop.f32.mrf.mxu0 }
 0x174   : > { %v1850_v42 = vpop.f32.mrf.mxu1 }
 0x175   : > { %v1851_v44 = vadd.f32 %v1850_v42, %v1561_v41  ;;  %v1563_v45 = vpop.f32.mrf.mxu0 }
 0x176   : > { %v1852_v46 = vpop.f32.mrf.mxu1 }
 0x177   : > { %v3018_v47 = vpack.c.bf16 %v1851_v44, %v1848_v43  ;;  %v1566_v48 = vpop.f32.mrf.mxu0 }
 0x178   : > { %v1855_v49 = vpop.f32.mrf.mxu1 }
 0x179   : > { %3126 = vst [vmem:[%s3644_s23 + $0x60] sm:$0xff] %v3018_v47   ;;  %v1568_v50 = vpop.f32.mrf.mxu0  ;;  %v1856_v54 = vadd.f32 %v1855_v49, %v1566_v48 }
 0x17a   : > { %v1857_v51 = vpop.f32.mrf.mxu1 }
 0x17b   : > { %v1569_v52 = vpop.f32.mrf.mxu0 }
 0x17c   : > { %v1858_v53 = vpop.f32.mrf.mxu1 }
 0x17d   : > { %v1859_v55 = vadd.f32 %v1858_v53, %v1569_v52  ;;  %v1571_v56 = vpop.f32.mrf.mxu0 }
 0x17e   : > { %v1860_v57 = vpop.f32.mrf.mxu1 }
 0x17f   : > { %v3023_v58 = vpack.c.bf16 %v1859_v55, %v1856_v54  ;;  %v1574_v59 = vpop.f32.mrf.mxu0 }
 0x180   : > { %v1863_v60 = vpop.f32.mrf.mxu1 }
 0x181   : > { %3127 = vst [vmem:[%s3644_s23 + $0x68] sm:$0xff] %v3023_v58   ;;  %v1576_v61 = vpop.f32.mrf.mxu0  ;;  %v1864_v1 = vadd.f32 %v1863_v60, %v1574_v59 }
 0x182   : > { %v1865_v62 = vpop.f32.mrf.mxu1 }
 0x183   : > { %v1577_v63 = vpop.f32.mrf.mxu0 }
 0x184   : > { %v1866_v0 = vpop.f32.mrf.mxu1 }
 0x185   : > { %v1867_v2 = vadd.f32 %v1866_v0, %v1577_v63  ;;  %v1579_v3 = vpop.f32.mrf.mxu0 }
 0x186   : > { %v1868_v4 = vpop.f32.mrf.mxu1 }
 0x187   : > { %v3028_v5 = vpack.c.bf16 %v1867_v2, %v1864_v1  ;;  %v1582_v6 = vpop.f32.mrf.mxu0 }
 0x188   : > { %v1871_v7 = vpop.f32.mrf.mxu1 }
 0x189   : > { %3128 = vst [vmem:[%s3644_s23 + $0x70] sm:$0xff] %v3028_v5   ;;  %v1584_v8 = vpop.f32.mrf.mxu0  ;;  %v1872_v12 = vadd.f32 %v1871_v7, %v1582_v6 }
 0x18a   : > { %v1873_v9 = vpop.f32.mrf.mxu1 }
 0x18b   : > { %v1585_v10 = vpop.f32.mrf.mxu0 }
 0x18c   : > { %v1874_v11 = vpop.f32.mrf.mxu1 }
 0x18d   : > { %v1875_v13 = vadd.f32 %v1874_v11, %v1585_v10  ;;  %v1587_v14 = vpop.f32.mrf.mxu0 }
 0x18e   : > { %v1876_v15 = vpop.f32.mrf.mxu1 }
 0x18f   : > { %v3033_v16 = vpack.c.bf16 %v1875_v13, %v1872_v12  ;;  %v1590_v17 = vpop.f32.mrf.mxu0 }
 0x190   : > { %v1879_v18 = vpop.f32.mrf.mxu1 }
 0x191   : > { %3129 = vst [vmem:[%s3644_s23 + $0x78] sm:$0xff] %v3033_v16   ;;  %v1592_v19 = vpop.f32.mrf.mxu0  ;;  %v1880_v23 = vadd.f32 %v1879_v18, %v1590_v17 }
 0x192   : > { %v1881_v20 = vpop.f32.mrf.mxu1 }
 0x193   : > { %v1593_v21 = vpop.f32.mrf.mxu0 }
 0x194   : > { %v1882_v22 = vpop.f32.mrf.mxu1 }
 0x195   : > { %v1883_v24 = vadd.f32 %v1882_v22, %v1593_v21  ;;  %v1595_v25 = vpop.f32.mrf.mxu0 }
 0x196   : > { %v1884_v26 = vpop.f32.mrf.mxu1 }
 0x197   : > { %v3038_v27 = vpack.c.bf16 %v1883_v24, %v1880_v23  ;;  %v1598_v28 = vpop.f32.mrf.mxu0 }
 0x198   : > { %v1887_v29 = vpop.f32.mrf.mxu1 }
 0x199   : > { %3130 = vst [vmem:[%s3644_s23 + $0x80] sm:$0xff] %v3038_v27   ;;  %v1600_v30 = vpop.f32.mrf.mxu0  ;;  %v1888_v34 = vadd.f32 %v1887_v29, %v1598_v28 }
 0x19a   : > { %v1889_v31 = vpop.f32.mrf.mxu1 }
 0x19b   : > { %v1601_v32 = vpop.f32.mrf.mxu0 }
 0x19c   : > { %v1890_v33 = vpop.f32.mrf.mxu1 }
 0x19d   : > { %v1891_v35 = vadd.f32 %v1890_v33, %v1601_v32  ;;  %v1603_v36 = vpop.f32.mrf.mxu0 }
 0x19e   : > { %v1892_v37 = vpop.f32.mrf.mxu1 }
 0x19f   : > { %v3043_v38 = vpack.c.bf16 %v1891_v35, %v1888_v34  ;;  %v1606_v39 = vpop.f32.mrf.mxu0 }
 0x1a0   : > { %v1895_v40 = vpop.f32.mrf.mxu1 }
 0x1a1   : > { %3131 = vst [vmem:[%s3644_s23 + $0x88] sm:$0xff] %v3043_v38   ;;  %v1608_v41 = vpop.f32.mrf.mxu0  ;;  %v1896_v45 = vadd.f32 %v1895_v40, %v1606_v39 }
 0x1a2   : > { %v1897_v42 = vpop.f32.mrf.mxu1 }
 0x1a3   : > { %v1609_v43 = vpop.f32.mrf.mxu0 }
 0x1a4   : > { %v1898_v44 = vpop.f32.mrf.mxu1 }
 0x1a5   : > { %v1899_v46 = vadd.f32 %v1898_v44, %v1609_v43  ;;  %v1611_v47 = vpop.f32.mrf.mxu0 }
 0x1a6   : > { %v1900_v48 = vpop.f32.mrf.mxu1 }
 0x1a7   : > { %v3048_v49 = vpack.c.bf16 %v1899_v46, %v1896_v45  ;;  %v1614_v50 = vpop.f32.mrf.mxu0 }
 0x1a8   : > { %v1903_v51 = vpop.f32.mrf.mxu1 }
 0x1a9   : > { %3132 = vst [vmem:[%s3644_s23 + $0x90] sm:$0xff] %v3048_v49   ;;  %v1616_v52 = vpop.f32.mrf.mxu0  ;;  %v1904_v56 = vadd.f32 %v1903_v51, %v1614_v50 }
 0x1aa   : > { %v1905_v53 = vpop.f32.mrf.mxu1 }
 0x1ab   : > { %v1617_v54 = vpop.f32.mrf.mxu0 }
 0x1ac   : > { %v1906_v55 = vpop.f32.mrf.mxu1 }
 0x1ad   : > { %v1907_v57 = vadd.f32 %v1906_v55, %v1617_v54  ;;  %v1619_v58 = vpop.f32.mrf.mxu0 }
 0x1ae   : > { %v1908_v59 = vpop.f32.mrf.mxu1 }
 0x1af   : > { %v3053_v60 = vpack.c.bf16 %v1907_v57, %v1904_v56  ;;  %v1622_v61 = vpop.f32.mrf.mxu0 }
 0x1b0   : > { %v1911_v62 = vpop.f32.mrf.mxu1 }
 0x1b1   : > { %3133 = vst [vmem:[%s3644_s23 + $0x98] sm:$0xff] %v3053_v60   ;;  %v1624_v63 = vpop.f32.mrf.mxu0  ;;  %v1912_v3 = vadd.f32 %v1911_v62, %v1622_v61 }
 0x1b2   : > { %v1913_v0 = vpop.f32.mrf.mxu1 }
 0x1b3   : > { %v1625_v1 = vpop.f32.mrf.mxu0 }
 0x1b4   : > { %v1914_v2 = vpop.f32.mrf.mxu1 }
 0x1b5   : > { %v1915_v4 = vadd.f32 %v1914_v2, %v1625_v1  ;;  %v1627_v5 = vpop.f32.mrf.mxu0 }
 0x1b6   : > { %v1916_v6 = vpop.f32.mrf.mxu1 }
 0x1b7   : > { %v3058_v7 = vpack.c.bf16 %v1915_v4, %v1912_v3  ;;  %v1630_v8 = vpop.f32.mrf.mxu0 }
 0x1b8   : > { %v1919_v9 = vpop.f32.mrf.mxu1 }
 0x1b9   : > { %3134 = vst [vmem:[%s3644_s23 + $0xa0] sm:$0xff] %v3058_v7   ;;  %v1632_v10 = vpop.f32.mrf.mxu0  ;;  %v1920_v14 = vadd.f32 %v1919_v9, %v1630_v8 }
 0x1ba   : > { %v1921_v11 = vpop.f32.mrf.mxu1 }
 0x1bb   : > { %v1633_v12 = vpop.f32.mrf.mxu0 }
 0x1bc   : > { %v1922_v13 = vpop.f32.mrf.mxu1 }
 0x1bd   : > { %v1923_v15 = vadd.f32 %v1922_v13, %v1633_v12  ;;  %v1635_v16 = vpop.f32.mrf.mxu0 }
 0x1be   : > { %v1924_v17 = vpop.f32.mrf.mxu1 }
 0x1bf   : > { %v3063_v18 = vpack.c.bf16 %v1923_v15, %v1920_v14  ;;  %v1638_v19 = vpop.f32.mrf.mxu0 }
 0x1c0   : > { %v1927_v20 = vpop.f32.mrf.mxu1 }
 0x1c1   : > { %3135 = vst [vmem:[%s3644_s23 + $0xa8] sm:$0xff] %v3063_v18   ;;  %v1640_v21 = vpop.f32.mrf.mxu0  ;;  %v1928_v25 = vadd.f32 %v1927_v20, %v1638_v19 }
 0x1c2   : > { %v1929_v22 = vpop.f32.mrf.mxu1 }
 0x1c3   : > { %v1641_v23 = vpop.f32.mrf.mxu0 }
 0x1c4   : > { %v1930_v24 = vpop.f32.mrf.mxu1 }
 0x1c5   : > { %v1931_v26 = vadd.f32 %v1930_v24, %v1641_v23  ;;  %v1643_v27 = vpop.f32.mrf.mxu0 }
 0x1c6   : > { %v1932_v28 = vpop.f32.mrf.mxu1 }
 0x1c7   : > { %v3068_v29 = vpack.c.bf16 %v1931_v26, %v1928_v25  ;;  %v1646_v30 = vpop.f32.mrf.mxu0 }
 0x1c8   : > { %v1935_v31 = vpop.f32.mrf.mxu1 }
 0x1c9   : > { %3136 = vst [vmem:[%s3644_s23 + $0xb0] sm:$0xff] %v3068_v29   ;;  %v1648_v32 = vpop.f32.mrf.mxu0  ;;  %v1936_v36 = vadd.f32 %v1935_v31, %v1646_v30 }
 0x1ca   : > { %v1937_v33 = vpop.f32.mrf.mxu1 }
 0x1cb   : > { %v1649_v34 = vpop.f32.mrf.mxu0 }
 0x1cc   : > { %v1938_v35 = vpop.f32.mrf.mxu1 }
 0x1cd   : > { %v1939_v37 = vadd.f32 %v1938_v35, %v1649_v34  ;;  %v1651_v38 = vpop.f32.mrf.mxu0 }
 0x1ce   : > { %v1940_v39 = vpop.f32.mrf.mxu1 }
 0x1cf   : > { %v3073_v40 = vpack.c.bf16 %v1939_v37, %v1936_v36  ;;  %v1654_v41 = vpop.f32.mrf.mxu0 }
 0x1d0   : > { %v1943_v42 = vpop.f32.mrf.mxu1 }
 0x1d1   : > { %3137 = vst [vmem:[%s3644_s23 + $0xb8] sm:$0xff] %v3073_v40   ;;  %v1656_v43 = vpop.f32.mrf.mxu0  ;;  %v1944_v47 = vadd.f32 %v1943_v42, %v1654_v41 }
 0x1d2   : > { %v1945_v44 = vpop.f32.mrf.mxu1 }
 0x1d3   : > { %v1657_v45 = vpop.f32.mrf.mxu0 }
 0x1d4   : > { %v1946_v46 = vpop.f32.mrf.mxu1 }
 0x1d5   : > { %v1947_v48 = vadd.f32 %v1946_v46, %v1657_v45  ;;  %v1659_v49 = vpop.f32.mrf.mxu0 }
 0x1d6   : > { %v1948_v50 = vpop.f32.mrf.mxu1 }
 0x1d7   : > { %v3078_v51 = vpack.c.bf16 %v1947_v48, %v1944_v47  ;;  %v1662_v52 = vpop.f32.mrf.mxu0 }
 0x1d8   : > { %v1951_v53 = vpop.f32.mrf.mxu1 }
 0x1d9   : > { %3138 = vst [vmem:[%s3644_s23 + $0xc0] sm:$0xff] %v3078_v51   ;;  %v1664_v54 = vpop.f32.mrf.mxu0  ;;  %v1952_v58 = vadd.f32 %v1951_v53, %v1662_v52 }
 0x1da   : > { %v1953_v55 = vpop.f32.mrf.mxu1 }
 0x1db   : > { %v1665_v56 = vpop.f32.mrf.mxu0 }
 0x1dc   : > { %v1954_v57 = vpop.f32.mrf.mxu1 }
 0x1dd   : > { %v1955_v59 = vadd.f32 %v1954_v57, %v1665_v56  ;;  %v1667_v60 = vpop.f32.mrf.mxu0 }
 0x1de   : > { %v1956_v61 = vpop.f32.mrf.mxu1 }
 0x1df   : > { %v3083_v62 = vpack.c.bf16 %v1955_v59, %v1952_v58  ;;  %v1670_v63 = vpop.f32.mrf.mxu0 }
 0x1e0   : > { %v1959_v0 = vpop.f32.mrf.mxu1 }
 0x1e1   : > { %3139 = vst [vmem:[%s3644_s23 + $0xc8] sm:$0xff] %v3083_v62   ;;  %v1672_v1 = vpop.f32.mrf.mxu0  ;;  %v1960_v5 = vadd.f32 %v1959_v0, %v1670_v63 }
 0x1e2   : > { %v1961_v2 = vpop.f32.mrf.mxu1 }
 0x1e3   : > { %v1673_v3 = vpop.f32.mrf.mxu0 }
 0x1e4   : > { %v1962_v4 = vpop.f32.mrf.mxu1 }
 0x1e5   : > { %v1963_v6 = vadd.f32 %v1962_v4, %v1673_v3  ;;  %v1675_v7 = vpop.f32.mrf.mxu0 }
 0x1e6   : > { %v1964_v8 = vpop.f32.mrf.mxu1 }
 0x1e7   : > { %v3088_v9 = vpack.c.bf16 %v1963_v6, %v1960_v5  ;;  %v1678_v10 = vpop.f32.mrf.mxu0 }
 0x1e8   : > { %v1967_v11 = vpop.f32.mrf.mxu1 }
 0x1e9   : > { %3140 = vst [vmem:[%s3644_s23 + $0xd0] sm:$0xff] %v3088_v9   ;;  %v1680_v12 = vpop.f32.mrf.mxu0  ;;  %v1968_v16 = vadd.f32 %v1967_v11, %v1678_v10 }
 0x1ea   : > { %v1969_v13 = vpop.f32.mrf.mxu1 }
 0x1eb   : > { %v1681_v14 = vpop.f32.mrf.mxu0 }
 0x1ec   : > { %v1970_v15 = vpop.f32.mrf.mxu1 }
 0x1ed   : > { %v1971_v17 = vadd.f32 %v1970_v15, %v1681_v14  ;;  %v1683_v18 = vpop.f32.mrf.mxu0 }
 0x1ee   : > { %v1972_v19 = vpop.f32.mrf.mxu1 }
 0x1ef   : > { %v3093_v20 = vpack.c.bf16 %v1971_v17, %v1968_v16  ;;  %v1686_v21 = vpop.f32.mrf.mxu0 }
 0x1f0   : > { %v1975_v22 = vpop.f32.mrf.mxu1 }
 0x1f1   : > { %3141 = vst [vmem:[%s3644_s23 + $0xd8] sm:$0xff] %v3093_v20   ;;  %v1688_v23 = vpop.f32.mrf.mxu0  ;;  %v1976_v27 = vadd.f32 %v1975_v22, %v1686_v21 }
 0x1f2   : > { %v1977_v24 = vpop.f32.mrf.mxu1 }
 0x1f3   : > { %v1689_v25 = vpop.f32.mrf.mxu0 }
 0x1f4   : > { %v1978_v26 = vpop.f32.mrf.mxu1 }
 0x1f5   : > { %v1979_v28 = vadd.f32 %v1978_v26, %v1689_v25  ;;  %v1691_v29 = vpop.f32.mrf.mxu0 }
 0x1f6   : > { %v1980_v30 = vpop.f32.mrf.mxu1 }
 0x1f7   : > { %v3098_v31 = vpack.c.bf16 %v1979_v28, %v1976_v27  ;;  %v1694_v32 = vpop.f32.mrf.mxu0 }
 0x1f8   : > { %v1983_v33 = vpop.f32.mrf.mxu1 }
 0x1f9   : > { %3142 = vst [vmem:[%s3644_s23 + $0xe0] sm:$0xff] %v3098_v31   ;;  %v1696_v34 = vpop.f32.mrf.mxu0  ;;  %v1984_v38 = vadd.f32 %v1983_v33, %v1694_v32 }
 0x1fa   : > { %v1985_v35 = vpop.f32.mrf.mxu1 }
 0x1fb   : > { %v1697_v36 = vpop.f32.mrf.mxu0 }
 0x1fc   : > { %v1986_v37 = vpop.f32.mrf.mxu1 }
 0x1fd   : > { %v1987_v39 = vadd.f32 %v1986_v37, %v1697_v36  ;;  %v1699_v40 = vpop.f32.mrf.mxu0 }
 0x1fe   : > { %v1988_v41 = vpop.f32.mrf.mxu1 }
 0x1ff   : > { %v3103_v42 = vpack.c.bf16 %v1987_v39, %v1984_v38  ;;  %v1702_v43 = vpop.f32.mrf.mxu0 }
 0x200   : > { %v1991_v44 = vpop.f32.mrf.mxu1 }
 0x201   : > { %3143 = vst [vmem:[%s3644_s23 + $0xe8] sm:$0xff] %v3103_v42   ;;  %v1704_v45 = vpop.f32.mrf.mxu0  ;;  %v1992_v49 = vadd.f32 %v1991_v44, %v1702_v43 }
 0x202   : > { %v1993_v46 = vpop.f32.mrf.mxu1 }
 0x203   : > { %v1705_v47 = vpop.f32.mrf.mxu0 }
 0x204   : > { %v1994_v48 = vpop.f32.mrf.mxu1 }
 0x205   : > { %v1995_v50 = vadd.f32 %v1994_v48, %v1705_v47  ;;  %v1707_v51 = vpop.f32.mrf.mxu0 }
 0x206   : > { %v1996_v52 = vpop.f32.mrf.mxu1 }
 0x207   : > { %v3108_v53 = vpack.c.bf16 %v1995_v50, %v1992_v49  ;;  %v1710_v54 = vpop.f32.mrf.mxu0 }
 0x208   : > { %v1999_v55 = vpop.f32.mrf.mxu1 }
 0x209   : > { %3144 = vst [vmem:[%s3644_s23 + $0xf0] sm:$0xff] %v3108_v53   ;;  %v1712_v56 = vpop.f32.mrf.mxu0  ;;  %v2000_v60 = vadd.f32 %v1999_v55, %v1710_v54 }
 0x20a   : > { %v2001_v57 = vpop.f32.mrf.mxu1 }
 0x20b   : > { %v1713_v58 = vpop.f32.mrf.mxu0 }
 0x20c   : > { %v2002_v59 = vpop.f32.mrf.mxu1 }
 0x20d   : > { %v2003_v61 = vadd.f32 %v2002_v59, %v1713_v58  ;;  %v1715_v62 = vpop.f32.mrf.mxu0 }
 0x20e   : > { %v2004_v63 = vpop.f32.mrf.mxu1 }
 0x20f   : > { %v3113_v0 = vpack.c.bf16 %v2003_v61, %v2000_v60 }
 0x211   : > { %3145 = vst [vmem:[%s3644_s23 + $0xf8] sm:$0xff] %v3113_v0  }
 0x212 PF: > { %s12_s11 = sadd.s32 1, %s3417_s11   ;;  %s3712_s9 = smov %s3413_s10 }
 0x213   : > { %p9_p5 = scmp.ge.s32.totalorder %s12_s11, 6   ;;  %s3713_s10 = smov %s3715_s12 }
 0x215   :  { %11 = sbr.rel (!%p9_p5) target bundleno = 2 (0x2), region = 69 }

// kernel: generator_forward.17
= control target key start
LH: loop header
LB: loop body
LE: loop exit
PB: predicated region body
PF: predicated region fallthrough
CT: control target
= control target key end

     0   :  { %s1407_s6 = smov 0   ;;  %s2357_s0 = inlined_call_operand.vmem [shape: bf16[2048,64], index: 0, kind: input, shape index: {}]   ;;  %s2358_s1 = inlined_call_operand.vmem [shape: f32[2,64], index: 1, kind: output, shape index: {}]  }
   0x1 LB: > { %s1051_s7 = sadd.s32 4294967295, %s1394_s6   ;;  %p1054_p0 = scmp.ge.s32.totalorder %s1394_s6, 1  ;;  %s1394_s6 = sphi %s1407_s6, %s11_s6  }
   0x2   : > { %p83_p1 = scmp.lt.s32.totalorder %s1394_s6, 3 }
   0x4   : > { %p84_p2 = pnand %p1054_p0, %p83_p1 }
   0x5   : > { %s1055_s8 = sshll.u32 (!%p84_p2), %s1051_s7, 7  ;;  %p1057_p4 = scmp.ne.s32.totalorder (!%p84_p2), %s1051_s7, 0 }
   0x6   : > { %87 = sbr.rel (%p84_p2) target bundleno = 330 (0x14a), region = 24  ;;  %p99_p3 = scmp.lt.s32.totalorder (!%p84_p2), %s1055_s8, 255 }
   0xb   : > { %s2360_s8 = smov (!%p99_p3, %s1055_s8), 255  ;;  %107 = sbr.rel (%p1057_p4) target bundleno = 18 (0x12), region = 28 }
   0xc   : > { %s1056_s9 = sshll.u32 %s2360_s8, 2 }
   0xd   : > { %s1418_s12 = scalar_lea.vmem %s2357_s0, %s1056_s9 }
  0x10   : > { %vm108_vm0 = vcmask 517120   ;;  %v1396_v0 = vmov 0.0  }
  0x11   : > { %109 = vst.msk [vmem:[%s2358_s1] sm:$0x3] %vm108_vm0, %v1396_v0 }
  0x12 PF: > { %v1061_v1 = vld [vmem:[%s1418_s12] sm:$0xff]   ;;  %v1316_v2 = vld [vmem:[%s1418_s12 + $0x8] sm:$0xff]   ;;  %vm367_vm1 = vcmask 523264   ;;  %v1317_v6 = vld [vmem:[%s1418_s12 + $0x10] sm:$0xff]   ;;  %vm1018_vm2 = vcmask 1040384   ;;  %vm1021_vm3 = vcmask 517120  }
  0x13   : > { %v1425_v3 = vunpack.c.l.bf16 %v1061_v1  ;;  %v1427_v4 = vunpack.c.h.bf16 %v1061_v1  ;;  %v1429_v5 = vunpack.c.l.bf16 %v1316_v2  ;;  %v1432_v7 = vunpack.c.h.bf16 %v1316_v2  ;;  %v1318_v14 = vld [vmem:[%s1418_s12 + $0x18] sm:$0xff]   ;;  %v1319_v21 = vld [vmem:[%s1418_s12 + $0x20] sm:$0xff]   ;;  %v1320_v28 = vld [vmem:[%s1418_s12 + $0x28] sm:$0xff]  }
  0x14   : > { %v1440_v12 = vunpack.c.l.bf16 %v1317_v6  ;;  %v1445_v16 = vunpack.c.h.bf16 %v1317_v6  ;;  %v1449_v19 = vunpack.c.l.bf16 %v1318_v14  ;;  %v1454_v23 = vunpack.c.h.bf16 %v1318_v14  ;;  %v1321_v35 = vld [vmem:[%s1418_s12 + $0x30] sm:$0xff]   ;;  %v1322_v42 = vld [vmem:[%s1418_s12 + $0x38] sm:$0xff]   ;;  %v1323_v49 = vld [vmem:[%s1418_s12 + $0x40] sm:$0xff]  }
  0x15   : > { %v368_v8 = vsel %vm367_vm1, %v1425_v3, 0.0  ;;  %v369_v9 = vsel %vm367_vm1, %v1427_v4, 0.0  ;;  %v371_v10 = vsel %vm367_vm1, %v1429_v5, 0.0  ;;  %v373_v13 = vsel %vm367_vm1, %v1432_v7, 0.0  ;;  %v1324_v56 = vld [vmem:[%s1418_s12 + $0x48] sm:$0xff]   ;;  %v1325_v63 = vld [vmem:[%s1418_s12 + $0x50] sm:$0xff]  }
  0x16   : > { %v370_v11 = vadd.f32 %v369_v9, %v368_v8  ;;  %v375_v17 = vsel %vm367_vm1, %v1440_v12, 0.0  ;;  %v377_v20 = vsel %vm367_vm1, %v1445_v16, 0.0  ;;  %v379_v24 = vsel %vm367_vm1, %v1449_v19, 0.0 }
  0x17   : > { %v1458_v26 = vunpack.c.l.bf16 %v1319_v21  ;;  %v381_v27 = vsel %vm367_vm1, %v1454_v23, 0.0  ;;  %v1463_v30 = vunpack.c.h.bf16 %v1319_v21  ;;  %v1467_v33 = vunpack.c.l.bf16 %v1320_v28 }
  0x18   : > { %v372_v15 = vadd.f32 %v371_v10, %v370_v11  ;;  %v1472_v37 = vunpack.c.h.bf16 %v1320_v28  ;;  %v1476_v40 = vunpack.c.l.bf16 %v1321_v35  ;;  %v1481_v44 = vunpack.c.h.bf16 %v1321_v35  ;;  %v1326_v10 = vld [vmem:[%s1418_s12 + $0x58] sm:$0xff]   ;;  %v1328_v28 = vld [vmem:[%s1418_s12 + $0x68] sm:$0xff]  }
  0x19   : > { %v383_v31 = vsel %vm367_vm1, %v1458_v26, 0.0  ;;  %v385_v34 = vsel %vm367_vm1, %v1463_v30, 0.0  ;;  %v387_v38 = vsel %vm367_vm1, %v1467_v33, 0.0  ;;  %v1485_v47 = vunpack.c.l.bf16 %v1322_v42 }
  0x1a   : > { %v374_v18 = vadd.f32 %v373_v13, %v372_v15  ;;  %v389_v41 = vsel %vm367_vm1, %v1472_v37, 0.0  ;;  %v391_v45 = vsel %vm367_vm1, %v1476_v40, 0.0  ;;  %v393_v48 = vsel %vm367_vm1, %v1481_v44, 0.0 }
  0x1b   : > { %v1490_v51 = vunpack.c.h.bf16 %v1322_v42  ;;  %v395_v52 = vsel %vm367_vm1, %v1485_v47, 0.0  ;;  %v1494_v54 = vunpack.c.l.bf16 %v1323_v49  ;;  %v1499_v58 = vunpack.c.h.bf16 %v1323_v49 }
  0x1c   : > { %v376_v22 = vadd.f32 %v375_v17, %v374_v18  ;;  %v1503_v61 = vunpack.c.l.bf16 %v1324_v56  ;;  %v1508_v1 = vunpack.c.h.bf16 %v1324_v56  ;;  %v1512_v8 = vunpack.c.l.bf16 %v1325_v63 }
  0x1d   : > { %v397_v55 = vsel %vm367_vm1, %v1490_v51, 0.0  ;;  %v399_v59 = vsel %vm367_vm1, %v1494_v54, 0.0  ;;  %v401_v62 = vsel %vm367_vm1, %v1499_v58, 0.0  ;;  %v1517_v13 = vunpack.c.h.bf16 %v1325_v63 }
  0x1e   : > { %v378_v25 = vadd.f32 %v377_v20, %v376_v22  ;;  %v403_v2 = vsel %vm367_vm1, %v1503_v61, 0.0  ;;  %v405_v9 = vsel %vm367_vm1, %v1508_v1, 0.0  ;;  %v407_v14 = vsel %vm367_vm1, %v1512_v8, 0.0  ;;  %v1327_v20 = vld [vmem:[%s1418_s12 + $0x60] sm:$0xff]  }
  0x1f   : > { %v1521_v17 = vunpack.c.l.bf16 %v1326_v10  ;;  %v409_v18 = vsel %vm367_vm1, %v1517_v13, 0.0  ;;  %v1526_v22 = vunpack.c.h.bf16 %v1326_v10  ;;  %v629_v35 = vmul.f32 %v1425_v3, %v1425_v3 }
  0x20   : > { %v380_v29 = vadd.f32 %v379_v24, %v378_v25  ;;  %v634_v56 = vmul.f32 %v1445_v16, %v1445_v16 }
  0x21   : > { %v411_v24 = vsel %vm367_vm1, %v1521_v17, 0.0 }
  0x22   : > { %v382_v32 = vadd.f32 %v381_v27, %v380_v29  ;;  %v1530_v27 = vunpack.c.l.bf16 %v1327_v20  ;;  %v413_v29 = vsel %vm367_vm1, %v1526_v22, 0.0 }
  0x24   : > { %v384_v36 = vadd.f32 %v383_v31, %v382_v32  ;;  %v1535_v31 = vunpack.c.h.bf16 %v1327_v20 }
  0x26   : > { %v386_v39 = vadd.f32 %v385_v34, %v384_v36  ;;  %v415_v34 = vsel %vm367_vm1, %v1530_v27, 0.0  ;;  %v630_v36 = vmul.f32 %v1427_v4, %v1427_v4  ;;  %v417_v42 = vsel %vm367_vm1, %v1535_v31, 0.0 }
  0x28   : > { %v388_v43 = vadd.f32 %v387_v38, %v386_v39  ;;  %v631_v38 = vmul.f32 %v1429_v5, %v1429_v5  ;;  %v1545_v39 = vunpack.c.l.bf16 %v1328_v28  ;;  %v633_v5 = vmul.f32 %v1440_v12, %v1440_v12  ;;  %v1330_v12 = vld [vmem:[%s1418_s12 + $0x78] sm:$0xff]  }
  0x29   : > { %v758_v49 = vsel %vm367_vm1, %v630_v36, 0.0  ;;  %v1576_v10 = vunpack.c.l.bf16 %v1330_v12  ;;  %v1332_v36 = vld [vmem:[%s1418_s12 + $0x88] sm:$0xff]  }
  0x2a   : > { %v390_v46 = vadd.f32 %v389_v41, %v388_v43  ;;  %v632_v43 = vmul.f32 %v1432_v7, %v1432_v7  ;;  %v419_v4 = vsel %vm367_vm1, %v1545_v39, 0.0 }
  0x2c   : > { %v392_v50 = vadd.f32 %v391_v45, %v390_v46  ;;  %v1551_v45 = vunpack.c.h.bf16 %v1328_v28  ;;  %v1329_v46 = vld [vmem:[%s1418_s12 + $0x70] sm:$0xff]  }
  0x2e   : > { %v394_v53 = vadd.f32 %v393_v48, %v392_v50  ;;  %v757_v48 = vsel %vm367_vm1, %v629_v35, 0.0  ;;  %v760_v50 = vsel %vm367_vm1, %v631_v38, 0.0  ;;  %v421_v7 = vsel %vm367_vm1, %v1551_v45, 0.0 }
  0x30   : > { %v396_v57 = vadd.f32 %v395_v52, %v394_v53  ;;  %v759_v53 = vadd.f32 %v758_v49, %v757_v48  ;;  %v640_v48 = vmul.f32 %v1472_v37, %v1472_v37 }
  0x32   : > { %v398_v60 = vadd.f32 %v397_v55, %v396_v57  ;;  %v1561_v55 = vunpack.c.l.bf16 %v1329_v46  ;;  %v762_v57 = vsel %vm367_vm1, %v632_v43, 0.0  ;;  %v639_v43 = vmul.f32 %v1467_v33, %v1467_v33 }
  0x34   : > { %v400_v0 = vadd.f32 %v399_v59, %v398_v60  ;;  %v761_v60 = vadd.f32 %v760_v50, %v759_v53  ;;  %v423_v63 = vsel %vm367_vm1, %v1561_v55, 0.0  ;;  %v1333_v50 = vld [vmem:[%s1418_s12 + $0x90] sm:$0xff]  }
  0x36   : > { %v402_v6 = vadd.f32 %v401_v62, %v400_v0  ;;  %v1569_v62 = vunpack.c.h.bf16 %v1329_v46  ;;  %v635_v0 = vmul.f32 %v1449_v19, %v1449_v19  ;;  %v427_v19 = vsel %vm367_vm1, %v1576_v10, 0.0 }
  0x38   : > { %v404_v11 = vadd.f32 %v403_v2, %v402_v6  ;;  %v764_v2 = vsel %vm367_vm1, %v633_v5, 0.0  ;;  %v425_v16 = vsel %vm367_vm1, %v1569_v62, 0.0  ;;  %v1606_v5 = vunpack.c.l.bf16 %v1332_v36 }
  0x3a   : > { %v406_v15 = vadd.f32 %v405_v9, %v404_v11  ;;  %v763_v9 = vadd.f32 %v762_v57, %v761_v60  ;;  %v636_v11 = vmul.f32 %v1454_v23, %v1454_v23  ;;  %v435_v33 = vsel %vm367_vm1, %v1606_v5, 0.0 }
  0x3b   : > { %v776_v57 = vsel %vm367_vm1, %v639_v43, 0.0  ;;  %v1621_v60 = vunpack.c.l.bf16 %v1333_v50 }
  0x3c   : > { %v408_v21 = vadd.f32 %v407_v14, %v406_v15  ;;  %v766_v14 = vsel %vm367_vm1, %v634_v56, 0.0  ;;  %v1331_v15 = vld [vmem:[%s1418_s12 + $0x80] sm:$0xff]   ;;  %v765_v20 = vadd.f32 %v764_v2, %v763_v9  ;;  %v770_v35 = vsel %vm367_vm1, %v636_v11, 0.0  ;;  %v1334_v2 = vld [vmem:[%s1418_s12 + $0x98] sm:$0xff]  }
  0x3d   : > { %v641_v56 = vmul.f32 %v1476_v40, %v1476_v40  ;;  %v439_v40 = vsel %vm367_vm1, %v1621_v60, 0.0  ;;  %v643_v11 = vmul.f32 %v1485_v47, %v1485_v47 }
  0x3e   : > { %v410_v25 = vadd.f32 %v409_v18, %v408_v21  ;;  %v1584_v21 = vunpack.c.h.bf16 %v1330_v12 }
  0x40   : > { %v412_v32 = vadd.f32 %v411_v24, %v410_v25  ;;  %v637_v24 = vmul.f32 %v1458_v26, %v1458_v26  ;;  %v768_v25 = vsel %vm367_vm1, %v635_v0, 0.0  ;;  %v429_v23 = vsel %vm367_vm1, %v1584_v21, 0.0 }
  0x41   : > { %v778_v0 = vsel %vm367_vm1, %v640_v48, 0.0  ;;  %v647_v48 = vmul.f32 %v1503_v61, %v1503_v61 }
  0x42   : > { %v414_v41 = vadd.f32 %v413_v29, %v412_v32  ;;  %v767_v29 = vadd.f32 %v766_v14, %v765_v20  ;;  %v1591_v32 = vunpack.c.l.bf16 %v1331_v15  ;;  %v772_v46 = vsel %vm367_vm1, %v637_v24, 0.0 }
  0x43   : > { %v780_v14 = vsel %vm367_vm1, %v641_v56, 0.0  ;;  %v1636_v20 = vunpack.c.l.bf16 %v1334_v2 }
  0x44   : > { %v416_v3 = vadd.f32 %v415_v34, %v414_v41  ;;  %v638_v34 = vmul.f32 %v1463_v30, %v1463_v30  ;;  %v769_v41 = vadd.f32 %v768_v25, %v767_v29  ;;  %v431_v26 = vsel %vm367_vm1, %v1591_v32, 0.0  ;;  %v1335_v25 = vld [vmem:[%s1418_s12 + $0xa0] sm:$0xff]  }
  0x45   : > { %v443_v47 = vsel %vm367_vm1, %v1636_v20, 0.0 }
  0x46   : > { %v418_v52 = vadd.f32 %v417_v42, %v416_v3  ;;  %v1599_v42 = vunpack.c.h.bf16 %v1331_v15  ;;  %v774_v49 = vsel %vm367_vm1, %v638_v34, 0.0  ;;  %v645_v34 = vmul.f32 %v1494_v54, %v1494_v54 }
  0x48   : > { %v420_v59 = vadd.f32 %v419_v4, %v418_v52  ;;  %v771_v4 = vadd.f32 %v770_v35, %v769_v41  ;;  %v433_v30 = vsel %vm367_vm1, %v1599_v42, 0.0  ;;  %v784_v35 = vsel %vm367_vm1, %v643_v11, 0.0 }
  0x49   : > { %v1651_v41 = vunpack.c.l.bf16 %v1335_v25 }
  0x4a   : > { %v422_v6 = vadd.f32 %v421_v7, %v420_v59  ;;  %v773_v53 = vadd.f32 %v772_v46, %v771_v4  ;;  %v1614_v7 = vunpack.c.h.bf16 %v1332_v36  ;;  %v1336_v46 = vld [vmem:[%s1418_s12 + $0xa8] sm:$0xff]  }
  0x4b   : > { %v447_v54 = vsel %vm367_vm1, %v1651_v41, 0.0 }
  0x4c   : > { %v424_v18 = vadd.f32 %v423_v63, %v422_v6  ;;  %v775_v59 = vadd.f32 %v774_v49, %v773_v53  ;;  %v437_v37 = vsel %vm367_vm1, %v1614_v7, 0.0  ;;  %v642_v63 = vmul.f32 %v1481_v44, %v1481_v44 }
  0x4d   : > { %v788_v49 = vsel %vm367_vm1, %v645_v34, 0.0  ;;  %v1666_v53 = vunpack.c.l.bf16 %v1336_v46 }
  0x4e   : > { %v426_v28 = vadd.f32 %v425_v16, %v424_v18  ;;  %v777_v9 = vadd.f32 %v776_v57, %v775_v59  ;;  %v1629_v16 = vunpack.c.h.bf16 %v1333_v50  ;;  %v782_v24 = vsel %vm367_vm1, %v642_v63, 0.0  ;;  %v1337_v57 = vld [vmem:[%s1418_s12 + $0xb0] sm:$0xff]  }
  0x4f   : > { %v451_v61 = vsel %vm367_vm1, %v1666_v53, 0.0  ;;  %v649_v63 = vmul.f32 %v1512_v8, %v1512_v8 }
  0x50   : > { %v428_v38 = vadd.f32 %v427_v19, %v426_v28  ;;  %v779_v18 = vadd.f32 %v778_v0, %v777_v9  ;;  %v441_v44 = vsel %vm367_vm1, %v1629_v16, 0.0  ;;  %v644_v19 = vmul.f32 %v1490_v51, %v1490_v51 }
  0x51   : > { %v792_v0 = vsel %vm367_vm1, %v647_v48, 0.0  ;;  %v1681_v9 = vunpack.c.l.bf16 %v1337_v57 }
  0x52   : > { %v430_v3 = vadd.f32 %v429_v23, %v428_v38  ;;  %v781_v29 = vadd.f32 %v780_v14, %v779_v18  ;;  %v1644_v23 = vunpack.c.h.bf16 %v1334_v2  ;;  %v786_v43 = vsel %vm367_vm1, %v644_v19, 0.0  ;;  %v1338_v14 = vld [vmem:[%s1418_s12 + $0xb8] sm:$0xff]  }
  0x53   : > { %v455_v8 = vsel %vm367_vm1, %v1681_v9, 0.0  ;;  %v651_v19 = vmul.f32 %v1521_v17, %v1521_v17 }
  0x54   : > { %v432_v52 = vadd.f32 %v431_v26, %v430_v3  ;;  %v783_v38 = vadd.f32 %v782_v24, %v781_v29  ;;  %v445_v51 = vsel %vm367_vm1, %v1644_v23, 0.0  ;;  %v646_v26 = vmul.f32 %v1499_v58, %v1499_v58 }
  0x55   : > { %v796_v24 = vsel %vm367_vm1, %v649_v63, 0.0  ;;  %v1696_v29 = vunpack.c.l.bf16 %v1338_v14 }
  0x56   : > { %v434_v12 = vadd.f32 %v433_v30, %v432_v52  ;;  %v785_v4 = vadd.f32 %v784_v35, %v783_v38  ;;  %v1659_v30 = vunpack.c.h.bf16 %v1335_v25  ;;  %v790_v56 = vsel %vm367_vm1, %v646_v26, 0.0  ;;  %v1339_v35 = vld [vmem:[%s1418_s12 + $0xc0] sm:$0xff]  }
  0x57   : > { %v459_v17 = vsel %vm367_vm1, %v1696_v29, 0.0  ;;  %v653_v26 = vmul.f32 %v1530_v27, %v1530_v27 }
  0x58   : > { %v436_v6 = vadd.f32 %v435_v33, %v434_v12  ;;  %v787_v52 = vadd.f32 %v786_v43, %v785_v4  ;;  %v449_v58 = vsel %vm367_vm1, %v1659_v30, 0.0  ;;  %v648_v33 = vmul.f32 %v1508_v1, %v1508_v1 }
  0x59   : > { %v800_v43 = vsel %vm367_vm1, %v651_v19, 0.0  ;;  %v1711_v4 = vunpack.c.l.bf16 %v1339_v35 }
  0x5a   : > { %v438_v15 = vadd.f32 %v437_v37, %v436_v6  ;;  %v789_v59 = vadd.f32 %v788_v49, %v787_v52  ;;  %v1674_v37 = vunpack.c.h.bf16 %v1336_v46  ;;  %v794_v11 = vsel %vm367_vm1, %v648_v33, 0.0  ;;  %v1340_v49 = vld [vmem:[%s1418_s12 + $0xc8] sm:$0xff]  }
  0x5b   : > { %v463_v27 = vsel %vm367_vm1, %v1711_v4, 0.0  ;;  %v655_v33 = vmul.f32 %v1545_v39, %v1545_v39 }
  0x5c   : > { %v440_v28 = vadd.f32 %v439_v40, %v438_v15  ;;  %v791_v6 = vadd.f32 %v790_v56, %v789_v59  ;;  %v453_v1 = vsel %vm367_vm1, %v1674_v37, 0.0  ;;  %v650_v40 = vmul.f32 %v1517_v13, %v1517_v13 }
  0x5d   : > { %v804_v56 = vsel %vm367_vm1, %v653_v26, 0.0  ;;  %v1726_v59 = vunpack.c.l.bf16 %v1340_v49 }
  0x5e   : > { %v442_v36 = vadd.f32 %v441_v44, %v440_v28  ;;  %v793_v18 = vadd.f32 %v792_v0, %v791_v6  ;;  %v1689_v44 = vunpack.c.h.bf16 %v1337_v57  ;;  %v798_v34 = vsel %vm367_vm1, %v650_v40, 0.0  ;;  %v1341_v0 = vld [vmem:[%s1418_s12 + $0xd0] sm:$0xff]  }
  0x5f   : > { %v467_v39 = vsel %vm367_vm1, %v1726_v59, 0.0  ;;  %v657_v40 = vmul.f32 %v1561_v55, %v1561_v55 }
  0x60   : > { %v444_v3 = vadd.f32 %v443_v47, %v442_v36  ;;  %v795_v28 = vadd.f32 %v794_v11, %v793_v18  ;;  %v457_v13 = vsel %vm367_vm1, %v1689_v44, 0.0  ;;  %v652_v47 = vmul.f32 %v1526_v22, %v1526_v22 }
  0x61   : > { %v808_v11 = vsel %vm367_vm1, %v655_v33, 0.0  ;;  %v1741_v18 = vunpack.c.l.bf16 %v1341_v0 }
  0x62   : > { %v446_v50 = vadd.f32 %v445_v51, %v444_v3  ;;  %v797_v38 = vadd.f32 %v796_v24, %v795_v28  ;;  %v1704_v51 = vunpack.c.h.bf16 %v1338_v14  ;;  %v802_v48 = vsel %vm367_vm1, %v652_v47, 0.0  ;;  %v1342_v24 = vld [vmem:[%s1418_s12 + $0xd8] sm:$0xff]  }
  0x63   : > { %v471_v55 = vsel %vm367_vm1, %v1741_v18, 0.0  ;;  %v659_v47 = vmul.f32 %v1576_v10, %v1576_v10 }
  0x64   : > { %v448_v12 = vadd.f32 %v447_v54, %v446_v50  ;;  %v799_v3 = vadd.f32 %v798_v34, %v797_v38  ;;  %v461_v22 = vsel %vm367_vm1, %v1704_v51, 0.0  ;;  %v654_v54 = vmul.f32 %v1535_v31, %v1535_v31 }
  0x65   : > { %v812_v34 = vsel %vm367_vm1, %v657_v40, 0.0  ;;  %v1756_v38 = vunpack.c.l.bf16 %v1342_v24 }
  0x66   : > { %v450_v2 = vadd.f32 %v449_v58, %v448_v12  ;;  %v801_v52 = vadd.f32 %v800_v43, %v799_v3  ;;  %v1719_v58 = vunpack.c.h.bf16 %v1339_v35  ;;  %v806_v63 = vsel %vm367_vm1, %v654_v54, 0.0  ;;  %v1343_v43 = vld [vmem:[%s1418_s12 + $0xe0] sm:$0xff]  }
  0x67   : > { %v475_v10 = vsel %vm367_vm1, %v1756_v38, 0.0  ;;  %v661_v54 = vmul.f32 %v1591_v32, %v1591_v32 }
  0x68   : > { %v452_v15 = vadd.f32 %v451_v61, %v450_v2  ;;  %v803_v12 = vadd.f32 %v802_v48, %v801_v52  ;;  %v465_v31 = vsel %vm367_vm1, %v1719_v58, 0.0  ;;  %v656_v61 = vmul.f32 %v1551_v45, %v1551_v45 }
  0x69   : > { %v816_v48 = vsel %vm367_vm1, %v659_v47, 0.0  ;;  %v1771_v52 = vunpack.c.l.bf16 %v1343_v43 }
  0x6a   : > { %v454_v25 = vadd.f32 %v453_v1, %v452_v15  ;;  %v805_v6 = vadd.f32 %v804_v56, %v803_v12  ;;  %v1734_v1 = vunpack.c.h.bf16 %v1340_v49  ;;  %v810_v19 = vsel %vm367_vm1, %v656_v61, 0.0  ;;  %v1344_v56 = vld [vmem:[%s1418_s12 + $0xe8] sm:$0xff]  }
  0x6b   : > { %v479_v32 = vsel %vm367_vm1, %v1771_v52, 0.0  ;;  %v663_v61 = vmul.f32 %v1606_v5, %v1606_v5 }
  0x6c   : > { %v456_v36 = vadd.f32 %v455_v8, %v454_v25  ;;  %v807_v15 = vadd.f32 %v806_v63, %v805_v6  ;;  %v469_v45 = vsel %vm367_vm1, %v1734_v1, 0.0  ;;  %v658_v8 = vmul.f32 %v1569_v62, %v1569_v62 }
  0x6d   : > { %v820_v63 = vsel %vm367_vm1, %v661_v54, 0.0  ;;  %v1786_v6 = vunpack.c.l.bf16 %v1344_v56 }
  0x6e   : > { %v458_v46 = vadd.f32 %v457_v13, %v456_v36  ;;  %v809_v28 = vadd.f32 %v808_v11, %v807_v15  ;;  %v1749_v13 = vunpack.c.h.bf16 %v1341_v0  ;;  %v814_v26 = vsel %vm367_vm1, %v658_v8, 0.0  ;;  %v1345_v11 = vld [vmem:[%s1418_s12 + $0xf0] sm:$0xff]  }
  0x6f   : > { %v483_v5 = vsel %vm367_vm1, %v1786_v6, 0.0  ;;  %v665_v8 = vmul.f32 %v1621_v60, %v1621_v60 }
  0x70   : > { %v460_v50 = vadd.f32 %v459_v17, %v458_v46  ;;  %v811_v36 = vadd.f32 %v810_v19, %v809_v28  ;;  %v473_v62 = vsel %vm367_vm1, %v1749_v13, 0.0  ;;  %v660_v17 = vmul.f32 %v1584_v21, %v1584_v21 }
  0x71   : > { %v824_v19 = vsel %vm367_vm1, %v663_v61, 0.0  ;;  %v1801_v28 = vunpack.c.l.bf16 %v1345_v11 }
  0x72   : > { %v462_v57 = vadd.f32 %v461_v22, %v460_v50  ;;  %v813_v3 = vadd.f32 %v812_v34, %v811_v36  ;;  %v1764_v22 = vunpack.c.h.bf16 %v1342_v24  ;;  %v818_v33 = vsel %vm367_vm1, %v660_v17, 0.0  ;;  %v1346_v34 = vld [vmem:[%s1418_s12 + $0xf8] sm:$0xff]  }
  0x73   : > { %v487_v60 = vsel %vm367_vm1, %v1801_v28, 0.0  ;;  %v667_v17 = vmul.f32 %v1636_v20, %v1636_v20 }
  0x74   : > { %v464_v2 = vadd.f32 %v463_v27, %v462_v57  ;;  %v815_v50 = vadd.f32 %v814_v26, %v813_v3  ;;  %v477_v21 = vsel %vm367_vm1, %v1764_v22, 0.0  ;;  %v662_v27 = vmul.f32 %v1599_v42, %v1599_v42 }
  0x75   : > { %v828_v26 = vsel %vm367_vm1, %v665_v8, 0.0  ;;  %v1816_v3 = vunpack.c.l.bf16 %v1346_v34 }
  0x76   : > { %v466_v14 = vadd.f32 %v465_v31, %v464_v2  ;;  %v817_v12 = vadd.f32 %v816_v48, %v815_v50  ;;  %v1779_v31 = vunpack.c.h.bf16 %v1343_v43  ;;  %v822_v40 = vsel %vm367_vm1, %v662_v27, 0.0  ;;  %v1347_v48 = vld [vmem:[%s1418_s12 + $0x100] sm:$0xff]  }
  0x77   : > { %v491_v20 = vsel %vm367_vm1, %v1816_v3, 0.0  ;;  %v669_v27 = vmul.f32 %v1651_v41, %v1651_v41 }
  0x78   : > { %v468_v25 = vadd.f32 %v467_v39, %v466_v14  ;;  %v819_v2 = vadd.f32 %v818_v33, %v817_v12  ;;  %v481_v42 = vsel %vm367_vm1, %v1779_v31, 0.0  ;;  %v664_v39 = vmul.f32 %v1614_v7, %v1614_v7 }
  0x79   : > { %v832_v33 = vsel %vm367_vm1, %v667_v17, 0.0  ;;  %v1831_v12 = vunpack.c.l.bf16 %v1347_v48  ;;  %v1350_v17 = vld [vmem:[%s1418_s12 + $0x118] sm:$0xff]  }
  0x7a   : > { %v470_v35 = vadd.f32 %v469_v45, %v468_v25  ;;  %v821_v15 = vadd.f32 %v820_v63, %v819_v2  ;;  %v1794_v45 = vunpack.c.h.bf16 %v1344_v56  ;;  %v826_v47 = vsel %vm367_vm1, %v664_v39, 0.0  ;;  %v1348_v63 = vld [vmem:[%s1418_s12 + $0x108] sm:$0xff]  }
  0x7b   : > { %v495_v41 = vsel %vm367_vm1, %v1831_v12, 0.0  ;;  %v671_v39 = vmul.f32 %v1666_v53, %v1666_v53 }
  0x7c   : > { %v472_v46 = vadd.f32 %v471_v55, %v470_v35  ;;  %v823_v25 = vadd.f32 %v822_v40, %v821_v15  ;;  %v485_v7 = vsel %vm367_vm1, %v1794_v45, 0.0  ;;  %v666_v55 = vmul.f32 %v1629_v16, %v1629_v16 }
  0x7d   : > { %v836_v40 = vsel %vm367_vm1, %v669_v27, 0.0  ;;  %v1846_v15 = vunpack.c.l.bf16 %v1348_v63 }
  0x7e   : > { %v474_v49 = vadd.f32 %v473_v62, %v472_v46  ;;  %v825_v36 = vadd.f32 %v824_v19, %v823_v25  ;;  %v1809_v62 = vunpack.c.h.bf16 %v1345_v11  ;;  %v830_v54 = vsel %vm367_vm1, %v666_v55, 0.0  ;;  %v1349_v19 = vld [vmem:[%s1418_s12 + $0x110] sm:$0xff]  }
  0x7f   : > { %v499_v53 = vsel %vm367_vm1, %v1846_v15, 0.0  ;;  %v673_v55 = vmul.f32 %v1681_v9, %v1681_v9 }
  0x80   : > { %v476_v57 = vadd.f32 %v475_v10, %v474_v49  ;;  %v827_v46 = vadd.f32 %v826_v47, %v825_v36  ;;  %v489_v16 = vsel %vm367_vm1, %v1809_v62, 0.0  ;;  %v668_v10 = vmul.f32 %v1644_v23, %v1644_v23 }
  0x81   : > { %v840_v47 = vsel %vm367_vm1, %v671_v39, 0.0  ;;  %v1861_v36 = vunpack.c.l.bf16 %v1349_v19 }
  0x82   : > { %v478_v0 = vadd.f32 %v477_v21, %v476_v57  ;;  %v829_v50 = vadd.f32 %v828_v26, %v827_v46  ;;  %v1824_v21 = vunpack.c.h.bf16 %v1346_v34  ;;  %v834_v61 = vsel %vm367_vm1, %v668_v10, 0.0 }
  0x83   : > { %v503_v9 = vsel %vm367_vm1, %v1861_v36, 0.0  ;;  %v844_v10 = vsel %vm367_vm1, %v673_v55, 0.0 }
  0x84   : > { %v480_v14 = vadd.f32 %v479_v32, %v478_v0  ;;  %v831_v57 = vadd.f32 %v830_v54, %v829_v50  ;;  %v493_v23 = vsel %vm367_vm1, %v1824_v21, 0.0  ;;  %v670_v32 = vmul.f32 %v1659_v30, %v1659_v30 }
  0x85   : > { %v1876_v50 = vunpack.c.l.bf16 %v1350_v17 }
  0x86   : > { %v482_v24 = vadd.f32 %v481_v42, %v480_v14  ;;  %v833_v2 = vadd.f32 %v832_v33, %v831_v57  ;;  %v1839_v42 = vunpack.c.h.bf16 %v1347_v48  ;;  %v838_v8 = vsel %vm367_vm1, %v670_v32, 0.0 }
  0x87   : > { %v675_v48 = vmul.f32 %v1696_v29, %v1696_v29  ;;  %v676_v33 = vmul.f32 %v1704_v51, %v1704_v51  ;;  %v507_v29 = vsel %vm367_vm1, %v1876_v50, 0.0 }
  0x88   : > { %v484_v35 = vadd.f32 %v483_v5, %v482_v24  ;;  %v835_v14 = vadd.f32 %v834_v61, %v833_v2  ;;  %v497_v30 = vsel %vm367_vm1, %v1839_v42, 0.0  ;;  %v672_v5 = vmul.f32 %v1674_v37, %v1674_v37 }
  0x89   : > { %v677_v61 = vmul.f32 %v1711_v4, %v1711_v4 }
  0x8a   : > { %v486_v43 = vadd.f32 %v485_v7, %v484_v35  ;;  %v837_v25 = vadd.f32 %v836_v40, %v835_v14  ;;  %v1854_v7 = vunpack.c.h.bf16 %v1348_v63  ;;  %v848_v63 = vsel %vm367_vm1, %v675_v48, 0.0 }
  0x8b   : > { %v678_v40 = vmul.f32 %v1719_v58, %v1719_v58 }
  0x8c   : > { %v488_v49 = vadd.f32 %v487_v60, %v486_v43  ;;  %v839_v35 = vadd.f32 %v838_v8, %v837_v25  ;;  %v501_v37 = vsel %vm367_vm1, %v1854_v7, 0.0  ;;  %v842_v60 = vsel %vm367_vm1, %v672_v5, 0.0 }
  0x8d   : > { %v674_v43 = vmul.f32 %v1689_v44, %v1689_v44  ;;  %v1351_v44 = vld [vmem:[%s1418_s12 + $0x120] sm:$0xff]   ;;  %v679_v8 = vmul.f32 %v1726_v59, %v1726_v59 }
  0x8e   : > { %v490_v56 = vadd.f32 %v489_v16, %v488_v49  ;;  %v841_v46 = vadd.f32 %v840_v47, %v839_v35  ;;  %v1869_v16 = vunpack.c.h.bf16 %v1349_v19  ;;  %v1899_v14 = vunpack.c.h.bf16 %v1351_v44 }
  0x8f   : > { %v846_v57 = vsel %vm367_vm1, %v674_v43, 0.0  ;;  %v852_v19 = vsel %vm367_vm1, %v677_v61, 0.0  ;;  %v680_v47 = vmul.f32 %v1734_v1, %v1734_v1  ;;  %v684_v61 = vmul.f32 %v1764_v22, %v1764_v22 }
  0x90   : > { %v492_v0 = vadd.f32 %v491_v20, %v490_v56  ;;  %v843_v49 = vadd.f32 %v842_v60, %v841_v46  ;;  %v505_v20 = vsel %vm367_vm1, %v1869_v16, 0.0  ;;  %v513_v58 = vsel %vm367_vm1, %v1899_v14, 0.0 }
  0x91   : > { %v858_v48 = vsel %vm367_vm1, %v680_v47, 0.0 }
  0x92   : > { %v494_v11 = vadd.f32 %v493_v23, %v492_v0  ;;  %v845_v56 = vadd.f32 %v844_v10, %v843_v49  ;;  %v1884_v23 = vunpack.c.h.bf16 %v1350_v17  ;;  %v1891_v0 = vunpack.c.l.bf16 %v1351_v44 }
  0x93   : > { %v681_v17 = vmul.f32 %v1741_v18, %v1741_v18 }
  0x94   : > { %v496_v24 = vadd.f32 %v495_v41, %v494_v11  ;;  %v509_v51 = vsel %vm367_vm1, %v1884_v23, 0.0  ;;  %v847_v2 = vadd.f32 %v846_v57, %v845_v56  ;;  %v1352_v41 = vld [vmem:[%s1418_s12 + $0x128] sm:$0xff]   ;;  %v850_v11 = vsel %vm367_vm1, %v676_v33, 0.0 }
  0x95   : > { %v511_v4 = vsel %vm367_vm1, %v1891_v0, 0.0  ;;  %v1914_v35 = vunpack.c.h.bf16 %v1352_v41  ;;  %v860_v33 = vsel %vm367_vm1, %v681_v17, 0.0  ;;  %v688_v17 = vmul.f32 %v1794_v45, %v1794_v45 }
  0x96   : > { %v498_v34 = vadd.f32 %v497_v30, %v496_v24  ;;  %v849_v30 = vadd.f32 %v848_v63, %v847_v2  ;;  %v1906_v24 = vunpack.c.l.bf16 %v1352_v41 }
  0x97   : > { %v517_v1 = vsel %vm367_vm1, %v1914_v35, 0.0 }
  0x98   : > { %v500_v26 = vadd.f32 %v499_v53, %v498_v34  ;;  %v851_v25 = vadd.f32 %v850_v11, %v849_v30  ;;  %v1353_v53 = vld [vmem:[%s1418_s12 + $0x130] sm:$0xff]   ;;  %v854_v34 = vsel %vm367_vm1, %v678_v40, 0.0  ;;  %v515_v59 = vsel %vm367_vm1, %v1906_v24, 0.0  ;;  %v1356_v30 = vld [vmem:[%s1418_s12 + $0x148] sm:$0xff]  }
  0x99   : > { %v1921_v43 = vunpack.c.l.bf16 %v1353_v53  ;;  %v1929_v49 = vunpack.c.h.bf16 %v1353_v53 }
  0x9a   : > { %v502_v54 = vadd.f32 %v501_v37, %v500_v26  ;;  %v853_v37 = vadd.f32 %v852_v19, %v851_v25  ;;  %v856_v26 = vsel %vm367_vm1, %v679_v8, 0.0  ;;  %v686_v8 = vmul.f32 %v1779_v31, %v1779_v31 }
  0x9b   : > { %v519_v18 = vsel %vm367_vm1, %v1921_v43, 0.0  ;;  %v866_v19 = vsel %vm367_vm1, %v684_v61, 0.0 }
  0x9c   : > { %v504_v27 = vadd.f32 %v503_v9, %v502_v54  ;;  %v855_v46 = vadd.f32 %v854_v34, %v853_v37  ;;  %v1354_v9 = vld [vmem:[%s1418_s12 + $0x138] sm:$0xff]   ;;  %v682_v54 = vmul.f32 %v1749_v13, %v1749_v13  ;;  %v521_v13 = vsel %vm367_vm1, %v1929_v49, 0.0  ;;  %v1357_v37 = vld [vmem:[%s1418_s12 + $0x150] sm:$0xff]  }
  0x9d   : > { %v1936_v56 = vunpack.c.l.bf16 %v1354_v9  ;;  %v1966_v34 = vunpack.c.l.bf16 %v1356_v30 }
  0x9e   : > { %v506_v32 = vadd.f32 %v505_v20, %v504_v27  ;;  %v857_v20 = vadd.f32 %v856_v26, %v855_v46  ;;  %v683_v27 = vmul.f32 %v1756_v38, %v1756_v38  ;;  %v862_v63 = vsel %vm367_vm1, %v682_v54, 0.0 }
  0x9f   : > { %v523_v38 = vsel %vm367_vm1, %v1936_v56, 0.0  ;;  %v870_v26 = vsel %vm367_vm1, %v686_v8, 0.0 }
  0xa0   : > { %v508_v39 = vadd.f32 %v507_v29, %v506_v32  ;;  %v859_v57 = vadd.f32 %v858_v48, %v857_v20  ;;  %v1355_v29 = vld [vmem:[%s1418_s12 + $0x140] sm:$0xff]   ;;  %v864_v40 = vsel %vm367_vm1, %v683_v27, 0.0  ;;  %v1981_v48 = vunpack.c.l.bf16 %v1357_v37  ;;  %v1358_v20 = vld [vmem:[%s1418_s12 + $0x158] sm:$0xff]  }
  0xa1   : > { %v1951_v11 = vunpack.c.l.bf16 %v1355_v29  ;;  %v690_v27 = vmul.f32 %v1809_v62, %v1809_v62 }
  0xa2   : > { %v510_v5 = vadd.f32 %v509_v51, %v508_v39  ;;  %v1944_v51 = vunpack.c.h.bf16 %v1354_v9  ;;  %v861_v2 = vadd.f32 %v860_v33, %v859_v57  ;;  %v685_v39 = vmul.f32 %v1771_v52, %v1771_v52 }
  0xa3   : > { %v527_v52 = vsel %vm367_vm1, %v1951_v11, 0.0  ;;  %v874_v33 = vsel %vm367_vm1, %v688_v17, 0.0 }
  0xa4   : > { %v512_v55 = vadd.f32 %v511_v4, %v510_v5  ;;  %v525_v22 = vsel %vm367_vm1, %v1944_v51, 0.0  ;;  %v863_v4 = vadd.f32 %v862_v63, %v861_v2  ;;  %v868_v47 = vsel %vm367_vm1, %v685_v39, 0.0  ;;  %v1359_v2 = vld [vmem:[%s1418_s12 + $0x160] sm:$0xff]  }
  0xa5   : > { %v1996_v63 = vunpack.c.l.bf16 %v1358_v20  ;;  %v692_v39 = vmul.f32 %v1824_v21, %v1824_v21 }
  0xa6   : > { %v514_v60 = vadd.f32 %v513_v58, %v512_v55  ;;  %v1959_v58 = vunpack.c.h.bf16 %v1355_v29  ;;  %v865_v25 = vadd.f32 %v864_v40, %v863_v4  ;;  %v687_v55 = vmul.f32 %v1786_v6, %v1786_v6 }
  0xa7   : > { %v531_v6 = vsel %vm367_vm1, %v1966_v34, 0.0  ;;  %v878_v40 = vsel %vm367_vm1, %v690_v27, 0.0 }
  0xa8   : > { %v516_v10 = vadd.f32 %v515_v59, %v514_v60  ;;  %v529_v31 = vsel %vm367_vm1, %v1959_v58, 0.0  ;;  %v867_v59 = vadd.f32 %v866_v19, %v865_v25  ;;  %v872_v54 = vsel %vm367_vm1, %v687_v55, 0.0  ;;  %v1360_v25 = vld [vmem:[%s1418_s12 + $0x168] sm:$0xff]  }
  0xa9   : > { %v2011_v19 = vunpack.c.l.bf16 %v1359_v2  ;;  %v694_v55 = vmul.f32 %v1839_v42, %v1839_v42 }
  0xaa   : > { %v518_v44 = vadd.f32 %v517_v1, %v516_v10  ;;  %v1974_v1 = vunpack.c.h.bf16 %v1356_v30  ;;  %v869_v46 = vadd.f32 %v868_v47, %v867_v59  ;;  %v689_v10 = vmul.f32 %v1801_v28, %v1801_v28 }
  0xab   : > { %v535_v28 = vsel %vm367_vm1, %v1981_v48, 0.0  ;;  %v882_v47 = vsel %vm367_vm1, %v692_v39, 0.0 }
  0xac   : > { %v520_v32 = vadd.f32 %v519_v18, %v518_v44  ;;  %v533_v45 = vsel %vm367_vm1, %v1974_v1, 0.0  ;;  %v871_v18 = vadd.f32 %v870_v26, %v869_v46  ;;  %v876_v61 = vsel %vm367_vm1, %v689_v10, 0.0  ;;  %v1361_v46 = vld [vmem:[%s1418_s12 + $0x170] sm:$0xff]  }
  0xad   : > { %v2026_v26 = vunpack.c.l.bf16 %v1360_v25  ;;  %v696_v10 = vmul.f32 %v1854_v7, %v1854_v7 }
  0xae   : > { %v522_v41 = vadd.f32 %v521_v13, %v520_v32  ;;  %v1989_v13 = vunpack.c.h.bf16 %v1357_v37  ;;  %v873_v57 = vadd.f32 %v872_v54, %v871_v18  ;;  %v691_v32 = vmul.f32 %v1816_v3, %v1816_v3 }
  0xaf   : > { %v539_v3 = vsel %vm367_vm1, %v1996_v63, 0.0  ;;  %v886_v54 = vsel %vm367_vm1, %v694_v55, 0.0 }
  0xb0   : > { %v524_v5 = vadd.f32 %v523_v38, %v522_v41  ;;  %v537_v62 = vsel %vm367_vm1, %v1989_v13, 0.0  ;;  %v875_v38 = vadd.f32 %v874_v33, %v873_v57  ;;  %v880_v8 = vsel %vm367_vm1, %v691_v32, 0.0  ;;  %v1362_v57 = vld [vmem:[%s1418_s12 + $0x178] sm:$0xff]  }
  0xb1   : > { %v2041_v33 = vunpack.c.l.bf16 %v1361_v46  ;;  %v698_v32 = vmul.f32 %v1869_v16, %v1869_v16 }
  0xb2   : > { %v526_v53 = vadd.f32 %v525_v22, %v524_v5  ;;  %v2004_v22 = vunpack.c.h.bf16 %v1358_v20  ;;  %v877_v4 = vadd.f32 %v876_v61, %v875_v38  ;;  %v693_v5 = vmul.f32 %v1831_v12, %v1831_v12 }
  0xb3   : > { %v543_v12 = vsel %vm367_vm1, %v2011_v19, 0.0  ;;  %v890_v61 = vsel %vm367_vm1, %v696_v10, 0.0 }
  0xb4   : > { %v528_v60 = vadd.f32 %v527_v52, %v526_v53  ;;  %v541_v21 = vsel %vm367_vm1, %v2004_v22, 0.0  ;;  %v879_v52 = vadd.f32 %v878_v40, %v877_v4  ;;  %v884_v17 = vsel %vm367_vm1, %v693_v5, 0.0  ;;  %v1363_v4 = vld [vmem:[%s1418_s12 + $0x180] sm:$0xff]  }
  0xb5   : > { %v2056_v40 = vunpack.c.l.bf16 %v1362_v57  ;;  %v700_v5 = vmul.f32 %v1884_v23, %v1884_v23 }
  0xb6   : > { %v530_v9 = vadd.f32 %v529_v31, %v528_v60  ;;  %v2019_v31 = vunpack.c.h.bf16 %v1359_v2  ;;  %v881_v59 = vadd.f32 %v880_v8, %v879_v52  ;;  %v695_v60 = vmul.f32 %v1846_v15, %v1846_v15 }
  0xb7   : > { %v547_v15 = vsel %vm367_vm1, %v2026_v26, 0.0  ;;  %v894_v8 = vsel %vm367_vm1, %v698_v32, 0.0 }
  0xb8   : > { %v532_v44 = vadd.f32 %v531_v6, %v530_v9  ;;  %v545_v42 = vsel %vm367_vm1, %v2019_v31, 0.0  ;;  %v883_v6 = vadd.f32 %v882_v47, %v881_v59  ;;  %v888_v27 = vsel %vm367_vm1, %v695_v60, 0.0  ;;  %v1364_v59 = vld [vmem:[%s1418_s12 + $0x188] sm:$0xff]  }
  0xb9   : > { %v2071_v47 = vunpack.c.l.bf16 %v1363_v4  ;;  %v702_v60 = vmul.f32 %v1899_v14, %v1899_v14 }
  0xba   : > { %v534_v29 = vadd.f32 %v533_v45, %v532_v44  ;;  %v2034_v45 = vunpack.c.h.bf16 %v1360_v25  ;;  %v885_v18 = vadd.f32 %v884_v17, %v883_v6  ;;  %v697_v44 = vmul.f32 %v1861_v36, %v1861_v36 }
  0xbb   : > { %v551_v36 = vsel %vm367_vm1, %v2041_v33, 0.0  ;;  %v898_v17 = vsel %vm367_vm1, %v700_v5, 0.0 }
  0xbc   : > { %v536_v41 = vadd.f32 %v535_v28, %v534_v29  ;;  %v549_v7 = vsel %vm367_vm1, %v2034_v45, 0.0  ;;  %v887_v28 = vadd.f32 %v886_v54, %v885_v18  ;;  %v892_v39 = vsel %vm367_vm1, %v697_v44, 0.0  ;;  %v1365_v18 = vld [vmem:[%s1418_s12 + $0x190] sm:$0xff]  }
  0xbd   : > { %v2086_v54 = vunpack.c.l.bf16 %v1364_v59  ;;  %v704_v44 = vmul.f32 %v1914_v35, %v1914_v35 }
  0xbe   : > { %v538_v30 = vadd.f32 %v537_v62, %v536_v41  ;;  %v2049_v62 = vunpack.c.h.bf16 %v1361_v46  ;;  %v889_v38 = vadd.f32 %v888_v27, %v887_v28  ;;  %v699_v41 = vmul.f32 %v1876_v50, %v1876_v50 }
  0xbf   : > { %v555_v50 = vsel %vm367_vm1, %v2056_v40, 0.0  ;;  %v902_v27 = vsel %vm367_vm1, %v702_v60, 0.0 }
  0xc0   : > { %v540_v53 = vadd.f32 %v539_v3, %v538_v30  ;;  %v553_v16 = vsel %vm367_vm1, %v2049_v62, 0.0  ;;  %v891_v3 = vadd.f32 %v890_v61, %v889_v38  ;;  %v896_v55 = vsel %vm367_vm1, %v699_v41, 0.0  ;;  %v1366_v38 = vld [vmem:[%s1418_s12 + $0x198] sm:$0xff]  }
  0xc1   : > { %v2101_v61 = vunpack.c.l.bf16 %v1365_v18  ;;  %v706_v41 = vmul.f32 %v1929_v49, %v1929_v49 }
  0xc2   : > { %v542_v37 = vadd.f32 %v541_v21, %v540_v53  ;;  %v2064_v21 = vunpack.c.h.bf16 %v1362_v57  ;;  %v893_v52 = vadd.f32 %v892_v39, %v891_v3  ;;  %v701_v53 = vmul.f32 %v1891_v0, %v1891_v0 }
  0xc3   : > { %v559_v0 = vsel %vm367_vm1, %v2071_v47, 0.0  ;;  %v906_v39 = vsel %vm367_vm1, %v704_v44, 0.0 }
  0xc4   : > { %v544_v9 = vadd.f32 %v543_v12, %v542_v37  ;;  %v557_v23 = vsel %vm367_vm1, %v2064_v21, 0.0  ;;  %v895_v12 = vadd.f32 %v894_v8, %v893_v52  ;;  %v900_v10 = vsel %vm367_vm1, %v701_v53, 0.0  ;;  %v1367_v52 = vld [vmem:[%s1418_s12 + $0x1a0] sm:$0xff]  }
  0xc5   : > { %v2116_v8 = vunpack.c.l.bf16 %v1366_v38  ;;  %v708_v53 = vmul.f32 %v1944_v51, %v1944_v51 }
  0xc6   : > { %v546_v20 = vadd.f32 %v545_v42, %v544_v9  ;;  %v2079_v42 = vunpack.c.h.bf16 %v1363_v4  ;;  %v897_v6 = vadd.f32 %v896_v55, %v895_v12  ;;  %v703_v9 = vmul.f32 %v1906_v24, %v1906_v24 }
  0xc7   : > { %v563_v24 = vsel %vm367_vm1, %v2086_v54, 0.0  ;;  %v910_v55 = vsel %vm367_vm1, %v706_v41, 0.0 }
  0xc8   : > { %v548_v29 = vadd.f32 %v547_v15, %v546_v20  ;;  %v561_v14 = vsel %vm367_vm1, %v2079_v42, 0.0  ;;  %v899_v15 = vadd.f32 %v898_v17, %v897_v6  ;;  %v904_v32 = vsel %vm367_vm1, %v703_v9, 0.0  ;;  %v1368_v6 = vld [vmem:[%s1418_s12 + $0x1a8] sm:$0xff]  }
  0xc9   : > { %v2131_v17 = vunpack.c.l.bf16 %v1367_v52  ;;  %v710_v9 = vmul.f32 %v1959_v58, %v1959_v58 }
  0xca   : > { %v550_v2 = vadd.f32 %v549_v7, %v548_v29  ;;  %v2094_v7 = vunpack.c.h.bf16 %v1364_v59  ;;  %v901_v28 = vadd.f32 %v900_v10, %v899_v15  ;;  %v705_v29 = vmul.f32 %v1921_v43, %v1921_v43 }
  0xcb   : > { %v567_v43 = vsel %vm367_vm1, %v2101_v61, 0.0  ;;  %v914_v10 = vsel %vm367_vm1, %v708_v53, 0.0 }
  0xcc   : > { %v552_v30 = vadd.f32 %v551_v36, %v550_v2  ;;  %v565_v35 = vsel %vm367_vm1, %v2094_v7, 0.0  ;;  %v903_v36 = vadd.f32 %v902_v27, %v901_v28  ;;  %v908_v5 = vsel %vm367_vm1, %v705_v29, 0.0  ;;  %v1369_v28 = vld [vmem:[%s1418_s12 + $0x1b0] sm:$0xff]  }
  0xcd   : > { %v2146_v27 = vunpack.c.l.bf16 %v1368_v6  ;;  %v712_v29 = vmul.f32 %v1974_v1, %v1974_v1 }
  0xce   : > { %v554_v25 = vadd.f32 %v553_v16, %v552_v30  ;;  %v2109_v16 = vunpack.c.h.bf16 %v1365_v18  ;;  %v905_v3 = vadd.f32 %v904_v32, %v903_v36  ;;  %v707_v30 = vmul.f32 %v1936_v56, %v1936_v56 }
  0xcf   : > { %v571_v56 = vsel %vm367_vm1, %v2116_v8, 0.0  ;;  %v918_v32 = vsel %vm367_vm1, %v710_v9, 0.0 }
  0xd0   : > { %v556_v37 = vadd.f32 %v555_v50, %v554_v25  ;;  %v569_v49 = vsel %vm367_vm1, %v2109_v16, 0.0  ;;  %v907_v50 = vadd.f32 %v906_v39, %v905_v3  ;;  %v912_v60 = vsel %vm367_vm1, %v707_v30, 0.0 }
  0xd1   : > { %v2161_v39 = vunpack.c.l.bf16 %v1369_v28  ;;  %v922_v30 = vsel %vm367_vm1, %v712_v29, 0.0 }
  0xd2   : > { %v558_v46 = vadd.f32 %v557_v23, %v556_v37  ;;  %v2124_v23 = vunpack.c.h.bf16 %v1366_v38  ;;  %v909_v12 = vadd.f32 %v908_v5, %v907_v50  ;;  %v709_v37 = vmul.f32 %v1951_v11, %v1951_v11 }
  0xd3   : > { %v575_v11 = vsel %vm367_vm1, %v2131_v17, 0.0  ;;  %v2168_v5 = vunpack.c.h.bf16 %v1369_v28 }
  0xd4   : > { %v560_v20 = vadd.f32 %v559_v0, %v558_v46  ;;  %v573_v51 = vsel %vm367_vm1, %v2124_v23, 0.0  ;;  %v911_v0 = vadd.f32 %v910_v55, %v909_v12  ;;  %v916_v44 = vsel %vm367_vm1, %v709_v37, 0.0 }
  0xd5   : > { %v585_v55 = vsel %vm367_vm1, %v2168_v5, 0.0 }
  0xd6   : > { %v562_v57 = vadd.f32 %v561_v14, %v560_v20  ;;  %v2139_v14 = vunpack.c.h.bf16 %v1367_v52  ;;  %v913_v15 = vadd.f32 %v912_v60, %v911_v0  ;;  %v711_v20 = vmul.f32 %v1966_v34, %v1966_v34 }
  0xd7   : > { %v579_v34 = vsel %vm367_vm1, %v2146_v27, 0.0  ;;  %v717_v0 = vmul.f32 %v2011_v19, %v2011_v19  ;;  %v719_v19 = vmul.f32 %v2026_v26, %v2026_v26 }
  0xd8   : > { %v564_v2 = vadd.f32 %v563_v24, %v562_v57  ;;  %v577_v24 = vsel %vm367_vm1, %v2139_v14, 0.0  ;;  %v915_v58 = vadd.f32 %v914_v10, %v913_v15  ;;  %v920_v41 = vsel %vm367_vm1, %v711_v20, 0.0 }
  0xd9   : > { %v718_v10 = vmul.f32 %v2019_v31, %v2019_v31  ;;  %v720_v31 = vmul.f32 %v2034_v45, %v2034_v45  ;;  %v936_v26 = vsel %vm367_vm1, %v719_v19, 0.0  ;;  %v730_v19 = vmul.f32 %v2109_v16, %v2109_v16 }
  0xda   : > { %v566_v4 = vadd.f32 %v565_v35, %v564_v2  ;;  %v2154_v35 = vunpack.c.h.bf16 %v1368_v6  ;;  %v917_v36 = vadd.f32 %v916_v44, %v915_v58  ;;  %v713_v2 = vmul.f32 %v1981_v48, %v1981_v48 }
  0xdb   : > { %v583_v48 = vsel %vm367_vm1, %v2161_v39, 0.0  ;;  %v932_v44 = vsel %vm367_vm1, %v717_v0, 0.0  ;;  %v934_v28 = vsel %vm367_vm1, %v718_v10, 0.0  ;;  %v938_v45 = vsel %vm367_vm1, %v720_v31, 0.0 }
  0xdc   : > { %v568_v25 = vadd.f32 %v567_v43, %v566_v4  ;;  %v581_v43 = vsel %vm367_vm1, %v2154_v35, 0.0  ;;  %v919_v1 = vadd.f32 %v918_v32, %v917_v36  ;;  %v714_v4 = vmul.f32 %v1989_v13, %v1989_v13 }
  0xdd   : > { %v924_v53 = vsel %vm367_vm1, %v713_v2, 0.0  ;;  %v722_v2 = vmul.f32 %v2049_v62, %v2049_v62  ;;  %v724_v62 = vmul.f32 %v2064_v21, %v2064_v21  ;;  %v732_v16 = vmul.f32 %v2124_v23, %v2124_v23 }
  0xde   : > { %v570_v59 = vadd.f32 %v569_v49, %v568_v25  ;;  %v1370_v49 = vld [vmem:[%s1418_s12 + $0x1b8] sm:$0xff]   ;;  %v921_v50 = vadd.f32 %v920_v41, %v919_v1  ;;  %v715_v25 = vmul.f32 %v1996_v63, %v1996_v63  ;;  %v926_v37 = vsel %vm367_vm1, %v714_v4, 0.0  ;;  %v1372_v41 = vld [vmem:[%s1418_s12 + $0x1c8] sm:$0xff]  }
  0xdf   : > { %v2188_v9 = vunpack.c.h.bf16 %v1370_v49  ;;  %v946_v21 = vsel %vm367_vm1, %v724_v62, 0.0  ;;  %v962_v23 = vsel %vm367_vm1, %v732_v16, 0.0 }
  0xe0   : > { %v572_v46 = vadd.f32 %v571_v56, %v570_v59  ;;  %v923_v13 = vadd.f32 %v922_v30, %v921_v50  ;;  %v2178_v56 = vunpack.c.l.bf16 %v1370_v49  ;;  %v716_v59 = vmul.f32 %v2004_v22, %v2004_v22 }
  0xe1   : > { %v928_v6 = vsel %vm367_vm1, %v715_v25, 0.0  ;;  %v589_v20 = vsel %vm367_vm1, %v2188_v9, 0.0  ;;  %v2220_v49 = vunpack.c.l.bf16 %v1372_v41 }
  0xe2   : > { %v574_v18 = vadd.f32 %v573_v51, %v572_v46  ;;  %v925_v60 = vadd.f32 %v924_v53, %v923_v13  ;;  %v587_v63 = vsel %vm367_vm1, %v2178_v56, 0.0  ;;  %v930_v22 = vsel %vm367_vm1, %v716_v59, 0.0  ;;  %v1373_v59 = vld [vmem:[%s1418_s12 + $0x1d0] sm:$0xff]  }
  0xe3   : > { %v595_v25 = vsel %vm367_vm1, %v2220_v49, 0.0  ;;  %v725_v53 = vmul.f32 %v2071_v47, %v2071_v47  ;;  %v2230_v13 = vunpack.c.h.bf16 %v1372_v41  ;;  %v727_v47 = vmul.f32 %v2086_v54, %v2086_v54 }
  0xe4   : > { %v576_v57 = vadd.f32 %v575_v11, %v574_v18  ;;  %v927_v46 = vadd.f32 %v926_v37, %v925_v60  ;;  %v1371_v11 = vld [vmem:[%s1418_s12 + $0x1c0] sm:$0xff]  }
  0xe5   : > { %v2199_v58 = vunpack.c.l.bf16 %v1371_v11  ;;  %v952_v54 = vsel %vm367_vm1, %v727_v47, 0.0 }
  0xe6   : > { %v578_v38 = vadd.f32 %v577_v24, %v576_v57  ;;  %v929_v18 = vadd.f32 %v928_v6, %v927_v46  ;;  %v2241_v6 = vunpack.c.l.bf16 %v1373_v59 }
  0xe7   : > { %v591_v32 = vsel %vm367_vm1, %v2199_v58, 0.0 }
  0xe8   : > { %v580_v3 = vadd.f32 %v579_v34, %v578_v38  ;;  %v931_v24 = vadd.f32 %v930_v22, %v929_v18  ;;  %v721_v34 = vmul.f32 %v2041_v33, %v2041_v33  ;;  %v2209_v38 = vunpack.c.h.bf16 %v1371_v11 }
  0xe9   : > { %v723_v33 = vmul.f32 %v2056_v40, %v2056_v40  ;;  %v599_v11 = vsel %vm367_vm1, %v2241_v6, 0.0 }
  0xea   : > { %v582_v52 = vadd.f32 %v581_v43, %v580_v3  ;;  %v933_v29 = vadd.f32 %v932_v44, %v931_v24  ;;  %v593_v3 = vsel %vm367_vm1, %v2209_v38, 0.0  ;;  %v940_v4 = vsel %vm367_vm1, %v721_v34, 0.0  ;;  %v1374_v44 = vld [vmem:[%s1418_s12 + $0x1d8] sm:$0xff]  }
  0xeb   : > { %v944_v40 = vsel %vm367_vm1, %v723_v33, 0.0  ;;  %v958_v34 = vsel %vm367_vm1, %v730_v19, 0.0  ;;  %v742_v19 = vmul.f32 %v2209_v38, %v2209_v38 }
  0xec   : > { %v584_v12 = vadd.f32 %v583_v48, %v582_v52  ;;  %v935_v36 = vadd.f32 %v934_v28, %v933_v29  ;;  %v942_v48 = vsel %vm367_vm1, %v722_v2, 0.0 }
  0xed   : > { %v982_v38 = vsel %vm367_vm1, %v742_v19, 0.0 }
  0xee   : > { %v586_v51 = vadd.f32 %v585_v55, %v584_v12  ;;  %v937_v1 = vadd.f32 %v936_v26, %v935_v36  ;;  %v726_v12 = vmul.f32 %v2079_v42, %v2079_v42  ;;  %v728_v42 = vmul.f32 %v2094_v7, %v2094_v7 }
  0xf0   : > { %v588_v15 = vadd.f32 %v587_v63, %v586_v51  ;;  %v939_v30 = vadd.f32 %v938_v45, %v937_v1  ;;  %v597_v51 = vsel %vm367_vm1, %v2230_v13, 0.0  ;;  %v948_v63 = vsel %vm367_vm1, %v725_v53, 0.0 }
  0xf1   : > { %v950_v46 = vsel %vm367_vm1, %v726_v12, 0.0  ;;  %v954_v7 = vsel %vm367_vm1, %v728_v42, 0.0  ;;  %v733_v45 = vmul.f32 %v2131_v17, %v2131_v17  ;;  %v734_v1 = vmul.f32 %v2139_v14, %v2139_v14 }
  0xf2   : > { %v590_v57 = vadd.f32 %v589_v20, %v588_v15  ;;  %v941_v52 = vadd.f32 %v940_v4, %v939_v30  ;;  %v729_v15 = vmul.f32 %v2101_v61, %v2101_v61  ;;  %v2251_v20 = vunpack.c.h.bf16 %v1373_v59 }
  0xf3   : > { %v731_v61 = vmul.f32 %v2116_v8, %v2116_v8  ;;  %v735_v17 = vmul.f32 %v2146_v27, %v2146_v27  ;;  %v964_v62 = vsel %vm367_vm1, %v733_v45, 0.0  ;;  %v736_v14 = vmul.f32 %v2154_v35, %v2154_v35  ;;  %v1376_v35 = vld [vmem:[%s1418_s12 + $0x1e8] sm:$0xff]  }
  0xf4   : > { %v592_v43 = vadd.f32 %v591_v32, %v590_v57  ;;  %v943_v55 = vadd.f32 %v942_v48, %v941_v52  ;;  %v601_v28 = vsel %vm367_vm1, %v2251_v20, 0.0  ;;  %v956_v57 = vsel %vm367_vm1, %v729_v15, 0.0 }
  0xf5   : > { %v2262_v32 = vunpack.c.l.bf16 %v1374_v44  ;;  %v960_v8 = vsel %vm367_vm1, %v731_v61, 0.0  ;;  %v966_v52 = vsel %vm367_vm1, %v734_v1, 0.0  ;;  %v968_v27 = vsel %vm367_vm1, %v735_v17, 0.0  ;;  %v1378_v1 = vld [vmem:[%s1418_s12 + $0x1f8] sm:$0xff]  }
  0xf6   : > { %v594_v50 = vadd.f32 %v593_v3, %v592_v43  ;;  %v945_v60 = vadd.f32 %v944_v40, %v943_v55  ;;  %v2272_v43 = vunpack.c.h.bf16 %v1374_v44  ;;  %v1375_v3 = vld [vmem:[%s1418_s12 + $0x1e0] sm:$0xff]   ;;  %v737_v55 = vmul.f32 %v2161_v39, %v2161_v39  ;;  %v1377_v44 = vld [vmem:[%s1418_s12 + $0x1f0] sm:$0xff]  }
  0xf7   : > { %v603_v2 = vsel %vm367_vm1, %v2262_v32, 0.0  ;;  %v738_v59 = vmul.f32 %v2168_v5, %v2168_v5  ;;  %v1306_v42 = vunpack.c.l.bf16 %v1376_v35  ;;  %v741_v15 = vmul.f32 %v2199_v58, %v2199_v58 }
  0xf8   : > { %v596_v37 = vadd.f32 %v595_v25, %v594_v50  ;;  %v947_v0 = vadd.f32 %v946_v21, %v945_v60  ;;  %v605_v30 = vsel %vm367_vm1, %v2272_v43, 0.0  ;;  %v2283_v50 = vunpack.c.l.bf16 %v1375_v3 }
  0xf9   : > { %v1303_v21 = vunpack.c.h.bf16 %v1375_v3  ;;  %v972_v39 = vsel %vm367_vm1, %v737_v55, 0.0  ;;  %v974_v5 = vsel %vm367_vm1, %v738_v59, 0.0  ;;  %v980_v58 = vsel %vm367_vm1, %v741_v15, 0.0 }
  0xfa   : > { %v598_v10 = vadd.f32 %v597_v51, %v596_v37  ;;  %v949_v22 = vadd.f32 %v948_v63, %v947_v0  ;;  %v607_v40 = vsel %vm367_vm1, %v2283_v50, 0.0  ;;  %v970_v37 = vsel %vm367_vm1, %v736_v14, 0.0 }
  0xfb   : > { %v609_v47 = vsel %vm367_vm1, %v1303_v21, 0.0  ;;  %v739_v63 = vmul.f32 %v2178_v56, %v2178_v56  ;;  %v1307_v56 = vunpack.c.h.bf16 %v1376_v35  ;;  %v748_v17 = vmul.f32 %v2272_v43, %v2272_v43 }
  0xfc   : > { %v951_v18 = vadd.f32 %v950_v46, %v949_v22  ;;  %v600_v24 = vadd.f32 %v599_v11, %v598_v10  ;;  %v740_v46 = vmul.f32 %v2188_v9, %v2188_v9  ;;  %v611_v11 = vsel %vm367_vm1, %v1306_v42, 0.0 }
  0xfd   : > { %v994_v55 = vsel %vm367_vm1, %v748_v17, 0.0  ;;  %v751_v59 = vmul.f32 %v1306_v42, %v1306_v42 }
  0xfe   : > { %v953_v31 = vadd.f32 %v952_v54, %v951_v18  ;;  %v602_v26 = vadd.f32 %v601_v28, %v600_v24  ;;  %v976_v54 = vsel %vm367_vm1, %v739_v63, 0.0  ;;  %v743_v28 = vmul.f32 %v2220_v49, %v2220_v49 }
  0xff   : > { %v1311_v49 = vunpack.c.h.bf16 %v1377_v44 }
 0x100   : > { %v955_v29 = vadd.f32 %v954_v7, %v953_v31  ;;  %v604_v33 = vadd.f32 %v603_v2, %v602_v26  ;;  %v978_v7 = vsel %vm367_vm1, %v740_v46, 0.0  ;;  %v613_v31 = vsel %vm367_vm1, %v1307_v56, 0.0 }
 0x101   : > { %v984_v2 = vsel %vm367_vm1, %v743_v28, 0.0  ;;  %v617_v3 = vsel %vm367_vm1, %v1311_v49, 0.0 }
 0x102   : > { %v957_v36 = vadd.f32 %v956_v57, %v955_v29  ;;  %v606_v25 = vadd.f32 %v605_v30, %v604_v33  ;;  %v1310_v57 = vunpack.c.l.bf16 %v1377_v44  ;;  %v744_v29 = vmul.f32 %v2230_v13, %v2230_v13 }
 0x103   : > { %v747_v33 = vmul.f32 %v2262_v32, %v2262_v32  ;;  %v1314_v30 = vunpack.c.l.bf16 %v1378_v1  ;;  %v1315_v32 = vunpack.c.h.bf16 %v1378_v1 }
 0x104   : > { %v959_v41 = vadd.f32 %v958_v34, %v957_v36  ;;  %v608_v60 = vadd.f32 %v607_v40, %v606_v25  ;;  %v615_v26 = vsel %vm367_vm1, %v1310_v57, 0.0  ;;  %v745_v36 = vmul.f32 %v2241_v6, %v2241_v6 }
 0x105   : > { %v619_v14 = vsel %vm367_vm1, %v1314_v30, 0.0  ;;  %v992_v25 = vsel %vm367_vm1, %v747_v33, 0.0  ;;  %v750_v40 = vmul.f32 %v1303_v21, %v1303_v21  ;;  %v621_v43 = vsel %vm367_vm1, %v1315_v32, 0.0 }
 0x106   : > { %v961_v4 = vadd.f32 %v960_v8, %v959_v41  ;;  %v610_v10 = vadd.f32 %v609_v47, %v608_v60  ;;  %v746_v8 = vmul.f32 %v2251_v20, %v2251_v20  ;;  %v986_v41 = vsel %vm367_vm1, %v744_v29, 0.0 }
 0x107   : > { %v752_v60 = vmul.f32 %v1307_v56, %v1307_v56  ;;  %v753_v63 = vmul.f32 %v1310_v57, %v1310_v57  ;;  %v754_v21 = vmul.f32 %v1311_v49, %v1311_v49  ;;  %v756_v15 = vmul.f32 %v1315_v32, %v1315_v32 }
 0x108   : > { %v963_v48 = vadd.f32 %v962_v23, %v961_v4  ;;  %v612_v9 = vadd.f32 %v611_v11, %v610_v10  ;;  %v988_v4 = vsel %vm367_vm1, %v745_v36, 0.0 }
 0x109   : > { %v1002_v46 = vsel %vm367_vm1, %v752_v60, 0.0  ;;  %v1004_v42 = vsel %vm367_vm1, %v753_v63, 0.0  ;;  %v1010_v44 = vsel %vm367_vm1, %v756_v15, 0.0 }
 0x10a   : > { %v965_v53 = vadd.f32 %v964_v62, %v963_v48  ;;  %v614_v16 = vadd.f32 %v613_v31, %v612_v9  ;;  %v990_v62 = vsel %vm367_vm1, %v746_v8, 0.0 }
 0x10c   : > { %v967_v12 = vadd.f32 %v966_v52, %v965_v53  ;;  %v616_v13 = vadd.f32 %v615_v26, %v614_v16  ;;  %v749_v52 = vmul.f32 %v2283_v50, %v2283_v50  ;;  %v366_v26 = vld [vmem:[%s2358_s1] sm:$0x3] }
 0x10e   : > { %v969_v51 = vadd.f32 %v968_v27, %v967_v12  ;;  %v618_v20 = vadd.f32 %v617_v3, %v616_v13 }
 0x110   : > { %v971_v0 = vadd.f32 %v970_v37, %v969_v51  ;;  %v620_v27 = vadd.f32 %v619_v14, %v618_v20  ;;  %v996_v37 = vsel %vm367_vm1, %v749_v52, 0.0  ;;  %v998_v51 = vsel %vm367_vm1, %v750_v40, 0.0 }
 0x112   : > { %v973_v22 = vadd.f32 %v972_v39, %v971_v0  ;;  %v622_v47 = vadd.f32 %v621_v43, %v620_v27  ;;  %v1000_v39 = vsel %vm367_vm1, %v751_v59, 0.0 }
 0x114   : > { %v975_v18 = vadd.f32 %v974_v5, %v973_v22  ;;  %v623_v5 = vrot.slane %v622_v47, 4  ;;  %v755_v22 = vmul.f32 %v1314_v30, %v1314_v30 }
 0x116   : > { %v977_v24 = vadd.f32 %v976_v54, %v975_v18  ;;  %v1006_v54 = vsel %vm367_vm1, %v754_v21, 0.0  ;;  %v624_v18 = vadd.f32 %v623_v5, %v622_v47  ;;  %v1008_v19 = vsel %vm367_vm1, %v755_v22, 0.0 }
 0x118   : > { %v979_v61 = vadd.f32 %v978_v7, %v977_v24  ;;  %v625_v9 = vrot.slane %v624_v18, 2 }
 0x11a   : > { %v981_v34 = vadd.f32 %v980_v58, %v979_v61  ;;  %v626_v28 = vadd.f32 %v625_v9, %v624_v18 }
 0x11c   : > { %v983_v45 = vadd.f32 %v982_v38, %v981_v34  ;;  %v627_v57 = vrot.slane %v626_v28, 1 }
 0x11e   : > { %v985_v23 = vadd.f32 %v984_v2, %v983_v45  ;;  %v628_v16 = vadd.f32 %v627_v57, %v626_v28 }
 0x120   : > { %v987_v6 = vadd.f32 %v986_v41, %v985_v23 }
 0x122   : > { %v989_v48 = vadd.f32 %v988_v4, %v987_v6 }
 0x124   : > { %v991_v53 = vadd.f32 %v990_v62, %v989_v48 }
 0x126   : > { %v993_v12 = vadd.f32 %v992_v25, %v991_v53 }
 0x128   : > { %v995_v35 = vadd.f32 %v994_v55, %v993_v12 }
 0x12a   : > { %v997_v50 = vadd.f32 %v996_v37, %v995_v35 }
 0x12c   : > { %v999_v0 = vadd.f32 %v998_v51, %v997_v50 }
 0x12e   : > { %v1001_v10 = vadd.f32 %v1000_v39, %v999_v0 }
 0x130   : > { %v1003_v11 = vadd.f32 %v1002_v46, %v1001_v10 }
 0x132   : > { %v1005_v56 = vadd.f32 %v1004_v42, %v1003_v11 }
 0x134   : > { %v1007_v7 = vadd.f32 %v1006_v54, %v1005_v56 }
 0x136   : > { %v1009_v24 = vadd.f32 %v1008_v19, %v1007_v7 }
 0x138   : > { %v1011_v31 = vadd.f32 %v1010_v44, %v1009_v24 }
 0x13a   : > { %v1012_v58 = vrot.slane %v1011_v31, 4 }
 0x13c   : > { %v1013_v61 = vadd.f32 %v1012_v58, %v1011_v31 }
 0x13e   : > { %v1014_v29 = vrot.slane %v1013_v61, 2 }
 0x140   : > { %v1015_v38 = vadd.f32 %v1014_v29, %v1013_v61 }
 0x142   : > { %v1016_v34 = vrot.slane %v1015_v38, 1 }
 0x144   : > { %v1017_v36 = vadd.f32 %v1016_v34, %v1015_v38 }
 0x146   : > { %v1019_v2 = vsel %vm1018_vm2, %v628_v16, %v1017_v36 }
 0x147   : > { %v1020_v45 = vadd.f32 %v1019_v2, %v366_v26 }
 0x149   : > { %1022 = vst.msk [vmem:[%s2358_s1] sm:$0x3] %vm1021_vm3, %v1020_v45 }
 0x14a PF: > { %s11_s6 = sadd.s32 1, %s1394_s6  }
 0x14b   : > { %p8_p5 = scmp.ge.s32.totalorder %s11_s6, 4  }
 0x14d   :  { %10 = sbr.rel (!%p8_p5) target bundleno = 1 (0x1), region = 54 }

// kernel: generator_forward.18
= control target key start
LH: loop header
LB: loop body
LE: loop exit
PB: predicated region body
PF: predicated region fallthrough
CT: control target
= control target key end

     0   :  { %s2151_s12 = smov 0   ;;  %s2775_s0 = inlined_call_operand.vmem [shape: bf16[2048,64], index: 0, kind: input, shape index: {}]   ;;  %s2776_s1 = inlined_call_operand.vmem [shape: f32[1,64], index: 1, kind: input, shape index: {}]   ;;  %s2777_s2 = inlined_call_operand.vmem [shape: f32[1,64], index: 2, kind: input, shape index: {}]   ;;  %s2778_s3 = inlined_call_operand.vmem [shape: bf16[2048,64], index: 3, kind: output, shape index: {}]  }
   0x1 LB: > { %s1525_s13 = sadd.s32 4294967295, %s2129_s12   ;;  %p1529_p0 = scmp.ge.s32.totalorder %s2129_s12, 1  ;;  %s2129_s12 = sphi %s2151_s12, %s13_s12  }
   0x2   : > { %p138_p1 = scmp.lt.s32.totalorder %s2129_s12, 3 }
   0x4   : > { %p139_p2 = pnand %p1529_p0, %p138_p1 }
   0x5   : > { %s1530_s14 = sshll.u32 (!%p139_p2), %s1525_s13, 7 }
   0x6   : > { %142 = sbr.rel (%p139_p2) target bundleno = 179 (0xb3), region = 32  ;;  %p163_p3 = scmp.lt.s32.totalorder (!%p139_p2), %s1530_s14, 255 }
   0xb   : > { %s2780_s14 = smov (!%p163_p3, %s1530_s14), 255  ;;  %v2172_v0 = vld [vmem:[%s2776_s1] ss:$0 sm:$0xff]  ;;  %vm1340_vm0 = vcmask 519168  }
   0xc   : > { %s1531_s15 = sshll.u32 %s2780_s14, 2  ;;  %v2181_v9 = vld [vmem:[%s2777_s2] ss:$0 sm:$0xff] }
   0xd   : > { %s2167_s18 = scalar_lea.vmem %s2775_s0, %s1531_s15  ;;  %s2204_s25 = scalar_lea.vmem %s2778_s3, %s1531_s15 }
   0xe   : > { %v1795_v1 = vld [vmem:[%s2167_s18] sm:$0xff]   ;;  %v2050_v2 = vld [vmem:[%s2167_s18 + $0x8] sm:$0xff]   ;;  %v2051_v3 = vld [vmem:[%s2167_s18 + $0x10] sm:$0xff]  }
   0xf   : > { %v1796_v4 = vunpack.c.l.bf16 %v1795_v1  ;;  %v1797_v5 = vunpack.c.h.bf16 %v1795_v1  ;;  %v1800_v6 = vunpack.c.l.bf16 %v2050_v2  ;;  %v1801_v7 = vunpack.c.h.bf16 %v2050_v2  ;;  %v2052_v8 = vld [vmem:[%s2167_s18 + $0x18] sm:$0xff]   ;;  %v2053_v38 = vld [vmem:[%s2167_s18 + $0x20] sm:$0xff]   ;;  %v2054_v39 = vld [vmem:[%s2167_s18 + $0x28] sm:$0xff]  }
  0x10   : > { %v1804_v10 = vunpack.c.l.bf16 %v2051_v3  ;;  %v1805_v11 = vunpack.c.h.bf16 %v2051_v3  ;;  %v1808_v12 = vunpack.c.l.bf16 %v2052_v8  ;;  %v1809_v13 = vunpack.c.h.bf16 %v2052_v8  ;;  %v2055_v44 = vld [vmem:[%s2167_s18 + $0x30] sm:$0xff]   ;;  %v2056_v45 = vld [vmem:[%s2167_s18 + $0x38] sm:$0xff]  }
  0x11   : > { %v437_v14 = vmul.f32 %v1796_v4, %v2172_v0  ;;  %v438_v15 = vmul.f32 %v1797_v5, %v2172_v0  ;;  %v439_v16 = vmul.f32 %v1800_v6, %v2172_v0  ;;  %v440_v17 = vmul.f32 %v1801_v7, %v2172_v0 }
  0x12   : > { %v441_v18 = vmul.f32 %v1804_v10, %v2172_v0  ;;  %v442_v19 = vmul.f32 %v1805_v11, %v2172_v0  ;;  %v443_v20 = vmul.f32 %v1808_v12, %v2172_v0  ;;  %v444_v21 = vmul.f32 %v1809_v13, %v2172_v0 }
  0x13   : > { %v572_v22 = vadd.f32 %v2181_v9, %v437_v14  ;;  %v573_v23 = vadd.f32 %v2181_v9, %v438_v15  ;;  %v574_v24 = vadd.f32 %v2181_v9, %v439_v16  ;;  %v575_v25 = vadd.f32 %v2181_v9, %v440_v17 }
  0x14   : > { %v576_v26 = vadd.f32 %v2181_v9, %v441_v18  ;;  %v577_v27 = vadd.f32 %v2181_v9, %v442_v19  ;;  %v578_v28 = vadd.f32 %v2181_v9, %v443_v20  ;;  %v579_v29 = vadd.f32 %v2181_v9, %v444_v21  ;;  %v2057_v20 = vld [vmem:[%s2167_s18 + $0x40] sm:$0xff]   ;;  %v2058_v21 = vld [vmem:[%s2167_s18 + $0x48] sm:$0xff]  }
  0x15   : > { %v700_v30 = vmax.f32 %v572_v22, 0.0  ;;  %v701_v31 = vmax.f32 %v573_v23, 0.0  ;;  %v702_v32 = vmax.f32 %v574_v24, 0.0  ;;  %v703_v33 = vmax.f32 %v575_v25, 0.0 }
  0x16   : > { %v704_v34 = vmax.f32 %v576_v26, 0.0  ;;  %v705_v35 = vmax.f32 %v577_v27, 0.0  ;;  %v706_v36 = vmax.f32 %v578_v28, 0.0  ;;  %v707_v37 = vmax.f32 %v579_v29, 0.0  ;;  %v2059_v26 = vld [vmem:[%s2167_s18 + $0x50] sm:$0xff]   ;;  %v2060_v27 = vld [vmem:[%s2167_s18 + $0x58] sm:$0xff]  }
  0x17   : > { %v1666_v40 = vpack.c.bf16 %v700_v30, %v700_v30  ;;  %v1667_v41 = vpack.c.bf16 %v701_v31, %v701_v31  ;;  %v1668_v42 = vpack.c.bf16 %v702_v32, %v702_v32  ;;  %v1669_v43 = vpack.c.bf16 %v703_v33, %v703_v33 }
  0x18   : > { %v1670_v46 = vpack.c.bf16 %v704_v34, %v704_v34  ;;  %v1671_v47 = vpack.c.bf16 %v705_v35, %v705_v35  ;;  %v1672_v48 = vpack.c.bf16 %v706_v36, %v706_v36  ;;  %v1673_v49 = vpack.c.bf16 %v707_v37, %v707_v37 }
  0x19   : > { %1341 = vst.msk [vmem:[%s2204_s25] sm:$0xf] %vm1340_vm0, %v1666_v40  ;;  %1342 = vst.msk [vmem:[%s2204_s25 + $0x4] sm:$0xf] %vm1340_vm0, %v1667_v41  ;;  %v1812_v50 = vunpack.c.l.bf16 %v2053_v38  ;;  %v1813_v51 = vunpack.c.h.bf16 %v2053_v38  ;;  %v1816_v52 = vunpack.c.l.bf16 %v2054_v39  ;;  %v1817_v53 = vunpack.c.h.bf16 %v2054_v39 }
  0x1a   : > { %1343 = vst.msk [vmem:[%s2204_s25 + $0x8] sm:$0xf] %vm1340_vm0, %v1668_v42  ;;  %1344 = vst.msk [vmem:[%s2204_s25 + $0xc] sm:$0xf] %vm1340_vm0, %v1669_v43  ;;  %v1820_v54 = vunpack.c.l.bf16 %v2055_v44  ;;  %v1821_v55 = vunpack.c.h.bf16 %v2055_v44  ;;  %v1824_v56 = vunpack.c.l.bf16 %v2056_v45  ;;  %v1825_v57 = vunpack.c.h.bf16 %v2056_v45 }
  0x1b   : > { %1345 = vst.msk [vmem:[%s2204_s25 + $0x10] sm:$0xf] %vm1340_vm0, %v1670_v46  ;;  %1346 = vst.msk [vmem:[%s2204_s25 + $0x14] sm:$0xf] %vm1340_vm0, %v1671_v47  ;;  %v445_v58 = vmul.f32 %v1812_v50, %v2172_v0  ;;  %v446_v59 = vmul.f32 %v1813_v51, %v2172_v0  ;;  %v447_v60 = vmul.f32 %v1816_v52, %v2172_v0  ;;  %v1828_v32 = vunpack.c.l.bf16 %v2057_v20 }
  0x1c   : > { %1347 = vst.msk [vmem:[%s2204_s25 + $0x18] sm:$0xf] %vm1340_vm0, %v1672_v48  ;;  %1348 = vst.msk [vmem:[%s2204_s25 + $0x1c] sm:$0xf] %vm1340_vm0, %v1673_v49  ;;  %v448_v61 = vmul.f32 %v1817_v53, %v2172_v0  ;;  %v449_v62 = vmul.f32 %v1820_v54, %v2172_v0  ;;  %v450_v63 = vmul.f32 %v1821_v55, %v2172_v0  ;;  %v1829_v33 = vunpack.c.h.bf16 %v2057_v20 }
  0x1d   : > { %v451_v1 = vmul.f32 %v1824_v56, %v2172_v0  ;;  %v452_v2 = vmul.f32 %v1825_v57, %v2172_v0  ;;  %v580_v3 = vadd.f32 %v2181_v9, %v445_v58  ;;  %v581_v4 = vadd.f32 %v2181_v9, %v446_v59 }
  0x1e   : > { %v582_v5 = vadd.f32 %v2181_v9, %v447_v60  ;;  %v583_v6 = vadd.f32 %v2181_v9, %v448_v61  ;;  %v584_v7 = vadd.f32 %v2181_v9, %v449_v62  ;;  %v585_v8 = vadd.f32 %v2181_v9, %v450_v63 }
  0x1f   : > { %v586_v10 = vadd.f32 %v2181_v9, %v451_v1  ;;  %v587_v11 = vadd.f32 %v2181_v9, %v452_v2  ;;  %v708_v12 = vmax.f32 %v580_v3, 0.0  ;;  %v709_v13 = vmax.f32 %v581_v4, 0.0  ;;  %v2061_v1 = vld [vmem:[%s2167_s18 + $0x60] sm:$0xff]   ;;  %v2062_v2 = vld [vmem:[%s2167_s18 + $0x68] sm:$0xff]  }
  0x20   : > { %v710_v14 = vmax.f32 %v582_v5, 0.0  ;;  %v711_v15 = vmax.f32 %v583_v6, 0.0  ;;  %v712_v16 = vmax.f32 %v584_v7, 0.0  ;;  %v713_v17 = vmax.f32 %v585_v8, 0.0  ;;  %v2063_v7 = vld [vmem:[%s2167_s18 + $0x70] sm:$0xff]   ;;  %v2064_v8 = vld [vmem:[%s2167_s18 + $0x78] sm:$0xff]  }
  0x21   : > { %v714_v18 = vmax.f32 %v586_v10, 0.0  ;;  %v715_v19 = vmax.f32 %v587_v11, 0.0  ;;  %v1674_v22 = vpack.c.bf16 %v708_v12, %v708_v12  ;;  %v1675_v23 = vpack.c.bf16 %v709_v13, %v709_v13 }
  0x22   : > { %v1676_v24 = vpack.c.bf16 %v710_v14, %v710_v14  ;;  %v1677_v25 = vpack.c.bf16 %v711_v15, %v711_v15  ;;  %v1678_v28 = vpack.c.bf16 %v712_v16, %v712_v16  ;;  %v1679_v29 = vpack.c.bf16 %v713_v17, %v713_v17 }
  0x23   : > { %v1680_v30 = vpack.c.bf16 %v714_v18, %v714_v18  ;;  %v1681_v31 = vpack.c.bf16 %v715_v19, %v715_v19  ;;  %1349 = vst.msk [vmem:[%s2204_s25 + $0x20] sm:$0xf] %vm1340_vm0, %v1674_v22  ;;  %1350 = vst.msk [vmem:[%s2204_s25 + $0x24] sm:$0xf] %vm1340_vm0, %v1675_v23  ;;  %v1832_v34 = vunpack.c.l.bf16 %v2058_v21  ;;  %v1833_v35 = vunpack.c.h.bf16 %v2058_v21 }
  0x24   : > { %1351 = vst.msk [vmem:[%s2204_s25 + $0x28] sm:$0xf] %vm1340_vm0, %v1676_v24  ;;  %1352 = vst.msk [vmem:[%s2204_s25 + $0x2c] sm:$0xf] %vm1340_vm0, %v1677_v25  ;;  %v1836_v36 = vunpack.c.l.bf16 %v2059_v26  ;;  %v1837_v37 = vunpack.c.h.bf16 %v2059_v26  ;;  %v1840_v38 = vunpack.c.l.bf16 %v2060_v27  ;;  %v1841_v39 = vunpack.c.h.bf16 %v2060_v27 }
  0x25   : > { %1353 = vst.msk [vmem:[%s2204_s25 + $0x30] sm:$0xf] %vm1340_vm0, %v1678_v28  ;;  %1354 = vst.msk [vmem:[%s2204_s25 + $0x34] sm:$0xf] %vm1340_vm0, %v1679_v29  ;;  %v453_v40 = vmul.f32 %v1828_v32, %v2172_v0  ;;  %v454_v41 = vmul.f32 %v1829_v33, %v2172_v0  ;;  %v455_v42 = vmul.f32 %v1832_v34, %v2172_v0  ;;  %v1844_v14 = vunpack.c.l.bf16 %v2061_v1 }
  0x26   : > { %1355 = vst.msk [vmem:[%s2204_s25 + $0x38] sm:$0xf] %vm1340_vm0, %v1680_v30  ;;  %1356 = vst.msk [vmem:[%s2204_s25 + $0x3c] sm:$0xf] %vm1340_vm0, %v1681_v31  ;;  %v456_v43 = vmul.f32 %v1833_v35, %v2172_v0  ;;  %v457_v44 = vmul.f32 %v1836_v36, %v2172_v0  ;;  %v458_v45 = vmul.f32 %v1837_v37, %v2172_v0  ;;  %v1845_v15 = vunpack.c.h.bf16 %v2061_v1 }
  0x27   : > { %v459_v46 = vmul.f32 %v1840_v38, %v2172_v0  ;;  %v460_v47 = vmul.f32 %v1841_v39, %v2172_v0  ;;  %v588_v48 = vadd.f32 %v2181_v9, %v453_v40  ;;  %v589_v49 = vadd.f32 %v2181_v9, %v454_v41 }
  0x28   : > { %v590_v50 = vadd.f32 %v2181_v9, %v455_v42  ;;  %v591_v51 = vadd.f32 %v2181_v9, %v456_v43  ;;  %v592_v52 = vadd.f32 %v2181_v9, %v457_v44  ;;  %v593_v53 = vadd.f32 %v2181_v9, %v458_v45 }
  0x29   : > { %v594_v54 = vadd.f32 %v2181_v9, %v459_v46  ;;  %v595_v55 = vadd.f32 %v2181_v9, %v460_v47  ;;  %v716_v56 = vmax.f32 %v588_v48, 0.0  ;;  %v717_v57 = vmax.f32 %v589_v49, 0.0  ;;  %v2065_v46 = vld [vmem:[%s2167_s18 + $0x80] sm:$0xff]   ;;  %v2066_v47 = vld [vmem:[%s2167_s18 + $0x88] sm:$0xff]  }
  0x2a   : > { %v718_v58 = vmax.f32 %v590_v50, 0.0  ;;  %v719_v59 = vmax.f32 %v591_v51, 0.0  ;;  %v720_v60 = vmax.f32 %v592_v52, 0.0  ;;  %v721_v61 = vmax.f32 %v593_v53, 0.0  ;;  %v2067_v52 = vld [vmem:[%s2167_s18 + $0x90] sm:$0xff]   ;;  %v2068_v53 = vld [vmem:[%s2167_s18 + $0x98] sm:$0xff]  }
  0x2b   : > { %v722_v62 = vmax.f32 %v594_v54, 0.0  ;;  %v723_v63 = vmax.f32 %v595_v55, 0.0  ;;  %v1682_v3 = vpack.c.bf16 %v716_v56, %v716_v56  ;;  %v1683_v4 = vpack.c.bf16 %v717_v57, %v717_v57 }
  0x2c   : > { %v1684_v5 = vpack.c.bf16 %v718_v58, %v718_v58  ;;  %v1685_v6 = vpack.c.bf16 %v719_v59, %v719_v59  ;;  %v1686_v10 = vpack.c.bf16 %v720_v60, %v720_v60  ;;  %v1687_v11 = vpack.c.bf16 %v721_v61, %v721_v61 }
  0x2d   : > { %v1688_v12 = vpack.c.bf16 %v722_v62, %v722_v62  ;;  %v1689_v13 = vpack.c.bf16 %v723_v63, %v723_v63  ;;  %1357 = vst.msk [vmem:[%s2204_s25 + $0x40] sm:$0xf] %vm1340_vm0, %v1682_v3  ;;  %1358 = vst.msk [vmem:[%s2204_s25 + $0x44] sm:$0xf] %vm1340_vm0, %v1683_v4  ;;  %v1848_v16 = vunpack.c.l.bf16 %v2062_v2  ;;  %v1849_v17 = vunpack.c.h.bf16 %v2062_v2 }
  0x2e   : > { %1359 = vst.msk [vmem:[%s2204_s25 + $0x48] sm:$0xf] %vm1340_vm0, %v1684_v5  ;;  %1360 = vst.msk [vmem:[%s2204_s25 + $0x4c] sm:$0xf] %vm1340_vm0, %v1685_v6  ;;  %v1852_v18 = vunpack.c.l.bf16 %v2063_v7  ;;  %v1853_v19 = vunpack.c.h.bf16 %v2063_v7  ;;  %v1856_v20 = vunpack.c.l.bf16 %v2064_v8  ;;  %v1857_v21 = vunpack.c.h.bf16 %v2064_v8 }
  0x2f   : > { %1361 = vst.msk [vmem:[%s2204_s25 + $0x50] sm:$0xf] %vm1340_vm0, %v1686_v10  ;;  %1362 = vst.msk [vmem:[%s2204_s25 + $0x54] sm:$0xf] %vm1340_vm0, %v1687_v11  ;;  %v461_v22 = vmul.f32 %v1844_v14, %v2172_v0  ;;  %v462_v23 = vmul.f32 %v1845_v15, %v2172_v0  ;;  %v463_v24 = vmul.f32 %v1848_v16, %v2172_v0  ;;  %v1860_v58 = vunpack.c.l.bf16 %v2065_v46 }
  0x30   : > { %1363 = vst.msk [vmem:[%s2204_s25 + $0x58] sm:$0xf] %vm1340_vm0, %v1688_v12  ;;  %1364 = vst.msk [vmem:[%s2204_s25 + $0x5c] sm:$0xf] %vm1340_vm0, %v1689_v13  ;;  %v464_v25 = vmul.f32 %v1849_v17, %v2172_v0  ;;  %v465_v26 = vmul.f32 %v1852_v18, %v2172_v0  ;;  %v466_v27 = vmul.f32 %v1853_v19, %v2172_v0  ;;  %v1861_v59 = vunpack.c.h.bf16 %v2065_v46 }
  0x31   : > { %v467_v28 = vmul.f32 %v1856_v20, %v2172_v0  ;;  %v468_v29 = vmul.f32 %v1857_v21, %v2172_v0  ;;  %v596_v30 = vadd.f32 %v2181_v9, %v461_v22  ;;  %v597_v31 = vadd.f32 %v2181_v9, %v462_v23 }
  0x32   : > { %v598_v32 = vadd.f32 %v2181_v9, %v463_v24  ;;  %v599_v33 = vadd.f32 %v2181_v9, %v464_v25  ;;  %v600_v34 = vadd.f32 %v2181_v9, %v465_v26  ;;  %v601_v35 = vadd.f32 %v2181_v9, %v466_v27 }
  0x33   : > { %v602_v36 = vadd.f32 %v2181_v9, %v467_v28  ;;  %v603_v37 = vadd.f32 %v2181_v9, %v468_v29  ;;  %v724_v38 = vmax.f32 %v596_v30, 0.0  ;;  %v725_v39 = vmax.f32 %v597_v31, 0.0  ;;  %v2069_v28 = vld [vmem:[%s2167_s18 + $0xa0] sm:$0xff]   ;;  %v2070_v29 = vld [vmem:[%s2167_s18 + $0xa8] sm:$0xff]  }
  0x34   : > { %v726_v40 = vmax.f32 %v598_v32, 0.0  ;;  %v727_v41 = vmax.f32 %v599_v33, 0.0  ;;  %v728_v42 = vmax.f32 %v600_v34, 0.0  ;;  %v729_v43 = vmax.f32 %v601_v35, 0.0  ;;  %v2071_v34 = vld [vmem:[%s2167_s18 + $0xb0] sm:$0xff]   ;;  %v2072_v35 = vld [vmem:[%s2167_s18 + $0xb8] sm:$0xff]  }
  0x35   : > { %v730_v44 = vmax.f32 %v602_v36, 0.0  ;;  %v731_v45 = vmax.f32 %v603_v37, 0.0  ;;  %v1690_v48 = vpack.c.bf16 %v724_v38, %v724_v38  ;;  %v1691_v49 = vpack.c.bf16 %v725_v39, %v725_v39 }
  0x36   : > { %v1692_v50 = vpack.c.bf16 %v726_v40, %v726_v40  ;;  %v1693_v51 = vpack.c.bf16 %v727_v41, %v727_v41  ;;  %v1694_v54 = vpack.c.bf16 %v728_v42, %v728_v42  ;;  %v1695_v55 = vpack.c.bf16 %v729_v43, %v729_v43 }
  0x37   : > { %v1696_v56 = vpack.c.bf16 %v730_v44, %v730_v44  ;;  %v1697_v57 = vpack.c.bf16 %v731_v45, %v731_v45  ;;  %1365 = vst.msk [vmem:[%s2204_s25 + $0x60] sm:$0xf] %vm1340_vm0, %v1690_v48  ;;  %1366 = vst.msk [vmem:[%s2204_s25 + $0x64] sm:$0xf] %vm1340_vm0, %v1691_v49  ;;  %v1864_v60 = vunpack.c.l.bf16 %v2066_v47  ;;  %v1865_v61 = vunpack.c.h.bf16 %v2066_v47 }
  0x38   : > { %1367 = vst.msk [vmem:[%s2204_s25 + $0x68] sm:$0xf] %vm1340_vm0, %v1692_v50  ;;  %1368 = vst.msk [vmem:[%s2204_s25 + $0x6c] sm:$0xf] %vm1340_vm0, %v1693_v51  ;;  %v1868_v62 = vunpack.c.l.bf16 %v2067_v52  ;;  %v1869_v63 = vunpack.c.h.bf16 %v2067_v52  ;;  %v1872_v1 = vunpack.c.l.bf16 %v2068_v53  ;;  %v1873_v2 = vunpack.c.h.bf16 %v2068_v53 }
  0x39   : > { %1369 = vst.msk [vmem:[%s2204_s25 + $0x70] sm:$0xf] %vm1340_vm0, %v1694_v54  ;;  %1370 = vst.msk [vmem:[%s2204_s25 + $0x74] sm:$0xf] %vm1340_vm0, %v1695_v55  ;;  %v469_v3 = vmul.f32 %v1860_v58, %v2172_v0  ;;  %v470_v4 = vmul.f32 %v1861_v59, %v2172_v0  ;;  %v471_v5 = vmul.f32 %v1864_v60, %v2172_v0  ;;  %v1876_v40 = vunpack.c.l.bf16 %v2069_v28 }
  0x3a   : > { %1371 = vst.msk [vmem:[%s2204_s25 + $0x78] sm:$0xf] %vm1340_vm0, %v1696_v56  ;;  %1372 = vst.msk [vmem:[%s2204_s25 + $0x7c] sm:$0xf] %vm1340_vm0, %v1697_v57  ;;  %v472_v6 = vmul.f32 %v1865_v61, %v2172_v0  ;;  %v473_v7 = vmul.f32 %v1868_v62, %v2172_v0  ;;  %v474_v8 = vmul.f32 %v1869_v63, %v2172_v0  ;;  %v1877_v41 = vunpack.c.h.bf16 %v2069_v28 }
  0x3b   : > { %v475_v10 = vmul.f32 %v1872_v1, %v2172_v0  ;;  %v476_v11 = vmul.f32 %v1873_v2, %v2172_v0  ;;  %v604_v12 = vadd.f32 %v2181_v9, %v469_v3  ;;  %v605_v13 = vadd.f32 %v2181_v9, %v470_v4 }
  0x3c   : > { %v606_v14 = vadd.f32 %v2181_v9, %v471_v5  ;;  %v607_v15 = vadd.f32 %v2181_v9, %v472_v6  ;;  %v608_v16 = vadd.f32 %v2181_v9, %v473_v7  ;;  %v609_v17 = vadd.f32 %v2181_v9, %v474_v8 }
  0x3d   : > { %v610_v18 = vadd.f32 %v2181_v9, %v475_v10  ;;  %v611_v19 = vadd.f32 %v2181_v9, %v476_v11  ;;  %v732_v20 = vmax.f32 %v604_v12, 0.0  ;;  %v733_v21 = vmax.f32 %v605_v13, 0.0  ;;  %v2073_v10 = vld [vmem:[%s2167_s18 + $0xc0] sm:$0xff]   ;;  %v2074_v11 = vld [vmem:[%s2167_s18 + $0xc8] sm:$0xff]  }
  0x3e   : > { %v734_v22 = vmax.f32 %v606_v14, 0.0  ;;  %v735_v23 = vmax.f32 %v607_v15, 0.0  ;;  %v736_v24 = vmax.f32 %v608_v16, 0.0  ;;  %v737_v25 = vmax.f32 %v609_v17, 0.0  ;;  %v2075_v16 = vld [vmem:[%s2167_s18 + $0xd0] sm:$0xff]   ;;  %v2076_v17 = vld [vmem:[%s2167_s18 + $0xd8] sm:$0xff]  }
  0x3f   : > { %v738_v26 = vmax.f32 %v610_v18, 0.0  ;;  %v739_v27 = vmax.f32 %v611_v19, 0.0  ;;  %v1698_v30 = vpack.c.bf16 %v732_v20, %v732_v20  ;;  %v1699_v31 = vpack.c.bf16 %v733_v21, %v733_v21 }
  0x40   : > { %v1700_v32 = vpack.c.bf16 %v734_v22, %v734_v22  ;;  %v1701_v33 = vpack.c.bf16 %v735_v23, %v735_v23  ;;  %v1702_v36 = vpack.c.bf16 %v736_v24, %v736_v24  ;;  %v1703_v37 = vpack.c.bf16 %v737_v25, %v737_v25 }
  0x41   : > { %v1704_v38 = vpack.c.bf16 %v738_v26, %v738_v26  ;;  %v1705_v39 = vpack.c.bf16 %v739_v27, %v739_v27  ;;  %1373 = vst.msk [vmem:[%s2204_s25 + $0x80] sm:$0xf] %vm1340_vm0, %v1698_v30  ;;  %1374 = vst.msk [vmem:[%s2204_s25 + $0x84] sm:$0xf] %vm1340_vm0, %v1699_v31  ;;  %v1880_v42 = vunpack.c.l.bf16 %v2070_v29  ;;  %v1881_v43 = vunpack.c.h.bf16 %v2070_v29 }
  0x42   : > { %1375 = vst.msk [vmem:[%s2204_s25 + $0x88] sm:$0xf] %vm1340_vm0, %v1700_v32  ;;  %1376 = vst.msk [vmem:[%s2204_s25 + $0x8c] sm:$0xf] %vm1340_vm0, %v1701_v33  ;;  %v1884_v44 = vunpack.c.l.bf16 %v2071_v34  ;;  %v1885_v45 = vunpack.c.h.bf16 %v2071_v34  ;;  %v1888_v46 = vunpack.c.l.bf16 %v2072_v35  ;;  %v1889_v47 = vunpack.c.h.bf16 %v2072_v35 }
  0x43   : > { %1377 = vst.msk [vmem:[%s2204_s25 + $0x90] sm:$0xf] %vm1340_vm0, %v1702_v36  ;;  %1378 = vst.msk [vmem:[%s2204_s25 + $0x94] sm:$0xf] %vm1340_vm0, %v1703_v37  ;;  %v477_v48 = vmul.f32 %v1876_v40, %v2172_v0  ;;  %v478_v49 = vmul.f32 %v1877_v41, %v2172_v0  ;;  %v479_v50 = vmul.f32 %v1880_v42, %v2172_v0  ;;  %v1892_v22 = vunpack.c.l.bf16 %v2073_v10 }
  0x44   : > { %1379 = vst.msk [vmem:[%s2204_s25 + $0x98] sm:$0xf] %vm1340_vm0, %v1704_v38  ;;  %1380 = vst.msk [vmem:[%s2204_s25 + $0x9c] sm:$0xf] %vm1340_vm0, %v1705_v39  ;;  %v480_v51 = vmul.f32 %v1881_v43, %v2172_v0  ;;  %v481_v52 = vmul.f32 %v1884_v44, %v2172_v0  ;;  %v482_v53 = vmul.f32 %v1885_v45, %v2172_v0  ;;  %v1893_v23 = vunpack.c.h.bf16 %v2073_v10 }
  0x45   : > { %v483_v54 = vmul.f32 %v1888_v46, %v2172_v0  ;;  %v484_v55 = vmul.f32 %v1889_v47, %v2172_v0  ;;  %v612_v56 = vadd.f32 %v2181_v9, %v477_v48  ;;  %v613_v57 = vadd.f32 %v2181_v9, %v478_v49 }
  0x46   : > { %v614_v58 = vadd.f32 %v2181_v9, %v479_v50  ;;  %v615_v59 = vadd.f32 %v2181_v9, %v480_v51  ;;  %v616_v60 = vadd.f32 %v2181_v9, %v481_v52  ;;  %v617_v61 = vadd.f32 %v2181_v9, %v482_v53 }
  0x47   : > { %v618_v62 = vadd.f32 %v2181_v9, %v483_v54  ;;  %v619_v63 = vadd.f32 %v2181_v9, %v484_v55  ;;  %v740_v1 = vmax.f32 %v612_v56, 0.0  ;;  %v741_v2 = vmax.f32 %v613_v57, 0.0  ;;  %v2077_v54 = vld [vmem:[%s2167_s18 + $0xe0] sm:$0xff]   ;;  %v2078_v55 = vld [vmem:[%s2167_s18 + $0xe8] sm:$0xff]  }
  0x48   : > { %v742_v3 = vmax.f32 %v614_v58, 0.0  ;;  %v743_v4 = vmax.f32 %v615_v59, 0.0  ;;  %v744_v5 = vmax.f32 %v616_v60, 0.0  ;;  %v745_v6 = vmax.f32 %v617_v61, 0.0  ;;  %v2079_v60 = vld [vmem:[%s2167_s18 + $0xf0] sm:$0xff]   ;;  %v2080_v61 = vld [vmem:[%s2167_s18 + $0xf8] sm:$0xff]  }
  0x49   : > { %v746_v7 = vmax.f32 %v618_v62, 0.0  ;;  %v747_v8 = vmax.f32 %v619_v63, 0.0  ;;  %v1706_v12 = vpack.c.bf16 %v740_v1, %v740_v1  ;;  %v1707_v13 = vpack.c.bf16 %v741_v2, %v741_v2 }
  0x4a   : > { %v1708_v14 = vpack.c.bf16 %v742_v3, %v742_v3  ;;  %v1709_v15 = vpack.c.bf16 %v743_v4, %v743_v4  ;;  %v1710_v18 = vpack.c.bf16 %v744_v5, %v744_v5  ;;  %v1711_v19 = vpack.c.bf16 %v745_v6, %v745_v6 }
  0x4b   : > { %v1712_v20 = vpack.c.bf16 %v746_v7, %v746_v7  ;;  %v1713_v21 = vpack.c.bf16 %v747_v8, %v747_v8  ;;  %1381 = vst.msk [vmem:[%s2204_s25 + $0xa0] sm:$0xf] %vm1340_vm0, %v1706_v12  ;;  %1382 = vst.msk [vmem:[%s2204_s25 + $0xa4] sm:$0xf] %vm1340_vm0, %v1707_v13  ;;  %v1896_v24 = vunpack.c.l.bf16 %v2074_v11  ;;  %v1897_v25 = vunpack.c.h.bf16 %v2074_v11 }
  0x4c   : > { %1383 = vst.msk [vmem:[%s2204_s25 + $0xa8] sm:$0xf] %vm1340_vm0, %v1708_v14  ;;  %1384 = vst.msk [vmem:[%s2204_s25 + $0xac] sm:$0xf] %vm1340_vm0, %v1709_v15  ;;  %v1900_v26 = vunpack.c.l.bf16 %v2075_v16  ;;  %v1901_v27 = vunpack.c.h.bf16 %v2075_v16  ;;  %v1904_v28 = vunpack.c.l.bf16 %v2076_v17  ;;  %v1905_v29 = vunpack.c.h.bf16 %v2076_v17 }
  0x4d   : > { %1385 = vst.msk [vmem:[%s2204_s25 + $0xb0] sm:$0xf] %vm1340_vm0, %v1710_v18  ;;  %1386 = vst.msk [vmem:[%s2204_s25 + $0xb4] sm:$0xf] %vm1340_vm0, %v1711_v19  ;;  %v485_v30 = vmul.f32 %v1892_v22, %v2172_v0  ;;  %v486_v31 = vmul.f32 %v1893_v23, %v2172_v0  ;;  %v487_v32 = vmul.f32 %v1896_v24, %v2172_v0  ;;  %v1908_v3 = vunpack.c.l.bf16 %v2077_v54 }
  0x4e   : > { %1387 = vst.msk [vmem:[%s2204_s25 + $0xb8] sm:$0xf] %vm1340_vm0, %v1712_v20  ;;  %1388 = vst.msk [vmem:[%s2204_s25 + $0xbc] sm:$0xf] %vm1340_vm0, %v1713_v21  ;;  %v488_v33 = vmul.f32 %v1897_v25, %v2172_v0  ;;  %v489_v34 = vmul.f32 %v1900_v26, %v2172_v0  ;;  %v490_v35 = vmul.f32 %v1901_v27, %v2172_v0  ;;  %v1909_v4 = vunpack.c.h.bf16 %v2077_v54 }
  0x4f   : > { %v491_v36 = vmul.f32 %v1904_v28, %v2172_v0  ;;  %v492_v37 = vmul.f32 %v1905_v29, %v2172_v0  ;;  %v620_v38 = vadd.f32 %v2181_v9, %v485_v30  ;;  %v621_v39 = vadd.f32 %v2181_v9, %v486_v31 }
  0x50   : > { %v622_v40 = vadd.f32 %v2181_v9, %v487_v32  ;;  %v623_v41 = vadd.f32 %v2181_v9, %v488_v33  ;;  %v624_v42 = vadd.f32 %v2181_v9, %v489_v34  ;;  %v625_v43 = vadd.f32 %v2181_v9, %v490_v35 }
  0x51   : > { %v626_v44 = vadd.f32 %v2181_v9, %v491_v36  ;;  %v627_v45 = vadd.f32 %v2181_v9, %v492_v37  ;;  %v748_v46 = vmax.f32 %v620_v38, 0.0  ;;  %v749_v47 = vmax.f32 %v621_v39, 0.0  ;;  %v2081_v36 = vld [vmem:[%s2167_s18 + $0x100] sm:$0xff]   ;;  %v2082_v37 = vld [vmem:[%s2167_s18 + $0x108] sm:$0xff]  }
  0x52   : > { %v750_v48 = vmax.f32 %v622_v40, 0.0  ;;  %v751_v49 = vmax.f32 %v623_v41, 0.0  ;;  %v752_v50 = vmax.f32 %v624_v42, 0.0  ;;  %v753_v51 = vmax.f32 %v625_v43, 0.0  ;;  %v2083_v42 = vld [vmem:[%s2167_s18 + $0x110] sm:$0xff]   ;;  %v2084_v43 = vld [vmem:[%s2167_s18 + $0x118] sm:$0xff]  }
  0x53   : > { %v754_v52 = vmax.f32 %v626_v44, 0.0  ;;  %v755_v53 = vmax.f32 %v627_v45, 0.0  ;;  %v1714_v56 = vpack.c.bf16 %v748_v46, %v748_v46  ;;  %v1715_v57 = vpack.c.bf16 %v749_v47, %v749_v47 }
  0x54   : > { %v1716_v58 = vpack.c.bf16 %v750_v48, %v750_v48  ;;  %v1717_v59 = vpack.c.bf16 %v751_v49, %v751_v49  ;;  %v1718_v62 = vpack.c.bf16 %v752_v50, %v752_v50  ;;  %v1719_v63 = vpack.c.bf16 %v753_v51, %v753_v51 }
  0x55   : > { %v1720_v1 = vpack.c.bf16 %v754_v52, %v754_v52  ;;  %v1721_v2 = vpack.c.bf16 %v755_v53, %v755_v53  ;;  %1389 = vst.msk [vmem:[%s2204_s25 + $0xc0] sm:$0xf] %vm1340_vm0, %v1714_v56  ;;  %1390 = vst.msk [vmem:[%s2204_s25 + $0xc4] sm:$0xf] %vm1340_vm0, %v1715_v57  ;;  %v1912_v5 = vunpack.c.l.bf16 %v2078_v55  ;;  %v1913_v6 = vunpack.c.h.bf16 %v2078_v55 }
  0x56   : > { %1391 = vst.msk [vmem:[%s2204_s25 + $0xc8] sm:$0xf] %vm1340_vm0, %v1716_v58  ;;  %1392 = vst.msk [vmem:[%s2204_s25 + $0xcc] sm:$0xf] %vm1340_vm0, %v1717_v59  ;;  %v1916_v7 = vunpack.c.l.bf16 %v2079_v60  ;;  %v1917_v8 = vunpack.c.h.bf16 %v2079_v60  ;;  %v1920_v10 = vunpack.c.l.bf16 %v2080_v61  ;;  %v1921_v11 = vunpack.c.h.bf16 %v2080_v61 }
  0x57   : > { %1393 = vst.msk [vmem:[%s2204_s25 + $0xd0] sm:$0xf] %vm1340_vm0, %v1718_v62  ;;  %1394 = vst.msk [vmem:[%s2204_s25 + $0xd4] sm:$0xf] %vm1340_vm0, %v1719_v63  ;;  %v493_v12 = vmul.f32 %v1908_v3, %v2172_v0  ;;  %v494_v13 = vmul.f32 %v1909_v4, %v2172_v0  ;;  %v495_v14 = vmul.f32 %v1912_v5, %v2172_v0  ;;  %v1924_v48 = vunpack.c.l.bf16 %v2081_v36 }
  0x58   : > { %1395 = vst.msk [vmem:[%s2204_s25 + $0xd8] sm:$0xf] %vm1340_vm0, %v1720_v1  ;;  %1396 = vst.msk [vmem:[%s2204_s25 + $0xdc] sm:$0xf] %vm1340_vm0, %v1721_v2  ;;  %v496_v15 = vmul.f32 %v1913_v6, %v2172_v0  ;;  %v497_v16 = vmul.f32 %v1916_v7, %v2172_v0  ;;  %v498_v17 = vmul.f32 %v1917_v8, %v2172_v0  ;;  %v1925_v49 = vunpack.c.h.bf16 %v2081_v36 }
  0x59   : > { %v499_v18 = vmul.f32 %v1920_v10, %v2172_v0  ;;  %v500_v19 = vmul.f32 %v1921_v11, %v2172_v0  ;;  %v628_v20 = vadd.f32 %v2181_v9, %v493_v12  ;;  %v629_v21 = vadd.f32 %v2181_v9, %v494_v13 }
  0x5a   : > { %v630_v22 = vadd.f32 %v2181_v9, %v495_v14  ;;  %v631_v23 = vadd.f32 %v2181_v9, %v496_v15  ;;  %v632_v24 = vadd.f32 %v2181_v9, %v497_v16  ;;  %v633_v25 = vadd.f32 %v2181_v9, %v498_v17 }
  0x5b   : > { %v634_v26 = vadd.f32 %v2181_v9, %v499_v18  ;;  %v635_v27 = vadd.f32 %v2181_v9, %v500_v19  ;;  %v756_v28 = vmax.f32 %v628_v20, 0.0  ;;  %v757_v29 = vmax.f32 %v629_v21, 0.0  ;;  %v2085_v18 = vld [vmem:[%s2167_s18 + $0x120] sm:$0xff]   ;;  %v2086_v19 = vld [vmem:[%s2167_s18 + $0x128] sm:$0xff]  }
  0x5c   : > { %v758_v30 = vmax.f32 %v630_v22, 0.0  ;;  %v759_v31 = vmax.f32 %v631_v23, 0.0  ;;  %v760_v32 = vmax.f32 %v632_v24, 0.0  ;;  %v761_v33 = vmax.f32 %v633_v25, 0.0  ;;  %v2087_v24 = vld [vmem:[%s2167_s18 + $0x130] sm:$0xff]   ;;  %v2088_v25 = vld [vmem:[%s2167_s18 + $0x138] sm:$0xff]  }
  0x5d   : > { %v762_v34 = vmax.f32 %v634_v26, 0.0  ;;  %v763_v35 = vmax.f32 %v635_v27, 0.0  ;;  %v1722_v38 = vpack.c.bf16 %v756_v28, %v756_v28  ;;  %v1723_v39 = vpack.c.bf16 %v757_v29, %v757_v29 }
  0x5e   : > { %v1724_v40 = vpack.c.bf16 %v758_v30, %v758_v30  ;;  %v1725_v41 = vpack.c.bf16 %v759_v31, %v759_v31  ;;  %v1726_v44 = vpack.c.bf16 %v760_v32, %v760_v32  ;;  %v1727_v45 = vpack.c.bf16 %v761_v33, %v761_v33 }
  0x5f   : > { %v1728_v46 = vpack.c.bf16 %v762_v34, %v762_v34  ;;  %v1729_v47 = vpack.c.bf16 %v763_v35, %v763_v35  ;;  %1397 = vst.msk [vmem:[%s2204_s25 + $0xe0] sm:$0xf] %vm1340_vm0, %v1722_v38  ;;  %1398 = vst.msk [vmem:[%s2204_s25 + $0xe4] sm:$0xf] %vm1340_vm0, %v1723_v39  ;;  %v1928_v50 = vunpack.c.l.bf16 %v2082_v37  ;;  %v1929_v51 = vunpack.c.h.bf16 %v2082_v37 }
  0x60   : > { %1399 = vst.msk [vmem:[%s2204_s25 + $0xe8] sm:$0xf] %vm1340_vm0, %v1724_v40  ;;  %1400 = vst.msk [vmem:[%s2204_s25 + $0xec] sm:$0xf] %vm1340_vm0, %v1725_v41  ;;  %v1932_v52 = vunpack.c.l.bf16 %v2083_v42  ;;  %v1933_v53 = vunpack.c.h.bf16 %v2083_v42  ;;  %v1936_v54 = vunpack.c.l.bf16 %v2084_v43  ;;  %v1937_v55 = vunpack.c.h.bf16 %v2084_v43 }
  0x61   : > { %1401 = vst.msk [vmem:[%s2204_s25 + $0xf0] sm:$0xf] %vm1340_vm0, %v1726_v44  ;;  %1402 = vst.msk [vmem:[%s2204_s25 + $0xf4] sm:$0xf] %vm1340_vm0, %v1727_v45  ;;  %v501_v56 = vmul.f32 %v1924_v48, %v2172_v0  ;;  %v502_v57 = vmul.f32 %v1925_v49, %v2172_v0  ;;  %v503_v58 = vmul.f32 %v1928_v50, %v2172_v0  ;;  %v1940_v30 = vunpack.c.l.bf16 %v2085_v18 }
  0x62   : > { %1403 = vst.msk [vmem:[%s2204_s25 + $0xf8] sm:$0xf] %vm1340_vm0, %v1728_v46  ;;  %1404 = vst.msk [vmem:[%s2204_s25 + $0xfc] sm:$0xf] %vm1340_vm0, %v1729_v47  ;;  %v504_v59 = vmul.f32 %v1929_v51, %v2172_v0  ;;  %v505_v60 = vmul.f32 %v1932_v52, %v2172_v0  ;;  %v506_v61 = vmul.f32 %v1933_v53, %v2172_v0  ;;  %v1941_v31 = vunpack.c.h.bf16 %v2085_v18  ;;  %v2553_v18 = vld [vmem:[%s2776_s1] ss:$0 sm:$0xff] }
  0x63   : > { %v507_v62 = vmul.f32 %v1936_v54, %v2172_v0  ;;  %v508_v63 = vmul.f32 %v1937_v55, %v2172_v0  ;;  %v636_v1 = vadd.f32 %v2181_v9, %v501_v56  ;;  %v637_v2 = vadd.f32 %v2181_v9, %v502_v57 }
  0x64   : > { %v638_v3 = vadd.f32 %v2181_v9, %v503_v58  ;;  %v639_v4 = vadd.f32 %v2181_v9, %v504_v59  ;;  %v640_v5 = vadd.f32 %v2181_v9, %v505_v60  ;;  %v641_v6 = vadd.f32 %v2181_v9, %v506_v61  ;;  %v2089_v61 = vld [vmem:[%s2167_s18 + $0x140] sm:$0xff]  }
  0x65   : > { %v642_v7 = vadd.f32 %v2181_v9, %v507_v62  ;;  %v643_v8 = vadd.f32 %v2181_v9, %v508_v63  ;;  %v764_v10 = vmax.f32 %v636_v1, 0.0  ;;  %v765_v11 = vmax.f32 %v637_v2, 0.0  ;;  %v2090_v62 = vld [vmem:[%s2167_s18 + $0x148] sm:$0xff]  }
  0x66   : > { %v766_v12 = vmax.f32 %v638_v3, 0.0  ;;  %v767_v13 = vmax.f32 %v639_v4, 0.0  ;;  %v768_v14 = vmax.f32 %v640_v5, 0.0  ;;  %v769_v15 = vmax.f32 %v641_v6, 0.0  ;;  %v2091_v3 = vld [vmem:[%s2167_s18 + $0x150] sm:$0xff]   ;;  %v2092_v4 = vld [vmem:[%s2167_s18 + $0x158] sm:$0xff]  }
  0x67   : > { %v770_v16 = vmax.f32 %v642_v7, 0.0  ;;  %v771_v17 = vmax.f32 %v643_v8, 0.0  ;;  %v1730_v20 = vpack.c.bf16 %v764_v10, %v764_v10  ;;  %v1731_v21 = vpack.c.bf16 %v765_v11, %v765_v11 }
  0x68   : > { %v1732_v22 = vpack.c.bf16 %v766_v12, %v766_v12  ;;  %v1733_v23 = vpack.c.bf16 %v767_v13, %v767_v13  ;;  %v1734_v26 = vpack.c.bf16 %v768_v14, %v768_v14  ;;  %v1735_v27 = vpack.c.bf16 %v769_v15, %v769_v15 }
  0x69   : > { %v1736_v28 = vpack.c.bf16 %v770_v16, %v770_v16  ;;  %v1737_v29 = vpack.c.bf16 %v771_v17, %v771_v17  ;;  %1405 = vst.msk [vmem:[%s2204_s25 + $0x100] sm:$0xf] %vm1340_vm0, %v1730_v20  ;;  %1406 = vst.msk [vmem:[%s2204_s25 + $0x104] sm:$0xf] %vm1340_vm0, %v1731_v21  ;;  %v1944_v32 = vunpack.c.l.bf16 %v2086_v19  ;;  %v1945_v33 = vunpack.c.h.bf16 %v2086_v19 }
  0x6a   : > { %1407 = vst.msk [vmem:[%s2204_s25 + $0x108] sm:$0xf] %vm1340_vm0, %v1732_v22  ;;  %1408 = vst.msk [vmem:[%s2204_s25 + $0x10c] sm:$0xf] %vm1340_vm0, %v1733_v23  ;;  %v1948_v34 = vunpack.c.l.bf16 %v2087_v24  ;;  %v1949_v35 = vunpack.c.h.bf16 %v2087_v24  ;;  %v1952_v36 = vunpack.c.l.bf16 %v2088_v25  ;;  %v1953_v37 = vunpack.c.h.bf16 %v2088_v25 }
  0x6b   : > { %1409 = vst.msk [vmem:[%s2204_s25 + $0x110] sm:$0xf] %vm1340_vm0, %v1734_v26  ;;  %1410 = vst.msk [vmem:[%s2204_s25 + $0x114] sm:$0xf] %vm1340_vm0, %v1735_v27  ;;  %v509_v38 = vmul.f32 %v1940_v30, %v2172_v0  ;;  %v510_v39 = vmul.f32 %v1941_v31, %v2172_v0  ;;  %v511_v40 = vmul.f32 %v1944_v32, %v2172_v0  ;;  %v1956_v10 = vunpack.c.l.bf16 %v2089_v61  ;;  %v2566_v27 = vld [vmem:[%s2777_s2] ss:$0 sm:$0xff] }
  0x6c   : > { %1411 = vst.msk [vmem:[%s2204_s25 + $0x118] sm:$0xf] %vm1340_vm0, %v1736_v28  ;;  %1412 = vst.msk [vmem:[%s2204_s25 + $0x11c] sm:$0xf] %vm1340_vm0, %v1737_v29  ;;  %v512_v41 = vmul.f32 %v1945_v33, %v2172_v0  ;;  %v513_v42 = vmul.f32 %v1948_v34, %v2172_v0  ;;  %v514_v43 = vmul.f32 %v1949_v35, %v2172_v0  ;;  %v1957_v11 = vunpack.c.h.bf16 %v2089_v61 }
  0x6d   : > { %v515_v44 = vmul.f32 %v1952_v36, %v2172_v0  ;;  %v516_v45 = vmul.f32 %v1953_v37, %v2172_v0  ;;  %v644_v46 = vadd.f32 %v2181_v9, %v509_v38  ;;  %v645_v47 = vadd.f32 %v2181_v9, %v510_v39 }
  0x6e   : > { %v646_v48 = vadd.f32 %v2181_v9, %v511_v40  ;;  %v647_v49 = vadd.f32 %v2181_v9, %v512_v41  ;;  %v648_v50 = vadd.f32 %v2181_v9, %v513_v42  ;;  %v649_v51 = vadd.f32 %v2181_v9, %v514_v43 }
  0x6f   : > { %v650_v52 = vadd.f32 %v2181_v9, %v515_v44  ;;  %v651_v53 = vadd.f32 %v2181_v9, %v516_v45  ;;  %v772_v0 = vmax.f32 %v644_v46, 0.0  ;;  %v773_v54 = vmax.f32 %v645_v47, 0.0  ;;  %v2093_v44 = vld [vmem:[%s2167_s18 + $0x160] sm:$0xff]   ;;  %v2094_v45 = vld [vmem:[%s2167_s18 + $0x168] sm:$0xff]  }
  0x70   : > { %v774_v55 = vmax.f32 %v646_v48, 0.0  ;;  %v775_v56 = vmax.f32 %v647_v49, 0.0  ;;  %v776_v57 = vmax.f32 %v648_v50, 0.0  ;;  %v777_v58 = vmax.f32 %v649_v51, 0.0  ;;  %v2095_v50 = vld [vmem:[%s2167_s18 + $0x170] sm:$0xff]   ;;  %v2096_v51 = vld [vmem:[%s2167_s18 + $0x178] sm:$0xff]  }
  0x71   : > { %v778_v59 = vmax.f32 %v650_v52, 0.0  ;;  %v779_v60 = vmax.f32 %v651_v53, 0.0  ;;  %v1738_v63 = vpack.c.bf16 %v772_v0, %v772_v0  ;;  %v1739_v1 = vpack.c.bf16 %v773_v54, %v773_v54 }
  0x72   : > { %v1740_v2 = vpack.c.bf16 %v774_v55, %v774_v55  ;;  %v1741_v9 = vpack.c.bf16 %v775_v56, %v775_v56  ;;  %v1742_v5 = vpack.c.bf16 %v776_v57, %v776_v57  ;;  %v1743_v6 = vpack.c.bf16 %v777_v58, %v777_v58 }
  0x73   : > { %v1744_v7 = vpack.c.bf16 %v778_v59, %v778_v59  ;;  %v1745_v8 = vpack.c.bf16 %v779_v60, %v779_v60  ;;  %1413 = vst.msk [vmem:[%s2204_s25 + $0x120] sm:$0xf] %vm1340_vm0, %v1738_v63  ;;  %1414 = vst.msk [vmem:[%s2204_s25 + $0x124] sm:$0xf] %vm1340_vm0, %v1739_v1  ;;  %v1960_v12 = vunpack.c.l.bf16 %v2090_v62  ;;  %v1961_v13 = vunpack.c.h.bf16 %v2090_v62 }
  0x74   : > { %1415 = vst.msk [vmem:[%s2204_s25 + $0x128] sm:$0xf] %vm1340_vm0, %v1740_v2  ;;  %1416 = vst.msk [vmem:[%s2204_s25 + $0x12c] sm:$0xf] %vm1340_vm0, %v1741_v9  ;;  %v1964_v14 = vunpack.c.l.bf16 %v2091_v3  ;;  %v1965_v15 = vunpack.c.h.bf16 %v2091_v3  ;;  %v1968_v16 = vunpack.c.l.bf16 %v2092_v4  ;;  %v1969_v17 = vunpack.c.h.bf16 %v2092_v4 }
  0x75   : > { %1417 = vst.msk [vmem:[%s2204_s25 + $0x130] sm:$0xf] %vm1340_vm0, %v1742_v5  ;;  %1418 = vst.msk [vmem:[%s2204_s25 + $0x134] sm:$0xf] %vm1340_vm0, %v1743_v6  ;;  %v517_v19 = vmul.f32 %v2553_v18, %v1956_v10  ;;  %v518_v20 = vmul.f32 %v2553_v18, %v1957_v11  ;;  %v519_v21 = vmul.f32 %v2553_v18, %v1960_v12  ;;  %v1972_v55 = vunpack.c.l.bf16 %v2093_v44 }
  0x76   : > { %1419 = vst.msk [vmem:[%s2204_s25 + $0x138] sm:$0xf] %vm1340_vm0, %v1744_v7  ;;  %1420 = vst.msk [vmem:[%s2204_s25 + $0x13c] sm:$0xf] %vm1340_vm0, %v1745_v8  ;;  %v520_v22 = vmul.f32 %v2553_v18, %v1961_v13  ;;  %v521_v23 = vmul.f32 %v2553_v18, %v1964_v14  ;;  %v522_v24 = vmul.f32 %v2553_v18, %v1965_v15  ;;  %v1973_v56 = vunpack.c.h.bf16 %v2093_v44 }
  0x77   : > { %v523_v25 = vmul.f32 %v2553_v18, %v1968_v16  ;;  %v524_v26 = vmul.f32 %v2553_v18, %v1969_v17  ;;  %v652_v28 = vadd.f32 %v2566_v27, %v517_v19  ;;  %v653_v29 = vadd.f32 %v2566_v27, %v518_v20 }
  0x78   : > { %v654_v30 = vadd.f32 %v2566_v27, %v519_v21  ;;  %v655_v31 = vadd.f32 %v2566_v27, %v520_v22  ;;  %v656_v32 = vadd.f32 %v2566_v27, %v521_v23  ;;  %v657_v33 = vadd.f32 %v2566_v27, %v522_v24 }
  0x79   : > { %v658_v34 = vadd.f32 %v2566_v27, %v523_v25  ;;  %v659_v35 = vadd.f32 %v2566_v27, %v524_v26  ;;  %v780_v36 = vmax.f32 %v652_v28, 0.0  ;;  %v781_v37 = vmax.f32 %v653_v29, 0.0  ;;  %v2097_v25 = vld [vmem:[%s2167_s18 + $0x180] sm:$0xff]   ;;  %v2098_v26 = vld [vmem:[%s2167_s18 + $0x188] sm:$0xff]  }
  0x7a   : > { %v782_v38 = vmax.f32 %v654_v30, 0.0  ;;  %v783_v39 = vmax.f32 %v655_v31, 0.0  ;;  %v784_v40 = vmax.f32 %v656_v32, 0.0  ;;  %v785_v41 = vmax.f32 %v657_v33, 0.0  ;;  %v2099_v32 = vld [vmem:[%s2167_s18 + $0x190] sm:$0xff]   ;;  %v2100_v33 = vld [vmem:[%s2167_s18 + $0x198] sm:$0xff]  }
  0x7b   : > { %v786_v42 = vmax.f32 %v658_v34, 0.0  ;;  %v787_v43 = vmax.f32 %v659_v35, 0.0  ;;  %v1746_v46 = vpack.c.bf16 %v780_v36, %v780_v36  ;;  %v1747_v47 = vpack.c.bf16 %v781_v37, %v781_v37 }
  0x7c   : > { %v1748_v48 = vpack.c.bf16 %v782_v38, %v782_v38  ;;  %v1749_v49 = vpack.c.bf16 %v783_v39, %v783_v39  ;;  %v1750_v52 = vpack.c.bf16 %v784_v40, %v784_v40  ;;  %v1751_v53 = vpack.c.bf16 %v785_v41, %v785_v41 }
  0x7d   : > { %v1752_v0 = vpack.c.bf16 %v786_v42, %v786_v42  ;;  %v1753_v54 = vpack.c.bf16 %v787_v43, %v787_v43  ;;  %1421 = vst.msk [vmem:[%s2204_s25 + $0x140] sm:$0xf] %vm1340_vm0, %v1746_v46  ;;  %1422 = vst.msk [vmem:[%s2204_s25 + $0x144] sm:$0xf] %vm1340_vm0, %v1747_v47  ;;  %v1976_v57 = vunpack.c.l.bf16 %v2094_v45  ;;  %v1977_v58 = vunpack.c.h.bf16 %v2094_v45 }
  0x7e   : > { %1423 = vst.msk [vmem:[%s2204_s25 + $0x148] sm:$0xf] %vm1340_vm0, %v1748_v48  ;;  %1424 = vst.msk [vmem:[%s2204_s25 + $0x14c] sm:$0xf] %vm1340_vm0, %v1749_v49  ;;  %v1980_v59 = vunpack.c.l.bf16 %v2095_v50  ;;  %v1981_v60 = vunpack.c.h.bf16 %v2095_v50  ;;  %v1984_v61 = vunpack.c.l.bf16 %v2096_v51  ;;  %v1985_v62 = vunpack.c.h.bf16 %v2096_v51 }
  0x7f   : > { %1425 = vst.msk [vmem:[%s2204_s25 + $0x150] sm:$0xf] %vm1340_vm0, %v1750_v52  ;;  %1426 = vst.msk [vmem:[%s2204_s25 + $0x154] sm:$0xf] %vm1340_vm0, %v1751_v53  ;;  %v525_v63 = vmul.f32 %v2553_v18, %v1972_v55  ;;  %v526_v1 = vmul.f32 %v2553_v18, %v1973_v56  ;;  %v527_v2 = vmul.f32 %v2553_v18, %v1976_v57  ;;  %v1988_v38 = vunpack.c.l.bf16 %v2097_v25 }
  0x80   : > { %1427 = vst.msk [vmem:[%s2204_s25 + $0x158] sm:$0xf] %vm1340_vm0, %v1752_v0  ;;  %1428 = vst.msk [vmem:[%s2204_s25 + $0x15c] sm:$0xf] %vm1340_vm0, %v1753_v54  ;;  %v528_v9 = vmul.f32 %v2553_v18, %v1977_v58  ;;  %v529_v3 = vmul.f32 %v2553_v18, %v1980_v59  ;;  %v530_v4 = vmul.f32 %v2553_v18, %v1981_v60  ;;  %v1989_v39 = vunpack.c.h.bf16 %v2097_v25 }
  0x81   : > { %v531_v5 = vmul.f32 %v2553_v18, %v1984_v61  ;;  %v532_v6 = vmul.f32 %v2553_v18, %v1985_v62  ;;  %v660_v7 = vadd.f32 %v2566_v27, %v525_v63  ;;  %v661_v8 = vadd.f32 %v2566_v27, %v526_v1 }
  0x82   : > { %v662_v10 = vadd.f32 %v2566_v27, %v527_v2  ;;  %v663_v11 = vadd.f32 %v2566_v27, %v528_v9  ;;  %v664_v12 = vadd.f32 %v2566_v27, %v529_v3  ;;  %v665_v13 = vadd.f32 %v2566_v27, %v530_v4 }
  0x83   : > { %v666_v14 = vadd.f32 %v2566_v27, %v531_v5  ;;  %v667_v15 = vadd.f32 %v2566_v27, %v532_v6  ;;  %v788_v16 = vmax.f32 %v660_v7, 0.0  ;;  %v789_v17 = vmax.f32 %v661_v8, 0.0  ;;  %v2101_v5 = vld [vmem:[%s2167_s18 + $0x1a0] sm:$0xff]   ;;  %v2102_v6 = vld [vmem:[%s2167_s18 + $0x1a8] sm:$0xff]  }
  0x84   : > { %v790_v19 = vmax.f32 %v662_v10, 0.0  ;;  %v791_v20 = vmax.f32 %v663_v11, 0.0  ;;  %v792_v21 = vmax.f32 %v664_v12, 0.0  ;;  %v793_v22 = vmax.f32 %v665_v13, 0.0  ;;  %v2103_v12 = vld [vmem:[%s2167_s18 + $0x1b0] sm:$0xff]   ;;  %v2104_v13 = vld [vmem:[%s2167_s18 + $0x1b8] sm:$0xff]  }
  0x85   : > { %v794_v23 = vmax.f32 %v666_v14, 0.0  ;;  %v795_v24 = vmax.f32 %v667_v15, 0.0  ;;  %v1754_v28 = vpack.c.bf16 %v788_v16, %v788_v16  ;;  %v1755_v29 = vpack.c.bf16 %v789_v17, %v789_v17 }
  0x86   : > { %v1756_v30 = vpack.c.bf16 %v790_v19, %v790_v19  ;;  %v1757_v31 = vpack.c.bf16 %v791_v20, %v791_v20  ;;  %v1758_v34 = vpack.c.bf16 %v792_v21, %v792_v21  ;;  %v1759_v35 = vpack.c.bf16 %v793_v22, %v793_v22 }
  0x87   : > { %v1760_v36 = vpack.c.bf16 %v794_v23, %v794_v23  ;;  %v1761_v37 = vpack.c.bf16 %v795_v24, %v795_v24  ;;  %1429 = vst.msk [vmem:[%s2204_s25 + $0x160] sm:$0xf] %vm1340_vm0, %v1754_v28  ;;  %1430 = vst.msk [vmem:[%s2204_s25 + $0x164] sm:$0xf] %vm1340_vm0, %v1755_v29  ;;  %v1992_v40 = vunpack.c.l.bf16 %v2098_v26  ;;  %v1993_v41 = vunpack.c.h.bf16 %v2098_v26 }
  0x88   : > { %1431 = vst.msk [vmem:[%s2204_s25 + $0x168] sm:$0xf] %vm1340_vm0, %v1756_v30  ;;  %1432 = vst.msk [vmem:[%s2204_s25 + $0x16c] sm:$0xf] %vm1340_vm0, %v1757_v31  ;;  %v1996_v42 = vunpack.c.l.bf16 %v2099_v32  ;;  %v1997_v43 = vunpack.c.h.bf16 %v2099_v32  ;;  %v2000_v44 = vunpack.c.l.bf16 %v2100_v33  ;;  %v2001_v45 = vunpack.c.h.bf16 %v2100_v33 }
  0x89   : > { %1433 = vst.msk [vmem:[%s2204_s25 + $0x170] sm:$0xf] %vm1340_vm0, %v1758_v34  ;;  %1434 = vst.msk [vmem:[%s2204_s25 + $0x174] sm:$0xf] %vm1340_vm0, %v1759_v35  ;;  %v533_v46 = vmul.f32 %v2553_v18, %v1988_v38  ;;  %v534_v47 = vmul.f32 %v2553_v18, %v1989_v39  ;;  %v535_v48 = vmul.f32 %v2553_v18, %v1992_v40  ;;  %v2004_v19 = vunpack.c.l.bf16 %v2101_v5 }
  0x8a   : > { %1435 = vst.msk [vmem:[%s2204_s25 + $0x178] sm:$0xf] %vm1340_vm0, %v1760_v36  ;;  %1436 = vst.msk [vmem:[%s2204_s25 + $0x17c] sm:$0xf] %vm1340_vm0, %v1761_v37  ;;  %v536_v49 = vmul.f32 %v2553_v18, %v1993_v41  ;;  %v537_v50 = vmul.f32 %v2553_v18, %v1996_v42  ;;  %v538_v51 = vmul.f32 %v2553_v18, %v1997_v43  ;;  %v2005_v20 = vunpack.c.h.bf16 %v2101_v5 }
  0x8b   : > { %v539_v52 = vmul.f32 %v2553_v18, %v2000_v44  ;;  %v540_v53 = vmul.f32 %v2553_v18, %v2001_v45  ;;  %v668_v0 = vadd.f32 %v2566_v27, %v533_v46  ;;  %v669_v54 = vadd.f32 %v2566_v27, %v534_v47 }
  0x8c   : > { %v670_v55 = vadd.f32 %v2566_v27, %v535_v48  ;;  %v671_v56 = vadd.f32 %v2566_v27, %v536_v49  ;;  %v672_v57 = vadd.f32 %v2566_v27, %v537_v50  ;;  %v673_v58 = vadd.f32 %v2566_v27, %v538_v51 }
  0x8d   : > { %v674_v59 = vadd.f32 %v2566_v27, %v539_v52  ;;  %v675_v60 = vadd.f32 %v2566_v27, %v540_v53  ;;  %v796_v61 = vmax.f32 %v668_v0, 0.0  ;;  %v797_v62 = vmax.f32 %v669_v54, 0.0  ;;  %v2105_v52 = vld [vmem:[%s2167_s18 + $0x1c0] sm:$0xff]   ;;  %v2106_v53 = vld [vmem:[%s2167_s18 + $0x1c8] sm:$0xff]  }
  0x8e   : > { %v798_v63 = vmax.f32 %v670_v55, 0.0  ;;  %v799_v1 = vmax.f32 %v671_v56, 0.0  ;;  %v800_v2 = vmax.f32 %v672_v57, 0.0  ;;  %v801_v9 = vmax.f32 %v673_v58, 0.0  ;;  %v2107_v57 = vld [vmem:[%s2167_s18 + $0x1d0] sm:$0xff]   ;;  %v2108_v58 = vld [vmem:[%s2167_s18 + $0x1d8] sm:$0xff]  }
  0x8f   : > { %v802_v3 = vmax.f32 %v674_v59, 0.0  ;;  %v803_v4 = vmax.f32 %v675_v60, 0.0  ;;  %v1762_v7 = vpack.c.bf16 %v796_v61, %v796_v61  ;;  %v1763_v8 = vpack.c.bf16 %v797_v62, %v797_v62 }
  0x90   : > { %v1764_v10 = vpack.c.bf16 %v798_v63, %v798_v63  ;;  %v1765_v11 = vpack.c.bf16 %v799_v1, %v799_v1  ;;  %v1766_v14 = vpack.c.bf16 %v800_v2, %v800_v2  ;;  %v1767_v15 = vpack.c.bf16 %v801_v9, %v801_v9 }
  0x91   : > { %v1768_v16 = vpack.c.bf16 %v802_v3, %v802_v3  ;;  %v1769_v17 = vpack.c.bf16 %v803_v4, %v803_v4  ;;  %1437 = vst.msk [vmem:[%s2204_s25 + $0x180] sm:$0xf] %vm1340_vm0, %v1762_v7  ;;  %1438 = vst.msk [vmem:[%s2204_s25 + $0x184] sm:$0xf] %vm1340_vm0, %v1763_v8  ;;  %v2008_v21 = vunpack.c.l.bf16 %v2102_v6  ;;  %v2009_v22 = vunpack.c.h.bf16 %v2102_v6 }
  0x92   : > { %1439 = vst.msk [vmem:[%s2204_s25 + $0x188] sm:$0xf] %vm1340_vm0, %v1764_v10  ;;  %1440 = vst.msk [vmem:[%s2204_s25 + $0x18c] sm:$0xf] %vm1340_vm0, %v1765_v11  ;;  %v2012_v23 = vunpack.c.l.bf16 %v2103_v12  ;;  %v2013_v24 = vunpack.c.h.bf16 %v2103_v12  ;;  %v2016_v25 = vunpack.c.l.bf16 %v2104_v13  ;;  %v2017_v26 = vunpack.c.h.bf16 %v2104_v13 }
  0x93   : > { %1441 = vst.msk [vmem:[%s2204_s25 + $0x190] sm:$0xf] %vm1340_vm0, %v1766_v14  ;;  %1442 = vst.msk [vmem:[%s2204_s25 + $0x194] sm:$0xf] %vm1340_vm0, %v1767_v15  ;;  %v541_v28 = vmul.f32 %v2553_v18, %v2004_v19  ;;  %v542_v29 = vmul.f32 %v2553_v18, %v2005_v20  ;;  %v543_v30 = vmul.f32 %v2553_v18, %v2008_v21  ;;  %v2020_v63 = vunpack.c.l.bf16 %v2105_v52 }
  0x94   : > { %1443 = vst.msk [vmem:[%s2204_s25 + $0x198] sm:$0xf] %vm1340_vm0, %v1768_v16  ;;  %1444 = vst.msk [vmem:[%s2204_s25 + $0x19c] sm:$0xf] %vm1340_vm0, %v1769_v17  ;;  %v544_v31 = vmul.f32 %v2553_v18, %v2009_v22  ;;  %v545_v32 = vmul.f32 %v2553_v18, %v2012_v23  ;;  %v546_v33 = vmul.f32 %v2553_v18, %v2013_v24  ;;  %v2021_v1 = vunpack.c.h.bf16 %v2105_v52 }
  0x95   : > { %v547_v34 = vmul.f32 %v2553_v18, %v2016_v25  ;;  %v548_v35 = vmul.f32 %v2553_v18, %v2017_v26  ;;  %v676_v36 = vadd.f32 %v2566_v27, %v541_v28  ;;  %v677_v37 = vadd.f32 %v2566_v27, %v542_v29 }
  0x96   : > { %v678_v38 = vadd.f32 %v2566_v27, %v543_v30  ;;  %v679_v39 = vadd.f32 %v2566_v27, %v544_v31  ;;  %v680_v40 = vadd.f32 %v2566_v27, %v545_v32  ;;  %v681_v41 = vadd.f32 %v2566_v27, %v546_v33 }
  0x97   : > { %v682_v42 = vadd.f32 %v2566_v27, %v547_v34  ;;  %v683_v43 = vadd.f32 %v2566_v27, %v548_v35  ;;  %v804_v44 = vmax.f32 %v676_v36, 0.0  ;;  %v805_v45 = vmax.f32 %v677_v37, 0.0  ;;  %v2109_v34 = vld [vmem:[%s2167_s18 + $0x1e0] sm:$0xff]   ;;  %v2110_v35 = vld [vmem:[%s2167_s18 + $0x1e8] sm:$0xff]  }
  0x98   : > { %v806_v46 = vmax.f32 %v678_v38, 0.0  ;;  %v807_v47 = vmax.f32 %v679_v39, 0.0  ;;  %v808_v48 = vmax.f32 %v680_v40, 0.0  ;;  %v809_v49 = vmax.f32 %v681_v41, 0.0  ;;  %v2111_v40 = vld [vmem:[%s2167_s18 + $0x1f0] sm:$0xff]   ;;  %v2112_v41 = vld [vmem:[%s2167_s18 + $0x1f8] sm:$0xff]  }
  0x99   : > { %v810_v50 = vmax.f32 %v682_v42, 0.0  ;;  %v811_v51 = vmax.f32 %v683_v43, 0.0  ;;  %v1770_v0 = vpack.c.bf16 %v804_v44, %v804_v44  ;;  %v1771_v54 = vpack.c.bf16 %v805_v45, %v805_v45 }
  0x9a   : > { %v1772_v55 = vpack.c.bf16 %v806_v46, %v806_v46  ;;  %v1773_v56 = vpack.c.bf16 %v807_v47, %v807_v47  ;;  %v1774_v59 = vpack.c.bf16 %v808_v48, %v808_v48  ;;  %v1775_v60 = vpack.c.bf16 %v809_v49, %v809_v49 }
  0x9b   : > { %v1776_v61 = vpack.c.bf16 %v810_v50, %v810_v50  ;;  %v1777_v62 = vpack.c.bf16 %v811_v51, %v811_v51  ;;  %1445 = vst.msk [vmem:[%s2204_s25 + $0x1a0] sm:$0xf] %vm1340_vm0, %v1770_v0  ;;  %1446 = vst.msk [vmem:[%s2204_s25 + $0x1a4] sm:$0xf] %vm1340_vm0, %v1771_v54  ;;  %v2024_v2 = vunpack.c.l.bf16 %v2106_v53  ;;  %v2025_v9 = vunpack.c.h.bf16 %v2106_v53 }
  0x9c   : > { %1447 = vst.msk [vmem:[%s2204_s25 + $0x1a8] sm:$0xf] %vm1340_vm0, %v1772_v55  ;;  %1448 = vst.msk [vmem:[%s2204_s25 + $0x1ac] sm:$0xf] %vm1340_vm0, %v1773_v56  ;;  %v2028_v3 = vunpack.c.l.bf16 %v2107_v57  ;;  %v2029_v4 = vunpack.c.h.bf16 %v2107_v57  ;;  %v2032_v5 = vunpack.c.l.bf16 %v2108_v58  ;;  %v2033_v6 = vunpack.c.h.bf16 %v2108_v58 }
  0x9d   : > { %1449 = vst.msk [vmem:[%s2204_s25 + $0x1b0] sm:$0xf] %vm1340_vm0, %v1774_v59  ;;  %1450 = vst.msk [vmem:[%s2204_s25 + $0x1b4] sm:$0xf] %vm1340_vm0, %v1775_v60  ;;  %v549_v7 = vmul.f32 %v2553_v18, %v2020_v63  ;;  %v550_v8 = vmul.f32 %v2553_v18, %v2021_v1  ;;  %v551_v10 = vmul.f32 %v2553_v18, %v2024_v2  ;;  %v2036_v46 = vunpack.c.l.bf16 %v2109_v34 }
  0x9e   : > { %1451 = vst.msk [vmem:[%s2204_s25 + $0x1b8] sm:$0xf] %vm1340_vm0, %v1776_v61  ;;  %1452 = vst.msk [vmem:[%s2204_s25 + $0x1bc] sm:$0xf] %vm1340_vm0, %v1777_v62  ;;  %v552_v11 = vmul.f32 %v2553_v18, %v2025_v9  ;;  %v553_v12 = vmul.f32 %v2553_v18, %v2028_v3  ;;  %v554_v13 = vmul.f32 %v2553_v18, %v2029_v4  ;;  %v2037_v47 = vunpack.c.h.bf16 %v2109_v34 }
  0x9f   : > { %v555_v14 = vmul.f32 %v2553_v18, %v2032_v5  ;;  %v556_v15 = vmul.f32 %v2553_v18, %v2033_v6  ;;  %v684_v16 = vadd.f32 %v2566_v27, %v549_v7  ;;  %v685_v17 = vadd.f32 %v2566_v27, %v550_v8 }
  0xa0   : > { %v686_v19 = vadd.f32 %v2566_v27, %v551_v10  ;;  %v687_v20 = vadd.f32 %v2566_v27, %v552_v11  ;;  %v688_v21 = vadd.f32 %v2566_v27, %v553_v12  ;;  %v689_v22 = vadd.f32 %v2566_v27, %v554_v13 }
  0xa1   : > { %v690_v23 = vadd.f32 %v2566_v27, %v555_v14  ;;  %v691_v24 = vadd.f32 %v2566_v27, %v556_v15  ;;  %v812_v25 = vmax.f32 %v684_v16, 0.0  ;;  %v813_v26 = vmax.f32 %v685_v17, 0.0 }
  0xa2   : > { %v814_v28 = vmax.f32 %v686_v19, 0.0  ;;  %v815_v29 = vmax.f32 %v687_v20, 0.0  ;;  %v816_v30 = vmax.f32 %v688_v21, 0.0  ;;  %v817_v31 = vmax.f32 %v689_v22, 0.0 }
  0xa3   : > { %v818_v32 = vmax.f32 %v690_v23, 0.0  ;;  %v819_v33 = vmax.f32 %v691_v24, 0.0  ;;  %v1778_v36 = vpack.c.bf16 %v812_v25, %v812_v25  ;;  %v1779_v37 = vpack.c.bf16 %v813_v26, %v813_v26 }
  0xa4   : > { %v1780_v38 = vpack.c.bf16 %v814_v28, %v814_v28  ;;  %v1781_v39 = vpack.c.bf16 %v815_v29, %v815_v29  ;;  %v1782_v42 = vpack.c.bf16 %v816_v30, %v816_v30  ;;  %v1783_v43 = vpack.c.bf16 %v817_v31, %v817_v31 }
  0xa5   : > { %v1784_v44 = vpack.c.bf16 %v818_v32, %v818_v32  ;;  %v1785_v45 = vpack.c.bf16 %v819_v33, %v819_v33  ;;  %1453 = vst.msk [vmem:[%s2204_s25 + $0x1c0] sm:$0xf] %vm1340_vm0, %v1778_v36  ;;  %1454 = vst.msk [vmem:[%s2204_s25 + $0x1c4] sm:$0xf] %vm1340_vm0, %v1779_v37  ;;  %v2040_v48 = vunpack.c.l.bf16 %v2110_v35  ;;  %v2041_v49 = vunpack.c.h.bf16 %v2110_v35 }
  0xa6   : > { %1455 = vst.msk [vmem:[%s2204_s25 + $0x1c8] sm:$0xf] %vm1340_vm0, %v1780_v38  ;;  %1456 = vst.msk [vmem:[%s2204_s25 + $0x1cc] sm:$0xf] %vm1340_vm0, %v1781_v39  ;;  %v2044_v50 = vunpack.c.l.bf16 %v2111_v40  ;;  %v2045_v51 = vunpack.c.h.bf16 %v2111_v40  ;;  %v2048_v52 = vunpack.c.l.bf16 %v2112_v41  ;;  %v2049_v53 = vunpack.c.h.bf16 %v2112_v41 }
  0xa7   : > { %1457 = vst.msk [vmem:[%s2204_s25 + $0x1d0] sm:$0xf] %vm1340_vm0, %v1782_v42  ;;  %1458 = vst.msk [vmem:[%s2204_s25 + $0x1d4] sm:$0xf] %vm1340_vm0, %v1783_v43  ;;  %v557_v0 = vmul.f32 %v2553_v18, %v2036_v46  ;;  %v558_v54 = vmul.f32 %v2553_v18, %v2037_v47  ;;  %v559_v55 = vmul.f32 %v2553_v18, %v2040_v48 }
  0xa8   : > { %1459 = vst.msk [vmem:[%s2204_s25 + $0x1d8] sm:$0xf] %vm1340_vm0, %v1784_v44  ;;  %1460 = vst.msk [vmem:[%s2204_s25 + $0x1dc] sm:$0xf] %vm1340_vm0, %v1785_v45  ;;  %v560_v56 = vmul.f32 %v2553_v18, %v2041_v49  ;;  %v561_v57 = vmul.f32 %v2553_v18, %v2044_v50  ;;  %v562_v58 = vmul.f32 %v2553_v18, %v2045_v51 }
  0xa9   : > { %v563_v59 = vmul.f32 %v2553_v18, %v2048_v52  ;;  %v564_v60 = vmul.f32 %v2553_v18, %v2049_v53  ;;  %v692_v61 = vadd.f32 %v2566_v27, %v557_v0  ;;  %v693_v62 = vadd.f32 %v2566_v27, %v558_v54 }
  0xaa   : > { %v694_v63 = vadd.f32 %v2566_v27, %v559_v55  ;;  %v695_v1 = vadd.f32 %v2566_v27, %v560_v56  ;;  %v696_v2 = vadd.f32 %v2566_v27, %v561_v57  ;;  %v697_v9 = vadd.f32 %v2566_v27, %v562_v58 }
  0xab   : > { %v698_v3 = vadd.f32 %v2566_v27, %v563_v59  ;;  %v699_v4 = vadd.f32 %v2566_v27, %v564_v60  ;;  %v820_v5 = vmax.f32 %v692_v61, 0.0  ;;  %v821_v6 = vmax.f32 %v693_v62, 0.0 }
  0xac   : > { %v822_v18 = vmax.f32 %v694_v63, 0.0  ;;  %v823_v7 = vmax.f32 %v695_v1, 0.0  ;;  %v824_v8 = vmax.f32 %v696_v2, 0.0  ;;  %v825_v10 = vmax.f32 %v697_v9, 0.0 }
  0xad   : > { %v826_v11 = vmax.f32 %v698_v3, 0.0  ;;  %v827_v12 = vmax.f32 %v699_v4, 0.0  ;;  %v1786_v13 = vpack.c.bf16 %v820_v5, %v820_v5  ;;  %v1787_v14 = vpack.c.bf16 %v821_v6, %v821_v6 }
  0xae   : > { %v1788_v15 = vpack.c.bf16 %v822_v18, %v822_v18  ;;  %v1789_v27 = vpack.c.bf16 %v823_v7, %v823_v7  ;;  %v1790_v16 = vpack.c.bf16 %v824_v8, %v824_v8  ;;  %v1791_v17 = vpack.c.bf16 %v825_v10, %v825_v10 }
  0xaf   : > { %v1792_v19 = vpack.c.bf16 %v826_v11, %v826_v11  ;;  %v1793_v20 = vpack.c.bf16 %v827_v12, %v827_v12  ;;  %1461 = vst.msk [vmem:[%s2204_s25 + $0x1e0] sm:$0xf] %vm1340_vm0, %v1786_v13  ;;  %1462 = vst.msk [vmem:[%s2204_s25 + $0x1e4] sm:$0xf] %vm1340_vm0, %v1787_v14 }
  0xb0   : > { %1463 = vst.msk [vmem:[%s2204_s25 + $0x1e8] sm:$0xf] %vm1340_vm0, %v1788_v15  ;;  %1464 = vst.msk [vmem:[%s2204_s25 + $0x1ec] sm:$0xf] %vm1340_vm0, %v1789_v27 }
  0xb1   : > { %1465 = vst.msk [vmem:[%s2204_s25 + $0x1f0] sm:$0xf] %vm1340_vm0, %v1790_v16  ;;  %1466 = vst.msk [vmem:[%s2204_s25 + $0x1f4] sm:$0xf] %vm1340_vm0, %v1791_v17 }
  0xb2   : > { %1467 = vst.msk [vmem:[%s2204_s25 + $0x1f8] sm:$0xf] %vm1340_vm0, %v1792_v19  ;;  %1468 = vst.msk [vmem:[%s2204_s25 + $0x1fc] sm:$0xf] %vm1340_vm0, %v1793_v20 }
  0xb3 PF: > { %s13_s12 = sadd.s32 1, %s2129_s12  }
  0xb4   : > { %p10_p4 = scmp.ge.s32.totalorder %s13_s12, 4  }
  0xb6   :  { %12 = sbr.rel (!%p10_p4) target bundleno = 1 (0x1), region = 62 }

// kernel: generator_forward.19
= control target key start
LH: loop header
LB: loop body
LE: loop exit
PB: predicated region body
PF: predicated region fallthrough
CT: control target
= control target key end

     0   :  { %s2258_s12 = smov 0   ;;  %s2260_s13 = smov 0   ;;  %s2575_s0 = inlined_call_operand.vmem [shape: bf16[4,2048,256], index: 0, kind: input, shape index: {}]   ;;  %s2576_s1 = inlined_call_operand.vmem [shape: bf16[4,256,128], index: 1, kind: input, shape index: {}]   ;;  %s2577_s2 = inlined_call_operand.vmem [shape: f32[1,128], index: 2, kind: input, shape index: {}]   ;;  %s2578_s3 = inlined_call_operand.vmem [shape: f32[4,2048,128], index: 3, kind: output, shape index: {}]  }
   0x1   :  { %s2262_s14 = smov 0   ;;  %s2264_s15 = smov 0  }
   0x2   :  { %s2266_s16 = smov 0  }
   0x3 LB: > { %s35_s17 = sadd.s32 1, %s2227_s14  ;;  %s39_s18 = sadd.s32 1, %s2231_s15  ;;  %s2235_s16 = sphi %s2266_s16, %s13_s16   ;;  %s2231_s15 = sphi %s2264_s15, %s2582_s15   ;;  %s2227_s14 = sphi %s2262_s14, %s2581_s14   ;;  %s2223_s13 = sphi %s2260_s13, %s2580_s13   ;;  %s2219_s12 = sphi %s2258_s12, %s2579_s12  }
   0x4   : > { %p37_p0 = scmp.ge.s32.totalorder %s35_s17, 4  ;;  %p1790_p1 = scmp.ge.s32.totalorder %s2235_s16, 1 }
   0x5   : > { %p212_p2 = scmp.lt.s32.totalorder %s2235_s16, 17 }
   0x6   : > { %s2584_s17 = smov (%p37_p0, %s35_s17), 0  ;;  %s2586_s18 = smov (!%p37_p0, %s39_s18), %s2231_s15 }
   0x7   : > { %p213_p3 = pnand %p1790_p1, %p212_p2  ;;  %p41_p4 = scmp.ge.s32.totalorder %s2586_s18, 4 }
   0x8   : > { %p269_p5 = scmp.lt.s32.totalorder (!%p213_p3), %s2223_s13, 3  ;;  %s1791_s19 = sshll.u32 (!%p213_p3), %s2219_s12, 6 }
   0x9   : > { %s2588_s18 = smov (%p41_p4, %s2586_s18), 0  ;;  %216 = sbr.rel (%p213_p3) target bundleno = 416 (0x1a0), region = 32 }
   0xa   : > { %p271_p6 = scmp.lt.s32.totalorder (!%p213_p3), %s1791_s19, 255 }
   0xe   : > { %v2237_v0 = vmov 0   ;;  %s2590_s13 = smov (!%p269_p5, %s2223_s13), 3  ;;  %s2592_s19 = smov (!%p271_p6, %s1791_s19), 255 }
   0xf   : > { %957 = vmatprep.subr.bf16.mxu0 %v2237_v0  ;;  %1884 = vmatprep.subr.bf16.mxu1 %v2237_v0  ;;  %s1883_s20 = sshll.u32 %s2590_s13, 7  ;;  %s1792_s24 = sshll.u32 %s2592_s19, 1 }
  0x10   : > { %s2296_s23 = scalar_lea.vmem %s2576_s1, %s1883_s20  ;;  %s1793_s25 = sshll.u32 %s2590_s13, 9 }
  0x11   : > { %v1957_v1 = vld [vmem:[%s2296_s23 + $0x38] sm:$0xff]   ;;  %v1958_v2 = vld [vmem:[%s2296_s23 + $0x30] sm:$0xff]   ;;  %v1959_v3 = vld [vmem:[%s2296_s23 + $0x28] sm:$0xff]   ;;  %s278_s26 = sadd.s32 %s1793_s25, %s1792_s24  ;;  %s1798_s4 = sshll.u32 %s2590_s13, 8 }
  0x12   : > { %958 = vmatpush1.bf16.msra.mxu0 %v1957_v1  ;;  %1900 = vmatpush1.bf16.msra.mxu1 %v1957_v1  ;;  %v1960_v4 = vld [vmem:[%s2296_s23 + $0x20] sm:$0xff]   ;;  %s1794_s27 = sshll.u32 %s278_s26, 2  ;;  %v1961_v5 = vld [vmem:[%s2296_s23 + $0x18] sm:$0xff]   ;;  %v1962_v7 = vld [vmem:[%s2296_s23 + $0x10] sm:$0xff]   ;;  %s2355_s5 = sadd.s32 %s1798_s4, %s2592_s19 }
  0x13   : > { %959 = vmatprep.subr.bf16.mxu0 %v2237_v0  ;;  %1885 = vmatprep.subr.bf16.mxu1 %v2237_v0  ;;  %s2316_s30 = scalar_lea.vmem %s2575_s0, %s1794_s27  ;;  %v1963_v9 = vld [vmem:[%s2296_s23 + $0x8] sm:$0xff]   ;;  %v1964_v10 = vld [vmem:[%s2296_s23] sm:$0xff]   ;;  %v1965_v11 = vld [vmem:[%s2296_s23 + $0x78] sm:$0xff]   ;;  %s1799_s8 = sshll.u32 %s2355_s5, 3 }
  0x14   : > { %v1975_v6 = vld [vmem:[%s2316_s30 + $0x4] ss:$8 sps:$4 sm:$0xff]   ;;  %v1966_v12 = vld [vmem:[%s2296_s23 + $0x70] sm:$0xff]   ;;  %v1969_v15 = vld [vmem:[%s2296_s23 + $0x58] sm:$0xff]   ;;  %s2438_s11 = scalar_lea.vmem %s2578_s3, %s1799_s8 }
  0x15   : > { %v1978_v8 = vld [vmem:[%s2316_s30 + $0x104] ss:$8 sps:$4 sm:$0xff]   ;;  %989 = vmatprep.mubr.bf16.mxu0 %v1975_v6  ;;  %v1970_v16 = vld [vmem:[%s2296_s23 + $0x50] sm:$0xff]   ;;  %v1973_v19 = vld [vmem:[%s2316_s30] ss:$8 sps:$4 sm:$0xff]  }
  0x16   : > { %960 = vmatpush1.bf16.msra.mxu0 %v1958_v2  ;;  %1901 = vmatpush1.bf16.msra.mxu1 %v1958_v2  ;;  %v1967_v13 = vld [vmem:[%s2296_s23 + $0x68] sm:$0xff]   ;;  %v1968_v14 = vld [vmem:[%s2296_s23 + $0x60] sm:$0xff]   ;;  %v1979_v21 = vld [vmem:[%s2316_s30 + $0x14] ss:$8 sps:$4 sm:$0xff]  }
  0x17   : > { %961 = vmatprep.subr.bf16.mxu0 %v2237_v0  ;;  %1886 = vmatprep.subr.bf16.mxu1 %v2237_v0  ;;  %v1971_v17 = vld [vmem:[%s2296_s23 + $0x48] sm:$0xff]   ;;  %v1972_v18 = vld [vmem:[%s2296_s23 + $0x40] sm:$0xff]   ;;  %v1981_v22 = vld [vmem:[%s2316_s30 + $0x114] ss:$8 sps:$4 sm:$0xff]  }
  0x18   : > { %1117 = vmatprep.mubr.bf16.mxu1 %v1978_v8  ;;  %v1976_v20 = vld [vmem:[%s2316_s30 + $0x100] ss:$8 sps:$4 sm:$0xff]   ;;  %v1983_v23 = vld [vmem:[%s2316_s30 + $0x10] ss:$8 sps:$4 sm:$0xff]   ;;  %v1985_v25 = vld [vmem:[%s2316_s30 + $0x24] ss:$8 sps:$4 sm:$0xff]  }
  0x19   : > { %v1984_v24 = vld [vmem:[%s2316_s30 + $0x110] ss:$8 sps:$4 sm:$0xff]   ;;  %v1987_v26 = vld [vmem:[%s2316_s30 + $0x124] ss:$8 sps:$4 sm:$0xff]   ;;  %v1989_v27 = vld [vmem:[%s2316_s30 + $0x20] ss:$8 sps:$4 sm:$0xff]  }
  0x1a   : > { %962 = vmatpush1.bf16.msra.mxu0 %v1959_v3  ;;  %1902 = vmatpush1.bf16.msra.mxu1 %v1959_v3  ;;  %v1990_v28 = vld [vmem:[%s2316_s30 + $0x120] ss:$8 sps:$4 sm:$0xff]   ;;  %v1991_v29 = vld [vmem:[%s2316_s30 + $0x34] ss:$8 sps:$4 sm:$0xff]   ;;  %v1995_v31 = vld [vmem:[%s2316_s30 + $0x30] ss:$8 sps:$4 sm:$0xff]  }
  0x1b   : > { %963 = vmatprep.subr.bf16.mxu0 %v2237_v0  ;;  %1887 = vmatprep.subr.bf16.mxu1 %v2237_v0  ;;  %v1993_v30 = vld [vmem:[%s2316_s30 + $0x134] ss:$8 sps:$4 sm:$0xff]   ;;  %v1996_v32 = vld [vmem:[%s2316_s30 + $0x130] ss:$8 sps:$4 sm:$0xff]   ;;  %v1997_v33 = vld [vmem:[%s2316_s30 + $0x44] ss:$8 sps:$4 sm:$0xff]  }
  0x1c   : > { %v1999_v34 = vld [vmem:[%s2316_s30 + $0x144] ss:$8 sps:$4 sm:$0xff]   ;;  %v2001_v35 = vld [vmem:[%s2316_s30 + $0x40] ss:$8 sps:$4 sm:$0xff]   ;;  %v2003_v37 = vld [vmem:[%s2316_s30 + $0x54] ss:$8 sps:$4 sm:$0xff]  }
  0x1d   : > { %v2002_v36 = vld [vmem:[%s2316_s30 + $0x140] ss:$8 sps:$4 sm:$0xff]   ;;  %v2005_v38 = vld [vmem:[%s2316_s30 + $0x154] ss:$8 sps:$4 sm:$0xff]   ;;  %v2007_v39 = vld [vmem:[%s2316_s30 + $0x50] ss:$8 sps:$4 sm:$0xff]  }
  0x1e   : > { %964 = vmatpush1.bf16.msra.mxu0 %v1960_v4  ;;  %1903 = vmatpush1.bf16.msra.mxu1 %v1960_v4  ;;  %v2008_v40 = vld [vmem:[%s2316_s30 + $0x150] ss:$8 sps:$4 sm:$0xff]   ;;  %v2009_v41 = vld [vmem:[%s2316_s30 + $0x64] ss:$8 sps:$4 sm:$0xff]   ;;  %v2013_v43 = vld [vmem:[%s2316_s30 + $0x60] ss:$8 sps:$4 sm:$0xff]  }
  0x1f   : > { %965 = vmatprep.subr.bf16.mxu0 %v2237_v0  ;;  %1888 = vmatprep.subr.bf16.mxu1 %v2237_v0  ;;  %v2011_v42 = vld [vmem:[%s2316_s30 + $0x164] ss:$8 sps:$4 sm:$0xff]   ;;  %v2014_v44 = vld [vmem:[%s2316_s30 + $0x160] ss:$8 sps:$4 sm:$0xff]   ;;  %v2015_v45 = vld [vmem:[%s2316_s30 + $0x74] ss:$8 sps:$4 sm:$0xff]  }
  0x20   : > { %v2017_v46 = vld [vmem:[%s2316_s30 + $0x174] ss:$8 sps:$4 sm:$0xff]   ;;  %v2019_v47 = vld [vmem:[%s2316_s30 + $0x70] ss:$8 sps:$4 sm:$0xff]   ;;  %v2021_v49 = vld [vmem:[%s2316_s30 + $0x84] ss:$8 sps:$4 sm:$0xff]  }
  0x21   : > { %v2020_v48 = vld [vmem:[%s2316_s30 + $0x170] ss:$8 sps:$4 sm:$0xff]   ;;  %v2023_v50 = vld [vmem:[%s2316_s30 + $0x184] ss:$8 sps:$4 sm:$0xff]   ;;  %v2025_v51 = vld [vmem:[%s2316_s30 + $0x80] ss:$8 sps:$4 sm:$0xff]  }
  0x22   : > { %966 = vmatpush1.bf16.msra.mxu0 %v1961_v5  ;;  %1904 = vmatpush1.bf16.msra.mxu1 %v1961_v5  ;;  %v2026_v52 = vld [vmem:[%s2316_s30 + $0x180] ss:$8 sps:$4 sm:$0xff]   ;;  %v2027_v53 = vld [vmem:[%s2316_s30 + $0x94] ss:$8 sps:$4 sm:$0xff]   ;;  %v2031_v55 = vld [vmem:[%s2316_s30 + $0x90] ss:$8 sps:$4 sm:$0xff]  }
  0x23   : > { %967 = vmatprep.subr.bf16.mxu0 %v2237_v0  ;;  %1889 = vmatprep.subr.bf16.mxu1 %v2237_v0  ;;  %v2029_v54 = vld [vmem:[%s2316_s30 + $0x194] ss:$8 sps:$4 sm:$0xff]   ;;  %v2032_v56 = vld [vmem:[%s2316_s30 + $0x190] ss:$8 sps:$4 sm:$0xff]   ;;  %v2033_v57 = vld [vmem:[%s2316_s30 + $0xa4] ss:$8 sps:$4 sm:$0xff]  }
  0x24   : > { %v2035_v58 = vld [vmem:[%s2316_s30 + $0x1a4] ss:$8 sps:$4 sm:$0xff]   ;;  %v2037_v59 = vld [vmem:[%s2316_s30 + $0xa0] ss:$8 sps:$4 sm:$0xff]   ;;  %v2039_v61 = vld [vmem:[%s2316_s30 + $0xb4] ss:$8 sps:$4 sm:$0xff]  }
  0x25   : > { %v2038_v60 = vld [vmem:[%s2316_s30 + $0x1a0] ss:$8 sps:$4 sm:$0xff]   ;;  %v2041_v62 = vld [vmem:[%s2316_s30 + $0x1b4] ss:$8 sps:$4 sm:$0xff]   ;;  %v2043_v63 = vld [vmem:[%s2316_s30 + $0xb0] ss:$8 sps:$4 sm:$0xff]  }
  0x26   : > { %968 = vmatpush1.bf16.msra.mxu0 %v1962_v7  ;;  %1905 = vmatpush1.bf16.msra.mxu1 %v1962_v7  ;;  %v2045_v1 = vld [vmem:[%s2316_s30 + $0xc4] ss:$8 sps:$4 sm:$0xff]   ;;  %v2049_v3 = vld [vmem:[%s2316_s30 + $0xc0] ss:$8 sps:$4 sm:$0xff]   ;;  %v2051_v5 = vld [vmem:[%s2316_s30 + $0xd4] ss:$8 sps:$4 sm:$0xff]  }
  0x27   : > { %969 = vmatprep.subr.bf16.mxu0 %v2237_v0  ;;  %1890 = vmatprep.subr.bf16.mxu1 %v2237_v0  ;;  %v2047_v2 = vld [vmem:[%s2316_s30 + $0x1c4] ss:$8 sps:$4 sm:$0xff]   ;;  %v2050_v4 = vld [vmem:[%s2316_s30 + $0x1c0] ss:$8 sps:$4 sm:$0xff]   ;;  %v2053_v6 = vld [vmem:[%s2316_s30 + $0x1d4] ss:$8 sps:$4 sm:$0xff]  }
  0x28   : > { %v2055_v7 = vld [vmem:[%s2316_s30 + $0xd0] ss:$8 sps:$4 sm:$0xff]  }
  0x29   : > { %v2056_v8 = vld [vmem:[%s2316_s30 + $0x1d0] ss:$8 sps:$4 sm:$0xff]  }
  0x2a   : > { %970 = vmatpush1.bf16.msra.mxu0 %v1963_v9  ;;  %1906 = vmatpush1.bf16.msra.mxu1 %v1963_v9  ;;  %v2057_v9 = vld [vmem:[%s2316_s30 + $0xe4] ss:$8 sps:$4 sm:$0xff]  }
  0x2b   : > { %971 = vmatprep.subr.bf16.mxu0 %v2237_v0  ;;  %1891 = vmatprep.subr.bf16.mxu1 %v2237_v0 }
  0x2e   : > { %972 = vmatpush1.bf16.msra.mxu0 %v1964_v10  ;;  %1907 = vmatpush1.bf16.msra.mxu1 %v1964_v10  ;;  %v2059_v10 = vld [vmem:[%s2316_s30 + $0x1e4] ss:$8 sps:$4 sm:$0xff]  }
  0x2f   : > { %973 = vmatprep.subr.bf16.mxu0 %v2237_v0  ;;  %1892 = vmatprep.subr.bf16.mxu1 %v2237_v0 }
  0x32   : > { %974 = vmatpush2.bf16.msra.mxu0 %v1965_v11  ;;  %1908 = vmatpush2.bf16.msra.mxu1 %v1965_v11  ;;  %v2061_v11 = vld [vmem:[%s2316_s30 + $0xe0] ss:$8 sps:$4 sm:$0xff]  }
  0x33   : > { %975 = vmatprep.subr.bf16.mxu0 %v2237_v0  ;;  %1893 = vmatprep.subr.bf16.mxu1 %v2237_v0 }
  0x36   : > { %976 = vmatpush2.bf16.msra.mxu0 %v1966_v12  ;;  %1909 = vmatpush2.bf16.msra.mxu1 %v1966_v12  ;;  %v2062_v12 = vld [vmem:[%s2316_s30 + $0x1e0] ss:$8 sps:$4 sm:$0xff]  }
  0x37   : > { %977 = vmatprep.subr.bf16.mxu0 %v2237_v0  ;;  %1894 = vmatprep.subr.bf16.mxu1 %v2237_v0 }
  0x3a   : > { %978 = vmatpush2.bf16.msra.mxu0 %v1967_v13  ;;  %1910 = vmatpush2.bf16.msra.mxu1 %v1967_v13  ;;  %v2063_v13 = vld [vmem:[%s2316_s30 + $0xf4] ss:$8 sps:$4 sm:$0xff]  }
  0x3b   : > { %979 = vmatprep.subr.bf16.mxu0 %v2237_v0  ;;  %1895 = vmatprep.subr.bf16.mxu1 %v2237_v0 }
  0x3e   : > { %980 = vmatpush2.bf16.msra.mxu0 %v1968_v14  ;;  %1911 = vmatpush2.bf16.msra.mxu1 %v1968_v14  ;;  %v2065_v14 = vld [vmem:[%s2316_s30 + $0x1f4] ss:$8 sps:$4 sm:$0xff]  }
  0x3f   : > { %981 = vmatprep.subr.bf16.mxu0 %v2237_v0  ;;  %1896 = vmatprep.subr.bf16.mxu1 %v2237_v0 }
  0x42   : > { %982 = vmatpush2.bf16.msra.mxu0 %v1969_v15  ;;  %1912 = vmatpush2.bf16.msra.mxu1 %v1969_v15  ;;  %v2067_v15 = vld [vmem:[%s2316_s30 + $0xf0] ss:$8 sps:$4 sm:$0xff]  }
  0x43   : > { %983 = vmatprep.subr.bf16.mxu0 %v2237_v0  ;;  %1897 = vmatprep.subr.bf16.mxu1 %v2237_v0 }
  0x46   : > { %984 = vmatpush2.bf16.msra.mxu0 %v1970_v16  ;;  %1913 = vmatpush2.bf16.msra.mxu1 %v1970_v16  ;;  %v2068_v16 = vld [vmem:[%s2316_s30 + $0x1f0] ss:$8 sps:$4 sm:$0xff]  }
  0x47   : > { %985 = vmatprep.subr.bf16.mxu0 %v2237_v0  ;;  %1898 = vmatprep.subr.bf16.mxu1 %v2237_v0 }
  0x4a   : > { %986 = vmatpush2.bf16.msra.mxu0 %v1971_v17  ;;  %1914 = vmatpush2.bf16.msra.mxu1 %v1971_v17  ;;  %v2424_v17 = vld [vmem:[%s2577_s2] ss:$0 sm:$0xff] }
  0x4b   : > { %987 = vmatprep.subr.bf16.mxu0 %v2237_v0  ;;  %1899 = vmatprep.subr.bf16.mxu1 %v2237_v0  ;;  %v2044_v0 = vld [vmem:[%s2316_s30 + $0x1b0] ss:$8 sps:$4 sm:$0xff]  }
  0x4e   : > { %988 = vmatpush2.bf16.msra.mxu0 %v1972_v18  ;;  %1915 = vmatpush2.bf16.msra.mxu1 %v1972_v18 }
  0x51   : > { %990 = vmatmul.mubr.bf16.vlgmr.msra.gmra.mxu0 %v1973_v19  ;;  %1118 = vmatmul.mubr.bf16.vlgmr.msra.gmra.mxu1 %v1976_v20 }
  0x52   : > { %997 = vmatprep.mubr.bf16.mxu0 %v1979_v21  ;;  %1125 = vmatprep.mubr.bf16.mxu1 %v1981_v22 }
  0x59   : > { %998 = vmatmul.mubr.bf16.gmra.mxu0 %v1983_v23  ;;  %1126 = vmatmul.mubr.bf16.gmra.mxu1 %v1984_v24 }
  0x5a   : > { %1005 = vmatprep.mubr.bf16.mxu0 %v1985_v25  ;;  %1133 = vmatprep.mubr.bf16.mxu1 %v1987_v26 }
  0x61   : > { %1006 = vmatmul.mubr.bf16.gmra.mxu0 %v1989_v27  ;;  %1134 = vmatmul.mubr.bf16.gmra.mxu1 %v1990_v28 }
  0x62   : > { %1013 = vmatprep.mubr.bf16.mxu0 %v1991_v29  ;;  %1141 = vmatprep.mubr.bf16.mxu1 %v1993_v30 }
  0x69   : > { %1014 = vmatmul.mubr.bf16.gmra.mxu0 %v1995_v31  ;;  %1142 = vmatmul.mubr.bf16.gmra.mxu1 %v1996_v32 }
  0x6a   : > { %1021 = vmatprep.mubr.bf16.mxu0 %v1997_v33  ;;  %1149 = vmatprep.mubr.bf16.mxu1 %v1999_v34 }
  0x71   : > { %1022 = vmatmul.mubr.bf16.gmra.mxu0 %v2001_v35  ;;  %1150 = vmatmul.mubr.bf16.gmra.mxu1 %v2002_v36 }
  0x72   : > { %1029 = vmatprep.mubr.bf16.mxu0 %v2003_v37  ;;  %1157 = vmatprep.mubr.bf16.mxu1 %v2005_v38 }
  0x79   : > { %1030 = vmatmul.mubr.bf16.gmra.mxu0 %v2007_v39  ;;  %1158 = vmatmul.mubr.bf16.gmra.mxu1 %v2008_v40 }
  0x7a   : > { %1037 = vmatprep.mubr.bf16.mxu0 %v2009_v41  ;;  %1165 = vmatprep.mubr.bf16.mxu1 %v2011_v42 }
  0x81   : > { %1038 = vmatmul.mubr.bf16.gmra.mxu0 %v2013_v43  ;;  %1166 = vmatmul.mubr.bf16.gmra.mxu1 %v2014_v44 }
  0x82   : > { %1045 = vmatprep.mubr.bf16.mxu0 %v2015_v45  ;;  %1173 = vmatprep.mubr.bf16.mxu1 %v2017_v46 }
  0x89   : > { %1046 = vmatmul.mubr.bf16.gmra.mxu0 %v2019_v47  ;;  %1174 = vmatmul.mubr.bf16.gmra.mxu1 %v2020_v48 }
  0x8a   : > { %1053 = vmatprep.mubr.bf16.mxu0 %v2021_v49  ;;  %1181 = vmatprep.mubr.bf16.mxu1 %v2023_v50 }
  0x91   : > { %1054 = vmatmul.mubr.bf16.gmra.mxu0 %v2025_v51  ;;  %1182 = vmatmul.mubr.bf16.gmra.mxu1 %v2026_v52 }
  0x92   : > { %1061 = vmatprep.mubr.bf16.mxu0 %v2027_v53  ;;  %1189 = vmatprep.mubr.bf16.mxu1 %v2029_v54 }
  0x99   : > { %1062 = vmatmul.mubr.bf16.gmra.mxu0 %v2031_v55  ;;  %1190 = vmatmul.mubr.bf16.gmra.mxu1 %v2032_v56 }
  0x9a   : > { %1069 = vmatprep.mubr.bf16.mxu0 %v2033_v57  ;;  %1197 = vmatprep.mubr.bf16.mxu1 %v2035_v58 }
  0xa1   : > { %1070 = vmatmul.mubr.bf16.gmra.mxu0 %v2037_v59  ;;  %1198 = vmatmul.mubr.bf16.gmra.mxu1 %v2038_v60 }
  0xa2   : > { %1077 = vmatprep.mubr.bf16.mxu0 %v2039_v61  ;;  %1205 = vmatprep.mubr.bf16.mxu1 %v2041_v62 }
  0xa9   : > { %1078 = vmatmul.mubr.bf16.gmra.mxu0 %v2043_v63  ;;  %1206 = vmatmul.mubr.bf16.gmra.mxu1 %v2044_v0 }
  0xaa   : > { %1085 = vmatprep.mubr.bf16.mxu0 %v2045_v1  ;;  %1213 = vmatprep.mubr.bf16.mxu1 %v2047_v2 }
  0xb1   : > { %1086 = vmatmul.mubr.bf16.gmra.mxu0 %v2049_v3  ;;  %1214 = vmatmul.mubr.bf16.gmra.mxu1 %v2050_v4 }
  0xb2   : > { %1093 = vmatprep.mubr.bf16.mxu0 %v2051_v5  ;;  %1221 = vmatprep.mubr.bf16.mxu1 %v2053_v6 }
  0xb9   : > { %1094 = vmatmul.mubr.bf16.gmra.mxu0 %v2055_v7  ;;  %1222 = vmatmul.mubr.bf16.gmra.mxu1 %v2056_v8 }
  0xba   : > { %1101 = vmatprep.mubr.bf16.mxu0 %v2057_v9  ;;  %1229 = vmatprep.mubr.bf16.mxu1 %v2059_v10 }
  0xc1   : > { %1102 = vmatmul.mubr.bf16.gmra.mxu0 %v2061_v11  ;;  %1230 = vmatmul.mubr.bf16.gmra.mxu1 %v2062_v12 }
  0xc2   : > { %1109 = vmatprep.mubr.bf16.mxu0 %v2063_v13  ;;  %1237 = vmatprep.mubr.bf16.mxu1 %v2065_v14 }
  0xc9   : > { %1110 = vmatmul.mubr.bf16.gmra.mxu0 %v2067_v15  ;;  %1238 = vmatmul.mubr.bf16.gmra.mxu1 %v2068_v16 }
 0x111   : > { %v991_v18 = vpop.f32.mrf.mxu0  ;;  %v1119_v19 = vpop.f32.mrf.mxu1 }
 0x112   : > { %v1448_v20 = vadd.f32 %v2424_v17, %v991_v18  ;;  %v1480_v21 = vadd.f32 %v2424_v17, %v1119_v19 }
 0x113   : > { %v993_v22 = vpop.f32.mrf.mxu0  ;;  %v1121_v23 = vpop.f32.mrf.mxu1 }
 0x114   : > { %2069 = vtanh.f32 %v1448_v20 }
 0x115   : > { %2071 = vtanh.f32 %v1480_v21  ;;  %v994_v24 = vpop.f32.mrf.mxu0  ;;  %v1122_v25 = vpop.f32.mrf.mxu1 }
 0x116   : > { %v1449_v26 = vadd.f32 %v2424_v17, %v994_v24  ;;  %v1481_v27 = vadd.f32 %v2424_v17, %v1122_v25 }
 0x117   : > { %v996_v28 = vpop.f32.mrf.mxu0  ;;  %v1124_v29 = vpop.f32.mrf.mxu1 }
 0x118   : > { %2073 = vtanh.f32 %v1449_v26 }
 0x119   : > { %2075 = vtanh.f32 %v1481_v27  ;;  %v999_v30 = vpop.f32.mrf.mxu0  ;;  %v1127_v31 = vpop.f32.mrf.mxu1 }
 0x11a   : > { %v1450_v32 = vadd.f32 %v2424_v17, %v999_v30  ;;  %v1482_v33 = vadd.f32 %v2424_v17, %v1127_v31 }
 0x11b   : > { %v1001_v34 = vpop.f32.mrf.mxu0  ;;  %v1129_v35 = vpop.f32.mrf.mxu1 }
 0x11c   : > { %2077 = vtanh.f32 %v1450_v32 }
 0x11d   : > { %2079 = vtanh.f32 %v1482_v33  ;;  %v1002_v36 = vpop.f32.mrf.mxu0  ;;  %v1130_v37 = vpop.f32.mrf.mxu1 }
 0x11e   : > { %v1451_v38 = vadd.f32 %v2424_v17, %v1002_v36  ;;  %v1483_v39 = vadd.f32 %v2424_v17, %v1130_v37 }
 0x11f   : > { %v1004_v40 = vpop.f32.mrf.mxu0  ;;  %v1132_v41 = vpop.f32.mrf.mxu1 }
 0x120   : > { %2081 = vtanh.f32 %v1451_v38 }
 0x121   : > { %v2070_v42 = vpop.eup %2069  ;;  %2083 = vtanh.f32 %v1483_v39  ;;  %v1007_v43 = vpop.f32.mrf.mxu0 }
 0x122   : > { %v1135_v44 = vpop.f32.mrf.mxu1  ;;  %v2072_v45 = vpop.eup %2071  ;;  %1576 = vst [vmem:[%s2438_s11] sm:$0xff] %v2070_v42  ;;  %v1452_v46 = vadd.f32 %v2424_v17, %v1007_v43 }
 0x123   : > { %v1484_v47 = vadd.f32 %v2424_v17, %v1135_v44  ;;  %1608 = vst [vmem:[%s2438_s11 + $0x100] sm:$0xff] %v2072_v45  ;;  %v1009_v48 = vpop.f32.mrf.mxu0 }
 0x124   : > { %v1137_v49 = vpop.f32.mrf.mxu1  ;;  %2085 = vtanh.f32 %v1452_v46 }
 0x125   : > { %v2074_v50 = vpop.eup %2073  ;;  %2087 = vtanh.f32 %v1484_v47  ;;  %v1010_v51 = vpop.f32.mrf.mxu0 }
 0x126   : > { %v1138_v52 = vpop.f32.mrf.mxu1  ;;  %v2076_v53 = vpop.eup %2075  ;;  %1577 = vst [vmem:[%s2438_s11 + $0x8] sm:$0xff] %v2074_v50  ;;  %v1453_v54 = vadd.f32 %v2424_v17, %v1010_v51 }
 0x127   : > { %v1485_v55 = vadd.f32 %v2424_v17, %v1138_v52  ;;  %1609 = vst [vmem:[%s2438_s11 + $0x108] sm:$0xff] %v2076_v53  ;;  %v1012_v56 = vpop.f32.mrf.mxu0 }
 0x128   : > { %v1140_v57 = vpop.f32.mrf.mxu1  ;;  %2089 = vtanh.f32 %v1453_v54 }
 0x129   : > { %v2078_v58 = vpop.eup %2077  ;;  %2091 = vtanh.f32 %v1485_v55  ;;  %v1015_v59 = vpop.f32.mrf.mxu0 }
 0x12a   : > { %v1143_v60 = vpop.f32.mrf.mxu1  ;;  %v2080_v61 = vpop.eup %2079  ;;  %1578 = vst [vmem:[%s2438_s11 + $0x10] sm:$0xff] %v2078_v58  ;;  %v1454_v62 = vadd.f32 %v2424_v17, %v1015_v59 }
 0x12b   : > { %v1486_v63 = vadd.f32 %v2424_v17, %v1143_v60  ;;  %1610 = vst [vmem:[%s2438_s11 + $0x110] sm:$0xff] %v2080_v61  ;;  %v1017_v0 = vpop.f32.mrf.mxu0 }
 0x12c   : > { %v1145_v1 = vpop.f32.mrf.mxu1  ;;  %2093 = vtanh.f32 %v1454_v62 }
 0x12d   : > { %v2082_v2 = vpop.eup %2081  ;;  %2095 = vtanh.f32 %v1486_v63  ;;  %v1018_v3 = vpop.f32.mrf.mxu0 }
 0x12e   : > { %v1146_v4 = vpop.f32.mrf.mxu1  ;;  %v2084_v5 = vpop.eup %2083  ;;  %1579 = vst [vmem:[%s2438_s11 + $0x18] sm:$0xff] %v2082_v2  ;;  %v1455_v6 = vadd.f32 %v2424_v17, %v1018_v3 }
 0x12f   : > { %v1487_v7 = vadd.f32 %v2424_v17, %v1146_v4  ;;  %1611 = vst [vmem:[%s2438_s11 + $0x118] sm:$0xff] %v2084_v5  ;;  %v1020_v8 = vpop.f32.mrf.mxu0 }
 0x130   : > { %v1148_v9 = vpop.f32.mrf.mxu1  ;;  %2097 = vtanh.f32 %v1455_v6 }
 0x131   : > { %v2086_v10 = vpop.eup %2085  ;;  %2099 = vtanh.f32 %v1487_v7  ;;  %v1023_v11 = vpop.f32.mrf.mxu0 }
 0x132   : > { %v1151_v12 = vpop.f32.mrf.mxu1  ;;  %v2088_v13 = vpop.eup %2087  ;;  %1580 = vst [vmem:[%s2438_s11 + $0x20] sm:$0xff] %v2086_v10  ;;  %v1456_v14 = vadd.f32 %v2424_v17, %v1023_v11 }
 0x133   : > { %v1488_v15 = vadd.f32 %v2424_v17, %v1151_v12  ;;  %1612 = vst [vmem:[%s2438_s11 + $0x120] sm:$0xff] %v2088_v13  ;;  %v1025_v16 = vpop.f32.mrf.mxu0 }
 0x134   : > { %v1153_v18 = vpop.f32.mrf.mxu1  ;;  %2101 = vtanh.f32 %v1456_v14 }
 0x135   : > { %v2090_v19 = vpop.eup %2089  ;;  %2103 = vtanh.f32 %v1488_v15  ;;  %v1026_v20 = vpop.f32.mrf.mxu0 }
 0x136   : > { %v1154_v21 = vpop.f32.mrf.mxu1  ;;  %v2092_v22 = vpop.eup %2091  ;;  %1581 = vst [vmem:[%s2438_s11 + $0x28] sm:$0xff] %v2090_v19  ;;  %v1457_v23 = vadd.f32 %v2424_v17, %v1026_v20 }
 0x137   : > { %v1489_v24 = vadd.f32 %v2424_v17, %v1154_v21  ;;  %1613 = vst [vmem:[%s2438_s11 + $0x128] sm:$0xff] %v2092_v22  ;;  %v1028_v25 = vpop.f32.mrf.mxu0 }
 0x138   : > { %v1156_v26 = vpop.f32.mrf.mxu1  ;;  %2105 = vtanh.f32 %v1457_v23 }
 0x139   : > { %v2094_v27 = vpop.eup %2093  ;;  %2107 = vtanh.f32 %v1489_v24  ;;  %v1031_v28 = vpop.f32.mrf.mxu0 }
 0x13a   : > { %v1159_v29 = vpop.f32.mrf.mxu1  ;;  %v2096_v30 = vpop.eup %2095  ;;  %1582 = vst [vmem:[%s2438_s11 + $0x30] sm:$0xff] %v2094_v27  ;;  %v1458_v31 = vadd.f32 %v2424_v17, %v1031_v28 }
 0x13b   : > { %v1490_v32 = vadd.f32 %v2424_v17, %v1159_v29  ;;  %1614 = vst [vmem:[%s2438_s11 + $0x130] sm:$0xff] %v2096_v30  ;;  %v1033_v33 = vpop.f32.mrf.mxu0 }
 0x13c   : > { %v1161_v34 = vpop.f32.mrf.mxu1  ;;  %2109 = vtanh.f32 %v1458_v31 }
 0x13d   : > { %v2098_v35 = vpop.eup %2097  ;;  %2111 = vtanh.f32 %v1490_v32  ;;  %v1034_v36 = vpop.f32.mrf.mxu0 }
 0x13e   : > { %v1162_v37 = vpop.f32.mrf.mxu1  ;;  %v2100_v38 = vpop.eup %2099  ;;  %1583 = vst [vmem:[%s2438_s11 + $0x38] sm:$0xff] %v2098_v35  ;;  %v1459_v39 = vadd.f32 %v2424_v17, %v1034_v36 }
 0x13f   : > { %v1491_v40 = vadd.f32 %v2424_v17, %v1162_v37  ;;  %1615 = vst [vmem:[%s2438_s11 + $0x138] sm:$0xff] %v2100_v38  ;;  %v1036_v41 = vpop.f32.mrf.mxu0 }
 0x140   : > { %v1164_v42 = vpop.f32.mrf.mxu1  ;;  %2113 = vtanh.f32 %v1459_v39 }
 0x141   : > { %v2102_v43 = vpop.eup %2101  ;;  %2115 = vtanh.f32 %v1491_v40  ;;  %v1039_v44 = vpop.f32.mrf.mxu0 }
 0x142   : > { %v1167_v45 = vpop.f32.mrf.mxu1  ;;  %v2104_v46 = vpop.eup %2103  ;;  %1584 = vst [vmem:[%s2438_s11 + $0x40] sm:$0xff] %v2102_v43  ;;  %v1460_v47 = vadd.f32 %v2424_v17, %v1039_v44 }
 0x143   : > { %v1492_v48 = vadd.f32 %v2424_v17, %v1167_v45  ;;  %1616 = vst [vmem:[%s2438_s11 + $0x140] sm:$0xff] %v2104_v46  ;;  %v1041_v49 = vpop.f32.mrf.mxu0 }
 0x144   : > { %v1169_v50 = vpop.f32.mrf.mxu1  ;;  %2117 = vtanh.f32 %v1460_v47 }
 0x145   : > { %v2106_v51 = vpop.eup %2105  ;;  %2119 = vtanh.f32 %v1492_v48  ;;  %v1042_v52 = vpop.f32.mrf.mxu0 }
 0x146   : > { %v1170_v53 = vpop.f32.mrf.mxu1  ;;  %v2108_v54 = vpop.eup %2107  ;;  %1585 = vst [vmem:[%s2438_s11 + $0x48] sm:$0xff] %v2106_v51  ;;  %v1461_v55 = vadd.f32 %v2424_v17, %v1042_v52 }
 0x147   : > { %v1493_v56 = vadd.f32 %v2424_v17, %v1170_v53  ;;  %1617 = vst [vmem:[%s2438_s11 + $0x148] sm:$0xff] %v2108_v54  ;;  %v1044_v57 = vpop.f32.mrf.mxu0 }
 0x148   : > { %v1172_v58 = vpop.f32.mrf.mxu1  ;;  %2121 = vtanh.f32 %v1461_v55 }
 0x149   : > { %v2110_v59 = vpop.eup %2109  ;;  %2123 = vtanh.f32 %v1493_v56  ;;  %v1047_v60 = vpop.f32.mrf.mxu0 }
 0x14a   : > { %v1175_v61 = vpop.f32.mrf.mxu1  ;;  %v2112_v62 = vpop.eup %2111  ;;  %1586 = vst [vmem:[%s2438_s11 + $0x50] sm:$0xff] %v2110_v59  ;;  %v1462_v63 = vadd.f32 %v2424_v17, %v1047_v60 }
 0x14b   : > { %v1494_v0 = vadd.f32 %v2424_v17, %v1175_v61  ;;  %1618 = vst [vmem:[%s2438_s11 + $0x150] sm:$0xff] %v2112_v62  ;;  %v1049_v1 = vpop.f32.mrf.mxu0 }
 0x14c   : > { %v1177_v2 = vpop.f32.mrf.mxu1  ;;  %2125 = vtanh.f32 %v1462_v63 }
 0x14d   : > { %v2114_v3 = vpop.eup %2113  ;;  %2127 = vtanh.f32 %v1494_v0  ;;  %v1050_v4 = vpop.f32.mrf.mxu0 }
 0x14e   : > { %v1178_v5 = vpop.f32.mrf.mxu1  ;;  %v2116_v6 = vpop.eup %2115  ;;  %1587 = vst [vmem:[%s2438_s11 + $0x58] sm:$0xff] %v2114_v3  ;;  %v1463_v7 = vadd.f32 %v2424_v17, %v1050_v4 }
 0x14f   : > { %v1495_v8 = vadd.f32 %v2424_v17, %v1178_v5  ;;  %1619 = vst [vmem:[%s2438_s11 + $0x158] sm:$0xff] %v2116_v6  ;;  %v1052_v9 = vpop.f32.mrf.mxu0 }
 0x150   : > { %v1180_v10 = vpop.f32.mrf.mxu1  ;;  %2129 = vtanh.f32 %v1463_v7 }
 0x151   : > { %v2118_v11 = vpop.eup %2117  ;;  %2131 = vtanh.f32 %v1495_v8  ;;  %v1055_v12 = vpop.f32.mrf.mxu0 }
 0x152   : > { %v1183_v13 = vpop.f32.mrf.mxu1  ;;  %v2120_v14 = vpop.eup %2119  ;;  %1588 = vst [vmem:[%s2438_s11 + $0x60] sm:$0xff] %v2118_v11  ;;  %v1464_v15 = vadd.f32 %v2424_v17, %v1055_v12 }
 0x153   : > { %v1496_v16 = vadd.f32 %v2424_v17, %v1183_v13  ;;  %1620 = vst [vmem:[%s2438_s11 + $0x160] sm:$0xff] %v2120_v14  ;;  %v1057_v18 = vpop.f32.mrf.mxu0 }
 0x154   : > { %v1185_v19 = vpop.f32.mrf.mxu1  ;;  %2133 = vtanh.f32 %v1464_v15 }
 0x155   : > { %v2122_v20 = vpop.eup %2121  ;;  %2135 = vtanh.f32 %v1496_v16  ;;  %v1058_v21 = vpop.f32.mrf.mxu0 }
 0x156   : > { %v1186_v22 = vpop.f32.mrf.mxu1  ;;  %v2124_v23 = vpop.eup %2123  ;;  %1589 = vst [vmem:[%s2438_s11 + $0x68] sm:$0xff] %v2122_v20  ;;  %v1465_v24 = vadd.f32 %v2424_v17, %v1058_v21 }
 0x157   : > { %v1497_v25 = vadd.f32 %v2424_v17, %v1186_v22  ;;  %1621 = vst [vmem:[%s2438_s11 + $0x168] sm:$0xff] %v2124_v23  ;;  %v1060_v26 = vpop.f32.mrf.mxu0 }
 0x158   : > { %v1188_v27 = vpop.f32.mrf.mxu1  ;;  %2137 = vtanh.f32 %v1465_v24 }
 0x159   : > { %v2126_v28 = vpop.eup %2125  ;;  %2139 = vtanh.f32 %v1497_v25  ;;  %v1063_v29 = vpop.f32.mrf.mxu0 }
 0x15a   : > { %v1191_v30 = vpop.f32.mrf.mxu1  ;;  %v2128_v31 = vpop.eup %2127  ;;  %1590 = vst [vmem:[%s2438_s11 + $0x70] sm:$0xff] %v2126_v28  ;;  %v1466_v32 = vadd.f32 %v2424_v17, %v1063_v29 }
 0x15b   : > { %v1498_v33 = vadd.f32 %v2424_v17, %v1191_v30  ;;  %1622 = vst [vmem:[%s2438_s11 + $0x170] sm:$0xff] %v2128_v31  ;;  %v1065_v34 = vpop.f32.mrf.mxu0 }
 0x15c   : > { %v1193_v35 = vpop.f32.mrf.mxu1  ;;  %2141 = vtanh.f32 %v1466_v32 }
 0x15d   : > { %v2130_v36 = vpop.eup %2129  ;;  %2143 = vtanh.f32 %v1498_v33  ;;  %v1066_v37 = vpop.f32.mrf.mxu0 }
 0x15e   : > { %v1194_v38 = vpop.f32.mrf.mxu1  ;;  %v2132_v39 = vpop.eup %2131  ;;  %1591 = vst [vmem:[%s2438_s11 + $0x78] sm:$0xff] %v2130_v36  ;;  %v1467_v40 = vadd.f32 %v2424_v17, %v1066_v37 }
 0x15f   : > { %v1499_v41 = vadd.f32 %v2424_v17, %v1194_v38  ;;  %1623 = vst [vmem:[%s2438_s11 + $0x178] sm:$0xff] %v2132_v39  ;;  %v1068_v42 = vpop.f32.mrf.mxu0 }
 0x160   : > { %v1196_v43 = vpop.f32.mrf.mxu1  ;;  %2145 = vtanh.f32 %v1467_v40 }
 0x161   : > { %v2134_v44 = vpop.eup %2133  ;;  %2147 = vtanh.f32 %v1499_v41  ;;  %v1071_v45 = vpop.f32.mrf.mxu0 }
 0x162   : > { %v1199_v46 = vpop.f32.mrf.mxu1  ;;  %v2136_v47 = vpop.eup %2135  ;;  %1592 = vst [vmem:[%s2438_s11 + $0x80] sm:$0xff] %v2134_v44  ;;  %v1468_v48 = vadd.f32 %v2424_v17, %v1071_v45 }
 0x163   : > { %v1500_v49 = vadd.f32 %v2424_v17, %v1199_v46  ;;  %1624 = vst [vmem:[%s2438_s11 + $0x180] sm:$0xff] %v2136_v47  ;;  %v1073_v50 = vpop.f32.mrf.mxu0 }
 0x164   : > { %v1201_v51 = vpop.f32.mrf.mxu1  ;;  %2149 = vtanh.f32 %v1468_v48 }
 0x165   : > { %v2138_v52 = vpop.eup %2137  ;;  %2151 = vtanh.f32 %v1500_v49  ;;  %v1074_v53 = vpop.f32.mrf.mxu0 }
 0x166   : > { %v1202_v54 = vpop.f32.mrf.mxu1  ;;  %v2140_v55 = vpop.eup %2139  ;;  %1593 = vst [vmem:[%s2438_s11 + $0x88] sm:$0xff] %v2138_v52  ;;  %v1469_v56 = vadd.f32 %v2424_v17, %v1074_v53 }
 0x167   : > { %v1501_v57 = vadd.f32 %v2424_v17, %v1202_v54  ;;  %1625 = vst [vmem:[%s2438_s11 + $0x188] sm:$0xff] %v2140_v55  ;;  %v1076_v58 = vpop.f32.mrf.mxu0 }
 0x168   : > { %v1204_v59 = vpop.f32.mrf.mxu1  ;;  %2153 = vtanh.f32 %v1469_v56 }
 0x169   : > { %v2142_v60 = vpop.eup %2141  ;;  %2155 = vtanh.f32 %v1501_v57  ;;  %v1079_v61 = vpop.f32.mrf.mxu0 }
 0x16a   : > { %v1207_v62 = vpop.f32.mrf.mxu1  ;;  %v2144_v63 = vpop.eup %2143  ;;  %1594 = vst [vmem:[%s2438_s11 + $0x90] sm:$0xff] %v2142_v60  ;;  %v1470_v0 = vadd.f32 %v2424_v17, %v1079_v61 }
 0x16b   : > { %v1502_v1 = vadd.f32 %v2424_v17, %v1207_v62  ;;  %1626 = vst [vmem:[%s2438_s11 + $0x190] sm:$0xff] %v2144_v63  ;;  %v1081_v2 = vpop.f32.mrf.mxu0 }
 0x16c   : > { %v1209_v3 = vpop.f32.mrf.mxu1  ;;  %2157 = vtanh.f32 %v1470_v0 }
 0x16d   : > { %v2146_v4 = vpop.eup %2145  ;;  %2159 = vtanh.f32 %v1502_v1  ;;  %v1082_v5 = vpop.f32.mrf.mxu0 }
 0x16e   : > { %v1210_v6 = vpop.f32.mrf.mxu1  ;;  %v2148_v7 = vpop.eup %2147  ;;  %1595 = vst [vmem:[%s2438_s11 + $0x98] sm:$0xff] %v2146_v4  ;;  %v1471_v8 = vadd.f32 %v2424_v17, %v1082_v5 }
 0x16f   : > { %v1503_v9 = vadd.f32 %v2424_v17, %v1210_v6  ;;  %1627 = vst [vmem:[%s2438_s11 + $0x198] sm:$0xff] %v2148_v7  ;;  %v1084_v10 = vpop.f32.mrf.mxu0 }
 0x170   : > { %v1212_v11 = vpop.f32.mrf.mxu1  ;;  %2161 = vtanh.f32 %v1471_v8 }
 0x171   : > { %v2150_v12 = vpop.eup %2149  ;;  %2163 = vtanh.f32 %v1503_v9  ;;  %v1087_v13 = vpop.f32.mrf.mxu0 }
 0x172   : > { %v1215_v14 = vpop.f32.mrf.mxu1  ;;  %v2152_v15 = vpop.eup %2151  ;;  %1596 = vst [vmem:[%s2438_s11 + $0xa0] sm:$0xff] %v2150_v12  ;;  %v1472_v16 = vadd.f32 %v2424_v17, %v1087_v13 }
 0x173   : > { %v1504_v18 = vadd.f32 %v2424_v17, %v1215_v14  ;;  %1628 = vst [vmem:[%s2438_s11 + $0x1a0] sm:$0xff] %v2152_v15  ;;  %v1089_v19 = vpop.f32.mrf.mxu0 }
 0x174   : > { %v1217_v20 = vpop.f32.mrf.mxu1  ;;  %2165 = vtanh.f32 %v1472_v16 }
 0x175   : > { %v2154_v21 = vpop.eup %2153  ;;  %2167 = vtanh.f32 %v1504_v18  ;;  %v1090_v22 = vpop.f32.mrf.mxu0 }
 0x176   : > { %v1218_v23 = vpop.f32.mrf.mxu1  ;;  %v2156_v24 = vpop.eup %2155  ;;  %1597 = vst [vmem:[%s2438_s11 + $0xa8] sm:$0xff] %v2154_v21  ;;  %v1473_v25 = vadd.f32 %v2424_v17, %v1090_v22 }
 0x177   : > { %v1505_v26 = vadd.f32 %v2424_v17, %v1218_v23  ;;  %1629 = vst [vmem:[%s2438_s11 + $0x1a8] sm:$0xff] %v2156_v24  ;;  %v1092_v27 = vpop.f32.mrf.mxu0 }
 0x178   : > { %v1220_v28 = vpop.f32.mrf.mxu1  ;;  %2169 = vtanh.f32 %v1473_v25 }
 0x179   : > { %v2158_v29 = vpop.eup %2157  ;;  %2171 = vtanh.f32 %v1505_v26  ;;  %v1095_v30 = vpop.f32.mrf.mxu0 }
 0x17a   : > { %v1223_v31 = vpop.f32.mrf.mxu1  ;;  %v2160_v32 = vpop.eup %2159  ;;  %1598 = vst [vmem:[%s2438_s11 + $0xb0] sm:$0xff] %v2158_v29  ;;  %v1474_v33 = vadd.f32 %v2424_v17, %v1095_v30 }
 0x17b   : > { %v1506_v34 = vadd.f32 %v2424_v17, %v1223_v31  ;;  %1630 = vst [vmem:[%s2438_s11 + $0x1b0] sm:$0xff] %v2160_v32  ;;  %v1097_v35 = vpop.f32.mrf.mxu0 }
 0x17c   : > { %v1225_v36 = vpop.f32.mrf.mxu1  ;;  %2173 = vtanh.f32 %v1474_v33 }
 0x17d   : > { %v2162_v37 = vpop.eup %2161  ;;  %2175 = vtanh.f32 %v1506_v34  ;;  %v1098_v38 = vpop.f32.mrf.mxu0 }
 0x17e   : > { %v1226_v39 = vpop.f32.mrf.mxu1  ;;  %v2164_v40 = vpop.eup %2163  ;;  %1599 = vst [vmem:[%s2438_s11 + $0xb8] sm:$0xff] %v2162_v37  ;;  %v1475_v41 = vadd.f32 %v2424_v17, %v1098_v38 }
 0x17f   : > { %v1507_v42 = vadd.f32 %v2424_v17, %v1226_v39  ;;  %1631 = vst [vmem:[%s2438_s11 + $0x1b8] sm:$0xff] %v2164_v40  ;;  %v1100_v43 = vpop.f32.mrf.mxu0 }
 0x180   : > { %v1228_v44 = vpop.f32.mrf.mxu1  ;;  %2177 = vtanh.f32 %v1475_v41 }
 0x181   : > { %v2166_v45 = vpop.eup %2165  ;;  %2179 = vtanh.f32 %v1507_v42  ;;  %v1103_v46 = vpop.f32.mrf.mxu0 }
 0x182   : > { %v1231_v47 = vpop.f32.mrf.mxu1  ;;  %v2168_v48 = vpop.eup %2167  ;;  %1600 = vst [vmem:[%s2438_s11 + $0xc0] sm:$0xff] %v2166_v45  ;;  %v1476_v49 = vadd.f32 %v2424_v17, %v1103_v46 }
 0x183   : > { %v1508_v50 = vadd.f32 %v2424_v17, %v1231_v47  ;;  %1632 = vst [vmem:[%s2438_s11 + $0x1c0] sm:$0xff] %v2168_v48  ;;  %v1105_v51 = vpop.f32.mrf.mxu0 }
 0x184   : > { %v1233_v52 = vpop.f32.mrf.mxu1  ;;  %2181 = vtanh.f32 %v1476_v49 }
 0x185   : > { %v2170_v53 = vpop.eup %2169  ;;  %2183 = vtanh.f32 %v1508_v50  ;;  %v1106_v54 = vpop.f32.mrf.mxu0 }
 0x186   : > { %v1234_v55 = vpop.f32.mrf.mxu1  ;;  %v2172_v56 = vpop.eup %2171  ;;  %1601 = vst [vmem:[%s2438_s11 + $0xc8] sm:$0xff] %v2170_v53  ;;  %v1477_v57 = vadd.f32 %v2424_v17, %v1106_v54 }
 0x187   : > { %v1509_v58 = vadd.f32 %v2424_v17, %v1234_v55  ;;  %1633 = vst [vmem:[%s2438_s11 + $0x1c8] sm:$0xff] %v2172_v56  ;;  %v1108_v59 = vpop.f32.mrf.mxu0 }
 0x188   : > { %v1236_v60 = vpop.f32.mrf.mxu1  ;;  %2185 = vtanh.f32 %v1477_v57 }
 0x189   : > { %v2174_v61 = vpop.eup %2173  ;;  %2187 = vtanh.f32 %v1509_v58  ;;  %v1111_v62 = vpop.f32.mrf.mxu0 }
 0x18a   : > { %v1239_v63 = vpop.f32.mrf.mxu1  ;;  %v2176_v0 = vpop.eup %2175  ;;  %1602 = vst [vmem:[%s2438_s11 + $0xd0] sm:$0xff] %v2174_v61  ;;  %v1478_v1 = vadd.f32 %v2424_v17, %v1111_v62 }
 0x18b   : > { %v1510_v2 = vadd.f32 %v2424_v17, %v1239_v63  ;;  %1634 = vst [vmem:[%s2438_s11 + $0x1d0] sm:$0xff] %v2176_v0  ;;  %v1113_v3 = vpop.f32.mrf.mxu0 }
 0x18c   : > { %v1241_v4 = vpop.f32.mrf.mxu1  ;;  %2189 = vtanh.f32 %v1478_v1 }
 0x18d   : > { %v2178_v5 = vpop.eup %2177  ;;  %2191 = vtanh.f32 %v1510_v2  ;;  %v1114_v6 = vpop.f32.mrf.mxu0 }
 0x18e   : > { %v1242_v7 = vpop.f32.mrf.mxu1  ;;  %v2180_v8 = vpop.eup %2179  ;;  %1603 = vst [vmem:[%s2438_s11 + $0xd8] sm:$0xff] %v2178_v5  ;;  %v1479_v9 = vadd.f32 %v2424_v17, %v1114_v6 }
 0x18f   : > { %v1511_v10 = vadd.f32 %v2424_v17, %v1242_v7  ;;  %1635 = vst [vmem:[%s2438_s11 + $0x1d8] sm:$0xff] %v2180_v8  ;;  %v1116_v11 = vpop.f32.mrf.mxu0 }
 0x190   : > { %v1244_v12 = vpop.f32.mrf.mxu1  ;;  %2193 = vtanh.f32 %v1479_v9 }
 0x191   : > { %v2182_v13 = vpop.eup %2181  ;;  %2195 = vtanh.f32 %v1511_v10 }
 0x192   : > { %v2184_v14 = vpop.eup %2183  ;;  %1604 = vst [vmem:[%s2438_s11 + $0xe0] sm:$0xff] %v2182_v13 }
 0x193   : > { %1636 = vst [vmem:[%s2438_s11 + $0x1e0] sm:$0xff] %v2184_v14 }
 0x195   : > { %v2186_v15 = vpop.eup %2185 }
 0x196   : > { %v2188_v16 = vpop.eup %2187  ;;  %1605 = vst [vmem:[%s2438_s11 + $0xe8] sm:$0xff] %v2186_v15 }
 0x197   : > { %1637 = vst [vmem:[%s2438_s11 + $0x1e8] sm:$0xff] %v2188_v16 }
 0x199   : > { %v2190_v18 = vpop.eup %2189 }
 0x19a   : > { %v2192_v19 = vpop.eup %2191  ;;  %1606 = vst [vmem:[%s2438_s11 + $0xf0] sm:$0xff] %v2190_v18 }
 0x19b   : > { %1638 = vst [vmem:[%s2438_s11 + $0x1f0] sm:$0xff] %v2192_v19 }
 0x19d   : > { %v2194_v17 = vpop.eup %2193 }
 0x19e   : > { %v2196_v20 = vpop.eup %2195  ;;  %1607 = vst [vmem:[%s2438_s11 + $0xf8] sm:$0xff] %v2194_v17 }
 0x19f   : > { %1639 = vst [vmem:[%s2438_s11 + $0x1f8] sm:$0xff] %v2196_v20 }
 0x1a0 PF: > { %s13_s16 = sadd.s32 1, %s2235_s16   ;;  %s2579_s12 = smov %s2227_s14 }
 0x1a1   : > { %p10_p7 = scmp.ge.s32.totalorder %s13_s16, 18   ;;  %s2580_s13 = smov %s2231_s15 }
 0x1a2   : > { %s2581_s14 = smov %s2584_s17  ;;  %s2582_s15 = smov %s2588_s18 }
 0x1a3   :  { %12 = sbr.rel (!%p10_p7) target bundleno = 3 (0x3), region = 76 }

</bundles_post_ra>
